<compile_context>
chip_gen: v6e
topology: v6e:2x2x1
jax: 0.10.0
libtpu: 0.0.40
codegen_flags: <defaults>
</compile_context>

<pallas_src>
import math
import numpy as np
import jax
import jax.numpy as jnp
from jax.experimental import pallas as pl
from jax.experimental.pallas import tpu as pltpu

NUM_SPHERICAL = 7
NUM_RADIAL = 6
NK = NUM_SPHERICAL * NUM_RADIAL
CUTOFF = 5.0
INV_CUTOFF = 1.0 / CUTOFF
ENVELOPE_EXPONENT = 5
MAX_LANES = 512          # lanes per grid step; tile = 8 * MAX_LANES = 4096 triplets


# ------------------------ deterministic parameter setup ---------------------
def _sph_jn_np(n, x):
    """Spherical Bessel j_n(x) (numpy, float64) via upward recurrence."""
    x = np.asarray(x, dtype=np.float64)
    j0 = np.sin(x) / x
    if n == 0:
        return j0
    j1 = np.sin(x) / (x * x) - np.cos(x) / x
    jm1, jc = j0, j1
    for m in range(1, n):
        jm1, jc = jc, (2 * m + 1) / x * jc - jm1
    return jc


def _bisect(f, lo, hi, iters=80):
    flo = f(lo)
    for _ in range(iters):
        mid = 0.5 * (lo + hi)
        fm = f(mid)
        if flo * fm <= 0.0:
            hi = mid
        else:
            lo, flo = mid, fm
    return 0.5 * (lo + hi)


def _jn_zeros(n, k):
    """First k positive zeros of j_l for l = 0..n-1 (dimenet_utils.Jn_zeros, no scipy)."""
    zerosj = np.zeros((n, k), dtype=np.float64)
    zerosj[0] = np.arange(1, k + 1) * np.pi
    points = np.arange(1, k + n) * np.pi
    racines = np.zeros(k + n - 1, dtype=np.float64)
    for i in range(1, n):
        for j in range(k + n - 1 - i):
            racines[j] = _bisect(
                lambda r, order=i: float(_sph_jn_np(order, r)), points[j], points[j + 1]
            )
        points = racines.copy()
        zerosj[i, :k] = racines[:k]
    return zerosj


_ZEROS64 = _jn_zeros(NUM_SPHERICAL, NUM_RADIAL)
_NORM64 = np.zeros((NUM_SPHERICAL, NUM_RADIAL), dtype=np.float64)
for _l in range(NUM_SPHERICAL):
    for _j in range(NUM_RADIAL):
        _NORM64[_l, _j] = 1.0 / np.sqrt(0.5 * _sph_jn_np(_l + 1, _ZEROS64[_l, _j]) ** 2)

FREQ_NP = _ZEROS64.astype(np.float32)               # (n, k) bessel frequencies z_{l,j}
INV_FREQ_NP = (1.0 / _ZEROS64).astype(np.float32)   # (n, k) reciprocals of frequencies
NORM_NP = _NORM64.astype(np.float32)                # (n, k) bessel normalizers
SPH_PREF = [math.sqrt((2 * l + 1) / (4.0 * math.pi)) for l in range(NUM_SPHERICAL)]


# ---------------------- shared jnp math (kernel + reference) ----------------
def _envelope(d, inv_d):
    """Envelope(exponent=5) using a precomputed 1/d (no divides)."""
    p = ENVELOPE_EXPONENT + 1
    a = -(p + 1) * (p + 2) / 2.0
    b = float(p * (p + 2))
    c = -p * (p + 1) / 2.0
    xp0 = d
    for _ in range(p - 2):              # d ** (p - 1) via repeated multiply
        xp0 = xp0 * d
    xp1 = xp0 * d
    xp2 = xp1 * d
    return (inv_d + a * xp0 + b * xp1 + c * xp2) * (d < 1.0).astype(d.dtype)


def _legendre_all(ct, n):
    """P_0..P_{n-1}(ct) via the standard recurrence (divides replaced by consts)."""
    out = [jnp.ones_like(ct)]
    if n > 1:
        out.append(ct)
    for l in range(2, n):
        out.append(((2 * l - 1) * ct * out[l - 1] - (l - 1) * out[l - 2]) * (1.0 / l))
    return out


def _sph_jl(l, x, inv_x):
    """j_l(x) via upward recurrence; divides replaced with multiplies by 1/x.

    cos(x) is only computed for l >= 1.  Upward recurrence drifts in f32 for
    x << l (tiny distances); the pure-JAX reference uses the identical op
    sequence so the comparison stays tight.
    """
    sx = jnp.sin(x)
    j0 = sx * inv_x
    if l == 0:
        return j0
    cx = jnp.cos(x)
    jm1 = j0
    jc = (j0 - cx) * inv_x
    for m in range(1, l):
        jm1, jc = jc, ((2 * m + 1) * inv_x) * jc - jm1
    return jc


# ------------------------------ Pallas kernel -------------------------------
def _sbl_kernel(da_ref, out_ref):
    # da_ref : (2, 8, L)   slab 0 = gathered raw dist, slab 1 = angle
    #                      (each an (8, L) full-vreg tile of triplets)
    # out_ref: (NUM_SPHERICAL, NUM_RADIAL, 8, L)
    d = da_ref[0] * INV_CUTOFF                            # (8, L)
    ang = da_ref[1]                                       # (8, L)
    inv_d = 1.0 / d                                       # single divide per element
    env = _envelope(d, inv_d)                             # (8, L)
    ct = jnp.cos(ang)                                     # (8, L)
    leg = _legendre_all(ct, NUM_SPHERICAL)                # list of (8, L)

    for l in range(NUM_SPHERICAL):
        # envelope * spherical harmonic Y_l^0 (prefactor baked as a scalar const)
        ecbf = (float(SPH_PREF[l]) * leg[l]) * env        # (8, L)
        for j in range(NUM_RADIAL):
            z = float(FREQ_NP[l, j])                      # compile-time constants
            iz = float(INV_FREQ_NP[l, j])
            nm = float(NORM_NP[l, j])
            x = z * d                                     # (8, L)
            inv_x = iz * inv_d                            # (8, L)
            jl = _sph_jl(l, x, inv_x)                     # (8, L)
            # Lane- and sublane-dense (8, L) store (unmasked vst).
            out_ref[l, j] = ((nm * jl) * ecbf).astype(out_ref.dtype)


def _round_up(x, m):
    return ((x + m - 1) // m) * m


def spherical_basis_layer(dist, angle, idx_kj):
    t = angle.shape[0]
    # Fold rbf[idx_kj] into a scalar gather of dist (tiny XLA gather); the basis
    # is then evaluated per-triplet inside the kernel (same math).
    d_kj = dist[idx_kj]

    # Full-vreg tiling: each grid step handles an (8, L) slab of triplets.
    lanes = max(128, min(MAX_LANES, _round_up(-(-t // 8), 128)))
    tile = 8 * lanes
    tp = _round_up(t, tile)
    pad = tp - t
    if pad:
        d_kj = jnp.concatenate([d_kj, jnp.full((pad,), CUTOFF, d_kj.dtype)])
        angle = jnp.concatenate([angle, jnp.zeros((pad,), angle.dtype)])

    rows = tp // lanes                                    # multiple of 8
    da = jnp.stack([d_kj, angle], axis=0).reshape(2, rows, lanes)

    out = pl.pallas_call(
        _sbl_kernel,
        out_shape=jax.ShapeDtypeStruct(
            (NUM_SPHERICAL, NUM_RADIAL, rows, lanes), jnp.float32),
        grid_spec=pltpu.PrefetchScalarGridSpec(
            num_scalar_prefetch=0,
            grid=(rows // 8,),
            in_specs=[pl.BlockSpec((2, 8, lanes), lambda i: (0, i, 0))],
            out_specs=pl.BlockSpec((NUM_SPHERICAL, NUM_RADIAL, 8, lanes),
                                   lambda i: (0, 0, i, 0)),
        ),
        compiler_params=pltpu.CompilerParams(dimension_semantics=("parallel",)),
    )(da)

    # (n, k, rows, lanes) -> (rows, lanes, n, k) -> (tp, n*k)  (matches .view(-1, n*k))
    out = jnp.transpose(out, (2, 3, 0, 1)).reshape(tp, NK)
    return out[:t]


# ------------------------------ pure-JAX reference --------------------------
def reference(dist, angle, idx_kj):
    d = dist * INV_CUTOFF
    inv_d = 1.0 / d
    blocks = []
    for l in range(NUM_SPHERICAL):
        x = FREQ_NP[l][None, :] * d[:, None]              # (E, k)
        inv_x = INV_FREQ_NP[l][None, :] * inv_d[:, None]  # (E, k)
        blocks.append(_sph_jl(l, x, inv_x) * NORM_NP[l][None, :])
    rbf = jnp.concatenate(blocks, axis=1)                 # (E, n*k)
    rbf = _envelope(d, inv_d)[:, None] * rbf
    ct = jnp.cos(angle)
    leg = _legendre_all(ct, NUM_SPHERICAL)
    cbf = jnp.stack([float(SPH_PREF[l]) * leg[l] for l in range(NUM_SPHERICAL)], axis=1)
    out = (rbf[idx_kj].reshape(-1, NUM_SPHERICAL, NUM_RADIAL)
           * cbf.reshape(-1, NUM_SPHERICAL, 1)).reshape(-1, NK)
    return out


if __name__ == "__main__":
    key = jax.random.PRNGKey(0)
    kd, ka, ki = jax.random.split(key, 3)
    E = 48    # number of edges
    T = 128   # number of triplets
    dist = jax.random.uniform(kd, (E,), jnp.float32, minval=1.0, maxval=CUTOFF - 0.1)
    angle = jax.random.uniform(ka, (T,), jnp.float32, minval=0.0, maxval=math.pi)
    idx_kj = jax.random.randint(ki, (T,), 0, E, dtype=jnp.int32)

    out = spherical_basis_layer(dist, angle, idx_kj)
    out = jax.block_until_ready(out)
    assert out.shape == (T, NK)

    ref = reference(dist, angle, idx_kj)
    np.testing.assert_allclose(np.asarray(out), np.asarray(ref), rtol=1e-4, atol=1e-4)
    print("KERNEL_OK")
</pallas_src>

<mosaic_0001>
module attributes {stable_mosaic.version = 11 : i64} {
  func.func @_sbl_kernel(%arg0: i32, %arg1: memref<2x8x128xf32, #tpu.memory_space<vmem>>, %arg2: memref<7x6x8x128xf32, #tpu.memory_space<vmem>>) attributes {dimension_semantics = [#tpu.dimension_semantics<parallel>], iteration_bounds = array<i64: 1>, scalar_prefetch = 0 : i64, scratch_operands = 0 : i64, tpu.core_type = #tpu.core_type<tc>, window_params = [{transform_indices = @transform_0, window_bounds = array<i64: 2, 8, 128>}, {transform_indices = @transform_1, window_bounds = array<i64: 7, 6, 8, 128>}]} {
    %c0 = arith.constant 0 : index
    %c0_0 = arith.constant 0 : index
    %c0_1 = arith.constant 0 : index
    %0 = vector.load %arg1[%c0, %c0_0, %c0_1] : memref<2x8x128xf32, #tpu.memory_space<vmem>>, vector<1x8x128xf32>
    %1 = vector.shape_cast %0 : vector<1x8x128xf32> to vector<8x128xf32>
    %cst = arith.constant 2.000000e-01 : f32
    %2 = vector.broadcast %cst : f32 to vector<8x128xf32>
    %3 = arith.mulf %1, %2 : vector<8x128xf32>
    %c1 = arith.constant 1 : index
    %c0_2 = arith.constant 0 : index
    %c0_3 = arith.constant 0 : index
    %4 = vector.load %arg1[%c1, %c0_2, %c0_3] : memref<2x8x128xf32, #tpu.memory_space<vmem>>, vector<1x8x128xf32>
    %5 = vector.shape_cast %4 : vector<1x8x128xf32> to vector<8x128xf32>
    %cst_4 = arith.constant 1.000000e+00 : f32
    %6 = vector.broadcast %cst_4 : f32 to vector<8x128xf32>
    %7 = arith.divf %6, %3 : vector<8x128xf32>
    %8 = arith.mulf %3, %3 : vector<8x128xf32>
    %9 = arith.mulf %8, %3 : vector<8x128xf32>
    %10 = arith.mulf %9, %3 : vector<8x128xf32>
    %11 = arith.mulf %10, %3 : vector<8x128xf32>
    %12 = arith.mulf %11, %3 : vector<8x128xf32>
    %13 = arith.mulf %12, %3 : vector<8x128xf32>
    %cst_5 = arith.constant -2.800000e+01 : f32
    %14 = vector.broadcast %cst_5 : f32 to vector<8x128xf32>
    %15 = arith.mulf %14, %11 : vector<8x128xf32>
    %16 = arith.addf %7, %15 : vector<8x128xf32>
    %cst_6 = arith.constant 4.800000e+01 : f32
    %17 = vector.broadcast %cst_6 : f32 to vector<8x128xf32>
    %18 = arith.mulf %17, %12 : vector<8x128xf32>
    %19 = arith.addf %16, %18 : vector<8x128xf32>
    %cst_7 = arith.constant -2.100000e+01 : f32
    %20 = vector.broadcast %cst_7 : f32 to vector<8x128xf32>
    %21 = arith.mulf %20, %13 : vector<8x128xf32>
    %22 = arith.addf %19, %21 : vector<8x128xf32>
    %cst_8 = arith.constant 1.000000e+00 : f32
    %23 = vector.broadcast %cst_8 : f32 to vector<8x128xf32>
    %24 = arith.cmpf olt, %3, %23 : vector<8x128xf32>
    %25 = arith.extui %24 : vector<8x128xi1> to vector<8x128xi32>
    %26 = arith.sitofp %25 : vector<8x128xi32> to vector<8x128xf32>
    %27 = arith.mulf %22, %26 : vector<8x128xf32>
    %28 = math.cos %5 : vector<8x128xf32>
    %cst_9 = arith.constant 1.000000e+00 : f32
    %29 = vector.broadcast %cst_9 : f32 to vector<8x128xf32>
    %cst_10 = arith.constant 3.000000e+00 : f32
    %30 = vector.broadcast %cst_10 : f32 to vector<8x128xf32>
    %31 = arith.mulf %30, %28 : vector<8x128xf32>
    %32 = arith.mulf %31, %28 : vector<8x128xf32>
    %cst_11 = arith.constant 1.000000e+00 : f32
    %33 = vector.broadcast %cst_11 : f32 to vector<8x128xf32>
    %34 = arith.mulf %33, %29 : vector<8x128xf32>
    %35 = arith.subf %32, %34 : vector<8x128xf32>
    %cst_12 = arith.constant 5.000000e-01 : f32
    %36 = vector.broadcast %cst_12 : f32 to vector<8x128xf32>
    %37 = arith.mulf %35, %36 : vector<8x128xf32>
    %cst_13 = arith.constant 5.000000e+00 : f32
    %38 = vector.broadcast %cst_13 : f32 to vector<8x128xf32>
    %39 = arith.mulf %38, %28 : vector<8x128xf32>
    %40 = arith.mulf %39, %37 : vector<8x128xf32>
    %cst_14 = arith.constant 2.000000e+00 : f32
    %41 = vector.broadcast %cst_14 : f32 to vector<8x128xf32>
    %42 = arith.mulf %41, %28 : vector<8x128xf32>
    %43 = arith.subf %40, %42 : vector<8x128xf32>
    %cst_15 = arith.constant 0.333333343 : f32
    %44 = vector.broadcast %cst_15 : f32 to vector<8x128xf32>
    %45 = arith.mulf %43, %44 : vector<8x128xf32>
    %cst_16 = arith.constant 7.000000e+00 : f32
    %46 = vector.broadcast %cst_16 : f32 to vector<8x128xf32>
    %47 = arith.mulf %46, %28 : vector<8x128xf32>
    %48 = arith.mulf %47, %45 : vector<8x128xf32>
    %cst_17 = arith.constant 3.000000e+00 : f32
    %49 = vector.broadcast %cst_17 : f32 to vector<8x128xf32>
    %50 = arith.mulf %49, %37 : vector<8x128xf32>
    %51 = arith.subf %48, %50 : vector<8x128xf32>
    %cst_18 = arith.constant 2.500000e-01 : f32
    %52 = vector.broadcast %cst_18 : f32 to vector<8x128xf32>
    %53 = arith.mulf %51, %52 : vector<8x128xf32>
    %cst_19 = arith.constant 9.000000e+00 : f32
    %54 = vector.broadcast %cst_19 : f32 to vector<8x128xf32>
    %55 = arith.mulf %54, %28 : vector<8x128xf32>
    %56 = arith.mulf %55, %53 : vector<8x128xf32>
    %cst_20 = arith.constant 4.000000e+00 : f32
    %57 = vector.broadcast %cst_20 : f32 to vector<8x128xf32>
    %58 = arith.mulf %57, %45 : vector<8x128xf32>
    %59 = arith.subf %56, %58 : vector<8x128xf32>
    %cst_21 = arith.constant 2.000000e-01 : f32
    %60 = vector.broadcast %cst_21 : f32 to vector<8x128xf32>
    %61 = arith.mulf %59, %60 : vector<8x128xf32>
    %cst_22 = arith.constant 1.100000e+01 : f32
    %62 = vector.broadcast %cst_22 : f32 to vector<8x128xf32>
    %63 = arith.mulf %62, %28 : vector<8x128xf32>
    %64 = arith.mulf %63, %61 : vector<8x128xf32>
    %cst_23 = arith.constant 5.000000e+00 : f32
    %65 = vector.broadcast %cst_23 : f32 to vector<8x128xf32>
    %66 = arith.mulf %65, %53 : vector<8x128xf32>
    %67 = arith.subf %64, %66 : vector<8x128xf32>
    %cst_24 = arith.constant 0.166666672 : f32
    %68 = vector.broadcast %cst_24 : f32 to vector<8x128xf32>
    %69 = arith.mulf %67, %68 : vector<8x128xf32>
    %cst_25 = arith.constant 0.282094806 : f32
    %70 = vector.broadcast %cst_25 : f32 to vector<8x128xf32>
    %71 = arith.mulf %70, %29 : vector<8x128xf32>
    %72 = arith.mulf %71, %27 : vector<8x128xf32>
    %cst_26 = arith.constant 3.14159274 : f32
    %73 = vector.broadcast %cst_26 : f32 to vector<8x128xf32>
    %74 = arith.mulf %73, %3 : vector<8x128xf32>
    %cst_27 = arith.constant 0.318309873 : f32
    %75 = vector.broadcast %cst_27 : f32 to vector<8x128xf32>
    %76 = arith.mulf %75, %7 : vector<8x128xf32>
    %77 = math.sin %74 : vector<8x128xf32>
    %78 = arith.mulf %77, %76 : vector<8x128xf32>
    %cst_28 = arith.constant 4.44288301 : f32
    %79 = vector.broadcast %cst_28 : f32 to vector<8x128xf32>
    %80 = arith.mulf %79, %78 : vector<8x128xf32>
    %81 = arith.mulf %80, %72 : vector<8x128xf32>
    %c0_29 = arith.constant 0 : index
    %c0_30 = arith.constant 0 : index
    %c0_31 = arith.constant 0 : index
    %c0_32 = arith.constant 0 : index
    %82 = vector.load %arg2[%c0_29, %c0_30, %c0_31, %c0_32] : memref<7x6x8x128xf32, #tpu.memory_space<vmem>>, vector<1x1x8x128xf32>
    %83 = vector.shape_cast %82 : vector<1x1x8x128xf32> to vector<8x128xf32>
    %84 = vector.shape_cast %81 : vector<8x128xf32> to vector<1x1x8x128xf32>
    tpu.vector_store %arg2[%c0_29, %c0_30, %c0_31, %c0_32], %84 {strides = array<i32>} : memref<7x6x8x128xf32, #tpu.memory_space<vmem>>, vector<1x1x8x128xf32>,
    %cst_33 = arith.constant 6.28318548 : f32
    %85 = vector.broadcast %cst_33 : f32 to vector<8x128xf32>
    %86 = arith.mulf %85, %3 : vector<8x128xf32>
    %cst_34 = arith.constant 0.159154937 : f32
    %87 = vector.broadcast %cst_34 : f32 to vector<8x128xf32>
    %88 = arith.mulf %87, %7 : vector<8x128xf32>
    %89 = math.sin %86 : vector<8x128xf32>
    %90 = arith.mulf %89, %88 : vector<8x128xf32>
    %cst_35 = arith.constant 8.88576602 : f32
    %91 = vector.broadcast %cst_35 : f32 to vector<8x128xf32>
    %92 = arith.mulf %91, %90 : vector<8x128xf32>
    %93 = arith.mulf %92, %72 : vector<8x128xf32>
    %c0_36 = arith.constant 0 : index
    %c1_37 = arith.constant 1 : index
    %c0_38 = arith.constant 0 : index
    %c0_39 = arith.constant 0 : index
    %94 = vector.load %arg2[%c0_36, %c1_37, %c0_38, %c0_39] : memref<7x6x8x128xf32, #tpu.memory_space<vmem>>, vector<1x1x8x128xf32>
    %95 = vector.shape_cast %94 : vector<1x1x8x128xf32> to vector<8x128xf32>
    %96 = vector.shape_cast %93 : vector<8x128xf32> to vector<1x1x8x128xf32>
    tpu.vector_store %arg2[%c0_36, %c1_37, %c0_38, %c0_39], %96 {strides = array<i32>} : memref<7x6x8x128xf32, #tpu.memory_space<vmem>>, vector<1x1x8x128xf32>,
    %cst_40 = arith.constant 9.42477798 : f32
    %97 = vector.broadcast %cst_40 : f32 to vector<8x128xf32>
    %98 = arith.mulf %97, %3 : vector<8x128xf32>
    %cst_41 = arith.constant 0.106103294 : f32
    %99 = vector.broadcast %cst_41 : f32 to vector<8x128xf32>
    %100 = arith.mulf %99, %7 : vector<8x128xf32>
    %101 = math.sin %98 : vector<8x128xf32>
    %102 = arith.mulf %101, %100 : vector<8x128xf32>
    %cst_42 = arith.constant 13.3286486 : f32
    %103 = vector.broadcast %cst_42 : f32 to vector<8x128xf32>
    %104 = arith.mulf %103, %102 : vector<8x128xf32>
    %105 = arith.mulf %104, %72 : vector<8x128xf32>
    %c0_43 = arith.constant 0 : index
    %c2 = arith.constant 2 : index
    %c0_44 = arith.constant 0 : index
    %c0_45 = arith.constant 0 : index
    %106 = vector.load %arg2[%c0_43, %c2, %c0_44, %c0_45] : memref<7x6x8x128xf32, #tpu.memory_space<vmem>>, vector<1x1x8x128xf32>
    %107 = vector.shape_cast %106 : vector<1x1x8x128xf32> to vector<8x128xf32>
    %108 = vector.shape_cast %105 : vector<8x128xf32> to vector<1x1x8x128xf32>
    tpu.vector_store %arg2[%c0_43, %c2, %c0_44, %c0_45], %108 {strides = array<i32>} : memref<7x6x8x128xf32, #tpu.memory_space<vmem>>, vector<1x1x8x128xf32>,
    %cst_46 = arith.constant 12.566371 : f32
    %109 = vector.broadcast %cst_46 : f32 to vector<8x128xf32>
    %110 = arith.mulf %109, %3 : vector<8x128xf32>
    %cst_47 = arith.constant 0.0795774683 : f32
    %111 = vector.broadcast %cst_47 : f32 to vector<8x128xf32>
    %112 = arith.mulf %111, %7 : vector<8x128xf32>
    %113 = math.sin %110 : vector<8x128xf32>
    %114 = arith.mulf %113, %112 : vector<8x128xf32>
    %cst_48 = arith.constant 17.7715321 : f32
    %115 = vector.broadcast %cst_48 : f32 to vector<8x128xf32>
    %116 = arith.mulf %115, %114 : vector<8x128xf32>
    %117 = arith.mulf %116, %72 : vector<8x128xf32>
    %c0_49 = arith.constant 0 : index
    %c3 = arith.constant 3 : index
    %c0_50 = arith.constant 0 : index
    %c0_51 = arith.constant 0 : index
    %118 = vector.load %arg2[%c0_49, %c3, %c0_50, %c0_51] : memref<7x6x8x128xf32, #tpu.memory_space<vmem>>, vector<1x1x8x128xf32>
    %119 = vector.shape_cast %118 : vector<1x1x8x128xf32> to vector<8x128xf32>
    %120 = vector.shape_cast %117 : vector<8x128xf32> to vector<1x1x8x128xf32>
    tpu.vector_store %arg2[%c0_49, %c3, %c0_50, %c0_51], %120 {strides = array<i32>} : memref<7x6x8x128xf32, #tpu.memory_space<vmem>>, vector<1x1x8x128xf32>,
    %cst_52 = arith.constant 15.707963 : f32
    %121 = vector.broadcast %cst_52 : f32 to vector<8x128xf32>
    %122 = arith.mulf %121, %3 : vector<8x128xf32>
    %cst_53 = arith.constant 0.0636619776 : f32
    %123 = vector.broadcast %cst_53 : f32 to vector<8x128xf32>
    %124 = arith.mulf %123, %7 : vector<8x128xf32>
    %125 = math.sin %122 : vector<8x128xf32>
    %126 = arith.mulf %125, %124 : vector<8x128xf32>
    %cst_54 = arith.constant 22.2144146 : f32
    %127 = vector.broadcast %cst_54 : f32 to vector<8x128xf32>
    %128 = arith.mulf %127, %126 : vector<8x128xf32>
    %129 = arith.mulf %128, %72 : vector<8x128xf32>
    %c0_55 = arith.constant 0 : index
    %c4 = arith.constant 4 : index
    %c0_56 = arith.constant 0 : index
    %c0_57 = arith.constant 0 : index
    %130 = vector.load %arg2[%c0_55, %c4, %c0_56, %c0_57] : memref<7x6x8x128xf32, #tpu.memory_space<vmem>>, vector<1x1x8x128xf32>
    %131 = vector.shape_cast %130 : vector<1x1x8x128xf32> to vector<8x128xf32>
    %132 = vector.shape_cast %129 : vector<8x128xf32> to vector<1x1x8x128xf32>
    tpu.vector_store %arg2[%c0_55, %c4, %c0_56, %c0_57], %132 {strides = array<i32>} : memref<7x6x8x128xf32, #tpu.memory_space<vmem>>, vector<1x1x8x128xf32>,
    %cst_58 = arith.constant 18.849556 : f32
    %133 = vector.broadcast %cst_58 : f32 to vector<8x128xf32>
    %134 = arith.mulf %133, %3 : vector<8x128xf32>
    %cst_59 = arith.constant 0.0530516468 : f32
    %135 = vector.broadcast %cst_59 : f32 to vector<8x128xf32>
    %136 = arith.mulf %135, %7 : vector<8x128xf32>
    %137 = math.sin %134 : vector<8x128xf32>
    %138 = arith.mulf %137, %136 : vector<8x128xf32>
    %cst_60 = arith.constant 26.6572971 : f32
    %139 = vector.broadcast %cst_60 : f32 to vector<8x128xf32>
    %140 = arith.mulf %139, %138 : vector<8x128xf32>
    %141 = arith.mulf %140, %72 : vector<8x128xf32>
    %c0_61 = arith.constant 0 : index
    %c5 = arith.constant 5 : index
    %c0_62 = arith.constant 0 : index
    %c0_63 = arith.constant 0 : index
    %142 = vector.load %arg2[%c0_61, %c5, %c0_62, %c0_63] : memref<7x6x8x128xf32, #tpu.memory_space<vmem>>, vector<1x1x8x128xf32>
    %143 = vector.shape_cast %142 : vector<1x1x8x128xf32> to vector<8x128xf32>
    %144 = vector.shape_cast %141 : vector<8x128xf32> to vector<1x1x8x128xf32>
    tpu.vector_store %arg2[%c0_61, %c5, %c0_62, %c0_63], %144 {strides = array<i32>} : memref<7x6x8x128xf32, #tpu.memory_space<vmem>>, vector<1x1x8x128xf32>,
    %cst_64 = arith.constant 0.488602519 : f32
    %145 = vector.broadcast %cst_64 : f32 to vector<8x128xf32>
    %146 = arith.mulf %145, %28 : vector<8x128xf32>
    %147 = arith.mulf %146, %27 : vector<8x128xf32>
    %cst_65 = arith.constant 4.49340963 : f32
    %148 = vector.broadcast %cst_65 : f32 to vector<8x128xf32>
    %149 = arith.mulf %148, %3 : vector<8x128xf32>
    %cst_66 = arith.constant 0.222548157 : f32
    %150 = vector.broadcast %cst_66 : f32 to vector<8x128xf32>
    %151 = arith.mulf %150, %7 : vector<8x128xf32>
    %152 = math.sin %149 : vector<8x128xf32>
    %153 = arith.mulf %152, %151 : vector<8x128xf32>
    %154 = math.cos %149 : vector<8x128xf32>
    %155 = arith.subf %153, %154 : vector<8x128xf32>
    %156 = arith.mulf %155, %151 : vector<8x128xf32>
    %cst_67 = arith.constant 6.51010417 : f32
    %157 = vector.broadcast %cst_67 : f32 to vector<8x128xf32>
    %158 = arith.mulf %157, %156 : vector<8x128xf32>
    %159 = arith.mulf %158, %147 : vector<8x128xf32>
    %c1_68 = arith.constant 1 : index
    %c0_69 = arith.constant 0 : index
    %c0_70 = arith.constant 0 : index
    %c0_71 = arith.constant 0 : index
    %160 = vector.load %arg2[%c1_68, %c0_69, %c0_70, %c0_71] : memref<7x6x8x128xf32, #tpu.memory_space<vmem>>, vector<1x1x8x128xf32>
    %161 = vector.shape_cast %160 : vector<1x1x8x128xf32> to vector<8x128xf32>
    %162 = vector.shape_cast %159 : vector<8x128xf32> to vector<1x1x8x128xf32>
    tpu.vector_store %arg2[%c1_68, %c0_69, %c0_70, %c0_71], %162 {strides = array<i32>} : memref<7x6x8x128xf32, #tpu.memory_space<vmem>>, vector<1x1x8x128xf32>,
    %cst_72 = arith.constant 7.72525167 : f32
    %163 = vector.broadcast %cst_72 : f32 to vector<8x128xf32>
    %164 = arith.mulf %163, %3 : vector<8x128xf32>
    %cst_73 = arith.constant 0.129445612 : f32
    %165 = vector.broadcast %cst_73 : f32 to vector<8x128xf32>
    %166 = arith.mulf %165, %7 : vector<8x128xf32>
    %167 = math.sin %164 : vector<8x128xf32>
    %168 = arith.mulf %167, %166 : vector<8x128xf32>
    %169 = math.cos %164 : vector<8x128xf32>
    %170 = arith.subf %168, %169 : vector<8x128xf32>
    %171 = arith.mulf %170, %166 : vector<8x128xf32>
    %cst_74 = arith.constant 11.0163078 : f32
    %172 = vector.broadcast %cst_74 : f32 to vector<8x128xf32>
    %173 = arith.mulf %172, %171 : vector<8x128xf32>
    %174 = arith.mulf %173, %147 : vector<8x128xf32>
    %c1_75 = arith.constant 1 : index
    %c1_76 = arith.constant 1 : index
    %c0_77 = arith.constant 0 : index
    %c0_78 = arith.constant 0 : index
    %175 = vector.load %arg2[%c1_75, %c1_76, %c0_77, %c0_78] : memref<7x6x8x128xf32, #tpu.memory_space<vmem>>, vector<1x1x8x128xf32>
    %176 = vector.shape_cast %175 : vector<1x1x8x128xf32> to vector<8x128xf32>
    %177 = vector.shape_cast %174 : vector<8x128xf32> to vector<1x1x8x128xf32>
    tpu.vector_store %arg2[%c1_75, %c1_76, %c0_77, %c0_78], %177 {strides = array<i32>} : memref<7x6x8x128xf32, #tpu.memory_space<vmem>>, vector<1x1x8x128xf32>,
    %cst_79 = arith.constant 10.9041214 : f32
    %178 = vector.broadcast %cst_79 : f32 to vector<8x128xf32>
    %179 = arith.mulf %178, %3 : vector<8x128xf32>
    %cst_80 = arith.constant 0.091708444 : f32
    %180 = vector.broadcast %cst_80 : f32 to vector<8x128xf32>
    %181 = arith.mulf %180, %7 : vector<8x128xf32>
    %182 = math.sin %179 : vector<8x128xf32>
    %183 = arith.mulf %182, %181 : vector<8x128xf32>
    %184 = math.cos %179 : vector<8x128xf32>
    %185 = arith.subf %183, %184 : vector<8x128xf32>
    %186 = arith.mulf %185, %181 : vector<8x128xf32>
    %cst_81 = arith.constant 15.4854689 : f32
    %187 = vector.broadcast %cst_81 : f32 to vector<8x128xf32>
    %188 = arith.mulf %187, %186 : vector<8x128xf32>
    %189 = arith.mulf %188, %147 : vector<8x128xf32>
    %c1_82 = arith.constant 1 : index
    %c2_83 = arith.constant 2 : index
    %c0_84 = arith.constant 0 : index
    %c0_85 = arith.constant 0 : index
    %190 = vector.load %arg2[%c1_82, %c2_83, %c0_84, %c0_85] : memref<7x6x8x128xf32, #tpu.memory_space<vmem>>, vector<1x1x8x128xf32>
    %191 = vector.shape_cast %190 : vector<1x1x8x128xf32> to vector<8x128xf32>
    %192 = vector.shape_cast %189 : vector<8x128xf32> to vector<1x1x8x128xf32>
    tpu.vector_store %arg2[%c1_82, %c2_83, %c0_84, %c0_85], %192 {strides = array<i32>} : memref<7x6x8x128xf32, #tpu.memory_space<vmem>>, vector<1x1x8x128xf32>,
    %cst_86 = arith.constant 14.0661936 : f32
    %193 = vector.broadcast %cst_86 : f32 to vector<8x128xf32>
    %194 = arith.mulf %193, %3 : vector<8x128xf32>
    %cst_87 = arith.constant 0.0710924342 : f32
    %195 = vector.broadcast %cst_87 : f32 to vector<8x128xf32>
    %196 = arith.mulf %195, %7 : vector<8x128xf32>
    %197 = math.sin %194 : vector<8x128xf32>
    %198 = arith.mulf %197, %196 : vector<8x128xf32>
    %199 = math.cos %194 : vector<8x128xf32>
    %200 = arith.subf %198, %199 : vector<8x128xf32>
    %201 = arith.mulf %200, %196 : vector<8x128xf32>
    %cst_88 = arith.constant 19.9428082 : f32
    %202 = vector.broadcast %cst_88 : f32 to vector<8x128xf32>
    %203 = arith.mulf %202, %201 : vector<8x128xf32>
    %204 = arith.mulf %203, %147 : vector<8x128xf32>
    %c1_89 = arith.constant 1 : index
    %c3_90 = arith.constant 3 : index
    %c0_91 = arith.constant 0 : index
    %c0_92 = arith.constant 0 : index
    %205 = vector.load %arg2[%c1_89, %c3_90, %c0_91, %c0_92] : memref<7x6x8x128xf32, #tpu.memory_space<vmem>>, vector<1x1x8x128xf32>
    %206 = vector.shape_cast %205 : vector<1x1x8x128xf32> to vector<8x128xf32>
    %207 = vector.shape_cast %204 : vector<8x128xf32> to vector<1x1x8x128xf32>
    tpu.vector_store %arg2[%c1_89, %c3_90, %c0_91, %c0_92], %207 {strides = array<i32>} : memref<7x6x8x128xf32, #tpu.memory_space<vmem>>, vector<1x1x8x128xf32>,
    %cst_93 = arith.constant 17.2207546 : f32
    %208 = vector.broadcast %cst_93 : f32 to vector<8x128xf32>
    %209 = arith.mulf %208, %3 : vector<8x128xf32>
    %cst_94 = arith.constant 0.0580694638 : f32
    %210 = vector.broadcast %cst_94 : f32 to vector<8x128xf32>
    %211 = arith.mulf %210, %7 : vector<8x128xf32>
    %212 = math.sin %209 : vector<8x128xf32>
    %213 = arith.mulf %212, %211 : vector<8x128xf32>
    %214 = math.cos %209 : vector<8x128xf32>
    %215 = arith.subf %213, %214 : vector<8x128xf32>
    %216 = arith.mulf %215, %211 : vector<8x128xf32>
    %cst_95 = arith.constant 24.3948517 : f32
    %217 = vector.broadcast %cst_95 : f32 to vector<8x128xf32>
    %218 = arith.mulf %217, %216 : vector<8x128xf32>
    %219 = arith.mulf %218, %147 : vector<8x128xf32>
    %c1_96 = arith.constant 1 : index
    %c4_97 = arith.constant 4 : index
    %c0_98 = arith.constant 0 : index
    %c0_99 = arith.constant 0 : index
    %220 = vector.load %arg2[%c1_96, %c4_97, %c0_98, %c0_99] : memref<7x6x8x128xf32, #tpu.memory_space<vmem>>, vector<1x1x8x128xf32>
    %221 = vector.shape_cast %220 : vector<1x1x8x128xf32> to vector<8x128xf32>
    %222 = vector.shape_cast %219 : vector<8x128xf32> to vector<1x1x8x128xf32>
    tpu.vector_store %arg2[%c1_96, %c4_97, %c0_98, %c0_99], %222 {strides = array<i32>} : memref<7x6x8x128xf32, #tpu.memory_space<vmem>>, vector<1x1x8x128xf32>,
    %cst_100 = arith.constant 20.3713036 : f32
    %223 = vector.broadcast %cst_100 : f32 to vector<8x128xf32>
    %224 = arith.mulf %223, %3 : vector<8x128xf32>
    %cst_101 = arith.constant 0.0490886606 : f32
    %225 = vector.broadcast %cst_101 : f32 to vector<8x128xf32>
    %226 = arith.mulf %225, %7 : vector<8x128xf32>
    %227 = math.sin %224 : vector<8x128xf32>
    %228 = arith.mulf %227, %226 : vector<8x128xf32>
    %229 = math.cos %224 : vector<8x128xf32>
    %230 = arith.subf %228, %229 : vector<8x128xf32>
    %231 = arith.mulf %230, %226 : vector<8x128xf32>
    %cst_102 = arith.constant 28.8440628 : f32
    %232 = vector.broadcast %cst_102 : f32 to vector<8x128xf32>
    %233 = arith.mulf %232, %231 : vector<8x128xf32>
    %234 = arith.mulf %233, %147 : vector<8x128xf32>
    %c1_103 = arith.constant 1 : index
    %c5_104 = arith.constant 5 : index
    %c0_105 = arith.constant 0 : index
    %c0_106 = arith.constant 0 : index
    %235 = vector.load %arg2[%c1_103, %c5_104, %c0_105, %c0_106] : memref<7x6x8x128xf32, #tpu.memory_space<vmem>>, vector<1x1x8x128xf32>
    %236 = vector.shape_cast %235 : vector<1x1x8x128xf32> to vector<8x128xf32>
    %237 = vector.shape_cast %234 : vector<8x128xf32> to vector<1x1x8x128xf32>
    tpu.vector_store %arg2[%c1_103, %c5_104, %c0_105, %c0_106], %237 {strides = array<i32>} : memref<7x6x8x128xf32, #tpu.memory_space<vmem>>, vector<1x1x8x128xf32>,
    %cst_107 = arith.constant 0.63078314 : f32
    %238 = vector.broadcast %cst_107 : f32 to vector<8x128xf32>
    %239 = arith.mulf %238, %37 : vector<8x128xf32>
    %240 = arith.mulf %239, %27 : vector<8x128xf32>
    %cst_108 = arith.constant 5.76345921 : f32
    %241 = vector.broadcast %cst_108 : f32 to vector<8x128xf32>
    %242 = arith.mulf %241, %3 : vector<8x128xf32>
    %cst_109 = arith.constant 0.173506916 : f32
    %243 = vector.broadcast %cst_109 : f32 to vector<8x128xf32>
    %244 = arith.mulf %243, %7 : vector<8x128xf32>
    %245 = math.sin %242 : vector<8x128xf32>
    %246 = arith.mulf %245, %244 : vector<8x128xf32>
    %247 = math.cos %242 : vector<8x128xf32>
    %248 = arith.subf %246, %247 : vector<8x128xf32>
    %249 = arith.mulf %248, %244 : vector<8x128xf32>
    %cst_110 = arith.constant 3.000000e+00 : f32
    %250 = vector.broadcast %cst_110 : f32 to vector<8x128xf32>
    %251 = arith.mulf %250, %244 : vector<8x128xf32>
    %252 = arith.mulf %251, %249 : vector<8x128xf32>
    %253 = arith.subf %252, %246 : vector<8x128xf32>
    %cst_111 = arith.constant 8.5426464 : f32
    %254 = vector.broadcast %cst_111 : f32 to vector<8x128xf32>
    %255 = arith.mulf %254, %253 : vector<8x128xf32>
    %256 = arith.mulf %255, %240 : vector<8x128xf32>
    %c2_112 = arith.constant 2 : index
    %c0_113 = arith.constant 0 : index
    %c0_114 = arith.constant 0 : index
    %c0_115 = arith.constant 0 : index
    %257 = vector.load %arg2[%c2_112, %c0_113, %c0_114, %c0_115] : memref<7x6x8x128xf32, #tpu.memory_space<vmem>>, vector<1x1x8x128xf32>
    %258 = vector.shape_cast %257 : vector<1x1x8x128xf32> to vector<8x128xf32>
    %259 = vector.shape_cast %256 : vector<8x128xf32> to vector<1x1x8x128xf32>
    tpu.vector_store %arg2[%c2_112, %c0_113, %c0_114, %c0_115], %259 {strides = array<i32>} : memref<7x6x8x128xf32, #tpu.memory_space<vmem>>, vector<1x1x8x128xf32>,
    %cst_116 = arith.constant 9.09501171 : f32
    %260 = vector.broadcast %cst_116 : f32 to vector<8x128xf32>
    %261 = arith.mulf %260, %3 : vector<8x128xf32>
    %cst_117 = arith.constant 0.109950386 : f32
    %262 = vector.broadcast %cst_117 : f32 to vector<8x128xf32>
    %263 = arith.mulf %262, %7 : vector<8x128xf32>
    %264 = math.sin %261 : vector<8x128xf32>
    %265 = arith.mulf %264, %263 : vector<8x128xf32>
    %266 = math.cos %261 : vector<8x128xf32>
    %267 = arith.subf %265, %266 : vector<8x128xf32>
    %268 = arith.mulf %267, %263 : vector<8x128xf32>
    %cst_118 = arith.constant 3.000000e+00 : f32
    %269 = vector.broadcast %cst_118 : f32 to vector<8x128xf32>
    %270 = arith.mulf %269, %263 : vector<8x128xf32>
    %271 = arith.mulf %270, %268 : vector<8x128xf32>
    %272 = arith.subf %271, %265 : vector<8x128xf32>
    %cst_119 = arith.constant 13.101758 : f32
    %273 = vector.broadcast %cst_119 : f32 to vector<8x128xf32>
    %274 = arith.mulf %273, %272 : vector<8x128xf32>
    %275 = arith.mulf %274, %240 : vector<8x128xf32>
    %c2_120 = arith.constant 2 : index
    %c1_121 = arith.constant 1 : index
    %c0_122 = arith.constant 0 : index
    %c0_123 = arith.constant 0 : index
    %276 = vector.load %arg2[%c2_120, %c1_121, %c0_122, %c0_123] : memref<7x6x8x128xf32, #tpu.memory_space<vmem>>, vector<1x1x8x128xf32>
    %277 = vector.shape_cast %276 : vector<1x1x8x128xf32> to vector<8x128xf32>
    %278 = vector.shape_cast %275 : vector<8x128xf32> to vector<1x1x8x128xf32>
    tpu.vector_store %arg2[%c2_120, %c1_121, %c0_122, %c0_123], %278 {strides = array<i32>} : memref<7x6x8x128xf32, #tpu.memory_space<vmem>>, vector<1x1x8x128xf32>,
    %cst_124 = arith.constant 12.3229408 : f32
    %279 = vector.broadcast %cst_124 : f32 to vector<8x128xf32>
    %280 = arith.mulf %279, %3 : vector<8x128xf32>
    %cst_125 = arith.constant 0.0811494589 : f32
    %281 = vector.broadcast %cst_125 : f32 to vector<8x128xf32>
    %282 = arith.mulf %281, %7 : vector<8x128xf32>
    %283 = math.sin %280 : vector<8x128xf32>
    %284 = arith.mulf %283, %282 : vector<8x128xf32>
    %285 = math.cos %280 : vector<8x128xf32>
    %286 = arith.subf %284, %285 : vector<8x128xf32>
    %287 = arith.mulf %286, %282 : vector<8x128xf32>
    %cst_126 = arith.constant 3.000000e+00 : f32
    %288 = vector.broadcast %cst_126 : f32 to vector<8x128xf32>
    %289 = arith.mulf %288, %282 : vector<8x128xf32>
    %290 = arith.mulf %289, %287 : vector<8x128xf32>
    %291 = arith.subf %290, %284 : vector<8x128xf32>
    %cst_127 = arith.constant 17.6019402 : f32
    %292 = vector.broadcast %cst_127 : f32 to vector<8x128xf32>
    %293 = arith.mulf %292, %291 : vector<8x128xf32>
    %294 = arith.mulf %293, %240 : vector<8x128xf32>
    %c2_128 = arith.constant 2 : index
    %c2_129 = arith.constant 2 : index
    %c0_130 = arith.constant 0 : index
    %c0_131 = arith.constant 0 : index
    %295 = vector.load %arg2[%c2_128, %c2_129, %c0_130, %c0_131] : memref<7x6x8x128xf32, #tpu.memory_space<vmem>>, vector<1x1x8x128xf32>
    %296 = vector.shape_cast %295 : vector<1x1x8x128xf32> to vector<8x128xf32>
    %297 = vector.shape_cast %294 : vector<8x128xf32> to vector<1x1x8x128xf32>
    tpu.vector_store %arg2[%c2_128, %c2_129, %c0_130, %c0_131], %297 {strides = array<i32>} : memref<7x6x8x128xf32, #tpu.memory_space<vmem>>, vector<1x1x8x128xf32>,
    %cst_132 = arith.constant 15.5146027 : f32
    %298 = vector.broadcast %cst_132 : f32 to vector<8x128xf32>
    %299 = arith.mulf %298, %3 : vector<8x128xf32>
    %cst_133 = arith.constant 0.0644554049 : f32
    %300 = vector.broadcast %cst_133 : f32 to vector<8x128xf32>
    %301 = arith.mulf %300, %7 : vector<8x128xf32>
    %302 = math.sin %299 : vector<8x128xf32>
    %303 = arith.mulf %302, %301 : vector<8x128xf32>
    %304 = math.cos %299 : vector<8x128xf32>
    %305 = arith.subf %303, %304 : vector<8x128xf32>
    %306 = arith.mulf %305, %301 : vector<8x128xf32>
    %cst_134 = arith.constant 3.000000e+00 : f32
    %307 = vector.broadcast %cst_134 : f32 to vector<8x128xf32>
    %308 = arith.mulf %307, %301 : vector<8x128xf32>
    %309 = arith.mulf %308, %306 : vector<8x128xf32>
    %310 = arith.subf %309, %303 : vector<8x128xf32>
    %cst_135 = arith.constant 22.0789623 : f32
    %311 = vector.broadcast %cst_135 : f32 to vector<8x128xf32>
    %312 = arith.mulf %311, %310 : vector<8x128xf32>
    %313 = arith.mulf %312, %240 : vector<8x128xf32>
    %c2_136 = arith.constant 2 : index
    %c3_137 = arith.constant 3 : index
    %c0_138 = arith.constant 0 : index
    %c0_139 = arith.constant 0 : index
    %314 = vector.load %arg2[%c2_136, %c3_137, %c0_138, %c0_139] : memref<7x6x8x128xf32, #tpu.memory_space<vmem>>, vector<1x1x8x128xf32>
    %315 = vector.shape_cast %314 : vector<1x1x8x128xf32> to vector<8x128xf32>
    %316 = vector.shape_cast %313 : vector<8x128xf32> to vector<1x1x8x128xf32>
    tpu.vector_store %arg2[%c2_136, %c3_137, %c0_138, %c0_139], %316 {strides = array<i32>} : memref<7x6x8x128xf32, #tpu.memory_space<vmem>>, vector<1x1x8x128xf32>,
    %cst_140 = arith.constant 18.6890354 : f32
    %317 = vector.broadcast %cst_140 : f32 to vector<8x128xf32>
    %318 = arith.mulf %317, %3 : vector<8x128xf32>
    %cst_141 = arith.constant 0.0535073057 : f32
    %319 = vector.broadcast %cst_141 : f32 to vector<8x128xf32>
    %320 = arith.mulf %319, %7 : vector<8x128xf32>
    %321 = math.sin %318 : vector<8x128xf32>
    %322 = arith.mulf %321, %320 : vector<8x128xf32>
    %323 = math.cos %318 : vector<8x128xf32>
    %324 = arith.subf %322, %323 : vector<8x128xf32>
    %325 = arith.mulf %324, %320 : vector<8x128xf32>
    %cst_142 = arith.constant 3.000000e+00 : f32
    %326 = vector.broadcast %cst_142 : f32 to vector<8x128xf32>
    %327 = arith.mulf %326, %320 : vector<8x128xf32>
    %328 = arith.mulf %327, %325 : vector<8x128xf32>
    %329 = arith.subf %328, %322 : vector<8x128xf32>
    %cst_143 = arith.constant 26.5445232 : f32
    %330 = vector.broadcast %cst_143 : f32 to vector<8x128xf32>
    %331 = arith.mulf %330, %329 : vector<8x128xf32>
    %332 = arith.mulf %331, %240 : vector<8x128xf32>
    %c2_144 = arith.constant 2 : index
    %c4_145 = arith.constant 4 : index
    %c0_146 = arith.constant 0 : index
    %c0_147 = arith.constant 0 : index
    %333 = vector.load %arg2[%c2_144, %c4_145, %c0_146, %c0_147] : memref<7x6x8x128xf32, #tpu.memory_space<vmem>>, vector<1x1x8x128xf32>
    %334 = vector.shape_cast %333 : vector<1x1x8x128xf32> to vector<8x128xf32>
    %335 = vector.shape_cast %332 : vector<8x128xf32> to vector<1x1x8x128xf32>
    tpu.vector_store %arg2[%c2_144, %c4_145, %c0_146, %c0_147], %335 {strides = array<i32>} : memref<7x6x8x128xf32, #tpu.memory_space<vmem>>, vector<1x1x8x128xf32>,
    %cst_148 = arith.constant 21.8538742 : f32
    %336 = vector.broadcast %cst_148 : f32 to vector<8x128xf32>
    %337 = arith.mulf %336, %3 : vector<8x128xf32>
    %cst_149 = arith.constant 0.0457584783 : f32
    %338 = vector.broadcast %cst_149 : f32 to vector<8x128xf32>
    %339 = arith.mulf %338, %7 : vector<8x128xf32>
    %340 = math.sin %337 : vector<8x128xf32>
    %341 = arith.mulf %340, %339 : vector<8x128xf32>
    %342 = math.cos %337 : vector<8x128xf32>
    %343 = arith.subf %341, %342 : vector<8x128xf32>
    %344 = arith.mulf %343, %339 : vector<8x128xf32>
    %cst_150 = arith.constant 3.000000e+00 : f32
    %345 = vector.broadcast %cst_150 : f32 to vector<8x128xf32>
    %346 = arith.mulf %345, %339 : vector<8x128xf32>
    %347 = arith.mulf %346, %344 : vector<8x128xf32>
    %348 = arith.subf %347, %341 : vector<8x128xf32>
    %cst_151 = arith.constant 31.0035686 : f32
    %349 = vector.broadcast %cst_151 : f32 to vector<8x128xf32>
    %350 = arith.mulf %349, %348 : vector<8x128xf32>
    %351 = arith.mulf %350, %240 : vector<8x128xf32>
    %c2_152 = arith.constant 2 : index
    %c5_153 = arith.constant 5 : index
    %c0_154 = arith.constant 0 : index
    %c0_155 = arith.constant 0 : index
    %352 = vector.load %arg2[%c2_152, %c5_153, %c0_154, %c0_155] : memref<7x6x8x128xf32, #tpu.memory_space<vmem>>, vector<1x1x8x128xf32>
    %353 = vector.shape_cast %352 : vector<1x1x8x128xf32> to vector<8x128xf32>
    %354 = vector.shape_cast %351 : vector<8x128xf32> to vector<1x1x8x128xf32>
    tpu.vector_store %arg2[%c2_152, %c5_153, %c0_154, %c0_155], %354 {strides = array<i32>} : memref<7x6x8x128xf32, #tpu.memory_space<vmem>>, vector<1x1x8x128xf32>,
    %cst_156 = arith.constant 0.746352672 : f32
    %355 = vector.broadcast %cst_156 : f32 to vector<8x128xf32>
    %356 = arith.mulf %355, %45 : vector<8x128xf32>
    %357 = arith.mulf %356, %27 : vector<8x128xf32>
    %cst_157 = arith.constant 6.98793221 : f32
    %358 = vector.broadcast %cst_157 : f32 to vector<8x128xf32>
    %359 = arith.mulf %358, %3 : vector<8x128xf32>
    %cst_158 = arith.constant 0.143103853 : f32
    %360 = vector.broadcast %cst_158 : f32 to vector<8x128xf32>
    %361 = arith.mulf %360, %7 : vector<8x128xf32>
    %362 = math.sin %359 : vector<8x128xf32>
    %363 = arith.mulf %362, %361 : vector<8x128xf32>
    %364 = math.cos %359 : vector<8x128xf32>
    %365 = arith.subf %363, %364 : vector<8x128xf32>
    %366 = arith.mulf %365, %361 : vector<8x128xf32>
    %cst_159 = arith.constant 3.000000e+00 : f32
    %367 = vector.broadcast %cst_159 : f32 to vector<8x128xf32>
    %368 = arith.mulf %367, %361 : vector<8x128xf32>
    %369 = arith.mulf %368, %366 : vector<8x128xf32>
    %370 = arith.subf %369, %363 : vector<8x128xf32>
    %cst_160 = arith.constant 5.000000e+00 : f32
    %371 = vector.broadcast %cst_160 : f32 to vector<8x128xf32>
    %372 = arith.mulf %371, %361 : vector<8x128xf32>
    %373 = arith.mulf %372, %370 : vector<8x128xf32>
    %374 = arith.subf %373, %366 : vector<8x128xf32>
    %cst_161 = arith.constant 10.5685472 : f32
    %375 = vector.broadcast %cst_161 : f32 to vector<8x128xf32>
    %376 = arith.mulf %375, %374 : vector<8x128xf32>
    %377 = arith.mulf %376, %357 : vector<8x128xf32>
    %c3_162 = arith.constant 3 : index
    %c0_163 = arith.constant 0 : index
    %c0_164 = arith.constant 0 : index
    %c0_165 = arith.constant 0 : index
    %378 = vector.load %arg2[%c3_162, %c0_163, %c0_164, %c0_165] : memref<7x6x8x128xf32, #tpu.memory_space<vmem>>, vector<1x1x8x128xf32>
    %379 = vector.shape_cast %378 : vector<1x1x8x128xf32> to vector<8x128xf32>
    %380 = vector.shape_cast %377 : vector<8x128xf32> to vector<1x1x8x128xf32>
    tpu.vector_store %arg2[%c3_162, %c0_163, %c0_164, %c0_165], %380 {strides = array<i32>} : memref<7x6x8x128xf32, #tpu.memory_space<vmem>>, vector<1x1x8x128xf32>,
    %cst_166 = arith.constant 10.4171181 : f32
    %381 = vector.broadcast %cst_166 : f32 to vector<8x128xf32>
    %382 = arith.mulf %381, %3 : vector<8x128xf32>
    %cst_167 = arith.constant 0.0959958359 : f32
    %383 = vector.broadcast %cst_167 : f32 to vector<8x128xf32>
    %384 = arith.mulf %383, %7 : vector<8x128xf32>
    %385 = math.sin %382 : vector<8x128xf32>
    %386 = arith.mulf %385, %384 : vector<8x128xf32>
    %387 = math.cos %382 : vector<8x128xf32>
    %388 = arith.subf %386, %387 : vector<8x128xf32>
    %389 = arith.mulf %388, %384 : vector<8x128xf32>
    %cst_168 = arith.constant 3.000000e+00 : f32
    %390 = vector.broadcast %cst_168 : f32 to vector<8x128xf32>
    %391 = arith.mulf %390, %384 : vector<8x128xf32>
    %392 = arith.mulf %391, %389 : vector<8x128xf32>
    %393 = arith.subf %392, %386 : vector<8x128xf32>
    %cst_169 = arith.constant 5.000000e+00 : f32
    %394 = vector.broadcast %cst_169 : f32 to vector<8x128xf32>
    %395 = arith.mulf %394, %384 : vector<8x128xf32>
    %396 = arith.mulf %395, %393 : vector<8x128xf32>
    %397 = arith.subf %396, %389 : vector<8x128xf32>
    %cst_170 = arith.constant 15.1624632 : f32
    %398 = vector.broadcast %cst_170 : f32 to vector<8x128xf32>
    %399 = arith.mulf %398, %397 : vector<8x128xf32>
    %400 = arith.mulf %399, %357 : vector<8x128xf32>
    %c3_171 = arith.constant 3 : index
    %c1_172 = arith.constant 1 : index
    %c0_173 = arith.constant 0 : index
    %c0_174 = arith.constant 0 : index
    %401 = vector.load %arg2[%c3_171, %c1_172, %c0_173, %c0_174] : memref<7x6x8x128xf32, #tpu.memory_space<vmem>>, vector<1x1x8x128xf32>
    %402 = vector.shape_cast %401 : vector<1x1x8x128xf32> to vector<8x128xf32>
    %403 = vector.shape_cast %400 : vector<8x128xf32> to vector<1x1x8x128xf32>
    tpu.vector_store %arg2[%c3_171, %c1_172, %c0_173, %c0_174], %403 {strides = array<i32>} : memref<7x6x8x128xf32, #tpu.memory_space<vmem>>, vector<1x1x8x128xf32>,
    %cst_175 = arith.constant 13.6980228 : f32
    %404 = vector.broadcast %cst_175 : f32 to vector<8x128xf32>
    %405 = arith.mulf %404, %3 : vector<8x128xf32>
    %cst_176 = arith.constant 0.0730032325 : f32
    %406 = vector.broadcast %cst_176 : f32 to vector<8x128xf32>
    %407 = arith.mulf %406, %7 : vector<8x128xf32>
    %408 = math.sin %405 : vector<8x128xf32>
    %409 = arith.mulf %408, %407 : vector<8x128xf32>
    %410 = math.cos %405 : vector<8x128xf32>
    %411 = arith.subf %409, %410 : vector<8x128xf32>
    %412 = arith.mulf %411, %407 : vector<8x128xf32>
    %cst_177 = arith.constant 3.000000e+00 : f32
    %413 = vector.broadcast %cst_177 : f32 to vector<8x128xf32>
    %414 = arith.mulf %413, %407 : vector<8x128xf32>
    %415 = arith.mulf %414, %412 : vector<8x128xf32>
    %416 = arith.subf %415, %409 : vector<8x128xf32>
    %cst_178 = arith.constant 5.000000e+00 : f32
    %417 = vector.broadcast %cst_178 : f32 to vector<8x128xf32>
    %418 = arith.mulf %417, %407 : vector<8x128xf32>
    %419 = arith.mulf %418, %416 : vector<8x128xf32>
    %420 = arith.subf %419, %412 : vector<8x128xf32>
    %cst_179 = arith.constant 19.6917267 : f32
    %421 = vector.broadcast %cst_179 : f32 to vector<8x128xf32>
    %422 = arith.mulf %421, %420 : vector<8x128xf32>
    %423 = arith.mulf %422, %357 : vector<8x128xf32>
    %c3_180 = arith.constant 3 : index
    %c2_181 = arith.constant 2 : index
    %c0_182 = arith.constant 0 : index
    %c0_183 = arith.constant 0 : index
    %424 = vector.load %arg2[%c3_180, %c2_181, %c0_182, %c0_183] : memref<7x6x8x128xf32, #tpu.memory_space<vmem>>, vector<1x1x8x128xf32>
    %425 = vector.shape_cast %424 : vector<1x1x8x128xf32> to vector<8x128xf32>
    %426 = vector.shape_cast %423 : vector<8x128xf32> to vector<1x1x8x128xf32>
    tpu.vector_store %arg2[%c3_180, %c2_181, %c0_182, %c0_183], %426 {strides = array<i32>} : memref<7x6x8x128xf32, #tpu.memory_space<vmem>>, vector<1x1x8x128xf32>,
    %cst_184 = arith.constant 16.9236221 : f32
    %427 = vector.broadcast %cst_184 : f32 to vector<8x128xf32>
    %428 = arith.mulf %427, %3 : vector<8x128xf32>
    %cst_185 = arith.constant 0.0590890087 : f32
    %429 = vector.broadcast %cst_185 : f32 to vector<8x128xf32>
    %430 = arith.mulf %429, %7 : vector<8x128xf32>
    %431 = math.sin %428 : vector<8x128xf32>
    %432 = arith.mulf %431, %430 : vector<8x128xf32>
    %433 = math.cos %428 : vector<8x128xf32>
    %434 = arith.subf %432, %433 : vector<8x128xf32>
    %435 = arith.mulf %434, %430 : vector<8x128xf32>
    %cst_186 = arith.constant 3.000000e+00 : f32
    %436 = vector.broadcast %cst_186 : f32 to vector<8x128xf32>
    %437 = arith.mulf %436, %430 : vector<8x128xf32>
    %438 = arith.mulf %437, %435 : vector<8x128xf32>
    %439 = arith.subf %438, %432 : vector<8x128xf32>
    %cst_187 = arith.constant 5.000000e+00 : f32
    %440 = vector.broadcast %cst_187 : f32 to vector<8x128xf32>
    %441 = arith.mulf %440, %430 : vector<8x128xf32>
    %442 = arith.mulf %441, %439 : vector<8x128xf32>
    %443 = arith.subf %442, %435 : vector<8x128xf32>
    %cst_188 = arith.constant 24.1896191 : f32
    %444 = vector.broadcast %cst_188 : f32 to vector<8x128xf32>
    %445 = arith.mulf %444, %443 : vector<8x128xf32>
    %446 = arith.mulf %445, %357 : vector<8x128xf32>
    %c3_189 = arith.constant 3 : index
    %c3_190 = arith.constant 3 : index
    %c0_191 = arith.constant 0 : index
    %c0_192 = arith.constant 0 : index
    %447 = vector.load %arg2[%c3_189, %c3_190, %c0_191, %c0_192] : memref<7x6x8x128xf32, #tpu.memory_space<vmem>>, vector<1x1x8x128xf32>
    %448 = vector.shape_cast %447 : vector<1x1x8x128xf32> to vector<8x128xf32>
    %449 = vector.shape_cast %446 : vector<8x128xf32> to vector<1x1x8x128xf32>
    tpu.vector_store %arg2[%c3_189, %c3_190, %c0_191, %c0_192], %449 {strides = array<i32>} : memref<7x6x8x128xf32, #tpu.memory_space<vmem>>, vector<1x1x8x128xf32>,
    %cst_193 = arith.constant 20.1218071 : f32
    %450 = vector.broadcast %cst_193 : f32 to vector<8x128xf32>
    %451 = arith.mulf %450, %3 : vector<8x128xf32>
    %cst_194 = arith.constant 0.0496973284 : f32
    %452 = vector.broadcast %cst_194 : f32 to vector<8x128xf32>
    %453 = arith.mulf %452, %7 : vector<8x128xf32>
    %454 = math.sin %451 : vector<8x128xf32>
    %455 = arith.mulf %454, %453 : vector<8x128xf32>
    %456 = math.cos %451 : vector<8x128xf32>
    %457 = arith.subf %455, %456 : vector<8x128xf32>
    %458 = arith.mulf %457, %453 : vector<8x128xf32>
    %cst_195 = arith.constant 3.000000e+00 : f32
    %459 = vector.broadcast %cst_195 : f32 to vector<8x128xf32>
    %460 = arith.mulf %459, %453 : vector<8x128xf32>
    %461 = arith.mulf %460, %458 : vector<8x128xf32>
    %462 = arith.subf %461, %455 : vector<8x128xf32>
    %cst_196 = arith.constant 5.000000e+00 : f32
    %463 = vector.broadcast %cst_196 : f32 to vector<8x128xf32>
    %464 = arith.mulf %463, %453 : vector<8x128xf32>
    %465 = arith.mulf %464, %462 : vector<8x128xf32>
    %466 = arith.subf %465, %458 : vector<8x128xf32>
    %cst_197 = arith.constant 28.6705284 : f32
    %467 = vector.broadcast %cst_197 : f32 to vector<8x128xf32>
    %468 = arith.mulf %467, %466 : vector<8x128xf32>
    %469 = arith.mulf %468, %357 : vector<8x128xf32>
    %c3_198 = arith.constant 3 : index
    %c4_199 = arith.constant 4 : index
    %c0_200 = arith.constant 0 : index
    %c0_201 = arith.constant 0 : index
    %470 = vector.load %arg2[%c3_198, %c4_199, %c0_200, %c0_201] : memref<7x6x8x128xf32, #tpu.memory_space<vmem>>, vector<1x1x8x128xf32>
    %471 = vector.shape_cast %470 : vector<1x1x8x128xf32> to vector<8x128xf32>
    %472 = vector.shape_cast %469 : vector<8x128xf32> to vector<1x1x8x128xf32>
    tpu.vector_store %arg2[%c3_198, %c4_199, %c0_200, %c0_201], %472 {strides = array<i32>} : memref<7x6x8x128xf32, #tpu.memory_space<vmem>>, vector<1x1x8x128xf32>,
    %cst_202 = arith.constant 23.3042469 : f32
    %473 = vector.broadcast %cst_202 : f32 to vector<8x128xf32>
    %474 = arith.mulf %473, %3 : vector<8x128xf32>
    %cst_203 = arith.constant 0.0429106317 : f32
    %475 = vector.broadcast %cst_203 : f32 to vector<8x128xf32>
    %476 = arith.mulf %475, %7 : vector<8x128xf32>
    %477 = math.sin %474 : vector<8x128xf32>
    %478 = arith.mulf %477, %476 : vector<8x128xf32>
    %479 = math.cos %474 : vector<8x128xf32>
    %480 = arith.subf %478, %479 : vector<8x128xf32>
    %481 = arith.mulf %480, %476 : vector<8x128xf32>
    %cst_204 = arith.constant 3.000000e+00 : f32
    %482 = vector.broadcast %cst_204 : f32 to vector<8x128xf32>
    %483 = arith.mulf %482, %476 : vector<8x128xf32>
    %484 = arith.mulf %483, %481 : vector<8x128xf32>
    %485 = arith.subf %484, %478 : vector<8x128xf32>
    %cst_205 = arith.constant 5.000000e+00 : f32
    %486 = vector.broadcast %cst_205 : f32 to vector<8x128xf32>
    %487 = arith.mulf %486, %476 : vector<8x128xf32>
    %488 = arith.mulf %487, %485 : vector<8x128xf32>
    %489 = arith.subf %488, %481 : vector<8x128xf32>
    %cst_206 = arith.constant 33.1412582 : f32
    %490 = vector.broadcast %cst_206 : f32 to vector<8x128xf32>
    %491 = arith.mulf %490, %489 : vector<8x128xf32>
    %492 = arith.mulf %491, %357 : vector<8x128xf32>
    %c3_207 = arith.constant 3 : index
    %c5_208 = arith.constant 5 : index
    %c0_209 = arith.constant 0 : index
    %c0_210 = arith.constant 0 : index
    %493 = vector.load %arg2[%c3_207, %c5_208, %c0_209, %c0_210] : memref<7x6x8x128xf32, #tpu.memory_space<vmem>>, vector<1x1x8x128xf32>
    %494 = vector.shape_cast %493 : vector<1x1x8x128xf32> to vector<8x128xf32>
    %495 = vector.shape_cast %492 : vector<8x128xf32> to vector<1x1x8x128xf32>
    tpu.vector_store %arg2[%c3_207, %c5_208, %c0_209, %c0_210], %495 {strides = array<i32>} : memref<7x6x8x128xf32, #tpu.memory_space<vmem>>, vector<1x1x8x128xf32>,
    %cst_211 = arith.constant 0.846284389 : f32
    %496 = vector.broadcast %cst_211 : f32 to vector<8x128xf32>
    %497 = arith.mulf %496, %53 : vector<8x128xf32>
    %498 = arith.mulf %497, %27 : vector<8x128xf32>
    %cst_212 = arith.constant 8.18256187 : f32
    %499 = vector.broadcast %cst_212 : f32 to vector<8x128xf32>
    %500 = arith.mulf %499, %3 : vector<8x128xf32>
    %cst_213 = arith.constant 0.122211121 : f32
    %501 = vector.broadcast %cst_213 : f32 to vector<8x128xf32>
    %502 = arith.mulf %501, %7 : vector<8x128xf32>
    %503 = math.sin %500 : vector<8x128xf32>
    %504 = arith.mulf %503, %502 : vector<8x128xf32>
    %505 = math.cos %500 : vector<8x128xf32>
    %506 = arith.subf %504, %505 : vector<8x128xf32>
    %507 = arith.mulf %506, %502 : vector<8x128xf32>
    %cst_214 = arith.constant 3.000000e+00 : f32
    %508 = vector.broadcast %cst_214 : f32 to vector<8x128xf32>
    %509 = arith.mulf %508, %502 : vector<8x128xf32>
    %510 = arith.mulf %509, %507 : vector<8x128xf32>
    %511 = arith.subf %510, %504 : vector<8x128xf32>
    %cst_215 = arith.constant 5.000000e+00 : f32
    %512 = vector.broadcast %cst_215 : f32 to vector<8x128xf32>
    %513 = arith.mulf %512, %502 : vector<8x128xf32>
    %514 = arith.mulf %513, %511 : vector<8x128xf32>
    %515 = arith.subf %514, %507 : vector<8x128xf32>
    %cst_216 = arith.constant 7.000000e+00 : f32
    %516 = vector.broadcast %cst_216 : f32 to vector<8x128xf32>
    %517 = arith.mulf %516, %502 : vector<8x128xf32>
    %518 = arith.mulf %517, %515 : vector<8x128xf32>
    %519 = arith.subf %518, %511 : vector<8x128xf32>
    %cst_217 = arith.constant 12.5983076 : f32
    %520 = vector.broadcast %cst_217 : f32 to vector<8x128xf32>
    %521 = arith.mulf %520, %519 : vector<8x128xf32>
    %522 = arith.mulf %521, %498 : vector<8x128xf32>
    %c4_218 = arith.constant 4 : index
    %c0_219 = arith.constant 0 : index
    %c0_220 = arith.constant 0 : index
    %c0_221 = arith.constant 0 : index
    %523 = vector.load %arg2[%c4_218, %c0_219, %c0_220, %c0_221] : memref<7x6x8x128xf32, #tpu.memory_space<vmem>>, vector<1x1x8x128xf32>
    %524 = vector.shape_cast %523 : vector<1x1x8x128xf32> to vector<8x128xf32>
    %525 = vector.shape_cast %522 : vector<8x128xf32> to vector<1x1x8x128xf32>
    tpu.vector_store %arg2[%c4_218, %c0_219, %c0_220, %c0_221], %525 {strides = array<i32>} : memref<7x6x8x128xf32, #tpu.memory_space<vmem>>, vector<1x1x8x128xf32>,
    %cst_222 = arith.constant 11.7049074 : f32
    %526 = vector.broadcast %cst_222 : f32 to vector<8x128xf32>
    %527 = arith.mulf %526, %3 : vector<8x128xf32>
    %cst_223 = arith.constant 0.0854342505 : f32
    %528 = vector.broadcast %cst_223 : f32 to vector<8x128xf32>
    %529 = arith.mulf %528, %7 : vector<8x128xf32>
    %530 = math.sin %527 : vector<8x128xf32>
    %531 = arith.mulf %530, %529 : vector<8x128xf32>
    %532 = math.cos %527 : vector<8x128xf32>
    %533 = arith.subf %531, %532 : vector<8x128xf32>
    %534 = arith.mulf %533, %529 : vector<8x128xf32>
    %cst_224 = arith.constant 3.000000e+00 : f32
    %535 = vector.broadcast %cst_224 : f32 to vector<8x128xf32>
    %536 = arith.mulf %535, %529 : vector<8x128xf32>
    %537 = arith.mulf %536, %534 : vector<8x128xf32>
    %538 = arith.subf %537, %531 : vector<8x128xf32>
    %cst_225 = arith.constant 5.000000e+00 : f32
    %539 = vector.broadcast %cst_225 : f32 to vector<8x128xf32>
    %540 = arith.mulf %539, %529 : vector<8x128xf32>
    %541 = arith.mulf %540, %538 : vector<8x128xf32>
    %542 = arith.subf %541, %534 : vector<8x128xf32>
    %cst_226 = arith.constant 7.000000e+00 : f32
    %543 = vector.broadcast %cst_226 : f32 to vector<8x128xf32>
    %544 = arith.mulf %543, %529 : vector<8x128xf32>
    %545 = arith.mulf %544, %542 : vector<8x128xf32>
    %546 = arith.subf %545, %538 : vector<8x128xf32>
    %cst_227 = arith.constant 17.2092075 : f32
    %547 = vector.broadcast %cst_227 : f32 to vector<8x128xf32>
    %548 = arith.mulf %547, %546 : vector<8x128xf32>
    %549 = arith.mulf %548, %498 : vector<8x128xf32>
    %c4_228 = arith.constant 4 : index
    %c1_229 = arith.constant 1 : index
    %c0_230 = arith.constant 0 : index
    %c0_231 = arith.constant 0 : index
    %550 = vector.load %arg2[%c4_228, %c1_229, %c0_230, %c0_231] : memref<7x6x8x128xf32, #tpu.memory_space<vmem>>, vector<1x1x8x128xf32>
    %551 = vector.shape_cast %550 : vector<1x1x8x128xf32> to vector<8x128xf32>
    %552 = vector.shape_cast %549 : vector<8x128xf32> to vector<1x1x8x128xf32>
    tpu.vector_store %arg2[%c4_228, %c1_229, %c0_230, %c0_231], %552 {strides = array<i32>} : memref<7x6x8x128xf32, #tpu.memory_space<vmem>>, vector<1x1x8x128xf32>,
    %cst_232 = arith.constant 15.0396643 : f32
    %553 = vector.broadcast %cst_232 : f32 to vector<8x128xf32>
    %554 = arith.mulf %553, %3 : vector<8x128xf32>
    %cst_233 = arith.constant 0.0664908439 : f32
    %555 = vector.broadcast %cst_233 : f32 to vector<8x128xf32>
    %556 = arith.mulf %555, %7 : vector<8x128xf32>
    %557 = math.sin %554 : vector<8x128xf32>
    %558 = arith.mulf %557, %556 : vector<8x128xf32>
    %559 = math.cos %554 : vector<8x128xf32>
    %560 = arith.subf %558, %559 : vector<8x128xf32>
    %561 = arith.mulf %560, %556 : vector<8x128xf32>
    %cst_234 = arith.constant 3.000000e+00 : f32
    %562 = vector.broadcast %cst_234 : f32 to vector<8x128xf32>
    %563 = arith.mulf %562, %556 : vector<8x128xf32>
    %564 = arith.mulf %563, %561 : vector<8x128xf32>
    %565 = arith.subf %564, %558 : vector<8x128xf32>
    %cst_235 = arith.constant 5.000000e+00 : f32
    %566 = vector.broadcast %cst_235 : f32 to vector<8x128xf32>
    %567 = arith.mulf %566, %556 : vector<8x128xf32>
    %568 = arith.mulf %567, %565 : vector<8x128xf32>
    %569 = arith.subf %568, %561 : vector<8x128xf32>
    %cst_236 = arith.constant 7.000000e+00 : f32
    %570 = vector.broadcast %cst_236 : f32 to vector<8x128xf32>
    %571 = arith.mulf %570, %556 : vector<8x128xf32>
    %572 = arith.mulf %571, %569 : vector<8x128xf32>
    %573 = arith.subf %572, %565 : vector<8x128xf32>
    %cst_237 = arith.constant 21.7632751 : f32
    %574 = vector.broadcast %cst_237 : f32 to vector<8x128xf32>
    %575 = arith.mulf %574, %573 : vector<8x128xf32>
    %576 = arith.mulf %575, %498 : vector<8x128xf32>
    %c4_238 = arith.constant 4 : index
    %c2_239 = arith.constant 2 : index
    %c0_240 = arith.constant 0 : index
    %c0_241 = arith.constant 0 : index
    %577 = vector.load %arg2[%c4_238, %c2_239, %c0_240, %c0_241] : memref<7x6x8x128xf32, #tpu.memory_space<vmem>>, vector<1x1x8x128xf32>
    %578 = vector.shape_cast %577 : vector<1x1x8x128xf32> to vector<8x128xf32>
    %579 = vector.shape_cast %576 : vector<8x128xf32> to vector<1x1x8x128xf32>
    tpu.vector_store %arg2[%c4_238, %c2_239, %c0_240, %c0_241], %579 {strides = array<i32>} : memref<7x6x8x128xf32, #tpu.memory_space<vmem>>, vector<1x1x8x128xf32>,
    %cst_242 = arith.constant 18.3012562 : f32
    %580 = vector.broadcast %cst_242 : f32 to vector<8x128xf32>
    %581 = arith.mulf %580, %3 : vector<8x128xf32>
    %cst_243 = arith.constant 0.0546410568 : f32
    %582 = vector.broadcast %cst_243 : f32 to vector<8x128xf32>
    %583 = arith.mulf %582, %7 : vector<8x128xf32>
    %584 = math.sin %581 : vector<8x128xf32>
    %585 = arith.mulf %584, %583 : vector<8x128xf32>
    %586 = math.cos %581 : vector<8x128xf32>
    %587 = arith.subf %585, %586 : vector<8x128xf32>
    %588 = arith.mulf %587, %583 : vector<8x128xf32>
    %cst_244 = arith.constant 3.000000e+00 : f32
    %589 = vector.broadcast %cst_244 : f32 to vector<8x128xf32>
    %590 = arith.mulf %589, %583 : vector<8x128xf32>
    %591 = arith.mulf %590, %588 : vector<8x128xf32>
    %592 = arith.subf %591, %585 : vector<8x128xf32>
    %cst_245 = arith.constant 5.000000e+00 : f32
    %593 = vector.broadcast %cst_245 : f32 to vector<8x128xf32>
    %594 = arith.mulf %593, %583 : vector<8x128xf32>
    %595 = arith.mulf %594, %592 : vector<8x128xf32>
    %596 = arith.subf %595, %588 : vector<8x128xf32>
    %cst_246 = arith.constant 7.000000e+00 : f32
    %597 = vector.broadcast %cst_246 : f32 to vector<8x128xf32>
    %598 = arith.mulf %597, %583 : vector<8x128xf32>
    %599 = arith.mulf %598, %596 : vector<8x128xf32>
    %600 = arith.subf %599, %592 : vector<8x128xf32>
    %cst_247 = arith.constant 2.628130e+01 : f32
    %601 = vector.broadcast %cst_247 : f32 to vector<8x128xf32>
    %602 = arith.mulf %601, %600 : vector<8x128xf32>
    %603 = arith.mulf %602, %498 : vector<8x128xf32>
    %c4_248 = arith.constant 4 : index
    %c3_249 = arith.constant 3 : index
    %c0_250 = arith.constant 0 : index
    %c0_251 = arith.constant 0 : index
    %604 = vector.load %arg2[%c4_248, %c3_249, %c0_250, %c0_251] : memref<7x6x8x128xf32, #tpu.memory_space<vmem>>, vector<1x1x8x128xf32>
    %605 = vector.shape_cast %604 : vector<1x1x8x128xf32> to vector<8x128xf32>
    %606 = vector.shape_cast %603 : vector<8x128xf32> to vector<1x1x8x128xf32>
    tpu.vector_store %arg2[%c4_248, %c3_249, %c0_250, %c0_251], %606 {strides = array<i32>} : memref<7x6x8x128xf32, #tpu.memory_space<vmem>>, vector<1x1x8x128xf32>,
    %cst_252 = arith.constant 21.5254173 : f32
    %607 = vector.broadcast %cst_252 : f32 to vector<8x128xf32>
    %608 = arith.mulf %607, %3 : vector<8x128xf32>
    %cst_253 = arith.constant 0.0464567058 : f32
    %609 = vector.broadcast %cst_253 : f32 to vector<8x128xf32>
    %610 = arith.mulf %609, %7 : vector<8x128xf32>
    %611 = math.sin %608 : vector<8x128xf32>
    %612 = arith.mulf %611, %610 : vector<8x128xf32>
    %613 = math.cos %608 : vector<8x128xf32>
    %614 = arith.subf %612, %613 : vector<8x128xf32>
    %615 = arith.mulf %614, %610 : vector<8x128xf32>
    %cst_254 = arith.constant 3.000000e+00 : f32
    %616 = vector.broadcast %cst_254 : f32 to vector<8x128xf32>
    %617 = arith.mulf %616, %610 : vector<8x128xf32>
    %618 = arith.mulf %617, %615 : vector<8x128xf32>
    %619 = arith.subf %618, %612 : vector<8x128xf32>
    %cst_255 = arith.constant 5.000000e+00 : f32
    %620 = vector.broadcast %cst_255 : f32 to vector<8x128xf32>
    %621 = arith.mulf %620, %610 : vector<8x128xf32>
    %622 = arith.mulf %621, %619 : vector<8x128xf32>
    %623 = arith.subf %622, %615 : vector<8x128xf32>
    %cst_256 = arith.constant 7.000000e+00 : f32
    %624 = vector.broadcast %cst_256 : f32 to vector<8x128xf32>
    %625 = arith.mulf %624, %610 : vector<8x128xf32>
    %626 = arith.mulf %625, %623 : vector<8x128xf32>
    %627 = arith.subf %626, %619 : vector<8x128xf32>
    %cst_257 = arith.constant 30.7779922 : f32
    %628 = vector.broadcast %cst_257 : f32 to vector<8x128xf32>
    %629 = arith.mulf %628, %627 : vector<8x128xf32>
    %630 = arith.mulf %629, %498 : vector<8x128xf32>
    %c4_258 = arith.constant 4 : index
    %c4_259 = arith.constant 4 : index
    %c0_260 = arith.constant 0 : index
    %c0_261 = arith.constant 0 : index
    %631 = vector.load %arg2[%c4_258, %c4_259, %c0_260, %c0_261] : memref<7x6x8x128xf32, #tpu.memory_space<vmem>>, vector<1x1x8x128xf32>
    %632 = vector.shape_cast %631 : vector<1x1x8x128xf32> to vector<8x128xf32>
    %633 = vector.shape_cast %630 : vector<8x128xf32> to vector<1x1x8x128xf32>
    tpu.vector_store %arg2[%c4_258, %c4_259, %c0_260, %c0_261], %633 {strides = array<i32>} : memref<7x6x8x128xf32, #tpu.memory_space<vmem>>, vector<1x1x8x128xf32>,
    %cst_262 = arith.constant 24.7275658 : f32
    %634 = vector.broadcast %cst_262 : f32 to vector<8x128xf32>
    %635 = arith.mulf %634, %3 : vector<8x128xf32>
    %cst_263 = arith.constant 0.0404406972 : f32
    %636 = vector.broadcast %cst_263 : f32 to vector<8x128xf32>
    %637 = arith.mulf %636, %7 : vector<8x128xf32>
    %638 = math.sin %635 : vector<8x128xf32>
    %639 = arith.mulf %638, %637 : vector<8x128xf32>
    %640 = math.cos %635 : vector<8x128xf32>
    %641 = arith.subf %639, %640 : vector<8x128xf32>
    %642 = arith.mulf %641, %637 : vector<8x128xf32>
    %cst_264 = arith.constant 3.000000e+00 : f32
    %643 = vector.broadcast %cst_264 : f32 to vector<8x128xf32>
    %644 = arith.mulf %643, %637 : vector<8x128xf32>
    %645 = arith.mulf %644, %642 : vector<8x128xf32>
    %646 = arith.subf %645, %639 : vector<8x128xf32>
    %cst_265 = arith.constant 5.000000e+00 : f32
    %647 = vector.broadcast %cst_265 : f32 to vector<8x128xf32>
    %648 = arith.mulf %647, %637 : vector<8x128xf32>
    %649 = arith.mulf %648, %646 : vector<8x128xf32>
    %650 = arith.subf %649, %642 : vector<8x128xf32>
    %cst_266 = arith.constant 7.000000e+00 : f32
    %651 = vector.broadcast %cst_266 : f32 to vector<8x128xf32>
    %652 = arith.mulf %651, %637 : vector<8x128xf32>
    %653 = arith.mulf %652, %650 : vector<8x128xf32>
    %654 = arith.subf %653, %646 : vector<8x128xf32>
    %cst_267 = arith.constant 35.2612419 : f32
    %655 = vector.broadcast %cst_267 : f32 to vector<8x128xf32>
    %656 = arith.mulf %655, %654 : vector<8x128xf32>
    %657 = arith.mulf %656, %498 : vector<8x128xf32>
    %c4_268 = arith.constant 4 : index
    %c5_269 = arith.constant 5 : index
    %c0_270 = arith.constant 0 : index
    %c0_271 = arith.constant 0 : index
    %658 = vector.load %arg2[%c4_268, %c5_269, %c0_270, %c0_271] : memref<7x6x8x128xf32, #tpu.memory_space<vmem>>, vector<1x1x8x128xf32>
    %659 = vector.shape_cast %658 : vector<1x1x8x128xf32> to vector<8x128xf32>
    %660 = vector.shape_cast %657 : vector<8x128xf32> to vector<1x1x8x128xf32>
    tpu.vector_store %arg2[%c4_268, %c5_269, %c0_270, %c0_271], %660 {strides = array<i32>} : memref<7x6x8x128xf32, #tpu.memory_space<vmem>>, vector<1x1x8x128xf32>,
    %cst_272 = arith.constant 0.935602605 : f32
    %661 = vector.broadcast %cst_272 : f32 to vector<8x128xf32>
    %662 = arith.mulf %661, %61 : vector<8x128xf32>
    %663 = arith.mulf %662, %27 : vector<8x128xf32>
    %cst_273 = arith.constant 9.35581207 : f32
    %664 = vector.broadcast %cst_273 : f32 to vector<8x128xf32>
    %665 = arith.mulf %664, %3 : vector<8x128xf32>
    %cst_274 = arith.constant 0.106885433 : f32
    %666 = vector.broadcast %cst_274 : f32 to vector<8x128xf32>
    %667 = arith.mulf %666, %7 : vector<8x128xf32>
    %668 = math.sin %665 : vector<8x128xf32>
    %669 = arith.mulf %668, %667 : vector<8x128xf32>
    %670 = math.cos %665 : vector<8x128xf32>
    %671 = arith.subf %669, %670 : vector<8x128xf32>
    %672 = arith.mulf %671, %667 : vector<8x128xf32>
    %cst_275 = arith.constant 3.000000e+00 : f32
    %673 = vector.broadcast %cst_275 : f32 to vector<8x128xf32>
    %674 = arith.mulf %673, %667 : vector<8x128xf32>
    %675 = arith.mulf %674, %672 : vector<8x128xf32>
    %676 = arith.subf %675, %669 : vector<8x128xf32>
    %cst_276 = arith.constant 5.000000e+00 : f32
    %677 = vector.broadcast %cst_276 : f32 to vector<8x128xf32>
    %678 = arith.mulf %677, %667 : vector<8x128xf32>
    %679 = arith.mulf %678, %676 : vector<8x128xf32>
    %680 = arith.subf %679, %672 : vector<8x128xf32>
    %cst_277 = arith.constant 7.000000e+00 : f32
    %681 = vector.broadcast %cst_277 : f32 to vector<8x128xf32>
    %682 = arith.mulf %681, %667 : vector<8x128xf32>
    %683 = arith.mulf %682, %680 : vector<8x128xf32>
    %684 = arith.subf %683, %676 : vector<8x128xf32>
    %cst_278 = arith.constant 9.000000e+00 : f32
    %685 = vector.broadcast %cst_278 : f32 to vector<8x128xf32>
    %686 = arith.mulf %685, %667 : vector<8x128xf32>
    %687 = arith.mulf %686, %684 : vector<8x128xf32>
    %688 = arith.subf %687, %680 : vector<8x128xf32>
    %cst_279 = arith.constant 14.6366234 : f32
    %689 = vector.broadcast %cst_279 : f32 to vector<8x128xf32>
    %690 = arith.mulf %689, %688 : vector<8x128xf32>
    %691 = arith.mulf %690, %663 : vector<8x128xf32>
    %c5_280 = arith.constant 5 : index
    %c0_281 = arith.constant 0 : index
    %c0_282 = arith.constant 0 : index
    %c0_283 = arith.constant 0 : index
    %692 = vector.load %arg2[%c5_280, %c0_281, %c0_282, %c0_283] : memref<7x6x8x128xf32, #tpu.memory_space<vmem>>, vector<1x1x8x128xf32>
    %693 = vector.shape_cast %692 : vector<1x1x8x128xf32> to vector<8x128xf32>
    %694 = vector.shape_cast %691 : vector<8x128xf32> to vector<1x1x8x128xf32>
    tpu.vector_store %arg2[%c5_280, %c0_281, %c0_282, %c0_283], %694 {strides = array<i32>} : memref<7x6x8x128xf32, #tpu.memory_space<vmem>>, vector<1x1x8x128xf32>,
    %cst_284 = arith.constant 12.9665298 : f32
    %695 = vector.broadcast %cst_284 : f32 to vector<8x128xf32>
    %696 = arith.mulf %695, %3 : vector<8x128xf32>
    %cst_285 = arith.constant 0.0771216378 : f32
    %697 = vector.broadcast %cst_285 : f32 to vector<8x128xf32>
    %698 = arith.mulf %697, %7 : vector<8x128xf32>
    %699 = math.sin %696 : vector<8x128xf32>
    %700 = arith.mulf %699, %698 : vector<8x128xf32>
    %701 = math.cos %696 : vector<8x128xf32>
    %702 = arith.subf %700, %701 : vector<8x128xf32>
    %703 = arith.mulf %702, %698 : vector<8x128xf32>
    %cst_286 = arith.constant 3.000000e+00 : f32
    %704 = vector.broadcast %cst_286 : f32 to vector<8x128xf32>
    %705 = arith.mulf %704, %698 : vector<8x128xf32>
    %706 = arith.mulf %705, %703 : vector<8x128xf32>
    %707 = arith.subf %706, %700 : vector<8x128xf32>
    %cst_287 = arith.constant 5.000000e+00 : f32
    %708 = vector.broadcast %cst_287 : f32 to vector<8x128xf32>
    %709 = arith.mulf %708, %698 : vector<8x128xf32>
    %710 = arith.mulf %709, %707 : vector<8x128xf32>
    %711 = arith.subf %710, %703 : vector<8x128xf32>
    %cst_288 = arith.constant 7.000000e+00 : f32
    %712 = vector.broadcast %cst_288 : f32 to vector<8x128xf32>
    %713 = arith.mulf %712, %698 : vector<8x128xf32>
    %714 = arith.mulf %713, %711 : vector<8x128xf32>
    %715 = arith.subf %714, %707 : vector<8x128xf32>
    %cst_289 = arith.constant 9.000000e+00 : f32
    %716 = vector.broadcast %cst_289 : f32 to vector<8x128xf32>
    %717 = arith.mulf %716, %698 : vector<8x128xf32>
    %718 = arith.mulf %717, %715 : vector<8x128xf32>
    %719 = arith.subf %718, %711 : vector<8x128xf32>
    %cst_290 = arith.constant 19.2483406 : f32
    %720 = vector.broadcast %cst_290 : f32 to vector<8x128xf32>
    %721 = arith.mulf %720, %719 : vector<8x128xf32>
    %722 = arith.mulf %721, %663 : vector<8x128xf32>
    %c5_291 = arith.constant 5 : index
    %c1_292 = arith.constant 1 : index
    %c0_293 = arith.constant 0 : index
    %c0_294 = arith.constant 0 : index
    %723 = vector.load %arg2[%c5_291, %c1_292, %c0_293, %c0_294] : memref<7x6x8x128xf32, #tpu.memory_space<vmem>>, vector<1x1x8x128xf32>
    %724 = vector.shape_cast %723 : vector<1x1x8x128xf32> to vector<8x128xf32>
    %725 = vector.shape_cast %722 : vector<8x128xf32> to vector<1x1x8x128xf32>
    tpu.vector_store %arg2[%c5_291, %c1_292, %c0_293, %c0_294], %725 {strides = array<i32>} : memref<7x6x8x128xf32, #tpu.memory_space<vmem>>, vector<1x1x8x128xf32>,
    %cst_295 = arith.constant 16.3547096 : f32
    %726 = vector.broadcast %cst_295 : f32 to vector<8x128xf32>
    %727 = arith.mulf %726, %3 : vector<8x128xf32>
    %cst_296 = arith.constant 0.0611444674 : f32
    %728 = vector.broadcast %cst_296 : f32 to vector<8x128xf32>
    %729 = arith.mulf %728, %7 : vector<8x128xf32>
    %730 = math.sin %727 : vector<8x128xf32>
    %731 = arith.mulf %730, %729 : vector<8x128xf32>
    %732 = math.cos %727 : vector<8x128xf32>
    %733 = arith.subf %731, %732 : vector<8x128xf32>
    %734 = arith.mulf %733, %729 : vector<8x128xf32>
    %cst_297 = arith.constant 3.000000e+00 : f32
    %735 = vector.broadcast %cst_297 : f32 to vector<8x128xf32>
    %736 = arith.mulf %735, %729 : vector<8x128xf32>
    %737 = arith.mulf %736, %734 : vector<8x128xf32>
    %738 = arith.subf %737, %731 : vector<8x128xf32>
    %cst_298 = arith.constant 5.000000e+00 : f32
    %739 = vector.broadcast %cst_298 : f32 to vector<8x128xf32>
    %740 = arith.mulf %739, %729 : vector<8x128xf32>
    %741 = arith.mulf %740, %738 : vector<8x128xf32>
    %742 = arith.subf %741, %734 : vector<8x128xf32>
    %cst_299 = arith.constant 7.000000e+00 : f32
    %743 = vector.broadcast %cst_299 : f32 to vector<8x128xf32>
    %744 = arith.mulf %743, %729 : vector<8x128xf32>
    %745 = arith.mulf %744, %742 : vector<8x128xf32>
    %746 = arith.subf %745, %738 : vector<8x128xf32>
    %cst_300 = arith.constant 9.000000e+00 : f32
    %747 = vector.broadcast %cst_300 : f32 to vector<8x128xf32>
    %748 = arith.mulf %747, %729 : vector<8x128xf32>
    %749 = arith.mulf %748, %746 : vector<8x128xf32>
    %750 = arith.subf %749, %742 : vector<8x128xf32>
    %cst_301 = arith.constant 23.8221588 : f32
    %751 = vector.broadcast %cst_301 : f32 to vector<8x128xf32>
    %752 = arith.mulf %751, %750 : vector<8x128xf32>
    %753 = arith.mulf %752, %663 : vector<8x128xf32>
    %c5_302 = arith.constant 5 : index
    %c2_303 = arith.constant 2 : index
    %c0_304 = arith.constant 0 : index
    %c0_305 = arith.constant 0 : index
    %754 = vector.load %arg2[%c5_302, %c2_303, %c0_304, %c0_305] : memref<7x6x8x128xf32, #tpu.memory_space<vmem>>, vector<1x1x8x128xf32>
    %755 = vector.shape_cast %754 : vector<1x1x8x128xf32> to vector<8x128xf32>
    %756 = vector.shape_cast %753 : vector<8x128xf32> to vector<1x1x8x128xf32>
    tpu.vector_store %arg2[%c5_302, %c2_303, %c0_304, %c0_305], %756 {strides = array<i32>} : memref<7x6x8x128xf32, #tpu.memory_space<vmem>>, vector<1x1x8x128xf32>,
    %cst_306 = arith.constant 19.6531525 : f32
    %757 = vector.broadcast %cst_306 : f32 to vector<8x128xf32>
    %758 = arith.mulf %757, %3 : vector<8x128xf32>
    %cst_307 = arith.constant 0.0508824214 : f32
    %759 = vector.broadcast %cst_307 : f32 to vector<8x128xf32>
    %760 = arith.mulf %759, %7 : vector<8x128xf32>
    %761 = math.sin %758 : vector<8x128xf32>
    %762 = arith.mulf %761, %760 : vector<8x128xf32>
    %763 = math.cos %758 : vector<8x128xf32>
    %764 = arith.subf %762, %763 : vector<8x128xf32>
    %765 = arith.mulf %764, %760 : vector<8x128xf32>
    %cst_308 = arith.constant 3.000000e+00 : f32
    %766 = vector.broadcast %cst_308 : f32 to vector<8x128xf32>
    %767 = arith.mulf %766, %760 : vector<8x128xf32>
    %768 = arith.mulf %767, %765 : vector<8x128xf32>
    %769 = arith.subf %768, %762 : vector<8x128xf32>
    %cst_309 = arith.constant 5.000000e+00 : f32
    %770 = vector.broadcast %cst_309 : f32 to vector<8x128xf32>
    %771 = arith.mulf %770, %760 : vector<8x128xf32>
    %772 = arith.mulf %771, %769 : vector<8x128xf32>
    %773 = arith.subf %772, %765 : vector<8x128xf32>
    %cst_310 = arith.constant 7.000000e+00 : f32
    %774 = vector.broadcast %cst_310 : f32 to vector<8x128xf32>
    %775 = arith.mulf %774, %760 : vector<8x128xf32>
    %776 = arith.mulf %775, %773 : vector<8x128xf32>
    %777 = arith.subf %776, %769 : vector<8x128xf32>
    %cst_311 = arith.constant 9.000000e+00 : f32
    %778 = vector.broadcast %cst_311 : f32 to vector<8x128xf32>
    %779 = arith.mulf %778, %760 : vector<8x128xf32>
    %780 = arith.mulf %779, %777 : vector<8x128xf32>
    %781 = arith.subf %780, %773 : vector<8x128xf32>
    %cst_312 = arith.constant 28.3586292 : f32
    %782 = vector.broadcast %cst_312 : f32 to vector<8x128xf32>
    %783 = arith.mulf %782, %781 : vector<8x128xf32>
    %784 = arith.mulf %783, %663 : vector<8x128xf32>
    %c5_313 = arith.constant 5 : index
    %c3_314 = arith.constant 3 : index
    %c0_315 = arith.constant 0 : index
    %c0_316 = arith.constant 0 : index
    %785 = vector.load %arg2[%c5_313, %c3_314, %c0_315, %c0_316] : memref<7x6x8x128xf32, #tpu.memory_space<vmem>>, vector<1x1x8x128xf32>
    %786 = vector.shape_cast %785 : vector<1x1x8x128xf32> to vector<8x128xf32>
    %787 = vector.shape_cast %784 : vector<8x128xf32> to vector<1x1x8x128xf32>
    tpu.vector_store %arg2[%c5_313, %c3_314, %c0_315, %c0_316], %787 {strides = array<i32>} : memref<7x6x8x128xf32, #tpu.memory_space<vmem>>, vector<1x1x8x128xf32>,
    %cst_317 = arith.constant 22.9045506 : f32
    %788 = vector.broadcast %cst_317 : f32 to vector<8x128xf32>
    %789 = arith.mulf %788, %3 : vector<8x128xf32>
    %cst_318 = arith.constant 0.0436594449 : f32
    %790 = vector.broadcast %cst_318 : f32 to vector<8x128xf32>
    %791 = arith.mulf %790, %7 : vector<8x128xf32>
    %792 = math.sin %789 : vector<8x128xf32>
    %793 = arith.mulf %792, %791 : vector<8x128xf32>
    %794 = math.cos %789 : vector<8x128xf32>
    %795 = arith.subf %793, %794 : vector<8x128xf32>
    %796 = arith.mulf %795, %791 : vector<8x128xf32>
    %cst_319 = arith.constant 3.000000e+00 : f32
    %797 = vector.broadcast %cst_319 : f32 to vector<8x128xf32>
    %798 = arith.mulf %797, %791 : vector<8x128xf32>
    %799 = arith.mulf %798, %796 : vector<8x128xf32>
    %800 = arith.subf %799, %793 : vector<8x128xf32>
    %cst_320 = arith.constant 5.000000e+00 : f32
    %801 = vector.broadcast %cst_320 : f32 to vector<8x128xf32>
    %802 = arith.mulf %801, %791 : vector<8x128xf32>
    %803 = arith.mulf %802, %800 : vector<8x128xf32>
    %804 = arith.subf %803, %796 : vector<8x128xf32>
    %cst_321 = arith.constant 7.000000e+00 : f32
    %805 = vector.broadcast %cst_321 : f32 to vector<8x128xf32>
    %806 = arith.mulf %805, %791 : vector<8x128xf32>
    %807 = arith.mulf %806, %804 : vector<8x128xf32>
    %808 = arith.subf %807, %800 : vector<8x128xf32>
    %cst_322 = arith.constant 9.000000e+00 : f32
    %809 = vector.broadcast %cst_322 : f32 to vector<8x128xf32>
    %810 = arith.mulf %809, %791 : vector<8x128xf32>
    %811 = arith.mulf %810, %808 : vector<8x128xf32>
    %812 = arith.subf %811, %804 : vector<8x128xf32>
    %cst_323 = arith.constant 32.8707314 : f32
    %813 = vector.broadcast %cst_323 : f32 to vector<8x128xf32>
    %814 = arith.mulf %813, %812 : vector<8x128xf32>
    %815 = arith.mulf %814, %663 : vector<8x128xf32>
    %c5_324 = arith.constant 5 : index
    %c4_325 = arith.constant 4 : index
    %c0_326 = arith.constant 0 : index
    %c0_327 = arith.constant 0 : index
    %816 = vector.load %arg2[%c5_324, %c4_325, %c0_326, %c0_327] : memref<7x6x8x128xf32, #tpu.memory_space<vmem>>, vector<1x1x8x128xf32>
    %817 = vector.shape_cast %816 : vector<1x1x8x128xf32> to vector<8x128xf32>
    %818 = vector.shape_cast %815 : vector<8x128xf32> to vector<1x1x8x128xf32>
    tpu.vector_store %arg2[%c5_324, %c4_325, %c0_326, %c0_327], %818 {strides = array<i32>} : memref<7x6x8x128xf32, #tpu.memory_space<vmem>>, vector<1x1x8x128xf32>,
    %cst_328 = arith.constant 26.1277504 : f32
    %819 = vector.broadcast %cst_328 : f32 to vector<8x128xf32>
    %820 = arith.mulf %819, %3 : vector<8x128xf32>
    %cst_329 = arith.constant 0.0382734835 : f32
    %821 = vector.broadcast %cst_329 : f32 to vector<8x128xf32>
    %822 = arith.mulf %821, %7 : vector<8x128xf32>
    %823 = math.sin %820 : vector<8x128xf32>
    %824 = arith.mulf %823, %822 : vector<8x128xf32>
    %825 = math.cos %820 : vector<8x128xf32>
    %826 = arith.subf %824, %825 : vector<8x128xf32>
    %827 = arith.mulf %826, %822 : vector<8x128xf32>
    %cst_330 = arith.constant 3.000000e+00 : f32
    %828 = vector.broadcast %cst_330 : f32 to vector<8x128xf32>
    %829 = arith.mulf %828, %822 : vector<8x128xf32>
    %830 = arith.mulf %829, %827 : vector<8x128xf32>
    %831 = arith.subf %830, %824 : vector<8x128xf32>
    %cst_331 = arith.constant 5.000000e+00 : f32
    %832 = vector.broadcast %cst_331 : f32 to vector<8x128xf32>
    %833 = arith.mulf %832, %822 : vector<8x128xf32>
    %834 = arith.mulf %833, %831 : vector<8x128xf32>
    %835 = arith.subf %834, %827 : vector<8x128xf32>
    %cst_332 = arith.constant 7.000000e+00 : f32
    %836 = vector.broadcast %cst_332 : f32 to vector<8x128xf32>
    %837 = arith.mulf %836, %822 : vector<8x128xf32>
    %838 = arith.mulf %837, %835 : vector<8x128xf32>
    %839 = arith.subf %838, %831 : vector<8x128xf32>
    %cst_333 = arith.constant 9.000000e+00 : f32
    %840 = vector.broadcast %cst_333 : f32 to vector<8x128xf32>
    %841 = arith.mulf %840, %822 : vector<8x128xf32>
    %842 = arith.mulf %841, %839 : vector<8x128xf32>
    %843 = arith.subf %842, %835 : vector<8x128xf32>
    %cst_334 = arith.constant 37.366684 : f32
    %844 = vector.broadcast %cst_334 : f32 to vector<8x128xf32>
    %845 = arith.mulf %844, %843 : vector<8x128xf32>
    %846 = arith.mulf %845, %663 : vector<8x128xf32>
    %c5_335 = arith.constant 5 : index
    %c5_336 = arith.constant 5 : index
    %c0_337 = arith.constant 0 : index
    %c0_338 = arith.constant 0 : index
    %847 = vector.load %arg2[%c5_335, %c5_336, %c0_337, %c0_338] : memref<7x6x8x128xf32, #tpu.memory_space<vmem>>, vector<1x1x8x128xf32>
    %848 = vector.shape_cast %847 : vector<1x1x8x128xf32> to vector<8x128xf32>
    %849 = vector.shape_cast %846 : vector<8x128xf32> to vector<1x1x8x128xf32>
    tpu.vector_store %arg2[%c5_335, %c5_336, %c0_337, %c0_338], %849 {strides = array<i32>} : memref<7x6x8x128xf32, #tpu.memory_space<vmem>>, vector<1x1x8x128xf32>,
    %cst_339 = arith.constant 1.01710725 : f32
    %850 = vector.broadcast %cst_339 : f32 to vector<8x128xf32>
    %851 = arith.mulf %850, %69 : vector<8x128xf32>
    %852 = arith.mulf %851, %27 : vector<8x128xf32>
    %cst_340 = arith.constant 10.5128355 : f32
    %853 = vector.broadcast %cst_340 : f32 to vector<8x128xf32>
    %854 = arith.mulf %853, %3 : vector<8x128xf32>
    %cst_341 = arith.constant 0.0951218158 : f32
    %855 = vector.broadcast %cst_341 : f32 to vector<8x128xf32>
    %856 = arith.mulf %855, %7 : vector<8x128xf32>
    %857 = math.sin %854 : vector<8x128xf32>
    %858 = arith.mulf %857, %856 : vector<8x128xf32>
    %859 = math.cos %854 : vector<8x128xf32>
    %860 = arith.subf %858, %859 : vector<8x128xf32>
    %861 = arith.mulf %860, %856 : vector<8x128xf32>
    %cst_342 = arith.constant 3.000000e+00 : f32
    %862 = vector.broadcast %cst_342 : f32 to vector<8x128xf32>
    %863 = arith.mulf %862, %856 : vector<8x128xf32>
    %864 = arith.mulf %863, %861 : vector<8x128xf32>
    %865 = arith.subf %864, %858 : vector<8x128xf32>
    %cst_343 = arith.constant 5.000000e+00 : f32
    %866 = vector.broadcast %cst_343 : f32 to vector<8x128xf32>
    %867 = arith.mulf %866, %856 : vector<8x128xf32>
    %868 = arith.mulf %867, %865 : vector<8x128xf32>
    %869 = arith.subf %868, %861 : vector<8x128xf32>
    %cst_344 = arith.constant 7.000000e+00 : f32
    %870 = vector.broadcast %cst_344 : f32 to vector<8x128xf32>
    %871 = arith.mulf %870, %856 : vector<8x128xf32>
    %872 = arith.mulf %871, %869 : vector<8x128xf32>
    %873 = arith.subf %872, %865 : vector<8x128xf32>
    %cst_345 = arith.constant 9.000000e+00 : f32
    %874 = vector.broadcast %cst_345 : f32 to vector<8x128xf32>
    %875 = arith.mulf %874, %856 : vector<8x128xf32>
    %876 = arith.mulf %875, %873 : vector<8x128xf32>
    %877 = arith.subf %876, %869 : vector<8x128xf32>
    %cst_346 = arith.constant 1.100000e+01 : f32
    %878 = vector.broadcast %cst_346 : f32 to vector<8x128xf32>
    %879 = arith.mulf %878, %856 : vector<8x128xf32>
    %880 = arith.mulf %879, %877 : vector<8x128xf32>
    %881 = arith.subf %880, %873 : vector<8x128xf32>
    %cst_347 = arith.constant 16.6857586 : f32
    %882 = vector.broadcast %cst_347 : f32 to vector<8x128xf32>
    %883 = arith.mulf %882, %881 : vector<8x128xf32>
    %884 = arith.mulf %883, %852 : vector<8x128xf32>
    %c6 = arith.constant 6 : index
    %c0_348 = arith.constant 0 : index
    %c0_349 = arith.constant 0 : index
    %c0_350 = arith.constant 0 : index
    %885 = vector.load %arg2[%c6, %c0_348, %c0_349, %c0_350] : memref<7x6x8x128xf32, #tpu.memory_space<vmem>>, vector<1x1x8x128xf32>
    %886 = vector.shape_cast %885 : vector<1x1x8x128xf32> to vector<8x128xf32>
    %887 = vector.shape_cast %884 : vector<8x128xf32> to vector<1x1x8x128xf32>
    tpu.vector_store %arg2[%c6, %c0_348, %c0_349, %c0_350], %887 {strides = array<i32>} : memref<7x6x8x128xf32, #tpu.memory_space<vmem>>, vector<1x1x8x128xf32>,
    %cst_351 = arith.constant 14.2073927 : f32
    %888 = vector.broadcast %cst_351 : f32 to vector<8x128xf32>
    %889 = arith.mulf %888, %3 : vector<8x128xf32>
    %cst_352 = arith.constant 0.0703858957 : f32
    %890 = vector.broadcast %cst_352 : f32 to vector<8x128xf32>
    %891 = arith.mulf %890, %7 : vector<8x128xf32>
    %892 = math.sin %889 : vector<8x128xf32>
    %893 = arith.mulf %892, %891 : vector<8x128xf32>
    %894 = math.cos %889 : vector<8x128xf32>
    %895 = arith.subf %893, %894 : vector<8x128xf32>
    %896 = arith.mulf %895, %891 : vector<8x128xf32>
    %cst_353 = arith.constant 3.000000e+00 : f32
    %897 = vector.broadcast %cst_353 : f32 to vector<8x128xf32>
    %898 = arith.mulf %897, %891 : vector<8x128xf32>
    %899 = arith.mulf %898, %896 : vector<8x128xf32>
    %900 = arith.subf %899, %893 : vector<8x128xf32>
    %cst_354 = arith.constant 5.000000e+00 : f32
    %901 = vector.broadcast %cst_354 : f32 to vector<8x128xf32>
    %902 = arith.mulf %901, %891 : vector<8x128xf32>
    %903 = arith.mulf %902, %900 : vector<8x128xf32>
    %904 = arith.subf %903, %896 : vector<8x128xf32>
    %cst_355 = arith.constant 7.000000e+00 : f32
    %905 = vector.broadcast %cst_355 : f32 to vector<8x128xf32>
    %906 = arith.mulf %905, %891 : vector<8x128xf32>
    %907 = arith.mulf %906, %904 : vector<8x128xf32>
    %908 = arith.subf %907, %900 : vector<8x128xf32>
    %cst_356 = arith.constant 9.000000e+00 : f32
    %909 = vector.broadcast %cst_356 : f32 to vector<8x128xf32>
    %910 = arith.mulf %909, %891 : vector<8x128xf32>
    %911 = arith.mulf %910, %908 : vector<8x128xf32>
    %912 = arith.subf %911, %904 : vector<8x128xf32>
    %cst_357 = arith.constant 1.100000e+01 : f32
    %913 = vector.broadcast %cst_357 : f32 to vector<8x128xf32>
    %914 = arith.mulf %913, %891 : vector<8x128xf32>
    %915 = arith.mulf %914, %912 : vector<8x128xf32>
    %916 = arith.subf %915, %908 : vector<8x128xf32>
    %cst_358 = arith.constant 21.2838707 : f32
    %917 = vector.broadcast %cst_358 : f32 to vector<8x128xf32>
    %918 = arith.mulf %917, %916 : vector<8x128xf32>
    %919 = arith.mulf %918, %852 : vector<8x128xf32>
    %c6_359 = arith.constant 6 : index
    %c1_360 = arith.constant 1 : index
    %c0_361 = arith.constant 0 : index
    %c0_362 = arith.constant 0 : index
    %920 = vector.load %arg2[%c6_359, %c1_360, %c0_361, %c0_362] : memref<7x6x8x128xf32, #tpu.memory_space<vmem>>, vector<1x1x8x128xf32>
    %921 = vector.shape_cast %920 : vector<1x1x8x128xf32> to vector<8x128xf32>
    %922 = vector.shape_cast %919 : vector<8x128xf32> to vector<1x1x8x128xf32>
    tpu.vector_store %arg2[%c6_359, %c1_360, %c0_361, %c0_362], %922 {strides = array<i32>} : memref<7x6x8x128xf32, #tpu.memory_space<vmem>>, vector<1x1x8x128xf32>,
    %cst_363 = arith.constant 17.647974 : f32
    %923 = vector.broadcast %cst_363 : f32 to vector<8x128xf32>
    %924 = arith.mulf %923, %3 : vector<8x128xf32>
    %cst_364 = arith.constant 0.0566637255 : f32
    %925 = vector.broadcast %cst_364 : f32 to vector<8x128xf32>
    %926 = arith.mulf %925, %7 : vector<8x128xf32>
    %927 = math.sin %924 : vector<8x128xf32>
    %928 = arith.mulf %927, %926 : vector<8x128xf32>
    %929 = math.cos %924 : vector<8x128xf32>
    %930 = arith.subf %928, %929 : vector<8x128xf32>
    %931 = arith.mulf %930, %926 : vector<8x128xf32>
    %cst_365 = arith.constant 3.000000e+00 : f32
    %932 = vector.broadcast %cst_365 : f32 to vector<8x128xf32>
    %933 = arith.mulf %932, %926 : vector<8x128xf32>
    %934 = arith.mulf %933, %931 : vector<8x128xf32>
    %935 = arith.subf %934, %928 : vector<8x128xf32>
    %cst_366 = arith.constant 5.000000e+00 : f32
    %936 = vector.broadcast %cst_366 : f32 to vector<8x128xf32>
    %937 = arith.mulf %936, %926 : vector<8x128xf32>
    %938 = arith.mulf %937, %935 : vector<8x128xf32>
    %939 = arith.subf %938, %931 : vector<8x128xf32>
    %cst_367 = arith.constant 7.000000e+00 : f32
    %940 = vector.broadcast %cst_367 : f32 to vector<8x128xf32>
    %941 = arith.mulf %940, %926 : vector<8x128xf32>
    %942 = arith.mulf %941, %939 : vector<8x128xf32>
    %943 = arith.subf %942, %935 : vector<8x128xf32>
    %cst_368 = arith.constant 9.000000e+00 : f32
    %944 = vector.broadcast %cst_368 : f32 to vector<8x128xf32>
    %945 = arith.mulf %944, %926 : vector<8x128xf32>
    %946 = arith.mulf %945, %943 : vector<8x128xf32>
    %947 = arith.subf %946, %939 : vector<8x128xf32>
    %cst_369 = arith.constant 1.100000e+01 : f32
    %948 = vector.broadcast %cst_369 : f32 to vector<8x128xf32>
    %949 = arith.mulf %948, %926 : vector<8x128xf32>
    %950 = arith.mulf %949, %947 : vector<8x128xf32>
    %951 = arith.subf %950, %943 : vector<8x128xf32>
    %cst_370 = arith.constant 25.8722305 : f32
    %952 = vector.broadcast %cst_370 : f32 to vector<8x128xf32>
    %953 = arith.mulf %952, %951 : vector<8x128xf32>
    %954 = arith.mulf %953, %852 : vector<8x128xf32>
    %c6_371 = arith.constant 6 : index
    %c2_372 = arith.constant 2 : index
    %c0_373 = arith.constant 0 : index
    %c0_374 = arith.constant 0 : index
    %955 = vector.load %arg2[%c6_371, %c2_372, %c0_373, %c0_374] : memref<7x6x8x128xf32, #tpu.memory_space<vmem>>, vector<1x1x8x128xf32>
    %956 = vector.shape_cast %955 : vector<1x1x8x128xf32> to vector<8x128xf32>
    %957 = vector.shape_cast %954 : vector<8x128xf32> to vector<1x1x8x128xf32>
    tpu.vector_store %arg2[%c6_371, %c2_372, %c0_373, %c0_374], %957 {strides = array<i32>} : memref<7x6x8x128xf32, #tpu.memory_space<vmem>>, vector<1x1x8x128xf32>,
    %cst_375 = arith.constant 20.9834633 : f32
    %958 = vector.broadcast %cst_375 : f32 to vector<8x128xf32>
    %959 = arith.mulf %958, %3 : vector<8x128xf32>
    %cst_376 = arith.constant 0.0476565771 : f32
    %960 = vector.broadcast %cst_376 : f32 to vector<8x128xf32>
    %961 = arith.mulf %960, %7 : vector<8x128xf32>
    %962 = math.sin %959 : vector<8x128xf32>
    %963 = arith.mulf %962, %961 : vector<8x128xf32>
    %964 = math.cos %959 : vector<8x128xf32>
    %965 = arith.subf %963, %964 : vector<8x128xf32>
    %966 = arith.mulf %965, %961 : vector<8x128xf32>
    %cst_377 = arith.constant 3.000000e+00 : f32
    %967 = vector.broadcast %cst_377 : f32 to vector<8x128xf32>
    %968 = arith.mulf %967, %961 : vector<8x128xf32>
    %969 = arith.mulf %968, %966 : vector<8x128xf32>
    %970 = arith.subf %969, %963 : vector<8x128xf32>
    %cst_378 = arith.constant 5.000000e+00 : f32
    %971 = vector.broadcast %cst_378 : f32 to vector<8x128xf32>
    %972 = arith.mulf %971, %961 : vector<8x128xf32>
    %973 = arith.mulf %972, %970 : vector<8x128xf32>
    %974 = arith.subf %973, %966 : vector<8x128xf32>
    %cst_379 = arith.constant 7.000000e+00 : f32
    %975 = vector.broadcast %cst_379 : f32 to vector<8x128xf32>
    %976 = arith.mulf %975, %961 : vector<8x128xf32>
    %977 = arith.mulf %976, %974 : vector<8x128xf32>
    %978 = arith.subf %977, %970 : vector<8x128xf32>
    %cst_380 = arith.constant 9.000000e+00 : f32
    %979 = vector.broadcast %cst_380 : f32 to vector<8x128xf32>
    %980 = arith.mulf %979, %961 : vector<8x128xf32>
    %981 = arith.mulf %980, %978 : vector<8x128xf32>
    %982 = arith.subf %981, %974 : vector<8x128xf32>
    %cst_381 = arith.constant 1.100000e+01 : f32
    %983 = vector.broadcast %cst_381 : f32 to vector<8x128xf32>
    %984 = arith.mulf %983, %961 : vector<8x128xf32>
    %985 = arith.mulf %984, %982 : vector<8x128xf32>
    %986 = arith.subf %985, %978 : vector<8x128xf32>
    %cst_382 = arith.constant 30.4249935 : f32
    %987 = vector.broadcast %cst_382 : f32 to vector<8x128xf32>
    %988 = arith.mulf %987, %986 : vector<8x128xf32>
    %989 = arith.mulf %988, %852 : vector<8x128xf32>
    %c6_383 = arith.constant 6 : index
    %c3_384 = arith.constant 3 : index
    %c0_385 = arith.constant 0 : index
    %c0_386 = arith.constant 0 : index
    %990 = vector.load %arg2[%c6_383, %c3_384, %c0_385, %c0_386] : memref<7x6x8x128xf32, #tpu.memory_space<vmem>>, vector<1x1x8x128xf32>
    %991 = vector.shape_cast %990 : vector<1x1x8x128xf32> to vector<8x128xf32>
    %992 = vector.shape_cast %989 : vector<8x128xf32> to vector<1x1x8x128xf32>
    tpu.vector_store %arg2[%c6_383, %c3_384, %c0_385, %c0_386], %992 {strides = array<i32>} : memref<7x6x8x128xf32, #tpu.memory_space<vmem>>, vector<1x1x8x128xf32>,
    %cst_387 = arith.constant 24.2627678 : f32
    %993 = vector.broadcast %cst_387 : f32 to vector<8x128xf32>
    %994 = arith.mulf %993, %3 : vector<8x128xf32>
    %cst_388 = arith.constant 0.0412154123 : f32
    %995 = vector.broadcast %cst_388 : f32 to vector<8x128xf32>
    %996 = arith.mulf %995, %7 : vector<8x128xf32>
    %997 = math.sin %994 : vector<8x128xf32>
    %998 = arith.mulf %997, %996 : vector<8x128xf32>
    %999 = math.cos %994 : vector<8x128xf32>
    %1000 = arith.subf %998, %999 : vector<8x128xf32>
    %1001 = arith.mulf %1000, %996 : vector<8x128xf32>
    %cst_389 = arith.constant 3.000000e+00 : f32
    %1002 = vector.broadcast %cst_389 : f32 to vector<8x128xf32>
    %1003 = arith.mulf %1002, %996 : vector<8x128xf32>
    %1004 = arith.mulf %1003, %1001 : vector<8x128xf32>
    %1005 = arith.subf %1004, %998 : vector<8x128xf32>
    %cst_390 = arith.constant 5.000000e+00 : f32
    %1006 = vector.broadcast %cst_390 : f32 to vector<8x128xf32>
    %1007 = arith.mulf %1006, %996 : vector<8x128xf32>
    %1008 = arith.mulf %1007, %1005 : vector<8x128xf32>
    %1009 = arith.subf %1008, %1001 : vector<8x128xf32>
    %cst_391 = arith.constant 7.000000e+00 : f32
    %1010 = vector.broadcast %cst_391 : f32 to vector<8x128xf32>
    %1011 = arith.mulf %1010, %996 : vector<8x128xf32>
    %1012 = arith.mulf %1011, %1009 : vector<8x128xf32>
    %1013 = arith.subf %1012, %1005 : vector<8x128xf32>
    %cst_392 = arith.constant 9.000000e+00 : f32
    %1014 = vector.broadcast %cst_392 : f32 to vector<8x128xf32>
    %1015 = arith.mulf %1014, %996 : vector<8x128xf32>
    %1016 = arith.mulf %1015, %1013 : vector<8x128xf32>
    %1017 = arith.subf %1016, %1009 : vector<8x128xf32>
    %cst_393 = arith.constant 1.100000e+01 : f32
    %1018 = vector.broadcast %cst_393 : f32 to vector<8x128xf32>
    %1019 = arith.mulf %1018, %996 : vector<8x128xf32>
    %1020 = arith.mulf %1019, %1017 : vector<8x128xf32>
    %1021 = arith.subf %1020, %1013 : vector<8x128xf32>
    %cst_394 = arith.constant 34.9516563 : f32
    %1022 = vector.broadcast %cst_394 : f32 to vector<8x128xf32>
    %1023 = arith.mulf %1022, %1021 : vector<8x128xf32>
    %1024 = arith.mulf %1023, %852 : vector<8x128xf32>
    %c6_395 = arith.constant 6 : index
    %c4_396 = arith.constant 4 : index
    %c0_397 = arith.constant 0 : index
    %c0_398 = arith.constant 0 : index
    %1025 = vector.load %arg2[%c6_395, %c4_396, %c0_397, %c0_398] : memref<7x6x8x128xf32, #tpu.memory_space<vmem>>, vector<1x1x8x128xf32>
    %1026 = vector.shape_cast %1025 : vector<1x1x8x128xf32> to vector<8x128xf32>
    %1027 = vector.shape_cast %1024 : vector<8x128xf32> to vector<1x1x8x128xf32>
    tpu.vector_store %arg2[%c6_395, %c4_396, %c0_397, %c0_398], %1027 {strides = array<i32>} : memref<7x6x8x128xf32, #tpu.memory_space<vmem>>, vector<1x1x8x128xf32>,
    %cst_399 = arith.constant 27.5078678 : f32
    %1028 = vector.broadcast %cst_399 : f32 to vector<8x128xf32>
    %1029 = arith.mulf %1028, %3 : vector<8x128xf32>
    %cst_400 = arith.constant 0.0363532342 : f32
    %1030 = vector.broadcast %cst_400 : f32 to vector<8x128xf32>
    %1031 = arith.mulf %1030, %7 : vector<8x128xf32>
    %1032 = math.sin %1029 : vector<8x128xf32>
    %1033 = arith.mulf %1032, %1031 : vector<8x128xf32>
    %1034 = math.cos %1029 : vector<8x128xf32>
    %1035 = arith.subf %1033, %1034 : vector<8x128xf32>
    %1036 = arith.mulf %1035, %1031 : vector<8x128xf32>
    %cst_401 = arith.constant 3.000000e+00 : f32
    %1037 = vector.broadcast %cst_401 : f32 to vector<8x128xf32>
    %1038 = arith.mulf %1037, %1031 : vector<8x128xf32>
    %1039 = arith.mulf %1038, %1036 : vector<8x128xf32>
    %1040 = arith.subf %1039, %1033 : vector<8x128xf32>
    %cst_402 = arith.constant 5.000000e+00 : f32
    %1041 = vector.broadcast %cst_402 : f32 to vector<8x128xf32>
    %1042 = arith.mulf %1041, %1031 : vector<8x128xf32>
    %1043 = arith.mulf %1042, %1040 : vector<8x128xf32>
    %1044 = arith.subf %1043, %1036 : vector<8x128xf32>
    %cst_403 = arith.constant 7.000000e+00 : f32
    %1045 = vector.broadcast %cst_403 : f32 to vector<8x128xf32>
    %1046 = arith.mulf %1045, %1031 : vector<8x128xf32>
    %1047 = arith.mulf %1046, %1044 : vector<8x128xf32>
    %1048 = arith.subf %1047, %1040 : vector<8x128xf32>
    %cst_404 = arith.constant 9.000000e+00 : f32
    %1049 = vector.broadcast %cst_404 : f32 to vector<8x128xf32>
    %1050 = arith.mulf %1049, %1031 : vector<8x128xf32>
    %1051 = arith.mulf %1050, %1048 : vector<8x128xf32>
    %1052 = arith.subf %1051, %1044 : vector<8x128xf32>
    %cst_405 = arith.constant 1.100000e+01 : f32
    %1053 = vector.broadcast %cst_405 : f32 to vector<8x128xf32>
    %1054 = arith.mulf %1053, %1031 : vector<8x128xf32>
    %1055 = arith.mulf %1054, %1052 : vector<8x128xf32>
    %1056 = arith.subf %1055, %1048 : vector<8x128xf32>
    %cst_406 = arith.constant 39.4600945 : f32
    %1057 = vector.broadcast %cst_406 : f32 to vector<8x128xf32>
    %1058 = arith.mulf %1057, %1056 : vector<8x128xf32>
    %1059 = arith.mulf %1058, %852 : vector<8x128xf32>
    %c6_407 = arith.constant 6 : index
    %c5_408 = arith.constant 5 : index
    %c0_409 = arith.constant 0 : index
    %c0_410 = arith.constant 0 : index
    %1060 = vector.load %arg2[%c6_407, %c5_408, %c0_409, %c0_410] : memref<7x6x8x128xf32, #tpu.memory_space<vmem>>, vector<1x1x8x128xf32>
    %1061 = vector.shape_cast %1060 : vector<1x1x8x128xf32> to vector<8x128xf32>
    %1062 = vector.shape_cast %1059 : vector<8x128xf32> to vector<1x1x8x128xf32>
    tpu.vector_store %arg2[%c6_407, %c5_408, %c0_409, %c0_410], %1062 {strides = array<i32>} : memref<7x6x8x128xf32, #tpu.memory_space<vmem>>, vector<1x1x8x128xf32>,
    return
  }
  func.func @transform_0(%arg0: i32) -> (i32, i32, i32) {
    %c0_i32 = arith.constant 0 : i32
    %c0_i32_0 = arith.constant 0 : i32
    %c0_i32_1 = arith.constant 0 : i32
    return %c0_i32, %arg0, %c0_i32_0 : i32, i32, i32
  }
  func.func @transform_1(%arg0: i32) -> (i32, i32, i32, i32) {
    %c0_i32 = arith.constant 0 : i32
    %c0_i32_0 = arith.constant 0 : i32
    %c0_i32_1 = arith.constant 0 : i32
    %c0_i32_2 = arith.constant 0 : i32
    return %c0_i32, %c0_i32_0, %arg0, %c0_i32_1 : i32, i32, i32, i32
  }
}

</mosaic_0001>

<bundles_post_ra>
// kernel: tpu_custom_call.1
= control target key start
LH: loop header
LB: loop body
LE: loop exit
PB: predicated region body
PF: predicated region fallthrough
CT: control target
= control target key end

     0   :  { %6 = vsyncpa [#allocation3], 0  ;;  %s14415_s0 = inlined_call_operand.hbm [shape: f32[2,8,128], index: 0, kind: input, shape index: {}]   ;;  %s14416_s1 = inlined_call_operand.hbm [shape: f32[7,6,8,128], index: 1, kind: output, shape index: {}]  }
   0x1   :  { %7 = vsyncpa [#allocation4], 0  ;;  %s9633_s6 = smov [#allocation2]  }
   0x2   :  { %s13_s7 = sshll.u32 %s9633_s6, 4  ;;  %s14_s7 = int_to_ptr.vmem [resolvable:$true] %s13_s7 }
   0x3   :  { %s9597_s8 = scalar_lea.vmem %s14_s7, 256  ;;  %p9602_p1 = scmp.lt.s32.totalorder %s14_s7, %s14_s7 }
   0x4   :  { %p9598_p0 = scmp.ne.s32.totalorder %s14_s7, %s9597_s8  ;;  %p9603_p2 = scmp.lt.s32.totalorder %s9597_s8, %s9597_s8 }
   0x6   :  { %p9604_p3 = por %p9603_p2, %p9602_p1 }
   0x8   :  { %p9605_p4 = pnand %p9604_p3, %p9598_p0 }
   0xa   :  { %9608 = shalt.err (!%p9605_p4)
}
   0xb   :  { %s9634_s9 = smov 128   ;;  %s9635_s10 = smov 8  }
   0xc   :  { %19 = dma.hbm_to_vmem [thread:$0]  %s14415_s0, 256, %s14_s7, [#allocation3], %s9634_s9, %s9634_s9, %s9635_s10  }
   0xd   :  { %9629 = dma.done.wait [#allocation3], 256  }
   0xe   :  { %9630 = vsyncadd [#allocation3], 4294967040  ;;  %v23_v0 = vld [vmem:[#allocation2] sm:$0xff]  ;;  %v9660_v1 = vld [vmem:[#allocation2 + $0x8] sm:$0xff]  ;;  %v9636_v21 = vmov 683565275  }
   0xf   :  { %v45_v2 = vand.u32 2147483647, %v9660_v1  ;;  %v48_v3 = vand.u32 2139095040, %v9660_v1  ;;  %v9664_v4 = vmul.f32 0.2, %v23_v0  ;;  %s9643_s0 = smov [#allocation5]  }
  0x10   :  { %v9637_v23 = vmov 2475754826   ;;  %v9638_v25 = vmov 2131351028   ;;  %v9639_v27 = vmov 2102212464  }
  0x11   :  { %v49_v5 = vshrl.u32 %v48_v3, 23  ;;  %v9667_v6 = vmul.f32 3.1415927, %v9664_v4  ;;  %v52_v7 = vand.u32 8388607, %v45_v2  ;;  %9414 = vrcp.f32 %v9664_v4  ;;  %s8901_s13 = sshll.u32 %s9643_s0, 4  ;;  %s8902_s13 = int_to_ptr.vmem [resolvable:$true] %s8901_s13 }
  0x12   :  { %v9673_v12 = vmul.f32 6.2831855, %v9664_v4  ;;  %v9640_v29 = vmov 920167782   ;;  %v9641_v38 = vmov 1326507024   ;;  %p9614_p6 = scmp.lt.s32.totalorder %s8902_s13, %s8902_s13 }
  0x13   :  { %v8914_v8 = vadd.s32 4294967169, %v49_v5  ;;  %v178_v9 = vand.u32 2139095040, %v9667_v6  ;;  %v53_v11 = vor.u32 8388608, %v52_v7  ;;  %v175_v14 = vand.u32 2147483647, %v9667_v6  ;;  %s9609_s14 = scalar_lea.vmem %s8902_s13, 5376 }
  0x14   :  { %v288_v19 = vand.u32 2139095040, %v9673_v12  ;;  %p9610_p5 = scmp.ne.s32.totalorder %s8902_s13, %s9609_s14  ;;  %p9615_p7 = scmp.lt.s32.totalorder %s9609_s14, %s9609_s14 }
  0x15   :  { %v55_v10 = vadd.s32 1, %v8914_v8  ;;  %v179_v15 = vshrl.u32 %v178_v9, 23  ;;  %v9676_v18 = vshll.u32 %v53_v11, 8  ;;  %v182_v32 = vand.u32 8388607, %v175_v14 }
  0x16   :  { %v289_v40 = vshrl.u32 %v288_v19, 23  ;;  %p9616_p8 = por %p9615_p7, %p9614_p6 }
  0x17   :  { %vm56_vm0 = vcmp.gt.s32.totalorder %v55_v10, 0  ;;  %v8919_v31 = vadd.s32 4294967169, %v179_v15  ;;  %v183_v59 = vor.u32 8388608, %v182_v32 }
  0x18   :  { %v57_v13 = vsel %vm56_vm0, %v55_v10, 0  ;;  %v8923_v0 = vadd.s32 4294967169, %v289_v40  ;;  %p9617_p9 = pnand %p9616_p8, %p9610_p5 }
  0x19   :  { %v59_v16 = vand.u32 31, %v57_v13  ;;  %v58_v17 = vshrl.u32 %v57_v13, 5  ;;  %v185_v53 = vadd.s32 1, %v8919_v31  ;;  %v9708_v10 = vshll.u32 %v183_v59, 8 }
  0x1b   :  { %v60_v20 = vsub.s32 32, %v59_v16  ;;  %v62_v22 = vshll.u32 %v9636_v21, %v59_v16  ;;  %v65_v24 = vshll.u32 %v9637_v23, %v59_v16  ;;  %v68_v26 = vshll.u32 %v9638_v25, %v59_v16 }
  0x1c   :  { %v71_v28 = vshll.u32 %v9639_v27, %v59_v16  ;;  %v74_v30 = vshll.u32 %v9640_v29, %v59_v16  ;;  %vm77_vm1 = vcmp.lt.s32.totalorder %v58_v17, 1  ;;  %vm78_vm2 = vcmp.lt.s32.totalorder %v58_v17, 2 }
  0x1d   :  { %v61_v33 = vshrl.u32 %v9636_v21, %v60_v20  ;;  %v63_v34 = vshrl.u32 %v9637_v23, %v60_v20  ;;  %v66_v35 = vshrl.u32 %v9638_v25, %v60_v20  ;;  %v69_v36 = vshrl.u32 %v9639_v27, %v60_v20 }
  0x1e   :  { %v72_v37 = vshrl.u32 %v9640_v29, %v60_v20  ;;  %v75_v39 = vshrl.u32 %v9641_v38, %v60_v20  ;;  %vm79_vm3 = vcmp.lt.s32.totalorder %v58_v17, 3  ;;  %vm80_vm4 = vcmp.lt.s32.totalorder %v58_v17, 4 }
  0x1f   :  { %v64_v41 = vor.u32 %v63_v34, %v62_v22  ;;  %v67_v42 = vor.u32 %v66_v35, %v65_v24  ;;  %v70_v43 = vor.u32 %v69_v36, %v68_v26  ;;  %vm186_vm5 = vcmp.gt.s32.totalorder %v185_v53, 0 }
  0x20   :  { %v73_v44 = vor.u32 %v72_v37, %v71_v28  ;;  %v76_v45 = vor.u32 %v75_v39, %v74_v30  ;;  %v187_v3 = vsel %vm186_vm5, %v185_v53, 0  ;;  %v295_v16 = vadd.s32 1, %v8923_v0 }
  0x21   :  { %v81_v46 = vsel %vm77_vm1, %v61_v33, %v64_v41  ;;  %v82_v47 = vsel %vm80_vm4, %v70_v43, 2102212464  ;;  %v85_v48 = vsel %vm77_vm1, %v64_v41, %v67_v42  ;;  %v89_v49 = vsel %vm77_vm1, %v67_v42, %v70_v43 }
  0x22   :  { %v83_v50 = vsel %vm79_vm3, %v67_v42, %v82_v47  ;;  %v86_v51 = vsel %vm80_vm4, %v73_v44, 920167782  ;;  %v90_v52 = vsel %vm80_vm4, %v76_v45, 1326507024  ;;  %v188_v7 = vshrl.u32 %v187_v3, 5 }
  0x23   :  { %v87_v54 = vsel %vm79_vm3, %v70_v43, %v86_v51  ;;  %v91_v55 = vsel %vm79_vm3, %v73_v44, %v90_v52  ;;  %v84_v56 = vsel %vm78_vm2, %v81_v46, %v83_v50  ;;  %v189_v8 = vand.u32 31, %v187_v3 }
  0x24   :  { %v88_v57 = vsel %vm78_vm2, %v85_v48, %v87_v54  ;;  %v92_v58 = vsel %vm78_vm2, %v89_v49, %v91_v55  ;;  %v100_v5 = vmul.u32 %v9676_v18, %v84_v56  ;;  %vm207_vm7 = vcmp.lt.s32.totalorder %v188_v7, 1 }
  0x25   :  { %v9696_v60 = vmul.u32.u64.low %v9676_v18, %v92_v58  ;;  %v9697_v61 = vmul.u32.u64.high %v9676_v18, %v92_v58, %v9696_v60  ;;  %v9700_v62 = vmul.u32.u64.low %v9676_v18, %v88_v57  ;;  %v9701_v63 = vmul.u32.u64.high %v9676_v18, %v88_v57, %v9700_v62 }
  0x26   :  { %v190_v11 = vsub.s32 32, %v189_v8  ;;  %v192_v13 = vshll.u32 %v9636_v21, %v189_v8  ;;  %v195_v15 = vshll.u32 %v9637_v23, %v189_v8  ;;  %v198_v19 = vshll.u32 %v9638_v25, %v189_v8 }
  0x27   :  { %vm102_vm6 = vc.u32 %v9697_v61, %v9700_v62  ;;  %v103_v9 = vadd.s32 1, %v9701_v63  ;;  %v201_v18 = vshll.u32 %v9639_v27, %v189_v8  ;;  %v204_v20 = vshll.u32 %v9640_v29, %v189_v8 }
  0x28   :  { %v193_v24 = vshrl.u32 %v9637_v23, %v190_v11  ;;  %v196_v26 = vshrl.u32 %v9638_v25, %v190_v11  ;;  %v191_v28 = vshrl.u32 %v9636_v21, %v190_v11  ;;  %v199_v30 = vshrl.u32 %v9639_v27, %v190_v11 }
  0x29   :  { %v104_v17 = vsel %vm102_vm6, %v103_v9, %v9701_v63  ;;  %v202_v31 = vshrl.u32 %v9640_v29, %v190_v11  ;;  %v205_v32 = vshrl.u32 %v9641_v38, %v190_v11  ;;  %vm209_vm8 = vcmp.lt.s32.totalorder %v188_v7, 3 }
  0x2a   :  { %v105_v22 = vadd.s32 %v104_v17, %v100_v5  ;;  %v194_v34 = vor.u32 %v193_v24, %v192_v13  ;;  %v197_v35 = vor.u32 %v196_v26, %v195_v15  ;;  %v200_v36 = vor.u32 %v199_v30, %v198_v19 }
  0x2b   :  { %v203_v37 = vor.u32 %v202_v31, %v201_v18  ;;  %v206_v39 = vor.u32 %v205_v32, %v204_v20  ;;  %vm210_vm9 = vcmp.lt.s32.totalorder %v188_v7, 4  ;;  %vm208_vm10 = vcmp.lt.s32.totalorder %v188_v7, 2 }
  0x2c   :  { %v106_v33 = vadd.s32 536870912, %v105_v22  ;;  %v215_v41 = vsel %vm207_vm7, %v194_v34, %v197_v35  ;;  %vm296_vm11 = vcmp.gt.s32.totalorder %v295_v16, 0  ;;  %v212_v42 = vsel %vm210_vm9, %v200_v36, 2102212464 }
  0x2d   :  { %v216_v43 = vsel %vm210_vm9, %v203_v37, 920167782  ;;  %v219_v44 = vsel %vm207_vm7, %v197_v35, %v200_v36  ;;  %v220_v45 = vsel %vm210_vm9, %v206_v39, 1326507024  ;;  %v29_v46 = vmul.f32 %v9664_v4, %v9664_v4 }
  0x2e   :  { %v9722_v40 = vshrl.u32 %v106_v33, 30  ;;  %v217_v47 = vsel %vm209_vm8, %v200_v36, %v216_v43  ;;  %v211_v48 = vsel %vm207_vm7, %v191_v28, %v194_v34  ;;  %v213_v49 = vsel %vm209_vm8, %v197_v35, %v212_v42 }
  0x2f   :  { %v218_v50 = vsel %vm208_vm10, %v215_v41, %v217_v47  ;;  %v221_v51 = vsel %vm209_vm8, %v203_v37, %v220_v45  ;;  %v285_v54 = vand.u32 2147483647, %v9673_v12  ;;  %v297_v55 = vsel %vm296_vm11, %v295_v16, 0 }
  0x30   :  { %v108_v52 = vshll.u32 %v9722_v40, 30  ;;  %v222_v53 = vsel %vm208_vm10, %v219_v44, %v221_v51  ;;  %v30_v58 = vmul.f32 %v29_v46, %v9664_v4  ;;  %v214_v59 = vsel %vm208_vm10, %v211_v48, %v213_v49 }
  0x31   :  { %v9737_v56 = vmul.u32.u64.low %v9708_v10, %v222_v53  ;;  %v9738_v57 = vmul.u32.u64.high %v9708_v10, %v222_v53, %v9737_v56  ;;  %v9743_v60 = vmul.u32.u64.low %v9708_v10, %v218_v50  ;;  %v9744_v63 = vmul.u32.u64.high %v9708_v10, %v218_v50, %v9743_v60 }
  0x32   :  { %v299_v0 = vand.u32 31, %v297_v55  ;;  %v9748_v3 = vsub.s32 %v105_v22, %v108_v52  ;;  %v292_v5 = vand.u32 8388607, %v285_v54  ;;  %v230_v8 = vmul.u32 %v9708_v10, %v214_v59  ;;  %v9782_v56 = vpop.eup %9414 }
  0x33   :  { %vm232_vm12 = vc.u32 %v9738_v57, %v9743_v60  ;;  %v31_v11 = vmul.f32 %v30_v58, %v9664_v4  ;;  %v233_v13 = vadd.s32 1, %v9744_v63  ;;  %v298_v17 = vshrl.u32 %v297_v55, 5 }
  0x34   :  { %v300_v7 = vsub.s32 32, %v299_v0  ;;  %v302_v9 = vshll.u32 %v9636_v21, %v299_v0  ;;  %v305_v15 = vshll.u32 %v9637_v23, %v299_v0  ;;  %v308_v16 = vshll.u32 %v9638_v25, %v299_v0 }
  0x35   :  { %v234_v20 = vsel %vm232_vm12, %v233_v13, %v9744_v63  ;;  %v293_v22 = vor.u32 8388608, %v292_v5  ;;  %v311_v24 = vshll.u32 %v9639_v27, %v299_v0  ;;  %v111_v28 = vsub.s32 0, %v9748_v3 }
  0x36   :  { %v303_v19 = vshrl.u32 %v9637_v23, %v300_v7  ;;  %v306_v18 = vshrl.u32 %v9638_v25, %v300_v7  ;;  %v309_v10 = vshrl.u32 %v9639_v27, %v300_v7  ;;  %v312_v26 = vshrl.u32 %v9640_v29, %v300_v7 }
  0x37   :  { %v235_v30 = vadd.s32 %v234_v20, %v230_v8  ;;  %v314_v35 = vshll.u32 %v9640_v29, %v299_v0  ;;  %v315_v36 = vshrl.u32 %v9641_v38, %v300_v7  ;;  %vm317_vm13 = vcmp.lt.s32.totalorder %v298_v17, 1 }
  0x38   :  { %v304_v31 = vor.u32 %v303_v19, %v302_v9  ;;  %v307_v32 = vor.u32 %v306_v18, %v305_v15  ;;  %v310_v33 = vor.u32 %v309_v10, %v308_v16  ;;  %v313_v34 = vor.u32 %v312_v26, %v311_v24 }
  0x39   :  { %v236_v37 = vadd.s32 536870912, %v235_v30  ;;  %vm319_vm14 = vcmp.lt.s32.totalorder %v298_v17, 3  ;;  %vm320_vm15 = vcmp.lt.s32.totalorder %v298_v17, 4  ;;  %v301_v39 = vshrl.u32 %v9636_v21, %v300_v7 }
  0x3a   :  { %v316_v41 = vor.u32 %v315_v36, %v314_v35  ;;  %v32_v42 = vmul.f32 %v31_v11, %v9664_v4  ;;  %vm318_vm0 = vcmp.lt.s32.totalorder %v298_v17, 2  ;;  %v326_v44 = vsel %vm320_vm15, %v313_v34, 920167782 }
  0x3b   :  { %v9771_v43 = vshrl.u32 %v236_v37, 30  ;;  %v8915_v45 = vmin.u32 %v111_v28, %v9748_v3  ;;  %v322_v46 = vsel %vm320_vm15, %v310_v33, 2102212464  ;;  %v325_v47 = vsel %vm317_vm13, %v304_v31, %v307_v32 }
  0x3c   :  { %v327_v48 = vsel %vm319_vm14, %v310_v33, %v326_v44  ;;  %v333_v50 = vshll.u32 %v293_v22, 8  ;;  %v321_v51 = vsel %vm317_vm13, %v301_v39, %v304_v31  ;;  %v329_v52 = vsel %vm317_vm13, %v307_v32, %v310_v33 }
  0x3d   :  { %v238_v49 = vshll.u32 %v9771_v43, 30  ;;  %v330_v53 = vsel %vm320_vm15, %v316_v41, 1326507024  ;;  %v9780_v55 = vmul.f32 9.424778, %v9664_v4  ;;  %v323_v59 = vsel %vm319_vm14, %v307_v32, %v322_v46 }
  0x3e   :  { %v328_v63 = vsel %vm318_vm0, %v325_v47, %v327_v48  ;;  %v331_v0 = vsel %vm319_vm14, %v313_v34, %v330_v53  ;;  %v33_v5 = vmul.f32 %v32_v42, %v9664_v4  ;;  %v35_v8 = vmul.f32 -28.0, %v32_v42 }
  0x3f   :  { %v239_v58 = vsub.s32 %v235_v30, %v238_v49  ;;  %v113_v7 = vclz %v8915_v45  ;;  %v332_v9 = vsel %vm318_vm0, %v329_v52, %v331_v0  ;;  %v324_v16 = vsel %vm318_vm0, %v321_v51, %v323_v59 }
  0x40   :  { %v9789_v13 = vmul.u32.u64.low %v333_v50, %v332_v9  ;;  %v9790_v15 = vmul.u32.u64.high %v333_v50, %v332_v9, %v9789_v13  ;;  %v9793_v19 = vmul.u32.u64.low %v333_v50, %v328_v63  ;;  %v9794_v18 = vmul.u32.u64.high %v333_v50, %v328_v63, %v9793_v19 }
  0x41   :  { %v241_v11 = vsub.s32 0, %v239_v58  ;;  %v399_v20 = vand.u32 2139095040, %v9780_v55  ;;  %v34_v22 = vmul.f32 %v33_v5, %v9664_v4  ;;  %v36_v24 = vadd.f32 %v9782_v56, %v35_v8 }
  0x42   :  { %v37_v26 = vmul.f32 48.0, %v33_v5  ;;  %v8916_v28 = vadd.s32 4294967294, %v113_v7  ;;  %v340_v31 = vmul.u32 %v333_v50, %v324_v16  ;;  %vm342_vm1 = vc.u32 %v9790_v15, %v9793_v19 }
  0x43   :  { %v8920_v10 = vmin.u32 %v241_v11, %v239_v58  ;;  %v343_v17 = vadd.s32 1, %v9794_v18  ;;  %vm41_vm2 = vcmp.lt.f32.partialorder %v9664_v4, 1.0  ;;  %v400_v33 = vshrl.u32 %v399_v20, 23 }
  0x44   :  { %v38_v34 = vadd.f32 %v37_v26, %v36_v24  ;;  %v39_v35 = vmul.f32 -21.0, %v34_v22  ;;  %vm8917_vm3 = vcmp.lt.s32.totalorder %v8916_v28, 0  ;;  %v231_v37 = vadd.s32 %v9743_v60, %v9738_v57 }
  0x45   :  { %v243_v30 = vclz %v8920_v10  ;;  %v344_v36 = vsel %vm342_vm1, %v343_v17, %v9794_v18  ;;  %v8927_v41 = vadd.s32 4294967169, %v400_v33  ;;  %v9808_v44 = vmul.f32 12.566371, %v9664_v4 }
  0x46   :  { %v345_v39 = vadd.s32 %v344_v36, %v340_v31  ;;  %v116_v45 = vsel %vm8917_vm3, 0, %v8916_v28  ;;  %v40_v49 = vadd.f32 %v39_v35, %v38_v34  ;;  %v9642_v50 = vmov 0.0  }
  0x47   :  { %v8921_v32 = vadd.s32 4294967294, %v243_v30  ;;  %v8913_v51 = vsel %vm41_vm2, 1.0, %v9642_v50  ;;  %v406_v53 = vadd.s32 1, %v8927_v41  ;;  %v101_v57 = vadd.s32 %v9700_v62, %v9697_v61 }
  0x48   :  { %v346_v52 = vadd.s32 536870912, %v345_v39  ;;  %v117_v60 = vsub.s32 32, %v116_v45  ;;  %v121_v0 = vsub.s32 4294967266, %v116_v45  ;;  %v261_v5 = vsub.s32 4, %v9771_v43 }
  0x49   :  { %vm8922_vm4 = vcmp.lt.s32.totalorder %v8921_v32, 0  ;;  %vm407_vm5 = vcmp.gt.s32.totalorder %v406_v53, 0  ;;  %v510_v11 = vand.u32 2139095040, %v9808_v44  ;;  %v9819_v18 = vmul.f32 %v8913_v51, %v40_v49 }
  0x4a   :  { %v246_v42 = vsel %vm8922_vm4, 0, %v8921_v32  ;;  %v9815_v8 = vshrl.u32 %v346_v52, 30  ;;  %v408_v9 = vsel %vm407_vm5, %v406_v53, 0  ;;  %vm177_vm6 = vcmp.lt.s32.totalorder %v9667_v6, 0 }
  0x4b   :  { %v247_v46 = vsub.s32 32, %v246_v42  ;;  %v248_v47 = vshll.u32 %v239_v58, %v246_v42  ;;  %v251_v48 = vsub.s32 4294967266, %v246_v42  ;;  %v410_v16 = vand.u32 31, %v408_v9 }
  0x4c   :  { %v348_v13 = vshll.u32 %v9815_v8, 30  ;;  %v118_v10 = vshll.u32 %v9748_v3, %v116_v45  ;;  %v119_v20 = vshrl.u32 %v101_v57, %v117_v60  ;;  %v9823_v22 = vadd.s32 127, %v121_v0 }
  0x4d   :  { %v249_v59 = vshrl.u32 %v231_v37, %v247_v46  ;;  %v252_v63 = vadd.s32 127, %v251_v48  ;;  %v262_v28 = vsel %vm177_vm6, %v261_v5, %v9771_v43  ;;  %v396_v30 = vand.u32 2147483647, %v9780_v55 }
  0x4e   :  { %v9825_v24 = vsub.s32 %v345_v39, %v348_v13  ;;  %v511_v31 = vshrl.u32 %v510_v11, 23  ;;  %v411_v32 = vsub.s32 32, %v410_v16  ;;  %v9833_v33 = vmul.f32 0.2820948, %v9819_v18 }
  0x4f   :  { %v250_v58 = vor.u32 %v249_v59, %v248_v47  ;;  %v253_v7 = vshll.u32 %v252_v63, 23  ;;  %v9836_v3 = vmul.f32 0.31830987, %v9782_v56  ;;  %vm9840_vm7 = vcmp.le.f32.partialorder %v175_v14, 0.7853982 }
  0x50   :  { %v351_v17 = vsub.s32 0, %v9825_v24  ;;  %v9844_v43 = vor.u32 %v119_v20, %v118_v10  ;;  %v123_v36 = vshll.u32 %v9823_v22, 23  ;;  %v264_v37 = vsel %vm9840_vm7, 0, %v262_v28 }
  0x51   :  { %v254_v61 = vor.u32 4788187, %v253_v7  ;;  %v257_v62 = vcvt.s32.f32 %v250_v58  ;;  %v403_v42 = vand.u32 8388607, %v396_v30  ;;  %v9852_v45 = vshrl.u32 %v408_v9, 5 }
  0x52   :  { %v8924_v39 = vmin.u32 %v351_v17, %v9825_v24  ;;  %v8931_v14 = vadd.s32 4294967169, %v511_v31  ;;  %v413_v47 = vshll.u32 %v9636_v21, %v410_v16  ;;  %v414_v48 = vshrl.u32 %v9637_v23, %v411_v32 }
  0x53   :  { %v255_v26 = vand.u32 2147483647, %v254_v61  ;;  %v416_v49 = vshll.u32 %v9637_v23, %v410_v16  ;;  %v417_v51 = vshrl.u32 %v9638_v25, %v411_v32  ;;  %v422_v52 = vshll.u32 %v9639_v27, %v410_v16 }
  0x54   :  { %v353_v46 = vclz %v8924_v39  ;;  %v423_v53 = vshrl.u32 %v9640_v29, %v411_v32  ;;  %v419_v59 = vshll.u32 %v9638_v25, %v410_v16  ;;  %v420_v63 = vshrl.u32 %v9639_v27, %v411_v32 }
  0x55   :  { %v258_v35 = vmul.f32 %v257_v62, %v255_v26  ;;  %v268_v0 = vadd.s32 3, %v264_v37  ;;  %v425_v5 = vshll.u32 %v9640_v29, %v410_v16  ;;  %v426_v58 = vshrl.u32 %v9641_v38, %v411_v32 }
  0x56   :  { %v8925_v60 = vadd.s32 4294967294, %v353_v46  ;;  %v341_v7 = vadd.s32 %v9793_v19, %v9790_v15  ;;  %v404_v9 = vor.u32 8388608, %v403_v42  ;;  %v415_v13 = vor.u32 %v414_v48, %v413_v47 }
  0x57   :  { %v259_v41 = vxor.u32 2147483648, %v258_v35  ;;  %v418_v61 = vor.u32 %v417_v51, %v416_v49  ;;  %v424_v62 = vor.u32 %v423_v53, %v422_v52  ;;  %v421_v10 = vor.u32 %v420_v63, %v419_v59 }
  0x58   :  { %vm8926_vm8 = vcmp.lt.s32.totalorder %v8925_v60, 0  ;;  %vm428_vm9 = vcmp.lt.s32.totalorder %v9852_v45, 1  ;;  %vm431_vm10 = vcmp.lt.s32.totalorder %v9852_v45, 4  ;;  %v517_v20 = vadd.s32 1, %v8931_v14 }
  0x59   :  { %v260_v50 = vsel %vm177_vm6, %v259_v41, %v258_v35  ;;  %v356_v11 = vsel %vm8926_vm8, 0, %v8925_v60  ;;  %v427_v28 = vor.u32 %v426_v58, %v425_v5  ;;  %vm430_vm11 = vcmp.lt.s32.totalorder %v9852_v45, 3 }
  0x5a   :  { %v263_v57 = vsel %vm9840_vm7, %v9667_v6, %v260_v50  ;;  %v357_v26 = vsub.s32 32, %v356_v11  ;;  %v358_v16 = vshll.u32 %v9825_v24, %v356_v11  ;;  %v361_v31 = vsub.s32 4294967266, %v356_v11 }
  0x5b   :  { %9416 = vcosq.f32 %v263_v57  ;;  %v412_v15 = vshrl.u32 %v9636_v21, %v411_v32  ;;  %vm429_vm12 = vcmp.lt.s32.totalorder %v9852_v45, 2  ;;  %v444_v19 = vshll.u32 %v404_v9, 8 }
  0x5c   :  { %9418 = vsinq.f32 %v263_v57  ;;  %vm287_vm13 = vcmp.lt.s32.totalorder %v9673_v12, 0  ;;  %v359_v17 = vshrl.u32 %v341_v7, %v357_v26  ;;  %v433_v34 = vsel %vm431_vm10, %v421_v10, 2102212464 }
  0x5d   :  { %v436_v35 = vsel %vm428_vm9, %v415_v13, %v418_v61  ;;  %v437_v24 = vsel %vm431_vm10, %v424_v62, 920167782  ;;  %v269_v37 = vand.u32 3, %v268_v0  ;;  %v362_v39 = vadd.s32 127, %v361_v31 }
  0x5e   :  { %v438_v32 = vsel %vm430_vm11, %v421_v10, %v437_v24  ;;  %vm518_vm14 = vcmp.gt.s32.totalorder %v517_v20, 0  ;;  %vm267_vm15 = vweird.f32 %v9667_v6  ;;  %v360_v41 = vor.u32 %v359_v17, %v358_v16 }
  0x5f   :  { %v439_v42 = vsel %vm429_vm12, %v436_v35, %v438_v32  ;;  %v440_v14 = vsel %vm428_vm9, %v418_v61, %v421_v10  ;;  %v441_v46 = vsel %vm431_vm10, %v427_v28, 1326507024  ;;  %vm9895_vm0 = vcmp.le.f32.partialorder %v285_v54, 0.7853982 }
  0x60   :  { %v363_v48 = vshll.u32 %v362_v39, 23  ;;  %v432_v49 = vsel %vm428_vm9, %v412_v15, %v415_v13  ;;  %v434_v50 = vsel %vm430_vm11, %v418_v61, %v433_v34  ;;  %v442_v51 = vsel %vm430_vm11, %v424_v62, %v441_v46 }
  0x61   :  { %v124_v52 = vor.u32 4788187, %v123_v36  ;;  %v443_v53 = vsel %vm429_vm12, %v440_v14, %v442_v51  ;;  %v9909_v54 = vmul.u32.u64.low %v444_v19, %v439_v42  ;;  %v9910_v57 = vmul.u32.u64.high %v444_v19, %v439_v42, %v9909_v54 }
  0x62   :  { %v364_v60 = vor.u32 4788187, %v363_v48  ;;  %v367_v59 = vcvt.s32.f32 %v360_v41  ;;  %v371_v63 = vsub.s32 4, %v9815_v8  ;;  %v519_v0 = vsel %vm518_vm14, %v517_v20, 0 }
  0x63   :  { %v435_v5 = vsel %vm429_vm12, %v432_v49, %v434_v50  ;;  %v9917_v58 = vmul.u32.u64.low %v444_v19, %v443_v53  ;;  %v9918_v7 = vmul.u32.u64.high %v444_v19, %v443_v53, %v9917_v58  ;;  %v521_v22 = vand.u32 31, %v519_v0 }
  0x64   :  { %v131_v9 = vsub.s32 4, %v9722_v40  ;;  %vm274_vm1 = vcmp.eq.s32.totalorder %v269_v37, 2  ;;  %v365_v11 = vand.u32 2147483647, %v364_v60  ;;  %v507_v13 = vand.u32 2147483647, %v9808_v44 }
  0x65   :  { %vm270_vm2 = vcmp.lt.s32.totalorder %v269_v37, 2  ;;  %vm271_vm3 = vcmp.eq.s32.totalorder %v269_v37, 0  ;;  %v454_v10 = vadd.s32 1, %v9910_v57  ;;  %v372_v26 = vsel %vm287_vm13, %v371_v63, %v9815_v8 }
  0x66   :  { %v368_v45 = vmul.f32 %v367_v59, %v365_v11  ;;  %v451_v16 = vmul.u32 %v444_v19, %v435_v5  ;;  %v127_v28 = vcvt.s32.f32 %v9844_v43  ;;  %vm453_vm4 = vc.u32 %v9918_v7, %v9909_v54 }
  0x67   :  { %v522_v15 = vsub.s32 32, %v521_v22  ;;  %v125_v17 = vand.u32 2147483647, %v124_v52  ;;  %v514_v24 = vand.u32 8388607, %v507_v13  ;;  %v374_v32 = vsel %vm9895_vm0, 0, %v372_v26 }
  0x68   :  { %v9417_v36 = vpop.eup %9416  ;;  %v369_v35 = vxor.u32 2147483648, %v368_v45  ;;  %v455_v8 = vsel %vm453_vm4, %v454_v10, %v9910_v57  ;;  %v9935_v19 = vshrl.u32 %v519_v0, 5  ;;  %v524_v14 = vshll.u32 %v9636_v21, %v521_v22 }
  0x69   :  { %v9419_v61 = vpop.eup %9418  ;;  %v275_v62 = vxor.u32 2147483648, %v9417_v36  ;;  %v456_v42 = vadd.s32 %v455_v8, %v451_v16  ;;  %v525_v48 = vshrl.u32 %v9637_v23, %v522_v15  ;;  %v527_v49 = vshll.u32 %v9637_v23, %v521_v22 }
  0x6a   :  { %v272_v20 = vxor.u32 2147483648, %v9419_v61  ;;  %v370_v41 = vsel %vm287_vm13, %v369_v35, %v368_v45  ;;  %v528_v6 = vshrl.u32 %v9638_v25, %v522_v15  ;;  %v530_v51 = vshll.u32 %v9638_v25, %v521_v22 }
  0x6b   :  { %v276_v31 = vsel %vm274_vm1, %v275_v62, %v9419_v61  ;;  %v373_v37 = vsel %vm9895_vm0, %v9673_v12, %v370_v41  ;;  %v457_v50 = vadd.s32 536870912, %v456_v42  ;;  %v531_v53 = vshrl.u32 %v9639_v27, %v522_v15 }
  0x6c   :  { %v273_v34 = vsel %vm271_vm3, %v9417_v36, %v272_v20  ;;  %9420 = vcosq.f32 %v373_v37  ;;  %v128_v57 = vmul.f32 %v127_v28, %v125_v17  ;;  %v515_v47 = vor.u32 8388608, %v514_v24 }
  0x6d   :  { %v277_v39 = vsel %vm270_vm2, %v273_v34, %v276_v31  ;;  %9422 = vsinq.f32 %v373_v37  ;;  %v9952_v60 = vshrl.u32 %v457_v50, 30  ;;  %v534_v59 = vshrl.u32 %v9640_v29, %v522_v15 }
  0x6e   :  { %v278_v43 = vsel %vm267_vm15, nan, %v277_v39  ;;  %v378_v0 = vadd.s32 3, %v374_v32  ;;  %v536_v5 = vshll.u32 %v9640_v29, %v521_v22  ;;  %v537_v58 = vshrl.u32 %v9641_v38, %v522_v15 }
  0x6f   :  { %v279_v46 = vmul.f32 %v278_v43, %v9836_v3  ;;  %v533_v3 = vshll.u32 %v9639_v27, %v521_v22  ;;  %v459_v36 = vshll.u32 %v9952_v60, 30  ;;  %v523_v11 = vshrl.u32 %v9636_v21, %v522_v15 }
  0x70   :  { %v526_v61 = vor.u32 %v525_v48, %v524_v14  ;;  %v529_v62 = vor.u32 %v528_v6, %v527_v49  ;;  %v532_v10 = vor.u32 %v531_v53, %v530_v51  ;;  %v538_v45 = vor.u32 %v537_v58, %v536_v5 }
  0x71   :  { %v280_v52 = vmul.f32 4.442883, %v279_v46  ;;  %v535_v20 = vor.u32 %v534_v59, %v533_v3  ;;  %vm539_vm5 = vcmp.lt.s32.totalorder %v9935_v19, 1  ;;  %vm47_vm6 = vcmp.lt.s32.totalorder %v9660_v1, 0 }
  0x72   :  { %v284_v26 = vmul.f32 0.15915494, %v9782_v56  ;;  %v9963_v16 = vsub.s32 %v456_v42, %v459_v36  ;;  %vm542_vm7 = vcmp.lt.s32.totalorder %v9935_v19, 4  ;;  %v129_v22 = vxor.u32 2147483648, %v128_v57 }
  0x73   :  { %v281_v63 = vmul.f32 %v280_v52, %v9833_v33  ;;  %v9971_v28 = vsel %vm47_vm6, %v131_v9, %v9722_v40  ;;  %vm398_vm8 = vcmp.lt.s32.totalorder %v9780_v55, 0  ;;  %vm541_vm9 = vcmp.lt.s32.totalorder %v9935_v19, 3 }
  0x74   :  { %v544_v31 = vsel %vm542_vm7, %v532_v10, 2102212464  ;;  %vm377_vm10 = vweird.f32 %v9673_v12  ;;  %v379_v15 = vand.u32 3, %v378_v0  ;;  %v462_v17 = vsub.s32 0, %v9963_v16 }
  0x75   :  { %282 = vst [vmem:[#allocation5] sm:$0xff] %v281_v63  ;;  %vm540_vm11 = vcmp.lt.s32.totalorder %v9935_v19, 2  ;;  %v547_v34 = vsel %vm539_vm5, %v526_v61, %v529_v62  ;;  %v543_v35 = vsel %vm539_vm5, %v523_v11, %v526_v61  ;;  %v548_v40 = vsel %vm542_vm7, %v535_v20, 920167782 }
  0x76   :  { %v552_v9 = vsel %vm542_vm7, %v538_v45, 1326507024  ;;  %v555_v24 = vshll.u32 %v515_v47, 8  ;;  %vm9984_vm12 = vcmp.le.f32.partialorder %v396_v30, 0.7853982  ;;  %v8928_v32 = vmin.u32 %v462_v17, %v9963_v16 }
  0x77   :  { %v545_v8 = vsel %vm541_vm9, %v529_v62, %v544_v31  ;;  %v549_v43 = vsel %vm541_vm9, %v532_v10, %v548_v40  ;;  %v551_v41 = vsel %vm539_vm5, %v529_v62, %v532_v10  ;;  %vm9997_vm13 = vcmp.le.f32.partialorder %v45_v2, 0.7853982 }
  0x78   :  { %v130_v30 = vsel %vm47_vm6, %v129_v22, %v128_v57  ;;  %v550_v14 = vsel %vm540_vm11, %v547_v34, %v549_v43  ;;  %v553_v46 = vsel %vm541_vm9, %v535_v20, %v552_v9  ;;  %v10008_v37 = vmul.f32 15.707963, %v9664_v4 }
  0x79   :  { %vm381_vm14 = vcmp.eq.s32.totalorder %v379_v15, 0  ;;  %vm384_vm15 = vcmp.eq.s32.totalorder %v379_v15, 2  ;;  %v464_v48 = vclz %v8928_v32  ;;  %v482_v2 = vsub.s32 4, %v9952_v60  ;;  %v9421_v49 = vpop.eup %9420 }
  0x7a   :  { %v546_v50 = vsel %vm540_vm11, %v543_v35, %v545_v8  ;;  %v554_v6 = vsel %vm540_vm11, %v551_v41, %v553_v46  ;;  %v10015_v51 = vmul.u32.u64.low %v555_v24, %v550_v14  ;;  %v10016_v52 = vmul.u32.u64.high %v555_v24, %v550_v14, %v10015_v51  ;;  %v9423_v53 = vpop.eup %9422 }
  0x7b   :  { %v385_v3 = vxor.u32 2147483648, %v9421_v49  ;;  %v8929_v57 = vadd.s32 4294967294, %v464_v48  ;;  %v10019_v47 = vmul.u32.u64.low %v555_v24, %v554_v6  ;;  %v10020_v59 = vmul.u32.u64.high %v555_v24, %v554_v6, %v10019_v47 }
  0x7c   :  { %vm380_vm0 = vcmp.lt.s32.totalorder %v379_v15, 2  ;;  %v382_v63 = vxor.u32 2147483648, %v9423_v53  ;;  %v452_v0 = vadd.s32 %v9909_v54, %v9918_v7  ;;  %v621_v5 = vand.u32 2139095040, %v10008_v37 }
  0x7d   :  { %v386_v19 = vsel %vm384_vm15, %v385_v3, %v9423_v53  ;;  %vm8930_vm1 = vcmp.lt.s32.totalorder %v8929_v57, 0  ;;  %v483_v58 = vsel %vm398_vm8, %v482_v2, %v9952_v60  ;;  %v562_v36 = vmul.u32 %v555_v24, %v546_v50 }
  0x7e   :  { %v383_v11 = vsel %vm381_vm14, %v9421_v49, %v382_v63  ;;  %v467_v61 = vsel %vm8930_vm1, 0, %v8929_v57  ;;  %v565_v62 = vadd.s32 1, %v10016_v52  ;;  %v622_v10 = vshrl.u32 %v621_v5, 23 }
  0x7f   :  { %v387_v20 = vsel %vm380_vm0, %v383_v11, %v386_v19  ;;  %v468_v45 = vsub.s32 32, %v467_v61  ;;  %v469_v54 = vshll.u32 %v9963_v16, %v467_v61  ;;  %v472_v7 = vsub.s32 4294967266, %v467_v61 }
  0x80   :  { %v388_v22 = vsel %vm377_vm10, nan, %v387_v20  ;;  %v485_v31 = vsel %vm9984_vm12, 0, %v483_v58  ;;  %vm564_vm2 = vc.u32 %v10020_v59, %v10015_v51  ;;  %v8935_v60 = vadd.s32 4294967169, %v622_v10 }
  0x81   :  { %v389_v15 = vmul.f32 %v388_v22, %v284_v26  ;;  %v470_v17 = vshrl.u32 %v452_v0, %v468_v45  ;;  %v473_v34 = vadd.s32 127, %v472_v7  ;;  %v566_v35 = vsel %vm564_vm2, %v565_v62, %v10016_v52 }
  0x82   :  { %v134_v16 = vsel %vm9997_vm13, 0, %v9971_v28  ;;  %v567_v40 = vadd.s32 %v566_v35, %v562_v36  ;;  %v628_v9 = vadd.s32 1, %v8935_v60  ;;  %v133_v12 = vsel %vm9997_vm13, %v9660_v1, %v130_v30 }
  0x83   :  { %v390_v24 = vmul.f32 8.885766, %v389_v15  ;;  %v471_v32 = vor.u32 %v470_v17, %v469_v54  ;;  %v474_v8 = vshll.u32 %v473_v34, 23  ;;  %v489_v43 = vadd.s32 3, %v485_v31 }
  0x84   :  { %v568_v41 = vadd.s32 536870912, %v567_v40  ;;  %v618_v26 = vand.u32 2147483647, %v10008_v37  ;;  %vm629_vm3 = vcmp.gt.s32.totalorder %v628_v9, 0  ;;  %9424 = vcosq.f32 %v133_v12 }
  0x85   :  { %v391_v14 = vmul.f32 %v390_v24, %v9833_v33  ;;  %v475_v46 = vor.u32 4788187, %v474_v8  ;;  %v478_v48 = vcvt.s32.f32 %v471_v32  ;;  %v630_v2 = vsel %vm629_vm3, %v628_v9, 0 }
  0x86   :  { %v10047_v28 = vshrl.u32 %v568_v41, 30  ;;  %v632_v49 = vand.u32 31, %v630_v2  ;;  %9426 = vsinq.f32 %v133_v12  ;;  %v10049_v42 = vand.u32 3, %v134_v16 }
  0x87   :  { %393 = vst [vmem:[#allocation5 + $0x8] sm:$0xff] %v391_v14  ;;  %v10052_v1 = vmul.f32 0.10610329, %v9782_v56  ;;  %v476_v30 = vand.u32 2147483647, %v475_v46  ;;  %v10054_v50 = vand.u32 3, %v489_v43  ;;  %v563_v10 = vadd.s32 %v10015_v51, %v10020_v59 }
  0x88   :  { %v570_v6 = vshll.u32 %v10047_v28, 30  ;;  %v625_v52 = vand.u32 8388607, %v618_v26  ;;  %v633_v53 = vsub.s32 32, %v632_v49  ;;  %v631_v57 = vshrl.u32 %v630_v2, 5 }
  0x89   :  { %v479_v3 = vmul.f32 %v478_v48, %v476_v30  ;;  %v635_v47 = vshll.u32 %v9636_v21, %v632_v49  ;;  %v10061_v63 = vmul.f32 18.849556, %v9664_v4  ;;  %v638_v19 = vshll.u32 %v9637_v23, %v632_v49 }
  0x8a   :  { %v10063_v0 = vsub.s32 %v567_v40, %v570_v6  ;;  %v636_v5 = vshrl.u32 %v9637_v23, %v633_v53  ;;  %v641_v58 = vshll.u32 %v9638_v25, %v632_v49  ;;  %v639_v11 = vshrl.u32 %v9638_v25, %v633_v53 }
  0x8b   :  { %v480_v36 = vxor.u32 2147483648, %v479_v3  ;;  %v642_v61 = vshrl.u32 %v9639_v27, %v633_v53  ;;  %v644_v62 = vshll.u32 %v9639_v27, %v632_v49  ;;  %v626_v45 = vor.u32 8388608, %v625_v52 }
  0x8c   :  { %v573_v20 = vsub.s32 0, %v10063_v0  ;;  %v645_v54 = vshrl.u32 %v9640_v29, %v633_v53  ;;  %v634_v22 = vshrl.u32 %v9636_v21, %v633_v53  ;;  %v637_v31 = vor.u32 %v636_v5, %v635_v47 }
  0x8d   :  { %v481_v7 = vsel %vm398_vm8, %v480_v36, %v479_v3  ;;  %v647_v60 = vshll.u32 %v9640_v29, %v632_v49  ;;  %v640_v51 = vor.u32 %v639_v11, %v638_v19  ;;  %v643_v59 = vor.u32 %v642_v61, %v641_v58 }
  0x8e   :  { %v484_v15 = vsel %vm9984_vm12, %v9780_v55, %v481_v7  ;;  %v8932_v17 = vmin.u32 %v573_v20, %v10063_v0  ;;  %v646_v34 = vor.u32 %v645_v54, %v644_v62  ;;  %v648_v35 = vshrl.u32 %v9641_v38, %v633_v53 }
  0x8f   :  { %9428 = vcosq.f32 %v484_v15  ;;  %vm650_vm4 = vcmp.lt.s32.totalorder %v631_v57, 1  ;;  %v10084_v40 = vshll.u32 %v626_v45, 8  ;;  %v732_v9 = vand.u32 2139095040, %v10061_v63 }
  0x90   :  { %9430 = vsinq.f32 %v484_v15  ;;  %v575_v16 = vclz %v8932_v17  ;;  %v649_v12 = vor.u32 %v648_v35, %v647_v60  ;;  %vm651_vm5 = vcmp.lt.s32.totalorder %v631_v57, 2 }
  0x91   :  { %vm652_vm6 = vcmp.lt.s32.totalorder %v631_v57, 3  ;;  %vm653_vm7 = vcmp.lt.s32.totalorder %v631_v57, 4  ;;  %v654_v24 = vsel %vm650_vm4, %v634_v22, %v637_v31  ;;  %v658_v8 = vsel %vm650_vm4, %v637_v31, %v640_v51  ;;  %v10089_v43 = vpop.eup %9424 }
  0x92   :  { %v8933_v39 = vadd.s32 4294967294, %v575_v16  ;;  %v655_v32 = vsel %vm653_vm7, %v643_v59, 2102212464  ;;  %v659_v14 = vsel %vm653_vm7, %v646_v34, 920167782  ;;  %v662_v46 = vsel %vm650_vm4, %v640_v51, %v643_v59 }
  0x93   :  { %v656_v41 = vsel %vm652_vm6, %v640_v51, %v655_v32  ;;  %v663_v48 = vsel %vm653_vm7, %v649_v12, 1326507024  ;;  %v10092_v2 = vpop.eup %9426  ;;  %v593_v49 = vsub.s32 4, %v10047_v28  ;;  %v660_v30 = vsel %vm652_vm6, %v643_v59, %v659_v14 }
  0x94   :  { %vm8934_vm8 = vcmp.lt.s32.totalorder %v8933_v39, 0  ;;  %v664_v6 = vsel %vm652_vm6, %v646_v34, %v663_v48  ;;  %vm143_vm9 = vcmp.eq.s32.totalorder %v10049_v42, 2  ;;  %v657_v53 = vsel %vm651_vm5, %v654_v24, %v656_v41 }
  0x95   :  { %v578_v52 = vsel %vm8934_vm8, 0, %v8933_v39  ;;  %v661_v3 = vsel %vm651_vm5, %v658_v8, %v660_v30  ;;  %v665_v47 = vsel %vm651_vm5, %v662_v46, %v664_v6  ;;  %v733_v36 = vshrl.u32 %v732_v9, 23 }
  0x96   :  { %v579_v5 = vsub.s32 32, %v578_v52  ;;  %v580_v19 = vshll.u32 %v10063_v0, %v578_v52  ;;  %v583_v58 = vsub.s32 4294967266, %v578_v52  ;;  %vm488_vm10 = vweird.f32 %v9780_v55 }
  0x97   :  { %v10102_v11 = vmul.u32.u64.low %v10084_v40, %v665_v47  ;;  %v10103_v61 = vmul.u32.u64.high %v10084_v40, %v665_v47, %v10102_v11  ;;  %v10106_v62 = vmul.u32.u64.low %v10084_v40, %v661_v3  ;;  %v10107_v20 = vmul.u32.u64.high %v10084_v40, %v661_v3, %v10106_v62 }
  0x98   :  { %vm10112_vm11 = vcmp.le.f32.partialorder %v507_v13, 0.7853982  ;;  %v581_v0 = vshrl.u32 %v563_v10, %v579_v5  ;;  %v584_v45 = vadd.s32 127, %v583_v58  ;;  %v8939_v54 = vadd.s32 4294967169, %v733_v36 }
  0x99   :  { %v144_v7 = vxor.u32 2147483648, %v10089_v43  ;;  %vm491_vm12 = vcmp.lt.s32.totalorder %v10054_v50, 2  ;;  %vm509_vm13 = vcmp.lt.s32.totalorder %v9808_v44, 0  ;;  %v729_v22 = vand.u32 2147483647, %v10061_v63 }
  0x9a   :  { %v582_v31 = vor.u32 %v581_v0, %v580_v19  ;;  %v585_v60 = vshll.u32 %v584_v45, 23  ;;  %v673_v15 = vmul.u32 %v10084_v40, %v657_v53  ;;  %v739_v17 = vadd.s32 1, %v8939_v54 }
  0x9b   :  { %vm492_vm14 = vcmp.eq.s32.totalorder %v10054_v50, 0  ;;  %v594_v13 = vsel %vm509_vm13, %v593_v49, %v10047_v28  ;;  %vm675_vm15 = vc.u32 %v10103_v61, %v10106_v62  ;;  %v676_v10 = vadd.s32 1, %v10107_v20 }
  0x9c   :  { %v9429_v51 = vpop.eup %9428  ;;  %vm495_vm0 = vcmp.eq.s32.totalorder %v10054_v50, 2  ;;  %v586_v59 = vor.u32 4788187, %v585_v60  ;;  %v589_v34 = vcvt.s32.f32 %v582_v31  ;;  %vm740_vm1 = vcmp.gt.s32.totalorder %v739_v17, 0 }
  0x9d   :  { %v9431_v35 = vpop.eup %9430  ;;  %v496_v16 = vxor.u32 2147483648, %v9429_v51  ;;  %v677_v40 = vsel %vm675_vm15, %v676_v10, %v10107_v20  ;;  %v736_v9 = vand.u32 8388607, %v729_v22  ;;  %v741_v12 = vsel %vm740_vm1, %v739_v17, 0 }
  0x9e   :  { %v493_v28 = vxor.u32 2147483648, %v9431_v35  ;;  %v587_v39 = vand.u32 2147483647, %v586_v59  ;;  %v596_v24 = vsel %vm10112_vm11, 0, %v594_v13  ;;  %v678_v32 = vadd.s32 %v677_v40, %v673_v15 }
  0x9f   :  { %v141_v8 = vxor.u32 2147483648, %v10092_v2  ;;  %v497_v41 = vsel %vm495_vm0, %v496_v16, %v9431_v35  ;;  %v10136_v14 = vmul.f32 0.07957747, %v9782_v56  ;;  %v743_v46 = vand.u32 31, %v741_v12 }
  0xa0   :  { %v10141_v48 = vsel %vm143_vm9, %v144_v7, %v10092_v2  ;;  %v494_v49 = vsel %vm492_vm14, %v9429_v51, %v493_v28  ;;  %v590_v30 = vmul.f32 %v589_v34, %v587_v39  ;;  %v679_v6 = vadd.s32 536870912, %v678_v32 }
  0xa1   :  { %v498_v52 = vsel %vm491_vm12, %v494_v49, %v497_v41  ;;  %v600_v53 = vadd.s32 3, %v596_v24  ;;  %v737_v3 = vor.u32 8388608, %v736_v9  ;;  %v744_v47 = vsub.s32 32, %v743_v46 }
  0xa2   :  { %v499_v5 = vsel %vm488_vm10, nan, %v498_v52  ;;  %v591_v19 = vxor.u32 2147483648, %v590_v30  ;;  %v10149_v58 = vshrl.u32 %v679_v6, 30  ;;  %v746_v36 = vshll.u32 %v9636_v21, %v743_v46 }
  0xa3   :  { %v500_v11 = vmul.f32 %v499_v5, %v10052_v1  ;;  %v747_v20 = vshrl.u32 %v9637_v23, %v744_v47  ;;  %v749_v0 = vshll.u32 %v9637_v23, %v743_v46  ;;  %v750_v50 = vshrl.u32 %v9638_v25, %v744_v47 }
  0xa4   :  { %v592_v45 = vsel %vm509_vm13, %v591_v19, %v590_v30  ;;  %v681_v54 = vshll.u32 %v10149_v58, 30  ;;  %v752_v55 = vshll.u32 %v9638_v25, %v743_v46  ;;  %v753_v7 = vshrl.u32 %v9639_v27, %v744_v47 }
  0xa5   :  { %v501_v31 = vmul.f32 13.328649, %v500_v11  ;;  %v595_v1 = vsel %vm10112_vm11, %v9808_v44, %v592_v45  ;;  %v742_v60 = vshrl.u32 %v741_v12, 5  ;;  %v10165_v15 = vmul.f32 4.4934096, %v9664_v4 }
  0xa6   :  { %9432 = vcosq.f32 %v595_v1  ;;  %v10167_v17 = vsub.s32 %v678_v32, %v681_v54  ;;  %v745_v13 = vshrl.u32 %v9636_v21, %v744_v47  ;;  %v748_v10 = vor.u32 %v747_v20, %v746_v36 }
  0xa7   :  { %v502_v51 = vmul.f32 %v501_v31, %v9833_v33  ;;  %9434 = vsinq.f32 %v595_v1  ;;  %v751_v59 = vor.u32 %v750_v50, %v749_v0  ;;  %v755_v34 = vshll.u32 %v9639_v27, %v743_v46 }
  0xa8   :  { %v684_v35 = vsub.s32 0, %v10167_v17  ;;  %v754_v57 = vor.u32 %v753_v7, %v752_v55  ;;  %v756_v16 = vshrl.u32 %v9640_v29, %v744_v47  ;;  %v758_v40 = vshll.u32 %v9640_v29, %v743_v46 }
  0xa9   :  { %504 = vst [vmem:[#allocation5 + $0x10] sm:$0xff] %v502_v51  ;;  %v10175_v9 = vand.u32 3, %v600_v53  ;;  %v759_v12 = vshrl.u32 %v9641_v38, %v744_v47  ;;  %vm761_vm2 = vcmp.lt.s32.totalorder %v742_v60, 1  ;;  %v845_v28 = vand.u32 2139095040, %v10165_v15 }
  0xaa   :  { %v8936_v39 = vmin.u32 %v684_v35, %v10167_v17  ;;  %v757_v24 = vor.u32 %v756_v16, %v755_v34  ;;  %vm764_vm3 = vcmp.lt.s32.totalorder %v742_v60, 4  ;;  %v10180_v32 = vshll.u32 %v737_v3, 8 }
  0xab   :  { %v760_v41 = vor.u32 %v759_v12, %v758_v40  ;;  %vm762_vm4 = vcmp.lt.s32.totalorder %v742_v60, 2  ;;  %vm763_vm5 = vcmp.lt.s32.totalorder %v742_v60, 3  ;;  %v766_v49 = vsel %vm764_vm3, %v754_v57, 2102212464 }
  0xac   :  { %v686_v30 = vclz %v8936_v39  ;;  %v765_v46 = vsel %vm761_vm2, %v745_v13, %v748_v10  ;;  %v769_v6 = vsel %vm761_vm2, %v748_v10, %v751_v59  ;;  %v773_v52 = vsel %vm761_vm2, %v751_v59, %v754_v57 }
  0xad   :  { %vm602_vm6 = vcmp.lt.s32.totalorder %v10175_v9, 2  ;;  %vm620_vm7 = vcmp.lt.s32.totalorder %v10008_v37, 0  ;;  %v767_v53 = vsel %vm763_vm5, %v751_v59, %v766_v49  ;;  %v770_v47 = vsel %vm764_vm3, %v757_v24, 920167782 }
  0xae   :  { %v774_v5 = vsel %vm764_vm3, %v760_v41, 1326507024  ;;  %v846_v19 = vshrl.u32 %v845_v28, 23  ;;  %vm140_vm8 = vcmp.eq.s32.totalorder %v10049_v42, 0  ;;  %vm599_vm9 = vweird.f32 %v9808_v44 }
  0xaf   :  { %v674_v3 = vadd.s32 %v10106_v62, %v10103_v61  ;;  %v8937_v36 = vadd.s32 4294967294, %v686_v30  ;;  %v771_v11 = vsel %vm763_vm5, %v754_v57, %v770_v47  ;;  %v775_v20 = vsel %vm763_vm5, %v757_v24, %v774_v5 }
  0xb0   :  { %v772_v0 = vsel %vm762_vm4, %v769_v6, %v771_v11  ;;  %v776_v50 = vsel %vm762_vm4, %v773_v52, %v775_v20  ;;  %v842_v45 = vand.u32 2147483647, %v10165_v15  ;;  %v8943_v54 = vadd.s32 4294967169, %v846_v19 }
  0xb1   :  { %vm8938_vm10 = vcmp.lt.s32.totalorder %v8937_v36, 0  ;;  %v768_v55 = vsel %vm762_vm4, %v765_v46, %v767_v53  ;;  %v10196_v7 = vmul.u32.u64.low %v10180_v32, %v776_v50  ;;  %v10197_v31 = vmul.u32.u64.high %v10180_v32, %v776_v50, %v10196_v7 }
  0xb2   :  { %v689_v61 = vsel %vm8938_vm10, 0, %v8937_v36  ;;  %v10200_v62 = vmul.u32.u64.low %v10180_v32, %v772_v0  ;;  %v10201_v1 = vmul.u32.u64.high %v10180_v32, %v772_v0, %v10200_v62  ;;  %v852_v13 = vadd.s32 1, %v8943_v54 }
  0xb3   :  { %v690_v10 = vsub.s32 32, %v689_v61  ;;  %v691_v51 = vshll.u32 %v10167_v17, %v689_v61  ;;  %v694_v59 = vsub.s32 4294967266, %v689_v61  ;;  %v704_v34 = vsub.s32 4, %v10149_v58  ;;  %v9433_v35 = vpop.eup %9432 }
  0xb4   :  { %vm603_vm11 = vcmp.eq.s32.totalorder %v10175_v9, 0  ;;  %vm606_vm12 = vcmp.eq.s32.totalorder %v10175_v9, 2  ;;  %v849_v60 = vand.u32 8388607, %v842_v45  ;;  %vm853_vm13 = vcmp.gt.s32.totalorder %v852_v13, 0  ;;  %v9435_v57 = vpop.eup %9434 }
  0xb5   :  { %v607_v16 = vxor.u32 2147483648, %v9433_v35  ;;  %v692_v40 = vshrl.u32 %v674_v3, %v690_v10  ;;  %v695_v12 = vadd.s32 127, %v694_v59  ;;  %v784_v28 = vmul.u32 %v10180_v32, %v768_v55 }
  0xb6   :  { %v604_v39 = vxor.u32 2147483648, %v9435_v57  ;;  %vm786_vm14 = vc.u32 %v10197_v31, %v10200_v62  ;;  %v787_v17 = vadd.s32 1, %v10201_v1  ;;  %v854_v24 = vsel %vm853_vm13, %v852_v13, 0 }
  0xb7   :  { %v608_v41 = vsel %vm606_vm12, %v607_v16, %v9435_v57  ;;  %v693_v49 = vor.u32 %v692_v40, %v691_v51  ;;  %v696_v30 = vshll.u32 %v695_v12, 23  ;;  %v10217_v46 = vsel %vm620_vm7, %v704_v34, %v10149_v58 }
  0xb8   :  { %v605_v6 = vsel %vm603_vm11, %v9433_v35, %v604_v39  ;;  %vm10223_vm15 = vcmp.le.f32.partialorder %v618_v26, 0.7853982  ;;  %v788_v52 = vsel %vm786_vm14, %v787_v17, %v10201_v1  ;;  %v856_v53 = vand.u32 31, %v854_v24 }
  0xb9   :  { %v609_v47 = vsel %vm602_vm6, %v605_v6, %v608_v41  ;;  %v697_v5 = vor.u32 4788187, %v696_v30  ;;  %v700_v19 = vcvt.s32.f32 %v693_v49  ;;  %v789_v3 = vadd.s32 %v788_v52, %v784_v28 }
  0xba   :  { %v142_v58 = vsel %vm140_vm8, %v10089_v43, %v141_v8  ;;  %v610_v26 = vsel %vm599_vm9, nan, %v609_v47  ;;  %v707_v36 = vsel %vm10223_vm15, 0, %v10217_v46  ;;  %v857_v11 = vsub.s32 32, %v856_v53 }
  0xbb   :  { %v611_v9 = vmul.f32 %v610_v26, %v10136_v14  ;;  %v698_v20 = vand.u32 2147483647, %v697_v5  ;;  %v790_v0 = vadd.s32 536870912, %v789_v3  ;;  %v850_v50 = vor.u32 8388608, %v849_v60 }
  0xbc   :  { %v859_v54 = vshll.u32 %v9636_v21, %v856_v53  ;;  %v860_v2 = vshrl.u32 %v9637_v23, %v857_v11  ;;  %v862_v55 = vshll.u32 %v9637_v23, %v856_v53  ;;  %v863_v43 = vshrl.u32 %v9638_v25, %v857_v11 }
  0xbd   :  { %vm139_vm0 = vcmp.lt.s32.totalorder %v10049_v42, 2  ;;  %v612_v44 = vmul.f32 17.771532, %v611_v9  ;;  %v701_v8 = vmul.f32 %v700_v19, %v698_v20  ;;  %v10246_v7 = vshrl.u32 %v790_v0, 30 }
  0xbe   :  { %v868_v61 = vshll.u32 %v9639_v27, %v856_v53  ;;  %v855_v14 = vshrl.u32 %v854_v24, 5  ;;  %v865_v1 = vshll.u32 %v9638_v25, %v856_v53  ;;  %v866_v13 = vshrl.u32 %v9639_v27, %v857_v11 }
  0xbf   :  { %v869_v10 = vshrl.u32 %v9640_v29, %v857_v11  ;;  %v613_v51 = vmul.f32 %v612_v44, %v9833_v33  ;;  %v702_v59 = vxor.u32 2147483648, %v701_v8  ;;  %v792_v34 = vshll.u32 %v10246_v7, 30 }
  0xc0   :  { %v10254_v35 = vshll.u32 %v850_v50, 8  ;;  %v858_v60 = vshrl.u32 %v9636_v21, %v857_v11  ;;  %v861_v57 = vor.u32 %v860_v2, %v859_v54  ;;  %v871_v16 = vshll.u32 %v9640_v29, %v856_v53 }
  0xc1   :  { %v872_v40 = vshrl.u32 %v9641_v38, %v857_v11  ;;  %615 = vst [vmem:[#allocation5 + $0x18] sm:$0xff] %v613_v51  ;;  %v703_v12 = vsel %vm620_vm7, %v702_v59, %v701_v8  ;;  %v10261_v28 = vsub.s32 %v789_v3, %v792_v34  ;;  %v864_v39 = vor.u32 %v863_v43, %v862_v55  ;;  %v9588_v51 = vld [vmem:[#allocation2 + $0x8] sm:$0xff] }
  0xc2   :  { %v870_v17 = vor.u32 %v869_v10, %v868_v61  ;;  %v706_v24 = vsel %vm10223_vm15, %v10008_v37, %v703_v12  ;;  %v867_v41 = vor.u32 %v866_v13, %v865_v1  ;;  %vm874_vm1 = vcmp.lt.s32.totalorder %v855_v14, 1 }
  0xc3   :  { %v873_v49 = vor.u32 %v872_v40, %v871_v16  ;;  %9436 = vcosq.f32 %v706_v24  ;;  %v795_v30 = vsub.s32 0, %v10261_v28  ;;  %vm876_vm2 = vcmp.lt.s32.totalorder %v855_v14, 3 }
  0xc4   :  { %vm877_vm3 = vcmp.lt.s32.totalorder %v855_v14, 4  ;;  %9438 = vsinq.f32 %v706_v24  ;;  %vm875_vm4 = vcmp.lt.s32.totalorder %v855_v14, 2  ;;  %v878_v46 = vsel %vm874_vm1, %v858_v60, %v861_v57 }
  0xc5   :  { %v879_v6 = vsel %vm877_vm3, %v867_v41, 2102212464  ;;  %v8940_v52 = vmin.u32 %v795_v30, %v10261_v28  ;;  %v882_v47 = vsel %vm874_vm1, %v861_v57, %v864_v39  ;;  %v883_v5 = vsel %vm877_vm3, %v870_v17, 920167782 }
  0xc6   :  { %v880_v53 = vsel %vm876_vm2, %v864_v39, %v879_v6  ;;  %v884_v32 = vsel %vm876_vm2, %v867_v41, %v883_v5  ;;  %v886_v19 = vsel %vm874_vm1, %v864_v39, %v867_v41  ;;  %v887_v3 = vsel %vm877_vm3, %v873_v49, 1326507024 }
  0xc7   :  { %v10271_v26 = vmul.f32 7.7252517, %v9664_v4  ;;  %v10274_v11 = vmul.f32 0.06366198, %v9782_v56  ;;  %v711_v9 = vadd.s32 3, %v707_v36  ;;  %v797_v20 = vclz %v8940_v52 }
  0xc8   :  { %v10279_v0 = vsel %vm139_vm0, %v142_v58, %v10141_v48  ;;  %v881_v50 = vsel %vm875_vm4, %v878_v46, %v880_v53  ;;  %v885_v54 = vsel %vm875_vm4, %v882_v47, %v884_v32  ;;  %v888_v2 = vsel %vm876_vm2, %v870_v17, %v887_v3 }
  0xc9   :  { %v8941_v55 = vadd.s32 4294967294, %v797_v20  ;;  %v889_v43 = vsel %vm875_vm4, %v886_v19, %v888_v2  ;;  %v10286_v44 = vmul.u32.u64.low %v10254_v35, %v885_v54  ;;  %v10287_v8 = vmul.u32.u64.high %v10254_v35, %v885_v54, %v10286_v44 }
  0xca   :  { %v815_v36 = vsub.s32 4, %v10246_v7  ;;  %v10292_v42 = vmul.u32.u64.low %v10254_v35, %v889_v43  ;;  %v10293_v48 = vmul.u32.u64.high %v10254_v35, %v889_v43, %v10292_v42  ;;  %v1061_v58 = vand.u32 2139095040, %v10271_v26 }
  0xcb   :  { %vm710_vm5 = vweird.f32 %v10008_v37  ;;  %v712_v61 = vand.u32 3, %v711_v9  ;;  %v785_v14 = vadd.s32 %v10200_v62, %v10197_v31  ;;  %vm8942_vm6 = vcmp.lt.s32.totalorder %v8941_v55, 0 }
  0xcc   :  { %vm731_vm7 = vcmp.lt.s32.totalorder %v10061_v63, 0  ;;  %v800_v1 = vsel %vm8942_vm6, 0, %v8941_v55  ;;  %v897_v13 = vmul.u32 %v10254_v35, %v881_v50  ;;  %v1062_v10 = vshrl.u32 %v1061_v58, 23 }
  0xcd   :  { %vm137_vm8 = vweird.f32 %v9588_v51  ;;  %v801_v59 = vsub.s32 32, %v800_v1  ;;  %v802_v34 = vshll.u32 %v10261_v28, %v800_v1  ;;  %v805_v60 = vsub.s32 4294967266, %v800_v1 }
  0xce   :  { %v900_v57 = vadd.s32 1, %v10287_v8  ;;  %vm10305_vm9 = vcmp.le.f32.partialorder %v729_v22, 0.7853982  ;;  %v816_v31 = vsel %vm731_vm7, %v815_v36, %v10246_v7  ;;  %vm899_vm10 = vc.u32 %v10293_v48, %v10286_v44 }
  0xcf   :  { %v8951_v62 = vadd.s32 4294967169, %v1062_v10  ;;  %vm714_vm11 = vcmp.eq.s32.totalorder %v712_v61, 0  ;;  %v803_v35 = vshrl.u32 %v785_v14, %v801_v59  ;;  %v806_v40 = vadd.s32 127, %v805_v60 }
  0xd0   :  { %v901_v12 = vsel %vm899_vm10, %v900_v57, %v10287_v8  ;;  %v9437_v28 = vpop.eup %9436  ;;  %vm717_vm12 = vcmp.eq.s32.totalorder %v712_v61, 2  ;;  %v1058_v22 = vand.u32 2147483647, %v10271_v26  ;;  %v818_v7 = vsel %vm10305_vm9, 0, %v816_v31 }
  0xd1   :  { %v902_v39 = vadd.s32 %v901_v12, %v897_v13  ;;  %v1068_v17 = vadd.s32 1, %v8951_v62  ;;  %v9439_v24 = vpop.eup %9438  ;;  %v718_v41 = vxor.u32 2147483648, %v9437_v28  ;;  %v804_v49 = vor.u32 %v803_v35, %v802_v34 }
  0xd2   :  { %v807_v30 = vshll.u32 %v806_v40, 23  ;;  %vm713_vm13 = vcmp.lt.s32.totalorder %v712_v61, 2  ;;  %v715_v46 = vxor.u32 2147483648, %v9439_v24  ;;  %v822_v19 = vadd.s32 3, %v818_v7 }
  0xd3   :  { %v903_v6 = vadd.s32 536870912, %v902_v39  ;;  %vm1069_vm14 = vcmp.gt.s32.totalorder %v1068_v17, 0  ;;  %v719_v52 = vsel %vm717_vm12, %v718_v41, %v9439_v24  ;;  %v811_v47 = vcvt.s32.f32 %v804_v49 }
  0xd4   :  { %v808_v53 = vor.u32 4788187, %v807_v30  ;;  %v1070_v5 = vsel %vm1069_vm14, %v1068_v17, 0  ;;  %v716_v32 = vsel %vm714_vm11, %v9437_v28, %v715_v46  ;;  %v1065_v54 = vand.u32 8388607, %v1058_v22 }
  0xd5   :  { %v10319_v3 = vshrl.u32 %v903_v6, 30  ;;  %v1072_v9 = vand.u32 31, %v1070_v5  ;;  %v720_v20 = vsel %vm713_vm13, %v716_v32, %v719_v52  ;;  %v10324_v2 = vmul.f32 10.904121, %v9664_v4 }
  0xd6   :  { %v809_v50 = vand.u32 2147483647, %v808_v53  ;;  %v721_v55 = vsel %vm710_vm5, nan, %v720_v20  ;;  %v10332_v58 = vsel %vm137_vm8, nan, %v10279_v0  ;;  %v10335_v61 = vmul.f32 0.053051647, %v9782_v56 }
  0xd7   :  { %v905_v43 = vshll.u32 %v10319_v3, 30  ;;  %v1073_v8 = vsub.s32 32, %v1072_v9  ;;  %v722_v36 = vmul.f32 %v721_v55, %v10274_v11  ;;  %v10337_v14 = vand.u32 3, %v822_v19 }
  0xd8   :  { %v812_v42 = vmul.f32 %v811_v47, %v809_v50  ;;  %v1066_v10 = vor.u32 8388608, %v1065_v54  ;;  %v1277_v59 = vand.u32 2139095040, %v10324_v2  ;;  %v1075_v11 = vshll.u32 %v9636_v21, %v1072_v9 }
  0xd9   :  { %v10339_v1 = vsub.s32 %v902_v39, %v905_v43  ;;  %v723_v13 = vmul.f32 22.214415, %v722_v36  ;;  %v1076_v51 = vshrl.u32 %v9637_v23, %v1073_v8  ;;  %v1078_v0 = vshll.u32 %v9637_v23, %v1072_v9 }
  0xda   :  { %v813_v37 = vxor.u32 2147483648, %v812_v42  ;;  %v1079_v31 = vshrl.u32 %v9638_v25, %v1073_v8  ;;  %v1081_v62 = vshll.u32 %v9638_v25, %v1072_v9  ;;  %v898_v40 = vadd.s32 %v10286_v44, %v10293_v48 }
  0xdb   :  { %v908_v34 = vsub.s32 0, %v10339_v1  ;;  %v724_v60 = vmul.f32 %v723_v13, %v9833_v33  ;;  %v1071_v28 = vshrl.u32 %v1070_v5, 5  ;;  %v1082_v39 = vshrl.u32 %v9639_v27, %v1073_v8 }
  0xdc   :  { %v814_v57 = vsel %vm731_vm7, %v813_v37, %v812_v42  ;;  %v10358_v17 = vshll.u32 %v1066_v10, 8  ;;  %v1278_v24 = vshrl.u32 %v1277_v59, 23  ;;  %v1074_v49 = vshrl.u32 %v9636_v21, %v1073_v8 }
  0xdd   :  { %v817_v35 = vsel %vm10305_vm9, %v10061_v63, %v814_v57  ;;  %v8944_v12 = vmin.u32 %v908_v34, %v10339_v1  ;;  %726 = vst [vmem:[#allocation5 + $0x20] sm:$0xff] %v724_v60  ;;  %v1077_v30 = vor.u32 %v1076_v51, %v1075_v11  ;;  %v1080_v16 = vor.u32 %v1079_v31, %v1078_v0 }
  0xde   :  { %9440 = vcosq.f32 %v817_v35  ;;  %v1083_v7 = vor.u32 %v1082_v39, %v1081_v62  ;;  %v1084_v46 = vshll.u32 %v9639_v27, %v1072_v9  ;;  %v1085_v44 = vshrl.u32 %v9640_v29, %v1073_v8 }
  0xdf   :  { %9442 = vsinq.f32 %v817_v35  ;;  %v910_v41 = vclz %v8944_v12  ;;  %v1087_v6 = vshll.u32 %v9640_v29, %v1072_v9  ;;  %v1088_v52 = vshrl.u32 %v9641_v38, %v1073_v8 }
  0xe0   :  { %vm1090_vm15 = vcmp.lt.s32.totalorder %v1071_v28, 1  ;;  %v1086_v53 = vor.u32 %v1085_v44, %v1084_v46  ;;  %vm1091_vm0 = vcmp.lt.s32.totalorder %v1071_v28, 2  ;;  %vm1093_vm1 = vcmp.lt.s32.totalorder %v1071_v28, 4 }
  0xe1   :  { %v8945_v48 = vadd.s32 4294967294, %v910_v41  ;;  %v8959_v47 = vadd.s32 4294967169, %v1278_v24  ;;  %v1089_v5 = vor.u32 %v1088_v52, %v1087_v6  ;;  %vm1092_vm3 = vcmp.lt.s32.totalorder %v1071_v28, 3 }
  0xe2   :  { %v1095_v32 = vsel %vm1093_vm1, %v1083_v7, 2102212464  ;;  %v1094_v20 = vsel %vm1090_vm15, %v1074_v49, %v1077_v30  ;;  %v1098_v50 = vsel %vm1090_vm15, %v1077_v30, %v1080_v16  ;;  %v1099_v54 = vsel %vm1093_vm1, %v1086_v53, 920167782 }
  0xe3   :  { %vm8946_vm2 = vcmp.lt.s32.totalorder %v8945_v48, 0  ;;  %v1096_v8 = vsel %vm1092_vm3, %v1080_v16, %v1095_v32  ;;  %vm821_vm4 = vweird.f32 %v10061_v63  ;;  %v928_v36 = vsub.s32 4, %v10319_v3 }
  0xe4   :  { %v913_v19 = vsel %vm8946_vm2, 0, %v8945_v48  ;;  %v1100_v42 = vsel %vm1092_vm3, %v1083_v7, %v1099_v54  ;;  %v1102_v13 = vsel %vm1090_vm15, %v1080_v16, %v1083_v7  ;;  %v1103_v37 = vsel %vm1093_vm1, %v1089_v5, 1326507024 }
  0xe5   :  { %v914_v9 = vsub.s32 32, %v913_v19  ;;  %v915_v55 = vshll.u32 %v10339_v1, %v913_v19  ;;  %v918_v43 = vsub.s32 4294967266, %v913_v19  ;;  %v1101_v34 = vsel %vm1091_vm0, %v1098_v50, %v1100_v42 }
  0xe6   :  { %v1104_v11 = vsel %vm1092_vm3, %v1086_v53, %v1103_v37  ;;  %v1097_v1 = vsel %vm1091_vm0, %v1094_v20, %v1096_v8  ;;  %v10381_v0 = vmul.u32.u64.low %v10358_v17, %v1101_v34  ;;  %v10382_v60 = vmul.u32.u64.high %v10358_v17, %v1101_v34, %v10381_v0 }
  0xe7   :  { %v916_v10 = vshrl.u32 %v898_v40, %v914_v9  ;;  %v919_v59 = vadd.s32 127, %v918_v43  ;;  %v1105_v51 = vsel %vm1091_vm0, %v1102_v13, %v1104_v11  ;;  %vm825_vm5 = vcmp.eq.s32.totalorder %v10337_v14, 0 }
  0xe8   :  { %v10386_v62 = vmul.u32.u64.low %v10358_v17, %v1105_v51  ;;  %v10387_v35 = vmul.u32.u64.high %v10358_v17, %v1105_v51, %v10386_v62  ;;  %vm10392_vm6 = vcmp.le.f32.partialorder %v842_v45, 0.7853982  ;;  %vm844_vm7 = vcmp.lt.s32.totalorder %v10165_v15, 0 }
  0xe9   :  { %v917_v57 = vor.u32 %v916_v10, %v915_v55  ;;  %v920_v31 = vshll.u32 %v919_v59, 23  ;;  %v1284_v12 = vadd.s32 1, %v8959_v47  ;;  %vm828_vm8 = vcmp.eq.s32.totalorder %v10337_v14, 2 }
  0xea   :  { %v1113_v41 = vmul.u32 %v10358_v17, %v1097_v1  ;;  %v929_v16 = vsel %vm844_vm7, %v928_v36, %v10319_v3  ;;  %v1116_v45 = vadd.s32 1, %v10382_v60  ;;  %vm824_vm10 = vcmp.lt.s32.totalorder %v10337_v14, 2 }
  0xeb   :  { %v9441_v28 = vpop.eup %9440  ;;  %v921_v39 = vor.u32 4788187, %v920_v31  ;;  %v924_v24 = vcvt.s32.f32 %v917_v57  ;;  %vm1285_vm9 = vcmp.gt.s32.totalorder %v1284_v12, 0  ;;  %vm1115_vm11 = vc.u32 %v10387_v35, %v10381_v0 }
  0xec   :  { %v9443_v49 = vpop.eup %9442  ;;  %v829_v30 = vxor.u32 2147483648, %v9441_v28  ;;  %v1117_v48 = vsel %vm1115_vm11, %v1116_v45, %v10382_v60  ;;  %v1274_v17 = vand.u32 2147483647, %v10324_v2  ;;  %v1286_v6 = vsel %vm1285_vm9, %v1284_v12, 0 }
  0xed   :  { %v826_v7 = vxor.u32 2147483648, %v9443_v49  ;;  %v922_v46 = vand.u32 2147483647, %v921_v39  ;;  %v931_v53 = vsel %vm10392_vm6, 0, %v929_v16  ;;  %v1118_v47 = vadd.s32 %v1117_v48, %v1113_v41 }
  0xee   :  { %v830_v44 = vsel %vm828_vm8, %v829_v30, %v9443_v49  ;;  %v10413_v32 = vmul.f32 0.48860252, %v10332_v58  ;;  %v10416_v19 = vmul.f32 0.22254816, %v9782_v56  ;;  %v1288_v20 = vand.u32 31, %v1286_v6 }
  0xef   :  { %v827_v52 = vsel %vm825_vm5, %v9441_v28, %v826_v7  ;;  %v925_v3 = vmul.f32 %v924_v24, %v922_v46  ;;  %v1119_v9 = vadd.s32 536870912, %v1118_v47  ;;  %v10421_v14 = vmul.f32 14.066194, %v9664_v4 }
  0xf0   :  { %v831_v5 = vsel %vm824_vm10, %v827_v52, %v830_v44  ;;  %v935_v43 = vadd.s32 3, %v931_v53  ;;  %v1281_v8 = vand.u32 8388607, %v1274_v17  ;;  %v1289_v36 = vsub.s32 32, %v1288_v20 }
  0xf1   :  { %v832_v50 = vsel %vm821_vm4, nan, %v831_v5  ;;  %v926_v54 = vxor.u32 2147483648, %v925_v3  ;;  %v10428_v13 = vshrl.u32 %v1119_v9, 30  ;;  %v10430_v37 = vshrl.u32 %v1286_v6, 5 }
  0xf2   :  { %v833_v55 = vmul.f32 %v832_v50, %v10335_v61  ;;  %v1291_v63 = vshll.u32 %v9636_v21, %v1288_v20  ;;  %v1294_v61 = vshll.u32 %v9637_v23, %v1288_v20  ;;  %v1297_v34 = vshll.u32 %v9638_v25, %v1288_v20 }
  0xf3   :  { %v927_v42 = vsel %vm844_vm7, %v926_v54, %v925_v3  ;;  %v1121_v11 = vshll.u32 %v10428_v13, 30  ;;  %v1292_v1 = vshrl.u32 %v9637_v23, %v1289_v36  ;;  %v1295_v51 = vshrl.u32 %v9638_v25, %v1289_v36 }
  0xf4   :  { %v834_v10 = vmul.f32 26.657297, %v833_v55  ;;  %v930_v59 = vsel %vm10392_vm6, %v10165_v15, %v927_v42  ;;  %v1298_v57 = vshrl.u32 %v9639_v27, %v1289_v36  ;;  %v1300_v31 = vshll.u32 %v9639_v27, %v1288_v20 }
  0xf5   :  { %9444 = vcosq.f32 %v930_v59  ;;  %v10444_v62 = vand.u32 3, %v935_v43  ;;  %v10446_v40 = vand.u32 3, %v931_v53  ;;  %v10448_v12 = vsub.s32 %v1118_v47, %v1121_v11 }
  0xf6   :  { %v835_v60 = vmul.f32 %v834_v10, %v9833_v33  ;;  %9446 = vsinq.f32 %v930_v59  ;;  %v1301_v28 = vshrl.u32 %v9640_v29, %v1289_v36  ;;  %v1282_v39 = vor.u32 8388608, %v1281_v8 }
  0xf7   :  { %v1303_v24 = vshll.u32 %v9640_v29, %v1288_v20  ;;  %v1304_v41 = vshrl.u32 %v9641_v38, %v1289_v36  ;;  %v1493_v33 = vand.u32 2139095040, %v10421_v14  ;;  %v1124_v49 = vsub.s32 0, %v10448_v12 }
  0xf8   :  { %837 = vst [vmem:[#allocation5 + $0x28] sm:$0xff] %v835_v60  ;;  %v1290_v30 = vshrl.u32 %v9636_v21, %v1289_v36  ;;  %v1293_v16 = vor.u32 %v1292_v1, %v1291_v63  ;;  %v1296_v45 = vor.u32 %v1295_v51, %v1294_v61  ;;  %v1299_v7 = vor.u32 %v1298_v57, %v1297_v34 }
  0xf9   :  { %v1302_v46 = vor.u32 %v1301_v28, %v1300_v31  ;;  %v1305_v44 = vor.u32 %v1304_v41, %v1303_v24  ;;  %vm1306_vm12 = vcmp.lt.s32.totalorder %v10430_v37, 1  ;;  %vm938_vm13 = vcmp.eq.s32.totalorder %v10444_v62, 0 }
  0xfa   :  { %vm1042_vm14 = vcmp.eq.s32.totalorder %v10446_v40, 0  ;;  %vm1045_vm15 = vcmp.eq.s32.totalorder %v10446_v40, 2  ;;  %v8952_v48 = vmin.u32 %v1124_v49, %v10448_v12  ;;  %vm1309_vm0 = vcmp.lt.s32.totalorder %v10430_v37, 4 }
  0xfb   :  { %vm937_vm1 = vcmp.lt.s32.totalorder %v10444_v62, 2  ;;  %vm1041_vm2 = vcmp.lt.s32.totalorder %v10446_v40, 2  ;;  %vm1308_vm3 = vcmp.lt.s32.totalorder %v10430_v37, 3  ;;  %v1311_v6 = vsel %vm1309_vm0, %v1299_v7, 2102212464 }
  0xfc   :  { %v10465_v52 = vshll.u32 %v1282_v39, 8  ;;  %v1494_v3 = vshrl.u32 %v1493_v33, 23  ;;  %vm934_vm4 = vweird.f32 %v10165_v15  ;;  %v1126_v53 = vclz %v8952_v48 }
  0xfd   :  { %vm1307_vm5 = vcmp.lt.s32.totalorder %v10430_v37, 2  ;;  %v1310_v47 = vsel %vm1306_vm12, %v1290_v30, %v1293_v16  ;;  %v1314_v5 = vsel %vm1306_vm12, %v1293_v16, %v1296_v45  ;;  %v1312_v20 = vsel %vm1308_vm3, %v1296_v45, %v1311_v6 }
  0xfe   :  { %v1315_v50 = vsel %vm1309_vm0, %v1302_v46, 920167782  ;;  %v1318_v54 = vsel %vm1306_vm12, %v1296_v45, %v1299_v7  ;;  %v1319_v9 = vsel %vm1309_vm0, %v1305_v44, 1326507024  ;;  %vm941_vm6 = vcmp.eq.s32.totalorder %v10444_v62, 2 }
  0xff   :  { %v8953_v55 = vadd.s32 4294967294, %v1126_v53  ;;  %v1316_v43 = vsel %vm1308_vm3, %v1299_v7, %v1315_v50  ;;  %v1320_v8 = vsel %vm1308_vm3, %v1302_v46, %v1319_v9  ;;  %vm1060_vm7 = vcmp.lt.s32.totalorder %v10271_v26, 0 }
 0x100   :  { %v1114_v36 = vadd.s32 %v10381_v0, %v10387_v35  ;;  %v1317_v42 = vsel %vm1307_vm5, %v1314_v5, %v1316_v43  ;;  %v1321_v63 = vsel %vm1307_vm5, %v1318_v54, %v1320_v8  ;;  %v8967_v10 = vadd.s32 4294967169, %v1494_v3 }
 0x101   :  { %vm8954_vm8 = vcmp.lt.s32.totalorder %v8953_v55, 0  ;;  %v1313_v59 = vsel %vm1307_vm5, %v1310_v47, %v1312_v20  ;;  %v10492_v61 = vmul.u32.u64.low %v10465_v52, %v1321_v63  ;;  %v10493_v34 = vmul.u32.u64.high %v10465_v52, %v1321_v63, %v10492_v61 }
 0x102   :  { %v9445_v11 = vpop.eup %9444  ;;  %v1129_v1 = vsel %vm8954_vm8, 0, %v8953_v55  ;;  %v10496_v51 = vmul.u32.u64.low %v10465_v52, %v1317_v42  ;;  %v10497_v0 = vmul.u32.u64.high %v10465_v52, %v1317_v42, %v10496_v51  ;;  %v1500_v35 = vadd.s32 1, %v8967_v10 }
 0x103   :  { %v9447_v60 = vpop.eup %9446  ;;  %v942_v57 = vxor.u32 2147483648, %v9445_v11  ;;  %v1130_v31 = vsub.s32 32, %v1129_v1  ;;  %v1131_v28 = vshll.u32 %v10448_v12, %v1129_v1  ;;  %v1134_v39 = vsub.s32 4294967266, %v1129_v1 }
 0x104   :  { %v939_v37 = vxor.u32 2147483648, %v9447_v60  ;;  %v1144_v24 = vsub.s32 4, %v10428_v13  ;;  %v1490_v41 = vand.u32 2147483647, %v10421_v14  ;;  %vm1501_vm9 = vcmp.gt.s32.totalorder %v1500_v35, 0 }
 0x105   :  { %v943_v33 = vsel %vm941_vm6, %v942_v57, %v9447_v60  ;;  %v1047_v49 = vsel %vm1045_vm15, %v942_v57, %v9447_v60  ;;  %v1132_v30 = vshrl.u32 %v1114_v36, %v1130_v31  ;;  %v1135_v16 = vadd.s32 127, %v1134_v39 }
 0x106   :  { %v940_v45 = vsel %vm938_vm13, %v9445_v11, %v939_v37  ;;  %v1044_v12 = vsel %vm1042_vm14, %v9445_v11, %v939_v37  ;;  %v1329_v7 = vmul.u32 %v10465_v52, %v1313_v59  ;;  %vm1331_vm10 = vc.u32 %v10493_v34, %v10496_v51 }
 0x107   :  { %v944_v46 = vsel %vm937_vm1, %v940_v45, %v943_v33  ;;  %v1048_v44 = vsel %vm1041_vm2, %v1044_v12, %v1047_v49  ;;  %v1133_v48 = vor.u32 %v1132_v30, %v1131_v28  ;;  %v1136_v6 = vshll.u32 %v1135_v16, 23 }
 0x108   :  { %v945_v3 = vsel %vm934_vm4, nan, %v944_v46  ;;  %v1049_v53 = vsel %vm934_vm4, nan, %v1048_v44  ;;  %v1332_v47 = vadd.s32 1, %v10497_v0  ;;  %v1502_v52 = vsel %vm1501_vm9, %v1500_v35, 0 }
 0x109   :  { %v946_v5 = vmul.f32 %v945_v3, %v10416_v19  ;;  %v1137_v20 = vor.u32 4788187, %v1136_v6  ;;  %v1140_v62 = vcvt.s32.f32 %v1133_v48  ;;  %v1145_v40 = vsel %vm1060_vm7, %v1144_v24, %v10428_v13 }
 0x10a   :  { %v10530_v50 = vmul.f32 %v10413_v32, %v9819_v18  ;;  %v1333_v54 = vsel %vm1331_vm10, %v1332_v47, %v10497_v0  ;;  %v1504_v15 = vand.u32 31, %v1502_v52  ;;  %vm10535_vm11 = vcmp.le.f32.partialorder %v1058_v22, 0.7853982 }
 0x10b   :  { %v1050_v9 = vsub.f32 %v946_v5, %v1049_v53  ;;  %v1138_v43 = vand.u32 2147483647, %v1137_v20  ;;  %v1334_v8 = vadd.s32 %v1333_v54, %v1329_v7  ;;  %v1147_v36 = vsel %vm10535_vm11, 0, %v1145_v40 }
 0x10c   :  { %v1497_v13 = vand.u32 8388607, %v1490_v41  ;;  %v10543_v32 = vshrl.u32 %v1502_v52, 5  ;;  %v1505_v42 = vsub.s32 32, %v1504_v15  ;;  %v1507_v22 = vshll.u32 %v9636_v21, %v1504_v15 }
 0x10d   :  { %v1051_v63 = vmul.f32 %v1050_v9, %v10416_v19  ;;  %v1141_v10 = vmul.f32 %v1140_v62, %v1138_v43  ;;  %v1335_v59 = vadd.s32 536870912, %v1334_v8  ;;  %v1510_v11 = vshll.u32 %v9637_v23, %v1504_v15 }
 0x10e   :  { %v1508_v61 = vshrl.u32 %v9637_v23, %v1505_v42  ;;  %v1511_v1 = vshrl.u32 %v9638_v25, %v1505_v42  ;;  %v1516_v0 = vshll.u32 %v9639_v27, %v1504_v15  ;;  %v1517_v31 = vshrl.u32 %v9640_v29, %v1505_v42 }
 0x10f   :  { %v1052_v35 = vmul.f32 6.510104, %v1051_v63  ;;  %v1142_v60 = vxor.u32 2147483648, %v1141_v10  ;;  %v10551_v57 = vshrl.u32 %v1335_v59, 30  ;;  %v1498_v28 = vor.u32 8388608, %v1497_v13 }
 0x110   :  { %v1513_v19 = vshll.u32 %v9638_v25, %v1504_v15  ;;  %v1514_v39 = vshrl.u32 %v9639_v27, %v1505_v42  ;;  %v1519_v37 = vshll.u32 %v9640_v29, %v1504_v15  ;;  %vm1522_vm12 = vcmp.lt.s32.totalorder %v10543_v32, 1 }
 0x111   :  { %v1053_v24 = vmul.f32 %v1052_v35, %v10530_v50  ;;  %v1143_v33 = vsel %vm1060_vm7, %v1142_v60, %v1141_v10  ;;  %v1337_v49 = vshll.u32 %v10551_v57, 30  ;;  %v1506_v16 = vshrl.u32 %v9636_v21, %v1505_v42 }
 0x112   :  { %v1146_v30 = vsel %vm10535_vm11, %v10271_v26, %v1143_v33  ;;  %v1518_v45 = vor.u32 %v1517_v31, %v1516_v0  ;;  %v1520_v12 = vshrl.u32 %v9641_v38, %v1505_v42  ;;  %v1509_v46 = vor.u32 %v1508_v61, %v1507_v22 }
 0x113   :  { %1055 = vst [vmem:[#allocation5 + $0x30] sm:$0xff] %v1053_v24  ;;  %9448 = vcosq.f32 %v1146_v30  ;;  %v10567_v7 = vsub.s32 %v1334_v8, %v1337_v49  ;;  %v1512_v44 = vor.u32 %v1511_v1, %v1510_v11  ;;  %v1515_v48 = vor.u32 %v1514_v39, %v1513_v19 }
 0x114   :  { %9450 = vsinq.f32 %v1146_v30  ;;  %v1521_v6 = vor.u32 %v1520_v12, %v1519_v37  ;;  %vm1525_vm13 = vcmp.lt.s32.totalorder %v10543_v32, 4  ;;  %v10571_v3 = vmul.f32 0.12944561, %v9782_v56 }
 0x115   :  { %v1151_v53 = vadd.s32 3, %v1147_v36  ;;  %v1340_v47 = vsub.s32 0, %v10567_v7  ;;  %vm1524_vm14 = vcmp.lt.s32.totalorder %v10543_v32, 3  ;;  %v10575_v52 = vand.u32 3, %v1147_v36 }
 0x116   :  { %v1527_v5 = vsel %vm1525_vm13, %v1515_v48, 2102212464  ;;  %v1531_v20 = vsel %vm1525_vm13, %v1518_v45, 920167782  ;;  %v1538_v62 = vshll.u32 %v1498_v28, 8  ;;  %vm1523_vm15 = vcmp.lt.s32.totalorder %v10543_v32, 2 }
 0x117   :  { %v8960_v40 = vmin.u32 %v1340_v47, %v10567_v7  ;;  %v1526_v54 = vsel %vm1522_vm12, %v1506_v16, %v1509_v46  ;;  %v1530_v15 = vsel %vm1522_vm12, %v1509_v46, %v1512_v44  ;;  %v1528_v9 = vsel %vm1524_vm14, %v1512_v44, %v1527_v5 }
 0x118   :  { %v1532_v55 = vsel %vm1524_vm14, %v1515_v48, %v1531_v20  ;;  %v1534_v43 = vsel %vm1522_vm12, %v1512_v44, %v1515_v48  ;;  %v1535_v8 = vsel %vm1525_vm13, %v1521_v6, 1326507024  ;;  %v1152_v36 = vand.u32 3, %v1151_v53 }
 0x119   :  { %vm1276_vm0 = vcmp.lt.s32.totalorder %v10324_v2, 0  ;;  %v1342_v13 = vclz %v8960_v40  ;;  %v10597_v42 = vmul.f32 17.220755, %v9664_v4  ;;  %vm1257_vm1 = vcmp.lt.s32.totalorder %v10575_v52, 2 }
 0x11a   :  { %v1529_v63 = vsel %vm1523_vm15, %v1526_v54, %v1528_v9  ;;  %v1533_v10 = vsel %vm1523_vm15, %v1530_v15, %v1532_v55  ;;  %v1536_v59 = vsel %vm1524_vm14, %v1518_v45, %v1535_v8  ;;  %vm1150_vm2 = vweird.f32 %v10271_v26 }
 0x11b   :  { %v8961_v22 = vadd.s32 4294967294, %v1342_v13  ;;  %v1537_v61 = vsel %vm1523_vm15, %v1534_v43, %v1536_v59  ;;  %v10609_v11 = vmul.u32.u64.low %v1538_v62, %v1533_v10  ;;  %v10610_v1 = vmul.u32.u64.high %v1538_v62, %v1533_v10, %v10609_v11 }
 0x11c   :  { %vm1258_vm3 = vcmp.eq.s32.totalorder %v10575_v52, 0  ;;  %v1360_v0 = vsub.s32 4, %v10551_v57  ;;  %v10615_v35 = vmul.u32.u64.low %v1538_v62, %v1537_v61  ;;  %v10616_v60 = vmul.u32.u64.high %v1538_v62, %v1537_v61, %v10615_v35 }
 0x11d   :  { %vm1261_vm4 = vcmp.eq.s32.totalorder %v10575_v52, 2  ;;  %v1330_v31 = vadd.s32 %v10496_v51, %v10493_v34  ;;  %vm8962_vm5 = vcmp.lt.s32.totalorder %v8961_v22, 0  ;;  %v1709_v32 = vand.u32 2139095040, %v10597_v42 }
 0x11e   :  { %vm1153_vm6 = vcmp.lt.s32.totalorder %v1152_v36, 2  ;;  %vm1154_vm7 = vcmp.eq.s32.totalorder %v1152_v36, 0  ;;  %vm10624_vm8 = vcmp.le.f32.partialorder %v1274_v17, 0.7853982  ;;  %v1345_v19 = vsel %vm8962_vm5, 0, %v8961_v22 }
 0x11f   :  { %v1545_v39 = vmul.u32 %v1538_v62, %v1529_v63  ;;  %v1346_v37 = vsub.s32 32, %v1345_v19  ;;  %v1347_v24 = vshll.u32 %v10567_v7, %v1345_v19  ;;  %v1350_v33 = vsub.s32 4294967266, %v1345_v19 }
 0x120   :  { %v1548_v49 = vadd.s32 1, %v10610_v1  ;;  %v9449_v34 = vpop.eup %9448  ;;  %vm1157_vm9 = vcmp.eq.s32.totalorder %v1152_v36, 2  ;;  %v1361_v51 = vsel %vm1276_vm0, %v1360_v0, %v10551_v57  ;;  %vm1547_vm10 = vc.u32 %v10616_v60, %v10609_v11 }
 0x121   :  { %v1710_v17 = vshrl.u32 %v1709_v32, 23  ;;  %v9451_v30 = vpop.eup %9450  ;;  %v1158_v16 = vxor.u32 2147483648, %v9449_v34  ;;  %v1348_v45 = vshrl.u32 %v1330_v31, %v1346_v37  ;;  %v1351_v12 = vadd.s32 127, %v1350_v33 }
 0x122   :  { %v1549_v46 = vsel %vm1547_vm10, %v1548_v49, %v10610_v1  ;;  %v1155_v7 = vxor.u32 2147483648, %v9451_v30  ;;  %v1706_v48 = vand.u32 2147483647, %v10597_v42  ;;  %v1363_v36 = vsel %vm10624_vm8, 0, %v1361_v51 }
 0x123   :  { %v1550_v44 = vadd.s32 %v1549_v46, %v1545_v39  ;;  %v8975_v6 = vadd.s32 4294967169, %v1710_v17  ;;  %v1159_v53 = vsel %vm1157_vm9, %v1158_v16, %v9451_v30  ;;  %v1263_v47 = vsel %vm1261_vm4, %v1158_v16, %v9451_v30 }
 0x124   :  { %v1349_v57 = vor.u32 %v1348_v45, %v1347_v24  ;;  %v1352_v5 = vshll.u32 %v1351_v12, 23  ;;  %v1156_v20 = vsel %vm1154_vm7, %v9449_v34, %v1155_v7  ;;  %v1260_v62 = vsel %vm1258_vm3, %v9449_v34, %v1155_v7 }
 0x125   :  { %v1551_v40 = vadd.s32 536870912, %v1550_v44  ;;  %v1716_v54 = vadd.s32 1, %v8975_v6  ;;  %v1160_v15 = vsel %vm1153_vm6, %v1156_v20, %v1159_v53  ;;  %v1264_v9 = vsel %vm1257_vm1, %v1260_v62, %v1263_v47 }
 0x126   :  { %v1353_v55 = vor.u32 4788187, %v1352_v5  ;;  %v1356_v43 = vcvt.s32.f32 %v1349_v57  ;;  %v1161_v8 = vsel %vm1150_vm2, nan, %v1160_v15  ;;  %v1265_v13 = vsel %vm1150_vm2, nan, %v1264_v9 }
 0x127   :  { %v10649_v63 = vshrl.u32 %v1551_v40, 30  ;;  %vm1717_vm11 = vcmp.gt.s32.totalorder %v1716_v54, 0  ;;  %v1162_v10 = vmul.f32 %v1161_v8, %v10571_v3  ;;  %v1713_v61 = vand.u32 8388607, %v1706_v48 }
 0x128   :  { %v1354_v59 = vand.u32 2147483647, %v1353_v55  ;;  %v1718_v22 = vsel %vm1717_vm11, %v1716_v54, 0  ;;  %v1367_v26 = vadd.s32 3, %v1363_v36  ;;  %v10661_v37 = vmul.f32 0.091708444, %v9782_v56 }
 0x129   :  { %v1553_v52 = vshll.u32 %v10649_v63, 30  ;;  %v1720_v1 = vand.u32 31, %v1718_v22  ;;  %v1266_v0 = vsub.f32 %v1162_v10, %v1265_v13  ;;  %v10663_v24 = vand.u32 3, %v1363_v36 }
 0x12a   :  { %v1357_v35 = vmul.f32 %v1356_v43, %v1354_v59  ;;  %v1714_v49 = vor.u32 8388608, %v1713_v61  ;;  %v10673_v16 = vand.u32 3, %v1367_v26  ;;  %v1719_v12 = vshrl.u32 %v1718_v22, 5 }
 0x12b   :  { %v10657_v31 = vsub.s32 %v1550_v44, %v1553_v52  ;;  %v1721_v32 = vsub.s32 32, %v1720_v1  ;;  %v1267_v19 = vmul.f32 %v1266_v0, %v10571_v3  ;;  %v1723_v17 = vshll.u32 %v9636_v21, %v1720_v1 }
 0x12c   :  { %v1358_v39 = vxor.u32 2147483648, %v1357_v35  ;;  %v1726_v7 = vshll.u32 %v9637_v23, %v1720_v1  ;;  %v1546_v6 = vadd.s32 %v10609_v11, %v10616_v60  ;;  %v10682_v28 = vmul.f32 20.371304, %v9664_v4 }
 0x12d   :  { %v1556_v33 = vsub.s32 0, %v10657_v31  ;;  %v1268_v34 = vmul.f32 11.016308, %v1267_v19  ;;  %v1724_v30 = vshrl.u32 %v9637_v23, %v1721_v32  ;;  %v1727_v44 = vshrl.u32 %v9638_v25, %v1721_v32 }
 0x12e   :  { %v1359_v51 = vsel %vm1276_vm0, %v1358_v39, %v1357_v35  ;;  %v1722_v47 = vshrl.u32 %v9636_v21, %v1721_v32  ;;  %v1729_v5 = vshll.u32 %v9638_v25, %v1720_v1  ;;  %v10686_v20 = vshll.u32 %v1714_v49, 8 }
 0x12f   :  { %v1362_v3 = vsel %vm10624_vm8, %v10324_v2, %v1359_v51  ;;  %v8968_v45 = vmin.u32 %v1556_v33, %v10657_v31  ;;  %v1269_v46 = vmul.f32 %v1268_v34, %v10530_v50  ;;  %v1725_v57 = vor.u32 %v1724_v30, %v1723_v17 }
 0x130   :  { %9452 = vcosq.f32 %v1362_v3  ;;  %v1730_v40 = vshrl.u32 %v9639_v27, %v1721_v32  ;;  %v1732_v54 = vshll.u32 %v9639_v27, %v1720_v1  ;;  %v1733_v15 = vshrl.u32 %v9640_v29, %v1721_v32 }
 0x131   :  { %9454 = vsinq.f32 %v1362_v3  ;;  %v1558_v53 = vclz %v8968_v45  ;;  %1271 = vst [vmem:[#allocation5 + $0x38] sm:$0xff] %v1269_v46  ;;  %v1728_v11 = vor.u32 %v1727_v44, %v1726_v7  ;;  %v1735_v60 = vshll.u32 %v9640_v29, %v1720_v1 }
 0x132   :  { %v1736_v9 = vshrl.u32 %v9641_v38, %v1721_v32  ;;  %vm1738_vm12 = vcmp.lt.s32.totalorder %v1719_v12, 1  ;;  %vm1373_vm13 = vcmp.eq.s32.totalorder %v10673_v16, 2  ;;  %vm1477_vm14 = vcmp.eq.s32.totalorder %v10663_v24, 2 }
 0x133   :  { %v8969_v62 = vadd.s32 4294967294, %v1558_v53  ;;  %vm1492_vm15 = vcmp.lt.s32.totalorder %v10421_v14, 0  ;;  %v1731_v55 = vor.u32 %v1730_v40, %v1729_v5  ;;  %v1734_v43 = vor.u32 %v1733_v15, %v1732_v54 }
 0x134   :  { %vm1739_vm1 = vcmp.lt.s32.totalorder %v1719_v12, 2  ;;  %vm1474_vm2 = vcmp.eq.s32.totalorder %v10663_v24, 0  ;;  %v1737_v13 = vor.u32 %v1736_v9, %v1735_v60  ;;  %vm1740_vm3 = vcmp.lt.s32.totalorder %v1719_v12, 3 }
 0x135   :  { %vm8970_vm0 = vcmp.lt.s32.totalorder %v8969_v62, 0  ;;  %vm1741_vm4 = vcmp.lt.s32.totalorder %v1719_v12, 4  ;;  %vm1369_vm5 = vcmp.lt.s32.totalorder %v10673_v16, 2  ;;  %vm1473_vm6 = vcmp.lt.s32.totalorder %v10663_v24, 2 }
 0x136   :  { %v1561_v8 = vsel %vm8970_vm0, 0, %v8969_v62  ;;  %v1743_v22 = vsel %vm1741_vm4, %v1731_v55, 2102212464  ;;  %vm1366_vm7 = vweird.f32 %v10324_v2  ;;  %vm10704_vm8 = vcmp.le.f32.partialorder %v1490_v41, 0.7853982 }
 0x137   :  { %v1562_v10 = vsub.s32 32, %v1561_v8  ;;  %v1563_v59 = vshll.u32 %v10657_v31, %v1561_v8  ;;  %v1566_v36 = vsub.s32 4294967266, %v1561_v8  ;;  %v1742_v61 = vsel %vm1738_vm12, %v1722_v47, %v1725_v57 }
 0x138   :  { %v1744_v1 = vsel %vm1740_vm3, %v1728_v11, %v1743_v22  ;;  %v1746_v0 = vsel %vm1738_vm12, %v1725_v57, %v1728_v11  ;;  %v1747_v35 = vsel %vm1741_vm4, %v1734_v43, 920167782  ;;  %v1750_v19 = vsel %vm1738_vm12, %v1728_v11, %v1731_v55 }
 0x139   :  { %v1564_v26 = vshrl.u32 %v1546_v6, %v1562_v10  ;;  %v1567_v31 = vadd.s32 127, %v1566_v36  ;;  %v1748_v32 = vsel %vm1740_vm3, %v1731_v55, %v1747_v35  ;;  %v1576_v39 = vsub.s32 4, %v10649_v63 }
 0x13a   :  { %v1749_v41 = vsel %vm1739_vm1, %v1746_v0, %v1748_v32  ;;  %v1751_v33 = vsel %vm1741_vm4, %v1737_v13, 1326507024  ;;  %v1925_v49 = vand.u32 2139095040, %v10682_v28  ;;  %v1745_v17 = vsel %vm1739_vm1, %v1742_v61, %v1744_v1 }
 0x13b   :  { %v1565_v34 = vor.u32 %v1564_v26, %v1563_v59  ;;  %v1568_v51 = vshll.u32 %v1567_v31, 23  ;;  %v1752_v30 = vsel %vm1740_vm3, %v1734_v43, %v1751_v33  ;;  %vm1370_vm9 = vcmp.eq.s32.totalorder %v10673_v16, 0 }
 0x13c   :  { %v1753_v3 = vsel %vm1739_vm1, %v1750_v19, %v1752_v30  ;;  %v10722_v45 = vmul.u32.u64.low %v10686_v20, %v1749_v41  ;;  %v10723_v46 = vmul.u32.u64.high %v10686_v20, %v1749_v41, %v10722_v45  ;;  %v1926_v7 = vshrl.u32 %v1925_v49, 23 }
 0x13d   :  { %v9453_v44 = vpop.eup %9452  ;;  %v1569_v6 = vor.u32 4788187, %v1568_v51  ;;  %v1572_v53 = vcvt.s32.f32 %v1565_v34  ;;  %v10727_v47 = vmul.u32.u64.low %v10686_v20, %v1753_v3  ;;  %v10728_v57 = vmul.u32.u64.high %v10686_v20, %v1753_v3, %v10727_v47 }
 0x13e   :  { %v9455_v5 = vpop.eup %9454  ;;  %v1374_v62 = vxor.u32 2147483648, %v9453_v44  ;;  %v1577_v12 = vsel %vm1492_vm15, %v1576_v39, %v10649_v63  ;;  %v8983_v40 = vadd.s32 4294967169, %v1926_v7  ;;  %v1761_v11 = vmul.u32 %v10686_v20, %v1745_v17 }
 0x13f   :  { %v1371_v54 = vxor.u32 2147483648, %v9455_v5  ;;  %v1570_v15 = vand.u32 2147483647, %v1569_v6  ;;  %v1922_v60 = vand.u32 2147483647, %v10682_v28  ;;  %v1764_v43 = vadd.s32 1, %v10723_v46 }
 0x140   :  { %v1375_v9 = vsel %vm1373_vm13, %v1374_v62, %v9455_v5  ;;  %v1479_v55 = vsel %vm1477_vm14, %v1374_v62, %v9455_v5  ;;  %v1932_v8 = vadd.s32 1, %v8983_v40  ;;  %v1579_v59 = vsel %vm10704_vm8, 0, %v1577_v12 }
 0x141   :  { %v1372_v13 = vsel %vm1370_vm9, %v9453_v44, %v1371_v54  ;;  %v1476_v63 = vsel %vm1474_vm2, %v9453_v44, %v1371_v54  ;;  %v1573_v10 = vmul.f32 %v1572_v53, %v1570_v15  ;;  %vm1763_vm10 = vc.u32 %v10728_v57, %v10722_v45 }
 0x142   :  { %v1376_v20 = vsel %vm1369_vm5, %v1372_v13, %v1375_v9  ;;  %v1480_v36 = vsel %vm1473_vm6, %v1476_v63, %v1479_v55  ;;  %vm1933_vm11 = vcmp.gt.s32.totalorder %v1932_v8, 0  ;;  %v1765_v0 = vsel %vm1763_vm10, %v1764_v43, %v10723_v46 }
 0x143   :  { %v1377_v22 = vsel %vm1366_vm7, nan, %v1376_v20  ;;  %v1481_v61 = vsel %vm1366_vm7, nan, %v1480_v36  ;;  %v1574_v1 = vxor.u32 2147483648, %v1573_v10  ;;  %v1583_v16 = vadd.s32 3, %v1579_v59 }
 0x144   :  { %v1378_v35 = vmul.f32 %v1377_v22, %v10661_v37  ;;  %v1766_v26 = vadd.s32 %v1765_v0, %v1761_v11  ;;  %v1934_v31 = vsel %vm1933_vm11, %v1932_v8, 0  ;;  %v10760_v39 = vmul.f32 0.071092434, %v9782_v56 }
 0x145   :  { %v1575_v24 = vsel %vm1492_vm15, %v1574_v1, %v1573_v10  ;;  %v1936_v32 = vand.u32 31, %v1934_v31  ;;  %v10765_v33 = vand.u32 3, %v1579_v59  ;;  %v1929_v49 = vand.u32 8388607, %v1922_v60 }
 0x146   :  { %v1482_v19 = vsub.f32 %v1378_v35, %v1481_v61  ;;  %v1578_v2 = vsel %vm10704_vm8, %v10421_v14, %v1575_v24  ;;  %v1767_v41 = vadd.s32 536870912, %v1766_v26  ;;  %v10770_v17 = vand.u32 3, %v1583_v16 }
 0x147   :  { %9456 = vcosq.f32 %v1578_v2  ;;  %v1937_v34 = vsub.s32 32, %v1936_v32  ;;  %v1939_v3 = vshll.u32 %v9636_v21, %v1936_v32  ;;  %v1942_v46 = vshll.u32 %v9637_v23, %v1936_v32 }
 0x148   :  { %v1483_v51 = vmul.f32 %v1482_v19, %v10661_v37  ;;  %9458 = vsinq.f32 %v1578_v2  ;;  %v10772_v30 = vshrl.u32 %v1767_v41, 30  ;;  %v1935_v53 = vshrl.u32 %v1934_v31, 5 }
 0x149   :  { %v1940_v52 = vshrl.u32 %v9637_v23, %v1937_v34  ;;  %v1943_v7 = vshrl.u32 %v9638_v25, %v1937_v34  ;;  %v1948_v47 = vshll.u32 %v9639_v27, %v1936_v32  ;;  %v1930_v37 = vor.u32 8388608, %v1929_v49 }
 0x14a   :  { %v1484_v44 = vmul.f32 15.485469, %v1483_v51  ;;  %v1769_v6 = vshll.u32 %v10772_v30, 30  ;;  %v1945_v5 = vshll.u32 %v9638_v25, %v1936_v32  ;;  %v1946_v62 = vshrl.u32 %v9639_v27, %v1937_v34 }
 0x14b   :  { %v1949_v12 = vshrl.u32 %v9640_v29, %v1937_v34  ;;  %v1938_v15 = vshrl.u32 %v9636_v21, %v1937_v34  ;;  %v1951_v11 = vshll.u32 %v9640_v29, %v1936_v32  ;;  %vm1690_vm12 = vcmp.eq.s32.totalorder %v10765_v33, 0 }
 0x14c   :  { %v1485_v40 = vmul.f32 %v1484_v44, %v10530_v50  ;;  %v10784_v54 = vsub.s32 %v1766_v26, %v1769_v6  ;;  %v1941_v9 = vor.u32 %v1940_v52, %v1939_v3  ;;  %v1944_v55 = vor.u32 %v1943_v7, %v1942_v46 }
 0x14d   :  { %v1950_v43 = vor.u32 %v1949_v12, %v1948_v47  ;;  %v1952_v8 = vshrl.u32 %v9641_v38, %v1937_v34  ;;  %vm1585_vm13 = vcmp.lt.s32.totalorder %v10770_v17, 2  ;;  %vm1689_vm14 = vcmp.lt.s32.totalorder %v10765_v33, 2 }
 0x14e   :  { %1487 = vst [vmem:[#allocation5 + $0x40] sm:$0xff] %v1485_v40  ;;  %vm1693_vm15 = vcmp.eq.s32.totalorder %v10765_v33, 2  ;;  %v1772_v13 = vsub.s32 0, %v10784_v54  ;;  %vm1954_vm0 = vcmp.lt.s32.totalorder %v1935_v53, 1  ;;  %vm1582_vm1 = vweird.f32 %v10421_v14 }
 0x14f   :  { %vm1586_vm2 = vcmp.eq.s32.totalorder %v10770_v17, 0  ;;  %v1947_v63 = vor.u32 %v1946_v62, %v1945_v5  ;;  %v1953_v10 = vor.u32 %v1952_v8, %v1951_v11  ;;  %vm1957_vm3 = vcmp.lt.s32.totalorder %v1935_v53, 4 }
 0x150   :  { %v8976_v59 = vmin.u32 %v1772_v13, %v10784_v54  ;;  %vm1955_vm4 = vcmp.lt.s32.totalorder %v1935_v53, 2  ;;  %vm1956_vm5 = vcmp.lt.s32.totalorder %v1935_v53, 3  ;;  %v1970_v20 = vshll.u32 %v1930_v37, 8 }
 0x151   :  { %v1958_v36 = vsel %vm1954_vm0, %v1938_v15, %v1941_v9  ;;  %v1959_v22 = vsel %vm1957_vm3, %v1947_v63, 2102212464  ;;  %v1962_v61 = vsel %vm1954_vm0, %v1941_v9, %v1944_v55  ;;  %v1963_v1 = vsel %vm1957_vm3, %v1950_v43, 920167782 }
 0x152   :  { %vm1589_vm6 = vcmp.eq.s32.totalorder %v10770_v17, 2  ;;  %v1762_v0 = vadd.s32 %v10722_v45, %v10728_v57  ;;  %v1774_v35 = vclz %v8976_v59  ;;  %v10805_v16 = vmul.f32 5.763459, %v9664_v4 }
 0x153   :  { %v1960_v26 = vsel %vm1956_vm5, %v1944_v55, %v1959_v22  ;;  %v1964_v31 = vsel %vm1956_vm5, %v1947_v63, %v1963_v1  ;;  %v1966_v24 = vsel %vm1954_vm0, %v1944_v55, %v1947_v63  ;;  %v1967_v32 = vsel %vm1957_vm3, %v1953_v10, 1326507024 }
 0x154   :  { %v9457_v19 = vpop.eup %9456  ;;  %v8977_v2 = vadd.s32 4294967294, %v1774_v35  ;;  %v1961_v41 = vsel %vm1955_vm4, %v1958_v36, %v1960_v26  ;;  %v1965_v49 = vsel %vm1955_vm4, %v1962_v61, %v1964_v31  ;;  %v1968_v45 = vsel %vm1956_vm5, %v1950_v43, %v1967_v32 }
 0x155   :  { %v9459_v57 = vpop.eup %9458  ;;  %v1590_v34 = vxor.u32 2147483648, %v9457_v19  ;;  %v1969_v51 = vsel %vm1955_vm4, %v1966_v24, %v1968_v45  ;;  %v10815_v3 = vmul.u32.u64.low %v1970_v20, %v1965_v49  ;;  %v10816_v52 = vmul.u32.u64.high %v1970_v20, %v1965_v49, %v10815_v3 }
 0x156   :  { %v1587_v46 = vxor.u32 2147483648, %v9459_v57  ;;  %vm8978_vm7 = vcmp.lt.s32.totalorder %v8977_v2, 0  ;;  %v10819_v7 = vmul.u32.u64.low %v1970_v20, %v1969_v51  ;;  %v10820_v44 = vmul.u32.u64.high %v1970_v20, %v1969_v51, %v10819_v7 }
 0x157   :  { %v1591_v6 = vsel %vm1589_vm6, %v1590_v34, %v9459_v57  ;;  %v1695_v47 = vsel %vm1693_vm15, %v1590_v34, %v9459_v57  ;;  %v1777_v37 = vsel %vm8978_vm7, 0, %v8977_v2  ;;  %v1977_v5 = vmul.u32 %v1970_v20, %v1961_v41 }
 0x158   :  { %v1588_v53 = vsel %vm1586_vm2, %v9457_v19, %v1587_v46  ;;  %v1692_v62 = vsel %vm1690_vm12, %v9457_v19, %v1587_v46  ;;  %v1778_v12 = vsub.s32 32, %v1777_v37  ;;  %v1779_v40 = vshll.u32 %v10784_v54, %v1777_v37 }
 0x159   :  { %v1592_v15 = vsel %vm1585_vm13, %v1588_v53, %v1591_v6  ;;  %v1696_v11 = vsel %vm1689_vm14, %v1692_v62, %v1695_v47  ;;  %v1782_v9 = vsub.s32 4294967266, %v1777_v37  ;;  %v1980_v55 = vadd.s32 1, %v10816_v52 }
 0x15a   :  { %v1593_v43 = vsel %vm1582_vm1, nan, %v1592_v15  ;;  %v1697_v8 = vsel %vm1582_vm1, nan, %v1696_v11  ;;  %v1780_v13 = vshrl.u32 %v1762_v0, %v1778_v12  ;;  %v1792_v63 = vsub.s32 4, %v10772_v30 }
 0x15b   :  { %v1594_v54 = vmul.f32 %v1593_v43, %v10760_v39  ;;  %v1783_v10 = vadd.s32 127, %v1782_v9  ;;  %vm1979_vm8 = vc.u32 %v10820_v44, %v10815_v3  ;;  %vm1708_vm9 = vcmp.lt.s32.totalorder %v10597_v42, 0 }
 0x15c   :  { %v1781_v33 = vor.u32 %v1780_v13, %v1779_v40  ;;  %v1981_v17 = vsel %vm1979_vm8, %v1980_v55, %v10816_v52  ;;  %v2143_v14 = vand.u32 2139095040, %v10805_v16  ;;  %v1793_v61 = vsel %vm1708_vm9, %v1792_v63, %v10772_v30 }
 0x15d   :  { %v1698_v59 = vsub.f32 %v1594_v54, %v1697_v8  ;;  %v1784_v20 = vshll.u32 %v1783_v10, 23  ;;  %v1982_v36 = vadd.s32 %v1981_v17, %v1977_v5  ;;  %vm10853_vm10 = vcmp.le.f32.partialorder %v1706_v48, 0.7853982 }
 0x15e   :  { %v1788_v22 = vcvt.s32.f32 %v1781_v33  ;;  %v2144_v26 = vshrl.u32 %v2143_v14, 23  ;;  %v2140_v24 = vand.u32 2147483647, %v10805_v16  ;;  %v10859_v32 = vmul.f32 9.095012, %v9664_v4 }
 0x15f   :  { %v1699_v1 = vmul.f32 %v1698_v59, %v10760_v39  ;;  %v1785_v0 = vor.u32 4788187, %v1784_v20  ;;  %v1983_v35 = vadd.s32 536870912, %v1982_v36  ;;  %v1795_v39 = vsel %vm10853_vm10, 0, %v1793_v61 }
 0x160   :  { %v8991_v30 = vadd.s32 4294967169, %v2144_v26  ;;  %v2362_v49 = vand.u32 2139095040, %v10859_v32  ;;  %v2147_v51 = vand.u32 8388607, %v2140_v24  ;;  %v2359_v46 = vand.u32 2147483647, %v10859_v32 }
 0x161   :  { %v1700_v19 = vmul.f32 19.942808, %v1699_v1  ;;  %v1786_v2 = vand.u32 2147483647, %v1785_v0  ;;  %v1984_v41 = vshrl.u32 %v1983_v35, 30  ;;  %vm1924_vm11 = vcmp.lt.s32.totalorder %v10682_v28, 0 }
 0x162   :  { %v2150_v52 = vadd.s32 1, %v8991_v30  ;;  %v2363_v7 = vshrl.u32 %v2362_v49, 23  ;;  %v1799_v37 = vadd.s32 3, %v1795_v39  ;;  %vm10877_vm13 = vcmp.le.f32.partialorder %v1922_v60, 0.7853982 }
 0x163   :  { %v1701_v45 = vmul.f32 %v1700_v19, %v10530_v50  ;;  %v1789_v48 = vmul.f32 %v1788_v22, %v1786_v2  ;;  %v1985_v57 = vshll.u32 %v1984_v41, 30  ;;  %v2008_v34 = vsub.s32 4, %v1984_v41 }
 0x164   :  { %vm2151_vm12 = vcmp.gt.s32.totalorder %v2150_v52, 0  ;;  %v8999_v53 = vadd.s32 4294967169, %v2363_v7  ;;  %v10885_v11 = vand.u32 3, %v1795_v39  ;;  %v2148_v9 = vor.u32 8388608, %v2147_v51 }
 0x165   :  { %1703 = vst [vmem:[#allocation5 + $0x48] sm:$0xff] %v1701_v45  ;;  %v1790_v6 = vxor.u32 2147483648, %v1789_v48  ;;  %v10869_v47 = vsub.s32 %v1982_v36, %v1985_v57  ;;  %v2009_v5 = vsel %vm1924_vm11, %v2008_v34, %v1984_v41  ;;  %v10889_v55 = vand.u32 8388607, %v2359_v46 }
 0x166   :  { %v2011_v60 = vsel %vm10877_vm13, 0, %v2009_v5  ;;  %v2152_v8 = vsel %vm2151_vm12, %v2150_v52, 0  ;;  %v10894_v13 = vand.u32 3, %v1799_v37  ;;  %v2369_v54 = vadd.s32 1, %v8999_v53 }
 0x167   :  { %v1791_v62 = vsel %vm1708_vm9, %v1790_v6, %v1789_v48  ;;  %v1988_v40 = vsub.s32 0, %v10869_v47  ;;  %v10896_v63 = vshrl.u32 %v2152_v8, 5  ;;  %v10899_v10 = vmul.f32 0.058069464, %v9782_v56 }
 0x168   :  { %v1794_v15 = vsel %vm10853_vm10, %v10597_v42, %v1791_v62  ;;  %v1978_v33 = vadd.s32 %v10815_v3, %v10820_v44  ;;  %v10903_v59 = vadd.s32 3, %v2011_v60  ;;  %v2154_v20 = vand.u32 31, %v2152_v8 }
 0x169   :  { %9460 = vcosq.f32 %v1794_v15  ;;  %v8984_v43 = vmin.u32 %v1988_v40, %v10869_v47  ;;  %v10905_v36 = vshll.u32 %v2148_v9, 8  ;;  %v2367_v14 = vor.u32 8388608, %v10889_v55 }
 0x16a   :  { %9462 = vsinq.f32 %v1794_v15  ;;  %v10908_v61 = vand.u32 3, %v2011_v60  ;;  %vm2172_vm14 = vcmp.lt.s32.totalorder %v10896_v63, 1  ;;  %vm2175_vm15 = vcmp.lt.s32.totalorder %v10896_v63, 4 }
 0x16b   :  { %v1990_v17 = vclz %v8984_v43  ;;  %vm1805_vm0 = vcmp.eq.s32.totalorder %v10894_v13, 2  ;;  %vm1909_vm1 = vcmp.eq.s32.totalorder %v10885_v11, 2  ;;  %v2155_v3 = vsub.s32 32, %v2154_v20 }
 0x16c   :  { %v2157_v44 = vshll.u32 %v9636_v21, %v2154_v20  ;;  %v2160_v1 = vshll.u32 %v9637_v23, %v2154_v20  ;;  %vm2173_vm2 = vcmp.lt.s32.totalorder %v10896_v63, 2  ;;  %vm2370_vm3 = vcmp.gt.s32.totalorder %v2369_v54, 0 }
 0x16d   :  { %v8985_v22 = vadd.s32 4294967294, %v1990_v17  ;;  %vm1802_vm4 = vcmp.eq.s32.totalorder %v10894_v13, 0  ;;  %vm1906_vm5 = vcmp.eq.s32.totalorder %v10885_v11, 0  ;;  %v2163_v0 = vshll.u32 %v9638_v25, %v2154_v20 }
 0x16e   :  { %v2166_v35 = vshll.u32 %v9639_v27, %v2154_v20  ;;  %v2169_v26 = vshll.u32 %v9640_v29, %v2154_v20  ;;  %vm1801_vm7 = vcmp.lt.s32.totalorder %v10894_v13, 2  ;;  %vm1905_vm8 = vcmp.lt.s32.totalorder %v10885_v11, 2 }
 0x16f   :  { %vm8986_vm6 = vcmp.lt.s32.totalorder %v8985_v22, 0  ;;  %v2156_v19 = vshrl.u32 %v9636_v21, %v2155_v3  ;;  %v2158_v2 = vshrl.u32 %v9637_v23, %v2155_v3  ;;  %v2161_v41 = vshrl.u32 %v9638_v25, %v2155_v3 }
 0x170   :  { %v1993_v31 = vsel %vm8986_vm6, 0, %v8985_v22  ;;  %vm1798_vm9 = vweird.f32 %v10597_v42  ;;  %v2164_v45 = vshrl.u32 %v9639_v27, %v2155_v3  ;;  %v2167_v34 = vshrl.u32 %v9640_v29, %v2155_v3 }
 0x171   :  { %v1994_v30 = vsub.s32 32, %v1993_v31  ;;  %v1995_v39 = vshll.u32 %v10869_v47, %v1993_v31  ;;  %v1998_v49 = vsub.s32 4294967266, %v1993_v31  ;;  %v2159_v48 = vor.u32 %v2158_v2, %v2157_v44 }
 0x172   :  { %v2162_v57 = vor.u32 %v2161_v41, %v2160_v1  ;;  %v2170_v51 = vshrl.u32 %v9641_v38, %v2155_v3  ;;  %v2165_v6 = vor.u32 %v2164_v45, %v2163_v0  ;;  %v2371_v37 = vsel %vm2370_vm3, %v2369_v54, 0 }
 0x173   :  { %v1996_v52 = vshrl.u32 %v1978_v33, %v1994_v30  ;;  %v1999_v7 = vadd.s32 127, %v1998_v49  ;;  %v2168_v5 = vor.u32 %v2167_v34, %v2166_v35  ;;  %vm2174_vm10 = vcmp.lt.s32.totalorder %v10896_v63, 3 }
 0x174   :  { %v2171_v53 = vor.u32 %v2170_v51, %v2169_v26  ;;  %v2176_v47 = vsel %vm2172_vm14, %v2156_v19, %v2159_v48  ;;  %v2177_v15 = vsel %vm2175_vm15, %v2165_v6, 2102212464  ;;  %v2180_v9 = vsel %vm2172_vm14, %v2159_v48, %v2162_v57 }
 0x175   :  { %v1997_v62 = vor.u32 %v1996_v52, %v1995_v39  ;;  %v2000_v40 = vshll.u32 %v1999_v7, 23  ;;  %v2178_v60 = vsel %vm2174_vm10, %v2162_v57, %v2177_v15  ;;  %v2181_v8 = vsel %vm2175_vm15, %v2168_v5, 920167782 }
 0x176   :  { %v9461_v43 = vpop.eup %9460  ;;  %v2185_v54 = vsel %vm2175_vm15, %v2171_v53, 1326507024  ;;  %v2373_v33 = vand.u32 31, %v2371_v37  ;;  %v2184_v44 = vsel %vm2172_vm14, %v2162_v57, %v2165_v6  ;;  %v2179_v0 = vsel %vm2173_vm2, %v2176_v47, %v2178_v60 }
 0x177   :  { %v9463_v17 = vpop.eup %9462  ;;  %v1806_v20 = vxor.u32 2147483648, %v9461_v43  ;;  %v2001_v22 = vor.u32 4788187, %v2000_v40  ;;  %v2004_v3 = vcvt.s32.f32 %v1997_v62  ;;  %v2182_v35 = vsel %vm2174_vm10, %v2165_v6, %v2181_v8 }
 0x178   :  { %v1803_v1 = vxor.u32 2147483648, %v9463_v17  ;;  %v2186_v26 = vsel %vm2174_vm10, %v2168_v5, %v2185_v54  ;;  %v2183_v41 = vsel %vm2173_vm2, %v2180_v9, %v2182_v35  ;;  %v2374_v45 = vsub.s32 32, %v2373_v33 }
 0x179   :  { %v1807_v31 = vsel %vm1805_vm0, %v1806_v20, %v9463_v17  ;;  %v1911_v19 = vsel %vm1909_vm1, %v1806_v20, %v9463_v17  ;;  %v2002_v2 = vand.u32 2147483647, %v2001_v22  ;;  %v2187_v49 = vsel %vm2173_vm2, %v2184_v44, %v2186_v26 }
 0x17a   :  { %v1804_v30 = vsel %vm1802_vm4, %v9461_v43, %v1803_v1  ;;  %v1908_v39 = vsel %vm1906_vm5, %v9461_v43, %v1803_v1  ;;  %v2376_v51 = vshll.u32 %v9636_v21, %v2373_v33  ;;  %v2372_v47 = vshrl.u32 %v2371_v37, 5 }
 0x17b   :  { %v1808_v48 = vsel %vm1801_vm7, %v1804_v30, %v1807_v31  ;;  %v1912_v57 = vsel %vm1905_vm8, %v1908_v39, %v1911_v19  ;;  %v2005_v34 = vmul.f32 %v2004_v3, %v2002_v2  ;;  %v2377_v62 = vshrl.u32 %v9637_v23, %v2374_v45 }
 0x17c   :  { %v1809_v52 = vsel %vm1798_vm9, nan, %v1808_v48  ;;  %v1913_v7 = vsel %vm1798_vm9, nan, %v1912_v57  ;;  %v10976_v6 = vmul.u32.u64.low %v10905_v36, %v2187_v49  ;;  %v10977_v63 = vmul.u32.u64.high %v10905_v36, %v2187_v49, %v10976_v6 }
 0x17d   :  { %v1810_v5 = vmul.f32 %v1809_v52, %v10899_v10  ;;  %v2006_v13 = vxor.u32 2147483648, %v2005_v34  ;;  %v10981_v53 = vmul.u32.u64.low %v10905_v36, %v2183_v41  ;;  %v10982_v11 = vmul.u32.u64.high %v10905_v36, %v2183_v41, %v10981_v53 }
 0x17e   :  { %v2379_v40 = vshll.u32 %v9637_v23, %v2373_v33  ;;  %v2380_v42 = vshrl.u32 %v9638_v25, %v2374_v45  ;;  %v2382_v43 = vshll.u32 %v9638_v25, %v2373_v33  ;;  %v2383_v60 = vshrl.u32 %v9639_v27, %v2374_v45 }
 0x17f   :  { %v1914_v15 = vsub.f32 %v1810_v5, %v1913_v7  ;;  %v2007_v9 = vsel %vm1924_vm11, %v2006_v13, %v2005_v34  ;;  %v2195_v37 = vmul.u32 %v10905_v36, %v2179_v0  ;;  %vm2197_vm12 = vc.u32 %v10977_v63, %v10981_v53 }
 0x180   :  { %v2010_v8 = vsel %vm10877_vm13, %v10682_v28, %v2007_v9  ;;  %v2378_v54 = vor.u32 %v2377_v62, %v2376_v51  ;;  %v2198_v20 = vadd.s32 1, %v10982_v11  ;;  %v2381_v22 = vor.u32 %v2380_v42, %v2379_v40 }
 0x181   :  { %v1915_v17 = vmul.f32 %v1914_v15, %v10899_v10  ;;  %9464 = vcosq.f32 %v2010_v8  ;;  %v2384_v3 = vor.u32 %v2383_v60, %v2382_v43  ;;  %v2385_v44 = vshll.u32 %v9639_v27, %v2373_v33 }
 0x182   :  { %9466 = vsinq.f32 %v2010_v8  ;;  %v2386_v1 = vshrl.u32 %v9640_v29, %v2374_v45  ;;  %v2199_v35 = vsel %vm2197_vm12, %v2198_v20, %v10982_v11  ;;  %v2388_v36 = vshll.u32 %v9640_v29, %v2373_v33 }
 0x183   :  { %v1916_v12 = vmul.f32 24.394852, %v1915_v17  ;;  %v2389_v0 = vshrl.u32 %v9641_v38, %v2374_v45  ;;  %v2200_v26 = vadd.s32 %v2199_v35, %v2195_v37  ;;  %v2375_v10 = vshrl.u32 %v9636_v21, %v2374_v45 }
 0x184   :  { %v2387_v31 = vor.u32 %v2386_v1, %v2385_v44  ;;  %vm2391_vm11 = vcmp.lt.s32.totalorder %v2372_v47, 1  ;;  %vm2393_vm13 = vcmp.lt.s32.totalorder %v2372_v47, 3  ;;  %vm2394_vm14 = vcmp.lt.s32.totalorder %v2372_v47, 4 }
 0x185   :  { %v1917_v19 = vmul.f32 %v1916_v12, %v10530_v50  ;;  %v2390_v2 = vor.u32 %v2389_v0, %v2388_v36  ;;  %v2201_v41 = vadd.s32 536870912, %v2200_v26  ;;  %vm2392_vm15 = vcmp.lt.s32.totalorder %v2372_v47, 2 }
 0x186   :  { %v2399_v30 = vsel %vm2391_vm11, %v2378_v54, %v2381_v22  ;;  %v2407_v39 = vshll.u32 %v2367_v14, 8  ;;  %v2396_v33 = vsel %vm2394_vm14, %v2384_v3, 2102212464  ;;  %v2400_v49 = vsel %vm2394_vm14, %v2387_v31, 920167782 }
 0x187   :  { %1919 = vst [vmem:[#allocation5 + $0x50] sm:$0xff] %v1917_v19  ;;  %v2403_v48 = vsel %vm2391_vm11, %v2381_v22, %v2384_v3  ;;  %v2404_v45 = vsel %vm2394_vm14, %v2390_v2, 1326507024  ;;  %v2016_v57 = vand.u32 3, %v10903_v59  ;;  %v11012_v34 = vshrl.u32 %v2201_v41, 30 }
 0x188   :  { %v2401_v51 = vsel %vm2393_vm13, %v2384_v3, %v2400_v49  ;;  %v2405_v52 = vsel %vm2393_vm13, %v2387_v31, %v2404_v45  ;;  %v2395_v7 = vsel %vm2391_vm11, %v2375_v10, %v2378_v54  ;;  %v11020_v14 = vmul.f32 12.322941, %v9664_v4 }
 0x189   :  { %v2402_v6 = vsel %vm2392_vm15, %v2399_v30, %v2401_v51  ;;  %v2406_v55 = vsel %vm2392_vm15, %v2403_v48, %v2405_v52  ;;  %v2203_v5 = vshll.u32 %v11012_v34, 30  ;;  %v2397_v13 = vsel %vm2393_vm13, %v2381_v22, %v2396_v33 }
 0x18a   :  { %v11024_v59 = vmul.u32.u64.low %v2407_v39, %v2406_v55  ;;  %v11025_v11 = vmul.u32.u64.high %v2407_v39, %v2406_v55, %v11024_v59  ;;  %v11027_v62 = vmul.u32.u64.low %v2407_v39, %v2402_v6  ;;  %v11028_v40 = vmul.u32.u64.high %v2407_v39, %v2402_v6, %v11027_v62 }
 0x18b   :  { %v148_v42 = vmul.f32 3.0, %v10332_v58  ;;  %v11032_v15 = vsub.s32 %v2200_v26, %v2203_v5  ;;  %v1921_v9 = vmul.f32 0.04908866, %v9782_v56  ;;  %vm2014_vm0 = vweird.f32 %v10682_v28 }
 0x18c   :  { %v2398_v43 = vsel %vm2392_vm15, %v2395_v7, %v2397_v13  ;;  %v2581_v60 = vand.u32 2139095040, %v11020_v14  ;;  %vm2021_vm1 = vcmp.eq.s32.totalorder %v2016_v57, 2  ;;  %vm2121_vm2 = vcmp.lt.s32.totalorder %v10908_v61, 2 }
 0x18d   :  { %vm2125_vm3 = vcmp.eq.s32.totalorder %v10908_v61, 2  ;;  %v2206_v37 = vsub.s32 0, %v11032_v15  ;;  %vm2017_vm4 = vcmp.lt.s32.totalorder %v2016_v57, 2  ;;  %vm2018_vm5 = vcmp.eq.s32.totalorder %v2016_v57, 0 }
 0x18e   :  { %v9465_v8 = vpop.eup %9464  ;;  %vm2122_vm6 = vcmp.eq.s32.totalorder %v10908_v61, 0  ;;  %v2414_v22 = vmul.u32 %v2407_v39, %v2398_v43  ;;  %v2417_v3 = vadd.s32 1, %v11028_v40  ;;  %vm2416_vm7 = vc.u32 %v11025_v11, %v11027_v62 }
 0x18f   :  { %v9467_v54 = vpop.eup %9466  ;;  %v2022_v17 = vxor.u32 2147483648, %v9465_v8  ;;  %v8992_v47 = vmin.u32 %v2206_v37, %v11032_v15  ;;  %v2582_v12 = vshrl.u32 %v2581_v60, 23  ;;  %v149_v35 = vmul.f32 %v148_v42, %v10332_v58 }
 0x190   :  { %v2019_v20 = vxor.u32 2147483648, %v9467_v54  ;;  %v2418_v30 = vsel %vm2416_vm7, %v2417_v3, %v11028_v40  ;;  %v2578_v49 = vand.u32 2147483647, %v11020_v14  ;;  %v2196_v57 = vadd.s32 %v10981_v53, %v10977_v63 }
 0x191   :  { %v2023_v44 = vsel %vm2021_vm1, %v2022_v17, %v9467_v54  ;;  %v2127_v1 = vsel %vm2125_vm3, %v2022_v17, %v9467_v54  ;;  %v2208_v26 = vclz %v8992_v47  ;;  %v2419_v33 = vadd.s32 %v2418_v30, %v2414_v22 }
 0x192   :  { %v2020_v36 = vsel %vm2018_vm5, %v9465_v8, %v2019_v20  ;;  %v2124_v0 = vsel %vm2122_vm6, %v9465_v8, %v2019_v20  ;;  %v9007_v48 = vadd.s32 4294967169, %v2582_v12  ;;  %v8918_v45 = vadd.f32 -1.0, %v149_v35 }
 0x193   :  { %v2024_v10 = vsel %vm2017_vm4, %v2020_v36, %v2023_v44  ;;  %v2128_v31 = vsel %vm2121_vm2, %v2124_v0, %v2127_v1  ;;  %v8993_v41 = vadd.s32 4294967294, %v2208_v26  ;;  %v2226_v61 = vsub.s32 4, %v11012_v34 }
 0x194   :  { %v2025_v19 = vsel %vm2014_vm0, nan, %v2024_v10  ;;  %v2129_v2 = vsel %vm2014_vm0, nan, %v2128_v31  ;;  %v2420_v7 = vadd.s32 536870912, %v2419_v33  ;;  %v2588_v28 = vadd.s32 1, %v9007_v48 }
 0x195   :  { %v2026_v39 = vmul.f32 %v2025_v19, %v1921_v9  ;;  %vm8994_vm8 = vcmp.lt.s32.totalorder %v8993_v41, 0  ;;  %vm2142_vm9 = vcmp.lt.s32.totalorder %v10805_v16, 0  ;;  %v2585_v40 = vand.u32 8388607, %v2578_v49 }
 0x196   :  { %v2211_v52 = vsel %vm8994_vm8, 0, %v8993_v41  ;;  %v2421_v59 = vshrl.u32 %v2420_v7, 30  ;;  %vm2589_vm10 = vcmp.gt.s32.totalorder %v2588_v28, 0  ;;  %v2227_v42 = vsel %vm2142_vm9, %v2226_v61, %v11012_v34 }
 0x197   :  { %v2130_v51 = vsub.f32 %v2026_v39, %v2129_v2  ;;  %v2212_v6 = vsub.s32 32, %v2211_v52  ;;  %v2213_v55 = vshll.u32 %v11032_v15, %v2211_v52  ;;  %v2216_v5 = vsub.s32 4294967266, %v2211_v52 }
 0x198   :  { %v2590_v43 = vsel %vm2589_vm10, %v2588_v28, 0  ;;  %v11066_v60 = vmul.f32 0.5, %v8918_v45  ;;  %v2422_v37 = vshll.u32 %v2421_v59, 30  ;;  %vm11070_vm12 = vcmp.le.f32.partialorder %v2140_v24, 0.7853982 }
 0x199   :  { %v2131_v13 = vmul.f32 %v2130_v51, %v1921_v9  ;;  %v2214_v63 = vshrl.u32 %v2196_v57, %v2212_v6  ;;  %v2217_v53 = vadd.s32 127, %v2216_v5  ;;  %v2592_v17 = vand.u32 31, %v2590_v43 }
 0x19a   :  { %v2229_v47 = vsel %vm11070_vm12, 0, %v2227_v42  ;;  %v11077_v34 = vsub.s32 %v2419_v33, %v2422_v37  ;;  %v2586_v22 = vor.u32 8388608, %v2585_v40  ;;  %v2445_v1 = vsub.s32 4, %v2421_v59 }
 0x19b   :  { %v2132_v8 = vmul.f32 28.844063, %v2131_v13  ;;  %v2215_v9 = vor.u32 %v2214_v63, %v2213_v55  ;;  %v2218_v54 = vshll.u32 %v2217_v53, 23  ;;  %v2593_v12 = vsub.s32 32, %v2592_v17 }
 0x19c   :  { %vm2361_vm11 = vcmp.lt.s32.totalorder %v10859_v32, 0  ;;  %v2425_v24 = vsub.s32 0, %v11077_v34  ;;  %v2591_v35 = vshrl.u32 %v2590_v43, 5  ;;  %v2595_v36 = vshll.u32 %v9636_v21, %v2592_v17 }
 0x19d   :  { %v2133_v20 = vmul.f32 %v2132_v8, %v10530_v50  ;;  %v2219_v3 = vor.u32 4788187, %v2218_v54  ;;  %v2222_v44 = vcvt.s32.f32 %v2215_v9  ;;  %v2233_v50 = vadd.s32 3, %v2229_v47 }
 0x19e   :  { %v2596_v26 = vshrl.u32 %v9637_v23, %v2593_v12  ;;  %v2598_v10 = vshll.u32 %v9637_v23, %v2592_v17  ;;  %v11084_v31 = vand.u32 3, %v2229_v47  ;;  %v2415_v19 = vadd.s32 %v11027_v62, %v11025_v11 }
 0x19f   :  { %2135 = vst [vmem:[#allocation5 + $0x58] sm:$0xff] %v2133_v20  ;;  %v2220_v0 = vand.u32 2147483647, %v2219_v3  ;;  %v9000_v2 = vmin.u32 %v2425_v24, %v11077_v34  ;;  %v11090_v41 = vmul.f32 15.514603, %v9664_v4  ;;  %v2446_v39 = vsel %vm2361_vm11, %v2445_v1, %v2421_v59 }
 0x1a0   :  { %v2599_v33 = vshrl.u32 %v9638_v25, %v2593_v12  ;;  %v11095_v48 = vshll.u32 %v2586_v22, 8  ;;  %vm11099_vm13 = vcmp.le.f32.partialorder %v2359_v46, 0.7853982  ;;  %v2594_v62 = vshrl.u32 %v9636_v21, %v2593_v12 }
 0x1a1   :  { %v2223_v30 = vmul.f32 %v2222_v44, %v2220_v0  ;;  %v2427_v11 = vclz %v9000_v2  ;;  %v2597_v57 = vor.u32 %v2596_v26, %v2595_v36  ;;  %vm2610_vm14 = vcmp.lt.s32.totalorder %v2591_v35, 1 }
 0x1a2   :  { %v2600_v51 = vor.u32 %v2599_v33, %v2598_v10  ;;  %v2601_v52 = vshll.u32 %v9638_v25, %v2592_v17  ;;  %v2602_v7 = vshrl.u32 %v9639_v27, %v2593_v12  ;;  %v2604_v6 = vshll.u32 %v9639_v27, %v2592_v17 }
 0x1a3   :  { %v2224_v61 = vxor.u32 2147483648, %v2223_v30  ;;  %v9001_v28 = vadd.s32 4294967294, %v2427_v11  ;;  %v2605_v55 = vshrl.u32 %v9640_v29, %v2593_v12  ;;  %v2607_v46 = vshll.u32 %v9640_v29, %v2592_v17 }
 0x1a4   :  { %v2603_v13 = vor.u32 %v2602_v7, %v2601_v52  ;;  %v2608_v59 = vshrl.u32 %v9641_v38, %v2593_v12  ;;  %vm2611_vm15 = vcmp.lt.s32.totalorder %v2591_v35, 2  ;;  %vm2612_vm1 = vcmp.lt.s32.totalorder %v2591_v35, 3 }
 0x1a5   :  { %v2225_v5 = vsel %vm2142_vm9, %v2224_v61, %v2223_v30  ;;  %vm9002_vm0 = vcmp.lt.s32.totalorder %v9001_v28, 0  ;;  %v2606_v63 = vor.u32 %v2605_v55, %v2604_v6  ;;  %vm2613_vm2 = vcmp.lt.s32.totalorder %v2591_v35, 4 }
 0x1a6   :  { %v2228_v40 = vsel %vm11070_vm12, %v10805_v16, %v2225_v5  ;;  %v2430_v53 = vsel %vm9002_vm0, 0, %v9001_v28  ;;  %v2609_v42 = vor.u32 %v2608_v59, %v2607_v46  ;;  %v2614_v9 = vsel %vm2610_vm14, %v2594_v62, %v2597_v57 }
 0x1a7   :  { %9468 = vcosq.f32 %v2228_v40  ;;  %v2431_v43 = vsub.s32 32, %v2430_v53  ;;  %v2432_v8 = vshll.u32 %v11077_v34, %v2430_v53  ;;  %v2435_v37 = vsub.s32 4294967266, %v2430_v53 }
 0x1a8   :  { %9470 = vsinq.f32 %v2228_v40  ;;  %v2615_v54 = vsel %vm2613_vm2, %v2603_v13, 2102212464  ;;  %v2618_v17 = vsel %vm2610_vm14, %v2597_v57, %v2600_v51  ;;  %v2619_v15 = vsel %vm2613_vm2, %v2606_v63, 920167782 }
 0x1a9   :  { %v2433_v20 = vshrl.u32 %v2415_v19, %v2431_v43  ;;  %v2436_v47 = vadd.s32 127, %v2435_v37  ;;  %v2616_v22 = vsel %vm2612_vm1, %v2600_v51, %v2615_v54  ;;  %v2620_v3 = vsel %vm2612_vm1, %v2603_v13, %v2619_v15 }
 0x1aa   :  { %v2448_v44 = vsel %vm11099_vm13, 0, %v2446_v39  ;;  %v2621_v34 = vsel %vm2611_vm15, %v2618_v17, %v2620_v3  ;;  %v2622_v1 = vsel %vm2610_vm14, %v2600_v51, %v2603_v13  ;;  %v2623_v12 = vsel %vm2613_vm2, %v2609_v42, 1326507024 }
 0x1ab   :  { %v2434_v24 = vor.u32 %v2433_v20, %v2432_v8  ;;  %v2437_v36 = vshll.u32 %v2436_v47, 23  ;;  %v2617_v0 = vsel %vm2611_vm15, %v2614_v9, %v2616_v22  ;;  %v2624_v26 = vsel %vm2612_vm1, %v2606_v63, %v2623_v12 }
 0x1ac   :  { %v2625_v10 = vsel %vm2611_vm15, %v2622_v1, %v2624_v26  ;;  %v11131_v19 = vmul.u32.u64.low %v11095_v48, %v2621_v34  ;;  %v11132_v2 = vmul.u32.u64.high %v11095_v48, %v2621_v34, %v11131_v19  ;;  %v2800_v30 = vand.u32 2139095040, %v11090_v41 }
 0x1ad   :  { %v2438_v39 = vor.u32 4788187, %v2437_v36  ;;  %v2441_v33 = vcvt.s32.f32 %v2434_v24  ;;  %v11137_v11 = vmul.u32.u64.low %v11095_v48, %v2625_v10  ;;  %v11138_v62 = vmul.u32.u64.high %v11095_v48, %v2625_v10, %v11137_v11 }
 0x1ae   :  { %v2136_v57 = vmul.f32 0.63078314, %v11066_v60  ;;  %v2234_v61 = vand.u32 3, %v2233_v50  ;;  %v2801_v51 = vshrl.u32 %v2800_v30, 23  ;;  %v11142_v35 = vmul.f32 0.17350692, %v9782_v56 }
 0x1af   :  { %vm2232_vm3 = vweird.f32 %v10805_v16  ;;  %v2439_v52 = vand.u32 2147483647, %v2438_v39  ;;  %v2633_v7 = vmul.u32 %v11095_v48, %v2617_v0  ;;  %vm2339_vm4 = vcmp.lt.s32.totalorder %v11084_v31, 2 }
 0x1b0   :  { %v2452_v28 = vadd.s32 3, %v2448_v44  ;;  %v2636_v6 = vadd.s32 1, %v11132_v2  ;;  %v9015_v55 = vadd.s32 4294967169, %v2801_v51  ;;  %vm2340_vm5 = vcmp.eq.s32.totalorder %v11084_v31, 0 }
 0x1b1   :  { %vm2343_vm6 = vcmp.eq.s32.totalorder %v11084_v31, 2  ;;  %v2442_v50 = vmul.f32 %v2441_v33, %v2439_v52  ;;  %vm2635_vm7 = vc.u32 %v11138_v62, %v11131_v19  ;;  %vm2235_vm8 = vcmp.lt.s32.totalorder %v2234_v61, 2 }
 0x1b2   :  { %v2637_v46 = vsel %vm2635_vm7, %v2636_v6, %v11132_v2  ;;  %v2797_v5 = vand.u32 2147483647, %v11090_v41  ;;  %v2807_v48 = vadd.s32 1, %v9015_v55  ;;  %vm2236_vm9 = vcmp.eq.s32.totalorder %v2234_v61, 0 }
 0x1b3   :  { %vm2239_vm10 = vcmp.eq.s32.totalorder %v2234_v61, 2  ;;  %v2443_v59 = vxor.u32 2147483648, %v2442_v50  ;;  %v2638_v40 = vadd.s32 %v2637_v46, %v2633_v7  ;;  %v11154_v42 = vand.u32 3, %v2452_v28 }
 0x1b4   :  { %v9469_v13 = vpop.eup %9468  ;;  %v11156_v43 = vand.u32 3, %v2448_v44  ;;  %vm2808_vm12 = vcmp.gt.s32.totalorder %v2807_v48, 0  ;;  %v2804_v47 = vand.u32 8388607, %v2797_v5  ;;  %v11182_v10 = vmul.f32 %v2136_v57, %v9819_v18 }
 0x1b5   :  { %v9471_v63 = vpop.eup %9470  ;;  %v2240_v53 = vxor.u32 2147483648, %v9469_v13  ;;  %v2444_v37 = vsel %vm2361_vm11, %v2443_v59, %v2442_v50  ;;  %v2639_v9 = vadd.s32 536870912, %v2638_v40  ;;  %v2809_v54 = vsel %vm2808_vm12, %v2807_v48, 0 }
 0x1b6   :  { %v2237_v8 = vxor.u32 2147483648, %v9471_v63  ;;  %v2447_v20 = vsel %vm11099_vm13, %v10859_v32, %v2444_v37  ;;  %v2811_v12 = vand.u32 31, %v2809_v54  ;;  %v2350_v2 = vmul.f32 3.0, %v11142_v35 }
 0x1b7   :  { %v2241_v17 = vsel %vm2239_vm10, %v2240_v53, %v9471_v63  ;;  %v2345_v15 = vsel %vm2343_vm6, %v2240_v53, %v9471_v63  ;;  %9472 = vcosq.f32 %v2447_v20  ;;  %v11170_v44 = vshrl.u32 %v2639_v9, 30 }
 0x1b8   :  { %v2238_v22 = vsel %vm2236_vm9, %v9469_v13, %v2237_v8  ;;  %v2342_v3 = vsel %vm2340_vm5, %v9469_v13, %v2237_v8  ;;  %9474 = vsinq.f32 %v2447_v20  ;;  %v2812_v26 = vsub.s32 32, %v2811_v12 }
 0x1b9   :  { %v2242_v34 = vsel %vm2235_vm8, %v2238_v22, %v2241_v17  ;;  %v2346_v1 = vsel %vm2339_vm4, %v2342_v3, %v2345_v15  ;;  %v2641_v36 = vshll.u32 %v11170_v44, 30  ;;  %v11186_v31 = vmul.f32 0.109950386, %v9782_v56 }
 0x1ba   :  { %v2243_v45 = vsel %vm2232_vm3, nan, %v2242_v34  ;;  %v2347_v24 = vsel %vm2232_vm3, nan, %v2346_v1  ;;  %vm2458_vm11 = vcmp.eq.s32.totalorder %v11154_v42, 2  ;;  %vm2562_vm13 = vcmp.eq.s32.totalorder %v11156_v43, 2 }
 0x1bb   :  { %v2244_v0 = vmul.f32 %v2243_v45, %v11142_v35  ;;  %v11188_v30 = vsub.s32 %v2638_v40, %v2641_v36  ;;  %v2805_v16 = vor.u32 8388608, %v2804_v47  ;;  %v2814_v33 = vshll.u32 %v9636_v21, %v2811_v12 }
 0x1bc   :  { %v11194_v11 = vmul.f32 18.689035, %v9664_v4  ;;  %vm2455_vm14 = vcmp.eq.s32.totalorder %v11154_v42, 0  ;;  %vm2559_vm15 = vcmp.eq.s32.totalorder %v11156_v43, 0  ;;  %v2815_v61 = vshrl.u32 %v9637_v23, %v2812_v26 }
 0x1bd   :  { %v2348_v39 = vsub.f32 %v2244_v0, %v2347_v24  ;;  %v2644_v57 = vsub.s32 0, %v11188_v30  ;;  %v2817_v51 = vshll.u32 %v9637_v23, %v2811_v12  ;;  %v2818_v52 = vshrl.u32 %v9638_v25, %v2812_v26 }
 0x1be   :  { %vm2454_vm0 = vcmp.lt.s32.totalorder %v11154_v42, 2  ;;  %vm2558_vm1 = vcmp.lt.s32.totalorder %v11156_v43, 2  ;;  %v2634_v28 = vadd.s32 %v11131_v19, %v11138_v62  ;;  %v2820_v6 = vshll.u32 %v9638_v25, %v2811_v12 }
 0x1bf   :  { %v2349_v7 = vmul.f32 %v2348_v39, %v11142_v35  ;;  %v2821_v55 = vshrl.u32 %v9639_v27, %v2812_v26  ;;  %vm2451_vm2 = vweird.f32 %v10859_v32  ;;  %v9008_v50 = vmin.u32 %v2644_v57, %v11188_v30 }
 0x1c0   :  { %v11211_v46 = vshrl.u32 %v2809_v54, 5  ;;  %v2823_v48 = vshll.u32 %v9639_v27, %v2811_v12  ;;  %v2824_v35 = vshrl.u32 %v9640_v29, %v2812_v26  ;;  %v2664_v59 = vsub.s32 4, %v11170_v44 }
 0x1c1   :  { %v2351_v13 = vmul.f32 %v2350_v2, %v2349_v7  ;;  %v11216_v40 = vshll.u32 %v2805_v16, 8  ;;  %v3019_v19 = vand.u32 2139095040, %v11194_v11  ;;  %v2646_v62 = vclz %v9008_v50 }
 0x1c2   :  { %v2813_v63 = vshrl.u32 %v9636_v21, %v2812_v26  ;;  %v2816_v53 = vor.u32 %v2815_v61, %v2814_v33  ;;  %v2819_v8 = vor.u32 %v2818_v52, %v2817_v51  ;;  %v2822_v9 = vor.u32 %v2821_v55, %v2820_v6 }
 0x1c3   :  { %v2352_v37 = vsub.f32 %v2351_v13, %v2244_v0  ;;  %v2826_v54 = vshll.u32 %v9640_v29, %v2811_v12  ;;  %v2827_v17 = vshrl.u32 %v9641_v38, %v2812_v26  ;;  %v9009_v15 = vadd.s32 4294967294, %v2646_v62 }
 0x1c4   :  { %v2825_v20 = vor.u32 %v2824_v35, %v2823_v48  ;;  %vm2829_vm3 = vcmp.lt.s32.totalorder %v11211_v46, 1  ;;  %vm2830_vm4 = vcmp.lt.s32.totalorder %v11211_v46, 2  ;;  %v9473_v47 = vpop.eup %9472  ;;  %vm2831_vm5 = vcmp.lt.s32.totalorder %v11211_v46, 3 }
 0x1c5   :  { %v2353_v22 = vmul.f32 8.542646, %v2352_v37  ;;  %v2828_v3 = vor.u32 %v2827_v17, %v2826_v54  ;;  %vm2832_vm6 = vcmp.lt.s32.totalorder %v11211_v46, 4  ;;  %v9475_v34 = vpop.eup %9474  ;;  %v2459_v1 = vxor.u32 2147483648, %v9473_v47 }
 0x1c6   :  { %vm9010_vm7 = vcmp.lt.s32.totalorder %v9009_v15, 0  ;;  %v2833_v12 = vsel %vm2829_vm3, %v2813_v63, %v2816_v53  ;;  %v2834_v45 = vsel %vm2832_vm6, %v2822_v9, 2102212464  ;;  %v2456_v36 = vxor.u32 2147483648, %v9475_v34 }
 0x1c7   :  { %v2354_v24 = vmul.f32 %v2353_v22, %v11182_v10  ;;  %v2649_v0 = vsel %vm9010_vm7, 0, %v9009_v15  ;;  %v2837_v26 = vsel %vm2829_vm3, %v2816_v53, %v2819_v8  ;;  %v2460_v2 = vsel %vm2458_vm11, %v2459_v1, %v9475_v34 }
 0x1c8   :  { %v2564_v39 = vsel %vm2562_vm13, %v2459_v1, %v9475_v34  ;;  %v2650_v16 = vsub.s32 32, %v2649_v0  ;;  %v2651_v33 = vshll.u32 %v11188_v30, %v2649_v0  ;;  %v2457_v57 = vsel %vm2455_vm14, %v9473_v47, %v2456_v36 }
 0x1c9   :  { %2356 = vst [vmem:[#allocation5 + $0x60] sm:$0xff] %v2354_v24  ;;  %v2561_v61 = vsel %vm2559_vm15, %v9473_v47, %v2456_v36  ;;  %v2654_v51 = vsub.s32 4294967266, %v2649_v0  ;;  %v2835_v52 = vsel %vm2831_vm5, %v2819_v8, %v2834_v45  ;;  %v2461_v7 = vsel %vm2454_vm0, %v2457_v57, %v2460_v2 }
 0x1ca   :  { %v2565_v6 = vsel %vm2558_vm1, %v2561_v61, %v2564_v39  ;;  %v2652_v55 = vshrl.u32 %v2634_v28, %v2650_v16  ;;  %v2838_v30 = vsel %vm2832_vm6, %v2825_v20, 920167782  ;;  %v2462_v50 = vsel %vm2451_vm2, nan, %v2461_v7 }
 0x1cb   :  { %v2566_v48 = vsel %vm2451_vm2, nan, %v2565_v6  ;;  %v2655_v35 = vadd.s32 127, %v2654_v51  ;;  %v2839_v13 = vsel %vm2831_vm5, %v2822_v9, %v2838_v30  ;;  %v2463_v42 = vmul.f32 %v2462_v50, %v11186_v31 }
 0x1cc   :  { %v2653_v62 = vor.u32 %v2652_v55, %v2651_v33  ;;  %v2840_v43 = vsel %vm2830_vm4, %v2837_v26, %v2839_v13  ;;  %v2841_v28 = vsel %vm2829_vm3, %v2819_v8, %v2822_v9  ;;  %v2842_v53 = vsel %vm2832_vm6, %v2828_v3, 1326507024 }
 0x1cd   :  { %v2656_v63 = vshll.u32 %v2655_v35, 23  ;;  %v11264_v32 = vmul.u32.u64.low %v11216_v40, %v2840_v43  ;;  %v11265_v37 = vmul.u32.u64.high %v11216_v40, %v2840_v43, %v11264_v32  ;;  %v2567_v54 = vsub.f32 %v2463_v42, %v2566_v48 }
 0x1ce   :  { %v2569_v17 = vmul.f32 3.0, %v11186_v31  ;;  %v2836_v15 = vsel %vm2830_vm4, %v2833_v12, %v2835_v52  ;;  %v2843_v47 = vsel %vm2831_vm5, %v2825_v20, %v2842_v53  ;;  %v2660_v8 = vcvt.s32.f32 %v2653_v62 }
 0x1cf   :  { %v2657_v22 = vor.u32 4788187, %v2656_v63  ;;  %v2844_v9 = vsel %vm2830_vm4, %v2841_v28, %v2843_v47  ;;  %v3020_v3 = vshrl.u32 %v3019_v19, 23  ;;  %v2568_v34 = vmul.f32 %v2567_v54, %v11186_v31 }
 0x1d0   :  { %vm2580_vm8 = vcmp.lt.s32.totalorder %v11020_v14, 0  ;;  %v11278_v1 = vmul.u32.u64.low %v11216_v40, %v2844_v9  ;;  %v11279_v45 = vmul.u32.u64.high %v11216_v40, %v2844_v9, %v11278_v1  ;;  %v2855_v12 = vadd.s32 1, %v11265_v37 }
 0x1d1   :  { %v2658_v24 = vand.u32 2147483647, %v2657_v22  ;;  %v2665_v20 = vsel %vm2580_vm8, %v2664_v59, %v11170_v44  ;;  %v9023_v46 = vadd.s32 4294967169, %v3020_v3  ;;  %v2570_v36 = vmul.f32 %v2569_v17, %v2568_v34 }
 0x1d2   :  { %v2852_v19 = vmul.u32 %v11216_v40, %v2836_v15  ;;  %v3016_v31 = vand.u32 2147483647, %v11194_v11  ;;  %vm11291_vm9 = vcmp.le.f32.partialorder %v2578_v49, 0.7853982  ;;  %vm2854_vm10 = vc.u32 %v11279_v45, %v11264_v32 }
 0x1d3   :  { %v2661_v26 = vmul.f32 %v2660_v8, %v2658_v24  ;;  %v3026_v2 = vadd.s32 1, %v9023_v46  ;;  %v2571_v39 = vsub.f32 %v2570_v36, %v2463_v42  ;;  %v2667_v44 = vsel %vm11291_vm9, 0, %v2665_v20 }
 0x1d4   :  { %v11300_v59 = vmul.f32 21.853874, %v9664_v4  ;;  %v11303_v40 = vmul.f32 0.08114946, %v9782_v56  ;;  %v2856_v49 = vsel %vm2854_vm10, %v2855_v12, %v11265_v37  ;;  %v3023_v61 = vand.u32 8388607, %v3016_v31 }
 0x1d5   :  { %v2662_v16 = vxor.u32 2147483648, %v2661_v26  ;;  %vm3027_vm12 = vcmp.gt.s32.totalorder %v3026_v2, 0  ;;  %v2572_v33 = vmul.f32 13.101758, %v2571_v39  ;;  %v2857_v57 = vadd.s32 %v2856_v49, %v2852_v19 }
 0x1d6   :  { %v3028_v51 = vsel %vm3027_vm12, %v3026_v2, 0  ;;  %v2671_v7 = vadd.s32 3, %v2667_v44  ;;  %v11310_v6 = vand.u32 3, %v2667_v44  ;;  %v3238_v35 = vand.u32 2139095040, %v11300_v59 }
 0x1d7   :  { %v2663_v52 = vsel %vm2580_vm8, %v2662_v16, %v2661_v26  ;;  %v3030_v55 = vand.u32 31, %v3028_v51  ;;  %v2573_v30 = vmul.f32 %v2572_v33, %v11182_v10  ;;  %v2858_v48 = vadd.s32 536870912, %v2857_v57 }
 0x1d8   :  { %v2666_v50 = vsel %vm11291_vm9, %v11020_v14, %v2663_v52  ;;  %v11317_v13 = vshrl.u32 %v3028_v51, 5  ;;  %v11328_v15 = vand.u32 3, %v2671_v7  ;;  %v3024_v22 = vor.u32 8388608, %v3023_v61 }
 0x1d9   :  { %9476 = vcosq.f32 %v2666_v50  ;;  %v3031_v42 = vsub.s32 32, %v3030_v55  ;;  %v3033_v62 = vshll.u32 %v9636_v21, %v3030_v55  ;;  %2575 = vst [vmem:[#allocation5 + $0x68] sm:$0xff] %v2573_v30  ;;  %v11320_v43 = vshrl.u32 %v2858_v48, 30 }
 0x1da   :  { %9478 = vsinq.f32 %v2666_v50  ;;  %v3036_v28 = vshll.u32 %v9637_v23, %v3030_v55  ;;  %v3042_v63 = vshll.u32 %v9639_v27, %v3030_v55  ;;  %v3039_v54 = vshll.u32 %v9638_v25, %v3030_v55 }
 0x1db   :  { %v3034_v53 = vshrl.u32 %v9637_v23, %v3031_v42  ;;  %v3037_v37 = vshrl.u32 %v9638_v25, %v3031_v42  ;;  %v3040_v17 = vshrl.u32 %v9639_v27, %v3031_v42  ;;  %v2860_v47 = vshll.u32 %v11320_v43, 30 }
 0x1dc   :  { %v3043_v8 = vshrl.u32 %v9640_v29, %v3031_v42  ;;  %v3032_v9 = vshrl.u32 %v9636_v21, %v3031_v42  ;;  %v3045_v3 = vshll.u32 %v9640_v29, %v3030_v55  ;;  %v3046_v34 = vshrl.u32 %v9641_v38, %v3031_v42 }
 0x1dd   :  { %v3239_v1 = vshrl.u32 %v3238_v35, 23  ;;  %v11335_v24 = vsub.s32 %v2857_v57, %v2860_v47  ;;  %v3035_v20 = vor.u32 %v3034_v53, %v3033_v62  ;;  %v3038_v12 = vor.u32 %v3037_v37, %v3036_v28 }
 0x1de   :  { %v3044_v46 = vor.u32 %v3043_v8, %v3042_v63  ;;  %vm2778_vm11 = vcmp.eq.s32.totalorder %v11310_v6, 0  ;;  %vm2781_vm13 = vcmp.eq.s32.totalorder %v11310_v6, 2  ;;  %v3041_v36 = vor.u32 %v3040_v17, %v3039_v54 }
 0x1df   :  { %vm3048_vm14 = vcmp.lt.s32.totalorder %v11317_v13, 1  ;;  %vm2673_vm15 = vcmp.lt.s32.totalorder %v11328_v15, 2  ;;  %vm2777_vm0 = vcmp.lt.s32.totalorder %v11310_v6, 2  ;;  %v2863_v19 = vsub.s32 0, %v11335_v24 }
 0x1e0   :  { %vm3050_vm1 = vcmp.lt.s32.totalorder %v11317_v13, 3  ;;  %vm3051_vm2 = vcmp.lt.s32.totalorder %v11317_v13, 4  ;;  %v11345_v0 = vshll.u32 %v3024_v22, 8  ;;  %vm2670_vm3 = vweird.f32 %v11020_v14 }
 0x1e1   :  { %v3047_v26 = vor.u32 %v3046_v34, %v3045_v3  ;;  %v3053_v2 = vsel %vm3051_vm2, %v3041_v36, 2102212464  ;;  %v3057_v39 = vsel %vm3051_vm2, %v3044_v46, 920167782  ;;  %v9031_v44 = vadd.s32 4294967169, %v3239_v1 }
 0x1e2   :  { %v9016_v16 = vmin.u32 %v2863_v19, %v11335_v24  ;;  %vm3049_vm4 = vcmp.lt.s32.totalorder %v11317_v13, 2  ;;  %v3052_v49 = vsel %vm3048_vm14, %v3032_v9, %v3035_v20  ;;  %v3056_v33 = vsel %vm3048_vm14, %v3035_v20, %v3038_v12 }
 0x1e3   :  { %vm2674_vm5 = vcmp.eq.s32.totalorder %v11328_v15, 0  ;;  %vm2677_vm6 = vcmp.eq.s32.totalorder %v11328_v15, 2  ;;  %v3054_v57 = vsel %vm3050_vm1, %v3038_v12, %v3053_v2  ;;  %v3058_v61 = vsel %vm3050_vm1, %v3041_v36, %v3057_v39 }
 0x1e4   :  { %v2853_v51 = vadd.s32 %v11264_v32, %v11279_v45  ;;  %v2865_v52 = vclz %v9016_v16  ;;  %v3060_v7 = vsel %vm3048_vm14, %v3038_v12, %v3041_v36  ;;  %v3235_v55 = vand.u32 2147483647, %v11300_v59 }
 0x1e5   :  { %v3055_v30 = vsel %vm3049_vm4, %v3052_v49, %v3054_v57  ;;  %v3059_v50 = vsel %vm3049_vm4, %v3056_v33, %v3058_v61  ;;  %v3061_v48 = vsel %vm3051_vm2, %v3047_v26, 1326507024  ;;  %v3245_v35 = vadd.s32 1, %v9031_v44 }
 0x1e6   :  { %v9477_v42 = vpop.eup %9476  ;;  %v9017_v62 = vadd.s32 4294967294, %v2865_v52  ;;  %v3062_v32 = vsel %vm3050_vm1, %v3044_v46, %v3061_v48  ;;  %v11378_v45 = vmul.u32.u64.low %v11345_v0, %v3059_v50  ;;  %v11379_v28 = vmul.u32.u64.high %v11345_v0, %v3059_v50, %v11378_v45 }
 0x1e7   :  { %v9479_v63 = vpop.eup %9478  ;;  %v2678_v53 = vxor.u32 2147483648, %v9477_v42  ;;  %v3063_v37 = vsel %vm3049_vm4, %v3060_v7, %v3062_v32  ;;  %v3071_v54 = vmul.u32 %v11345_v0, %v3055_v30  ;;  %vm3246_vm7 = vcmp.gt.s32.totalorder %v3245_v35, 0 }
 0x1e8   :  { %v2675_v17 = vxor.u32 2147483648, %v9479_v63  ;;  %vm9018_vm8 = vcmp.lt.s32.totalorder %v9017_v62, 0  ;;  %v11386_v47 = vmul.u32.u64.low %v11345_v0, %v3063_v37  ;;  %v11387_v22 = vmul.u32.u64.high %v11345_v0, %v3063_v37, %v11386_v47 }
 0x1e9   :  { %v2679_v8 = vsel %vm2677_vm6, %v2678_v53, %v9479_v63  ;;  %v2783_v9 = vsel %vm2781_vm13, %v2678_v53, %v9479_v63  ;;  %v2868_v3 = vsel %vm9018_vm8, 0, %v9017_v62  ;;  %v3247_v34 = vsel %vm3246_vm7, %v3245_v35, 0 }
 0x1ea   :  { %v2676_v13 = vsel %vm2674_vm5, %v9477_v42, %v2675_v17  ;;  %v2780_v1 = vsel %vm2778_vm11, %v9477_v42, %v2675_v17  ;;  %v2869_v20 = vsub.s32 32, %v2868_v3  ;;  %v2870_v12 = vshll.u32 %v11335_v24, %v2868_v3 }
 0x1eb   :  { %v2680_v46 = vsel %vm2673_vm15, %v2676_v13, %v2679_v8  ;;  %v2784_v36 = vsel %vm2777_vm0, %v2780_v1, %v2783_v9  ;;  %v2873_v19 = vsub.s32 4294967266, %v2868_v3  ;;  %v3074_v0 = vadd.s32 1, %v11379_v28 }
 0x1ec   :  { %v2681_v26 = vsel %vm2670_vm3, nan, %v2680_v46  ;;  %v2785_v2 = vsel %vm2670_vm3, nan, %v2784_v36  ;;  %v2871_v39 = vshrl.u32 %v2853_v51, %v2869_v20  ;;  %vm3073_vm9 = vc.u32 %v11387_v22, %v11378_v45 }
 0x1ed   :  { %v2682_v44 = vmul.f32 %v2681_v26, %v11303_v40  ;;  %v2874_v16 = vadd.s32 127, %v2873_v19  ;;  %v3242_v6 = vand.u32 8388607, %v3235_v55  ;;  %v2883_v24 = vsub.s32 4, %v11320_v43 }
 0x1ee   :  { %v2872_v15 = vor.u32 %v2871_v39, %v2870_v12  ;;  %v3075_v49 = vsel %vm3073_vm9, %v3074_v0, %v11379_v28  ;;  %v3249_v33 = vand.u32 31, %v3247_v34  ;;  %v2788_v14 = vmul.f32 3.0, %v11303_v40 }
 0x1ef   :  { %v2786_v57 = vsub.f32 %v2682_v44, %v2785_v2  ;;  %v2875_v61 = vshll.u32 %v2874_v16, 23  ;;  %v3076_v51 = vadd.s32 %v3075_v49, %v3071_v54  ;;  %vm2799_vm10 = vcmp.lt.s32.totalorder %v11090_v41, 0 }
 0x1f0   :  { %v3250_v52 = vsub.s32 32, %v3249_v33  ;;  %v2879_v50 = vcvt.s32.f32 %v2872_v15  ;;  %vm11419_vm12 = vcmp.le.f32.partialorder %v2797_v5, 0.7853982  ;;  %v2884_v42 = vsel %vm2799_vm10, %v2883_v24, %v11320_v43 }
 0x1f1   :  { %v2787_v7 = vmul.f32 %v2786_v57, %v11303_v40  ;;  %v2876_v30 = vor.u32 4788187, %v2875_v61  ;;  %v3077_v48 = vadd.s32 536870912, %v3076_v51  ;;  %v3243_v62 = vor.u32 8388608, %v3242_v6 }
 0x1f2   :  { %v3248_v53 = vshrl.u32 %v3247_v34, 5  ;;  %v3252_v40 = vshll.u32 %v9636_v21, %v3249_v33  ;;  %v3253_v37 = vshrl.u32 %v9637_v23, %v3250_v52  ;;  %v3258_v54 = vshll.u32 %v9638_v25, %v3249_v33 }
 0x1f3   :  { %v2789_v32 = vmul.f32 %v2788_v14, %v2787_v7  ;;  %v2877_v28 = vand.u32 2147483647, %v2876_v30  ;;  %v11426_v63 = vshrl.u32 %v3077_v48, 30  ;;  %v3259_v5 = vshrl.u32 %v9639_v27, %v3250_v52 }
 0x1f4   :  { %v3255_v43 = vshll.u32 %v9637_v23, %v3249_v33  ;;  %v3256_v9 = vshrl.u32 %v9638_v25, %v3250_v52  ;;  %v3261_v3 = vshll.u32 %v9639_v27, %v3249_v33  ;;  %v3262_v34 = vshrl.u32 %v9640_v29, %v3250_v52 }
 0x1f5   :  { %v2790_v17 = vsub.f32 %v2789_v32, %v2682_v44  ;;  %v2880_v47 = vmul.f32 %v2879_v50, %v2877_v28  ;;  %v3079_v8 = vshll.u32 %v11426_v63, 30  ;;  %v3264_v13 = vshll.u32 %v9640_v29, %v3249_v33 }
 0x1f6   :  { %v3265_v46 = vshrl.u32 %v9641_v38, %v3250_v52  ;;  %v2886_v36 = vsel %vm11419_vm12, 0, %v2884_v42  ;;  %v3251_v19 = vshrl.u32 %v9636_v21, %v3250_v52  ;;  %v3254_v0 = vor.u32 %v3253_v37, %v3252_v40 }
 0x1f7   :  { %v2791_v1 = vmul.f32 17.60194, %v2790_v17  ;;  %v2881_v20 = vxor.u32 2147483648, %v2880_v47  ;;  %v11438_v12 = vsub.s32 %v3076_v51, %v3079_v8  ;;  %v3260_v26 = vor.u32 %v3259_v5, %v3258_v54 }
 0x1f8   :  { %vm3270_vm11 = vcmp.lt.s32.totalorder %v3248_v53, 4  ;;  %v3257_v6 = vor.u32 %v3256_v9, %v3255_v43  ;;  %v3263_v15 = vor.u32 %v3262_v34, %v3261_v3  ;;  %v3266_v33 = vor.u32 %v3265_v46, %v3264_v13 }
 0x1f9   :  { %v2792_v2 = vmul.f32 %v2791_v1, %v11182_v10  ;;  %v2882_v39 = vsel %vm2799_vm10, %v2881_v20, %v2880_v47  ;;  %v3082_v44 = vsub.s32 0, %v11438_v12  ;;  %v3272_v24 = vsel %vm3270_vm11, %v3260_v26, 2102212464 }
 0x1fa   :  { %v2885_v16 = vsel %vm11419_vm12, %v11090_v41, %v2882_v39  ;;  %vm3267_vm13 = vcmp.lt.s32.totalorder %v3248_v53, 1  ;;  %vm3269_vm14 = vcmp.lt.s32.totalorder %v3248_v53, 3  ;;  %v3283_v57 = vshll.u32 %v3243_v62, 8 }
 0x1fb   :  { %2794 = vst [vmem:[#allocation5 + $0x70] sm:$0xff] %v2792_v2  ;;  %9480 = vcosq.f32 %v2885_v16  ;;  %v9024_v49 = vmin.u32 %v3082_v44, %v11438_v12  ;;  %vm3268_vm15 = vcmp.lt.s32.totalorder %v3248_v53, 2  ;;  %v3271_v61 = vsel %vm3267_vm13, %v3251_v19, %v3254_v0 }
 0x1fc   :  { %9482 = vsinq.f32 %v2885_v16  ;;  %v3273_v51 = vsel %vm3269_vm14, %v3257_v6, %v3272_v24  ;;  %v2890_v52 = vadd.s32 3, %v2886_v36  ;;  %v3275_v7 = vsel %vm3267_vm13, %v3254_v0, %v3257_v6 }
 0x1fd   :  { %v3084_v14 = vclz %v9024_v49  ;;  %v3276_v30 = vsel %vm3270_vm11, %v3263_v15, 920167782  ;;  %v3279_v50 = vsel %vm3267_vm13, %v3257_v6, %v3260_v26  ;;  %v2995_v48 = vand.u32 3, %v2886_v36 }
 0x1fe   :  { %v3277_v42 = vsel %vm3269_vm14, %v3260_v26, %v3276_v30  ;;  %v3280_v32 = vsel %vm3270_vm11, %v3266_v33, 1326507024  ;;  %v3072_v28 = vadd.s32 %v11378_v45, %v11387_v22  ;;  %v3274_v62 = vsel %vm3268_vm15, %v3271_v61, %v3273_v51 }
 0x1ff   :  { %v9025_v35 = vadd.s32 4294967294, %v3084_v14  ;;  %v3278_v40 = vsel %vm3268_vm15, %v3275_v7, %v3277_v42  ;;  %v3281_v37 = vsel %vm3269_vm14, %v3263_v15, %v3280_v32  ;;  %v11468_v47 = vmul.f32 0.064455405, %v9782_v56 }
 0x200   :  { %v3282_v54 = vsel %vm3268_vm15, %v3279_v50, %v3281_v37  ;;  %v11463_v5 = vmul.u32.u64.low %v3283_v57, %v3278_v40  ;;  %v11464_v17 = vmul.u32.u64.high %v3283_v57, %v3278_v40, %v11463_v5  ;;  %v11475_v34 = vmul.f32 6.987932, %v9664_v4 }
 0x201   :  { %vm9026_vm0 = vcmp.lt.s32.totalorder %v9025_v35, 0  ;;  %v11470_v43 = vmul.u32.u64.low %v3283_v57, %v3282_v54  ;;  %v11471_v9 = vmul.u32.u64.high %v3283_v57, %v3282_v54, %v11470_v43  ;;  %vm2889_vm1 = vweird.f32 %v11090_v41 }
 0x202   :  { %v3087_v8 = vsel %vm9026_vm0, 0, %v9025_v35  ;;  %v2891_v53 = vand.u32 3, %v2890_v52  ;;  %vm3018_vm2 = vcmp.lt.s32.totalorder %v11194_v11, 0  ;;  %v3290_v13 = vmul.u32 %v3283_v57, %v3274_v62 }
 0x203   :  { %v3088_v45 = vsub.s32 32, %v3087_v8  ;;  %v3089_v22 = vshll.u32 %v11438_v12, %v3087_v8  ;;  %v3092_v3 = vsub.s32 4294967266, %v3087_v8  ;;  %vm2996_vm3 = vcmp.lt.s32.totalorder %v2995_v48, 2 }
 0x204   :  { %v3293_v46 = vadd.s32 1, %v11464_v17  ;;  %vm2997_vm4 = vcmp.eq.s32.totalorder %v2995_v48, 0  ;;  %v3102_v36 = vsub.s32 4, %v11426_v63  ;;  %vm3292_vm5 = vc.u32 %v11471_v9, %v11463_v5 }
 0x205   :  { %v3090_v1 = vshrl.u32 %v3072_v28, %v3088_v45  ;;  %v3093_v20 = vadd.s32 127, %v3092_v3  ;;  %v3459_v12 = vand.u32 2139095040, %v11475_v34  ;;  %vm3000_vm6 = vcmp.eq.s32.totalorder %v2995_v48, 2 }
 0x206   :  { %v3294_v26 = vsel %vm3292_vm5, %v3293_v46, %v11464_v17  ;;  %vm2892_vm7 = vcmp.lt.s32.totalorder %v2891_v53, 2  ;;  %vm2896_vm8 = vcmp.eq.s32.totalorder %v2891_v53, 2  ;;  %vm2893_vm9 = vcmp.eq.s32.totalorder %v2891_v53, 0 }
 0x207   :  { %v3091_v19 = vor.u32 %v3090_v1, %v3089_v22  ;;  %v3094_v0 = vshll.u32 %v3093_v20, 23  ;;  %v3295_v39 = vadd.s32 %v3294_v26, %v3290_v13  ;;  %v3460_v44 = vshrl.u32 %v3459_v12, 23 }
 0x208   :  { %v9481_v2 = vpop.eup %9480  ;;  %v3103_v33 = vsel %vm3018_vm2, %v3102_v36, %v11426_v63  ;;  %vm11491_vm10 = vcmp.le.f32.partialorder %v3016_v31, 0.7853982  ;;  %v3456_v54 = vand.u32 2147483647, %v11475_v34  ;;  %v3007_v3 = vmul.f32 3.0, %v11468_v47 }
 0x209   :  { %v9483_v16 = vpop.eup %9482  ;;  %v2897_v6 = vxor.u32 2147483648, %v9481_v2  ;;  %v3095_v15 = vor.u32 4788187, %v3094_v0  ;;  %v3098_v24 = vcvt.s32.f32 %v3091_v19  ;;  %v3296_v57 = vadd.s32 536870912, %v3295_v39 }
 0x20a   :  { %v2894_v49 = vxor.u32 2147483648, %v9483_v16  ;;  %v9039_v14 = vadd.s32 4294967169, %v3460_v44  ;;  %v3105_v62 = vsel %vm11491_vm10, 0, %v3103_v33  ;;  %v3463_v1 = vand.u32 8388607, %v3456_v54 }
 0x20b   :  { %v2898_v61 = vsel %vm2896_vm8, %v2897_v6, %v9483_v16  ;;  %v3002_v51 = vsel %vm3000_vm6, %v2897_v6, %v9483_v16  ;;  %v3096_v7 = vand.u32 2147483647, %v3095_v15  ;;  %v11496_v35 = vshrl.u32 %v3296_v57, 30 }
 0x20c   :  { %v2895_v30 = vsel %vm2893_vm9, %v9481_v2, %v2894_v49  ;;  %v2999_v50 = vsel %vm2997_vm4, %v9481_v2, %v2894_v49  ;;  %v3466_v42 = vadd.s32 1, %v9039_v14  ;;  %v3109_v48 = vadd.s32 3, %v3105_v62 }
 0x20d   :  { %v2899_v63 = vsel %vm2892_vm7, %v2895_v30, %v2898_v61  ;;  %v3003_v32 = vsel %vm2996_vm3, %v2999_v50, %v3002_v51  ;;  %v3099_v28 = vmul.f32 %v3098_v24, %v3096_v7  ;;  %v3298_v37 = vshll.u32 %v11496_v35, 30 }
 0x20e   :  { %v2900_v31 = vsel %vm2889_vm1, nan, %v2899_v63  ;;  %v3004_v40 = vsel %vm2889_vm1, nan, %v3003_v32  ;;  %vm3467_vm12 = vcmp.gt.s32.totalorder %v3466_v42, 0  ;;  %v11523_v12 = vand.u32 3, %v3109_v48 }
 0x20f   :  { %v2901_v17 = vmul.f32 %v2900_v31, %v11468_v47  ;;  %v3100_v8 = vxor.u32 2147483648, %v3099_v28  ;;  %v11509_v43 = vsub.s32 %v3295_v39, %v3298_v37  ;;  %v3468_v45 = vsel %vm3467_vm12, %v3466_v42, 0 }
 0x210   :  { %v11521_v46 = vshrl.u32 %v3468_v45, 5  ;;  %v3470_v36 = vand.u32 31, %v3468_v45  ;;  %v11525_v19 = vand.u32 3, %v3105_v62  ;;  %v11529_v2 = vmul.f32 0.053507306, %v9782_v56 }
 0x211   :  { %v3005_v22 = vsub.f32 %v2901_v17, %v3004_v40  ;;  %v3101_v53 = vsel %vm3018_vm2, %v3100_v8, %v3099_v28  ;;  %v3301_v13 = vsub.s32 0, %v11509_v43  ;;  %v11532_v44 = vmul.f32 10.417118, %v9664_v4 }
 0x212   :  { %v3104_v41 = vsel %vm11491_vm10, %v11194_v11, %v3101_v53  ;;  %v3471_v39 = vsub.s32 32, %v3470_v36  ;;  %vm3237_vm11 = vcmp.lt.s32.totalorder %v11300_v59, 0  ;;  %v3321_v6 = vsub.s32 4, %v11496_v35 }
 0x213   :  { %v3006_v20 = vmul.f32 %v3005_v22, %v11468_v47  ;;  %9484 = vcosq.f32 %v3104_v41  ;;  %v9032_v0 = vmin.u32 %v3301_v13, %v11509_v43  ;;  %v3291_v47 = vadd.s32 %v11463_v5, %v11471_v9 }
 0x214   :  { %9486 = vsinq.f32 %v3104_v41  ;;  %v3464_v15 = vor.u32 8388608, %v3463_v1  ;;  %v3473_v49 = vshll.u32 %v9636_v21, %v3470_v36  ;;  %v3474_v33 = vshrl.u32 %v9637_v23, %v3471_v39 }
 0x215   :  { %v3008_v26 = vmul.f32 %v3007_v3, %v3006_v20  ;;  %v3303_v16 = vclz %v9032_v0  ;;  %vm3488_vm13 = vcmp.lt.s32.totalorder %v11521_v46, 1  ;;  %vm3115_vm14 = vcmp.eq.s32.totalorder %v11523_v12, 2 }
 0x216   :  { %vm3219_vm15 = vcmp.eq.s32.totalorder %v11525_v19, 2  ;;  %v3476_v14 = vshll.u32 %v9637_v23, %v3470_v36  ;;  %v3477_v5 = vshrl.u32 %v9638_v25, %v3471_v39  ;;  %v3479_v9 = vshll.u32 %v9638_v25, %v3470_v36 }
 0x217   :  { %v3009_v24 = vsub.f32 %v3008_v26, %v2901_v17  ;;  %v9033_v57 = vadd.s32 4294967294, %v3303_v16  ;;  %vm3112_vm0 = vcmp.eq.s32.totalorder %v11523_v12, 0  ;;  %vm3216_vm1 = vcmp.eq.s32.totalorder %v11525_v19, 0 }
 0x218   :  { %v3475_v51 = vor.u32 %v3474_v33, %v3473_v49  ;;  %v3480_v52 = vshrl.u32 %v9639_v27, %v3471_v39  ;;  %v3482_v7 = vshll.u32 %v9639_v27, %v3470_v36  ;;  %vm3111_vm2 = vcmp.lt.s32.totalorder %v11523_v12, 2 }
 0x219   :  { %v3010_v61 = vmul.f32 22.078962, %v3009_v24  ;;  %vm3215_vm3 = vcmp.lt.s32.totalorder %v11525_v19, 2  ;;  %vm9034_vm4 = vcmp.lt.s32.totalorder %v9033_v57, 0  ;;  %v3478_v30 = vor.u32 %v3477_v5, %v3476_v14 }
 0x21a   :  { %v3483_v50 = vshrl.u32 %v9640_v29, %v3471_v39  ;;  %v3485_v42 = vshll.u32 %v9640_v29, %v3470_v36  ;;  %vm3108_vm5 = vweird.f32 %v11194_v11  ;;  %v3306_v32 = vsel %vm9034_vm4, 0, %v9033_v57 }
 0x21b   :  { %v3011_v63 = vmul.f32 %v3010_v61, %v11182_v10  ;;  %v3481_v28 = vor.u32 %v3480_v52, %v3479_v9  ;;  %v3486_v62 = vshrl.u32 %v9641_v38, %v3471_v39  ;;  %v3307_v31 = vsub.s32 32, %v3306_v32 }
 0x21c   :  { %v3308_v40 = vshll.u32 %v11509_v43, %v3306_v32  ;;  %v3311_v37 = vsub.s32 4294967266, %v3306_v32  ;;  %v3484_v17 = vor.u32 %v3483_v50, %v3482_v7  ;;  %v3472_v8 = vshrl.u32 %v9636_v21, %v3471_v39 }
 0x21d   :  { %3013 = vst [vmem:[#allocation5 + $0x78] sm:$0xff] %v3011_v63  ;;  %v3487_v48 = vor.u32 %v3486_v62, %v3485_v42  ;;  %vm3490_vm6 = vcmp.lt.s32.totalorder %v11521_v46, 3  ;;  %vm3491_vm7 = vcmp.lt.s32.totalorder %v11521_v46, 4  ;;  %v3309_v45 = vshrl.u32 %v3291_v47, %v3307_v31 }
 0x21e   :  { %v3312_v22 = vadd.s32 127, %v3311_v37  ;;  %v3493_v3 = vsel %vm3491_vm7, %v3481_v28, 2102212464  ;;  %v11563_v53 = vshll.u32 %v3464_v15, 8  ;;  %vm11567_vm8 = vcmp.le.f32.partialorder %v3235_v55, 0.7853982 }
 0x21f   :  { %v3322_v41 = vsel %vm3237_vm11, %v3321_v6, %v11496_v35  ;;  %vm3489_vm9 = vcmp.lt.s32.totalorder %v11521_v46, 2  ;;  %v3496_v13 = vsel %vm3488_vm13, %v3475_v51, %v3478_v30  ;;  %v3497_v1 = vsel %vm3491_vm7, %v3484_v17, 920167782 }
 0x220   :  { %v9485_v20 = vpop.eup %9484  ;;  %v3310_v36 = vor.u32 %v3309_v45, %v3308_v40  ;;  %v3313_v0 = vshll.u32 %v3312_v22, 23  ;;  %v3498_v55 = vsel %vm3490_vm6, %v3481_v28, %v3497_v1  ;;  %v3500_v26 = vsel %vm3488_vm13, %v3478_v30, %v3481_v28 }
 0x221   :  { %v9487_v39 = vpop.eup %9486  ;;  %v3116_v47 = vxor.u32 2147483648, %v9485_v20  ;;  %v3492_v35 = vsel %vm3488_vm13, %v3472_v8, %v3475_v51  ;;  %v3494_v16 = vsel %vm3490_vm6, %v3478_v30, %v3493_v3  ;;  %v3501_v6 = vsel %vm3491_vm7, %v3487_v48, 1326507024 }
 0x222   :  { %v3113_v15 = vxor.u32 2147483648, %v9487_v39  ;;  %v3314_v24 = vor.u32 4788187, %v3313_v0  ;;  %v3317_v49 = vcvt.s32.f32 %v3310_v36  ;;  %v3502_v33 = vsel %vm3490_vm6, %v3484_v17, %v3501_v6 }
 0x223   :  { %v3117_v57 = vsel %vm3115_vm14, %v3116_v47, %v9487_v39  ;;  %v3221_v14 = vsel %vm3219_vm15, %v3116_v47, %v9487_v39  ;;  %v3499_v5 = vsel %vm3489_vm9, %v3496_v13, %v3498_v55  ;;  %v3503_v9 = vsel %vm3489_vm9, %v3500_v26, %v3502_v33 }
 0x224   :  { %v3114_v61 = vsel %vm3112_vm0, %v9485_v20, %v3113_v15  ;;  %v3218_v51 = vsel %vm3216_vm1, %v9485_v20, %v3113_v15  ;;  %v3315_v52 = vand.u32 2147483647, %v3314_v24  ;;  %v3681_v7 = vand.u32 2139095040, %v11532_v44 }
 0x225   :  { %v3118_v30 = vsel %vm3111_vm2, %v3114_v61, %v3117_v57  ;;  %v3222_v50 = vsel %vm3215_vm3, %v3218_v51, %v3221_v14  ;;  %v11609_v42 = vmul.u32.u64.low %v11563_v53, %v3503_v9  ;;  %v11610_v63 = vmul.u32.u64.high %v11563_v53, %v3503_v9, %v11609_v42 }
 0x226   :  { %v3119_v32 = vsel %vm3108_vm5, nan, %v3118_v30  ;;  %v3223_v28 = vsel %vm3108_vm5, nan, %v3222_v50  ;;  %v3318_v62 = vmul.f32 %v3317_v49, %v3315_v52  ;;  %v3682_v31 = vshrl.u32 %v3681_v7, 23 }
 0x227   :  { %v3120_v40 = vmul.f32 %v3119_v32, %v11529_v2  ;;  %v3495_v12 = vsel %vm3489_vm9, %v3492_v35, %v3494_v16  ;;  %v11620_v19 = vmul.u32.u64.low %v11563_v53, %v3499_v5  ;;  %v11621_v37 = vmul.u32.u64.high %v11563_v53, %v3499_v5, %v11620_v19 }
 0x228   :  { %v152_v17 = vmul.f32 5.0, %v10332_v58  ;;  %v3319_v8 = vxor.u32 2147483648, %v3318_v62  ;;  %v3324_v48 = vsel %vm11567_vm8, 0, %v3322_v41  ;;  %v9047_v11 = vadd.s32 4294967169, %v3682_v31 }
 0x229   :  { %v11628_v45 = vmul.f32 2.0, %v10332_v58  ;;  %v3224_v22 = vsub.f32 %v3120_v40, %v3223_v28  ;;  %v3226_v3 = vmul.f32 3.0, %v11529_v2  ;;  %v3678_v46 = vand.u32 2147483647, %v11532_v44 }
 0x22a   :  { %v3320_v13 = vsel %vm3237_vm11, %v3319_v8, %v3318_v62  ;;  %v3511_v1 = vmul.u32 %v11563_v53, %v3495_v12  ;;  %vm3513_vm10 = vc.u32 %v11610_v63, %v11620_v19  ;;  %v3688_v20 = vadd.s32 1, %v9047_v11 }
 0x22b   :  { %v3225_v41 = vmul.f32 %v3224_v22, %v11529_v2  ;;  %v3323_v36 = vsel %vm11567_vm8, %v11300_v59, %v3320_v13  ;;  %v3328_v0 = vadd.s32 3, %v3324_v48  ;;  %v3514_v55 = vadd.s32 1, %v11621_v37 }
 0x22c   :  { %v11643_v26 = vmul.f32 %v152_v17, %v11066_v60  ;;  %9488 = vcosq.f32 %v3323_v36  ;;  %v11645_v39 = vand.u32 3, %v3324_v48  ;;  %vm3689_vm12 = vcmp.gt.s32.totalorder %v3688_v20, 0 }
 0x22d   :  { %v3227_v53 = vmul.f32 %v3226_v3, %v3225_v41  ;;  %9490 = vsinq.f32 %v3323_v36  ;;  %v3515_v47 = vsel %vm3513_vm10, %v3514_v55, %v11621_v37  ;;  %v3690_v35 = vsel %vm3689_vm12, %v3688_v20, 0 }
 0x22e   :  { %v3516_v2 = vadd.s32 %v3515_v47, %v3511_v1  ;;  %v3685_v43 = vand.u32 8388607, %v3678_v46  ;;  %v3692_v16 = vand.u32 31, %v3690_v35  ;;  %v11651_v15 = vmul.f32 0.04575848, %v9782_v56 }
 0x22f   :  { %v3228_v6 = vsub.f32 %v3227_v53, %v3120_v40  ;;  %v11653_v24 = vand.u32 3, %v3328_v0  ;;  %v155_v57 = vsub.f32 %v11643_v26, %v11628_v45  ;;  %vm3438_vm11 = vcmp.eq.s32.totalorder %v11645_v39, 2 }
 0x230   :  { %v3517_v49 = vadd.s32 536870912, %v3516_v2  ;;  %v3693_v33 = vsub.s32 32, %v3692_v16  ;;  %v11659_v5 = vmul.f32 3.0, %v11651_v15  ;;  %vm3435_vm13 = vcmp.eq.s32.totalorder %v11645_v39, 0 }
 0x231   :  { %v3229_v14 = vmul.f32 26.544523, %v3228_v6  ;;  %v3686_v61 = vor.u32 8388608, %v3685_v43  ;;  %v11664_v51 = vshrl.u32 %v3690_v35, 5  ;;  %v3701_v52 = vshll.u32 %v9638_v25, %v3692_v16 }
 0x232   :  { %v11662_v9 = vshrl.u32 %v3517_v49, 30  ;;  %vm3330_vm14 = vcmp.lt.s32.totalorder %v11653_v24, 2  ;;  %vm3434_vm15 = vcmp.lt.s32.totalorder %v11645_v39, 2  ;;  %v3702_v30 = vshrl.u32 %v9639_v27, %v3693_v33 }
 0x233   :  { %v3230_v7 = vmul.f32 %v3229_v14, %v11182_v10  ;;  %v3704_v50 = vshll.u32 %v9639_v27, %v3692_v16  ;;  %v3705_v42 = vshrl.u32 %v9640_v29, %v3693_v33  ;;  %vm3327_vm0 = vweird.f32 %v11300_v59 }
 0x234   :  { %v3519_v32 = vshll.u32 %v11662_v9, 30  ;;  %v3707_v28 = vshll.u32 %v9640_v29, %v3692_v16  ;;  %v3708_v62 = vshrl.u32 %v9641_v38, %v3693_v33  ;;  %v11678_v31 = vmul.f32 13.698023, %v9664_v4 }
 0x235   :  { %3232 = vst [vmem:[#allocation5 + $0x80] sm:$0xff] %v3230_v7  ;;  %v3695_v40 = vshll.u32 %v9636_v21, %v3692_v16  ;;  %v3696_v12 = vshrl.u32 %v9637_v23, %v3693_v33  ;;  %v3698_v37 = vshll.u32 %v9637_v23, %v3692_v16  ;;  %v3699_v17 = vshrl.u32 %v9638_v25, %v3693_v33 }
 0x236   :  { %vm3331_vm1 = vcmp.eq.s32.totalorder %v11653_v24, 0  ;;  %vm3334_vm2 = vcmp.eq.s32.totalorder %v11653_v24, 2  ;;  %v11686_v8 = vsub.s32 %v3516_v2, %v3519_v32  ;;  %v3703_v48 = vor.u32 %v3702_v30, %v3701_v52 }
 0x237   :  { %v3512_v11 = vadd.s32 %v11620_v19, %v11610_v63  ;;  %v3694_v22 = vshrl.u32 %v9636_v21, %v3693_v33  ;;  %v3706_v3 = vor.u32 %v3705_v42, %v3704_v50  ;;  %vm3713_vm3 = vcmp.lt.s32.totalorder %v11664_v51, 4 }
 0x238   :  { %v3522_v13 = vsub.s32 0, %v11686_v8  ;;  %v3709_v1 = vor.u32 %v3708_v62, %v3707_v28  ;;  %v3715_v20 = vsel %vm3713_vm3, %v3703_v48, 2102212464  ;;  %v11695_v41 = vshll.u32 %v3686_v61, 8 }
 0x239   :  { %v9489_v36 = vpop.eup %9488  ;;  %v3697_v0 = vor.u32 %v3696_v12, %v3695_v40  ;;  %v3700_v55 = vor.u32 %v3699_v17, %v3698_v37  ;;  %vm3710_vm4 = vcmp.lt.s32.totalorder %v11664_v51, 1  ;;  %v3903_v63 = vand.u32 2139095040, %v11678_v31 }
 0x23a   :  { %v9491_v19 = vpop.eup %9490  ;;  %v3335_v53 = vxor.u32 2147483648, %v9489_v36  ;;  %v9040_v47 = vmin.u32 %v3522_v13, %v11686_v8  ;;  %vm3711_vm5 = vcmp.lt.s32.totalorder %v11664_v51, 2  ;;  %vm3712_vm6 = vcmp.lt.s32.totalorder %v11664_v51, 3 }
 0x23b   :  { %v3332_v35 = vxor.u32 2147483648, %v9491_v19  ;;  %v3714_v2 = vsel %vm3710_vm4, %v3694_v22, %v3697_v0  ;;  %v3716_v43 = vsel %vm3712_vm6, %v3700_v55, %v3715_v20  ;;  %v3719_v16 = vsel %vm3713_vm3, %v3706_v3, 920167782 }
 0x23c   :  { %v3336_v6 = vsel %vm3334_vm2, %v3335_v53, %v9491_v19  ;;  %v3440_v49 = vsel %vm3438_vm11, %v3335_v53, %v9491_v19  ;;  %v3524_v33 = vclz %v9040_v47  ;;  %v3723_v14 = vsel %vm3713_vm3, %v3709_v1, 1326507024 }
 0x23d   :  { %v3333_v61 = vsel %vm3331_vm1, %v9489_v36, %v3332_v35  ;;  %v3437_v52 = vsel %vm3435_vm13, %v9489_v36, %v3332_v35  ;;  %v3718_v7 = vsel %vm3710_vm4, %v3697_v0, %v3700_v55  ;;  %v3722_v30 = vsel %vm3710_vm4, %v3700_v55, %v3703_v48 }
 0x23e   :  { %v3337_v50 = vsel %vm3330_vm14, %v3333_v61, %v3336_v6  ;;  %v3441_v42 = vsel %vm3434_vm15, %v3437_v52, %v3440_v49  ;;  %v9041_v32 = vadd.s32 4294967294, %v3524_v33  ;;  %v3720_v28 = vsel %vm3712_vm6, %v3703_v48, %v3719_v16 }
 0x23f   :  { %v3338_v62 = vsel %vm3327_vm0, nan, %v3337_v50  ;;  %v3442_v40 = vsel %vm3327_vm0, nan, %v3441_v42  ;;  %v3717_v12 = vsel %vm3711_vm5, %v3714_v2, %v3716_v43  ;;  %v3724_v24 = vsel %vm3712_vm6, %v3706_v3, %v3723_v14 }
 0x240   :  { %v3339_v37 = vmul.f32 %v3338_v62, %v11651_v15  ;;  %vm9042_vm7 = vcmp.lt.s32.totalorder %v9041_v32, 0  ;;  %v3721_v39 = vsel %vm3711_vm5, %v3718_v7, %v3720_v28  ;;  %v3725_v17 = vsel %vm3711_vm5, %v3722_v30, %v3724_v24 }
 0x241   :  { %v3527_v48 = vsel %vm9042_vm7, 0, %v9041_v32  ;;  %v11742_v22 = vmul.u32.u64.low %v11695_v41, %v3725_v17  ;;  %v11743_v59 = vmul.u32.u64.high %v11695_v41, %v3725_v17, %v11742_v22  ;;  %v3904_v13 = vshrl.u32 %v3903_v63, 23 }
 0x242   :  { %v3443_v1 = vsub.f32 %v3339_v37, %v3442_v40  ;;  %v3528_v20 = vsub.s32 32, %v3527_v48  ;;  %v3529_v36 = vshll.u32 %v11686_v8, %v3527_v48  ;;  %v3532_v3 = vsub.s32 4294967266, %v3527_v48 }
 0x243   :  { %v3542_v0 = vsub.s32 4, %v11662_v9  ;;  %v11748_v55 = vmul.u32.u64.low %v11695_v41, %v3721_v39  ;;  %v11749_v19 = vmul.u32.u64.high %v11695_v41, %v3721_v39, %v11748_v55  ;;  %v9055_v51 = vadd.s32 4294967169, %v3904_v13 }
 0x244   :  { %v3444_v53 = vmul.f32 %v3443_v1, %v11651_v15  ;;  %v3530_v47 = vshrl.u32 %v3512_v11, %v3528_v20  ;;  %v3533_v35 = vadd.s32 127, %v3532_v3  ;;  %v11756_v63 = vmul.f32 0.33333334, %v155_v57 }
 0x245   :  { %vm3458_vm8 = vcmp.lt.s32.totalorder %v11475_v34, 0  ;;  %v3733_v8 = vmul.u32 %v11695_v41, %v3717_v12  ;;  %v3910_v2 = vadd.s32 1, %v9055_v51  ;;  %vm3735_vm9 = vc.u32 %v11743_v59, %v11748_v55 }
 0x246   :  { %v3446_v43 = vmul.f32 %v11659_v5, %v3444_v53  ;;  %v3531_v16 = vor.u32 %v3530_v47, %v3529_v36  ;;  %v3534_v6 = vshll.u32 %v3533_v35, 23  ;;  %v3543_v15 = vsel %vm3458_vm8, %v3542_v0, %v11662_v9 }
 0x247   :  { %v3736_v45 = vadd.s32 1, %v11749_v19  ;;  %v3900_v26 = vand.u32 2147483647, %v11678_v31  ;;  %vm3911_vm10 = vcmp.gt.s32.totalorder %v3910_v2, 0  ;;  %v11769_v5 = vmul.f32 0.7463527, %v11756_v63 }
 0x248   :  { %v3447_v57 = vsub.f32 %v3446_v43, %v3339_v37  ;;  %v3535_v11 = vor.u32 4788187, %v3534_v6  ;;  %v3538_v41 = vcvt.s32.f32 %v3531_v16  ;;  %v3912_v49 = vsel %vm3911_vm10, %v3910_v2, 0 }
 0x249   :  { %v3737_v33 = vsel %vm3735_vm9, %v3736_v45, %v11749_v19  ;;  %v3914_v14 = vand.u32 31, %v3912_v49  ;;  %vm11774_vm12 = vcmp.le.f32.partialorder %v3456_v54, 0.7853982  ;;  %v3907_v50 = vand.u32 8388607, %v3900_v26 }
 0x24a   :  { %v3448_v61 = vmul.f32 31.003569, %v3447_v57  ;;  %v3536_v52 = vand.u32 2147483647, %v3535_v11  ;;  %v3738_v7 = vadd.s32 %v3737_v33, %v3733_v8  ;;  %v3545_v30 = vsel %vm11774_vm12, 0, %v3543_v15 }
 0x24b   :  { %v3915_v42 = vsub.s32 32, %v3914_v14  ;;  %v3917_v32 = vshll.u32 %v9636_v21, %v3914_v14  ;;  %v3920_v54 = vshll.u32 %v9637_v23, %v3914_v14  ;;  %v3923_v37 = vshll.u32 %v9638_v25, %v3914_v14 }
 0x24c   :  { %v3449_v28 = vmul.f32 %v3448_v61, %v11182_v10  ;;  %v3539_v62 = vmul.f32 %v3538_v41, %v3536_v52  ;;  %v3739_v40 = vadd.s32 536870912, %v3738_v7  ;;  %v3926_v39 = vshll.u32 %v9639_v27, %v3914_v14 }
 0x24d   :  { %v3918_v12 = vshrl.u32 %v9637_v23, %v3915_v42  ;;  %v3921_v24 = vshrl.u32 %v9638_v25, %v3915_v42  ;;  %v3924_v22 = vshrl.u32 %v9639_v27, %v3915_v42  ;;  %v3927_v13 = vshrl.u32 %v9640_v29, %v3915_v42 }
 0x24e   :  { %3451 = vst [vmem:[#allocation5 + $0x88] sm:$0xff] %v3449_v28  ;;  %v3540_v17 = vxor.u32 2147483648, %v3539_v62  ;;  %v3740_v48 = vshrl.u32 %v3739_v40, 30  ;;  %v11792_v10 = vmul.f32 0.14310385, %v9782_v56  ;;  %v3913_v1 = vshrl.u32 %v3912_v49, 5 }
 0x24f   :  { %v3929_v20 = vshll.u32 %v9640_v29, %v3914_v14  ;;  %v3930_v36 = vshrl.u32 %v9641_v38, %v3915_v42  ;;  %v3549_v0 = vadd.s32 3, %v3545_v30  ;;  %v3908_v51 = vor.u32 8388608, %v3907_v50 }
 0x250   :  { %v3541_v3 = vsel %vm3458_vm8, %v3540_v17, %v3539_v62  ;;  %v3741_v19 = vshll.u32 %v3740_v48, 30  ;;  %v3916_v47 = vshrl.u32 %v9636_v21, %v3915_v42  ;;  %v3919_v35 = vor.u32 %v3918_v12, %v3917_v32 }
 0x251   :  { %v3544_v53 = vsel %vm11774_vm12, %v11475_v34, %v3541_v3  ;;  %v3928_v8 = vor.u32 %v3927_v13, %v3926_v39  ;;  %v3922_v43 = vor.u32 %v3921_v24, %v3920_v54  ;;  %v3925_v16 = vor.u32 %v3924_v22, %v3923_v37 }
 0x252   :  { %9492 = vcosq.f32 %v3544_v53  ;;  %v11802_v2 = vsub.s32 %v3738_v7, %v3741_v19  ;;  %v3931_v6 = vor.u32 %v3930_v36, %v3929_v20  ;;  %vm3932_vm11 = vcmp.lt.s32.totalorder %v3913_v1, 1 }
 0x253   :  { %9494 = vsinq.f32 %v3544_v53  ;;  %vm3935_vm13 = vcmp.lt.s32.totalorder %v3913_v1, 4  ;;  %v11804_v15 = vand.u32 3, %v3545_v30  ;;  %vm3934_vm14 = vcmp.lt.s32.totalorder %v3913_v1, 3 }
 0x254   :  { %v3744_v45 = vsub.s32 0, %v11802_v2  ;;  %v3937_v57 = vsel %vm3935_vm13, %v3925_v16, 2102212464  ;;  %vm3680_vm15 = vcmp.lt.s32.totalorder %v11532_v44, 0  ;;  %vm3933_vm0 = vcmp.lt.s32.totalorder %v3913_v1, 2 }
 0x255   :  { %v3941_v11 = vsel %vm3935_vm13, %v3928_v8, 920167782  ;;  %v3948_v41 = vshll.u32 %v3908_v51, 8  ;;  %v3936_v33 = vsel %vm3932_vm11, %v3916_v47, %v3919_v35  ;;  %v3938_v14 = vsel %vm3934_vm14, %v3922_v43, %v3937_v57 }
 0x256   :  { %v9048_v49 = vmin.u32 %v3744_v45, %v11802_v2  ;;  %v3940_v61 = vsel %vm3932_vm11, %v3919_v35, %v3922_v43  ;;  %v3942_v9 = vsel %vm3934_vm14, %v3925_v16, %v3941_v11  ;;  %v3944_v52 = vsel %vm3932_vm11, %v3922_v43, %v3925_v16 }
 0x257   :  { %v3945_v7 = vsel %vm3935_vm13, %v3931_v6, 1326507024  ;;  %v11812_v30 = vmul.f32 16.923622, %v9664_v4  ;;  %v3550_v50 = vand.u32 3, %v3549_v0  ;;  %vm3656_vm1 = vcmp.eq.s32.totalorder %v11804_v15, 0 }
 0x258   :  { %vm11817_vm2 = vcmp.le.f32.partialorder %v3678_v46, 0.7853982  ;;  %v3746_v32 = vclz %v9048_v49  ;;  %vm3655_vm3 = vcmp.lt.s32.totalorder %v11804_v15, 2  ;;  %v3764_v28 = vsub.s32 4, %v3740_v48 }
 0x259   :  { %v3939_v62 = vsel %vm3933_vm0, %v3936_v33, %v3938_v14  ;;  %v3943_v40 = vsel %vm3933_vm0, %v3940_v61, %v3942_v9  ;;  %v3946_v54 = vsel %vm3934_vm14, %v3928_v8, %v3945_v7  ;;  %vm3548_vm4 = vweird.f32 %v11475_v34 }
 0x25a   :  { %v9049_v12 = vadd.s32 4294967294, %v3746_v32  ;;  %v3947_v24 = vsel %vm3933_vm0, %v3944_v52, %v3946_v54  ;;  %v11827_v37 = vmul.u32.u64.low %v3948_v41, %v3943_v40  ;;  %v11828_v46 = vmul.u32.u64.high %v3948_v41, %v3943_v40, %v11827_v37 }
 0x25b   :  { %vm3659_vm5 = vcmp.eq.s32.totalorder %v11804_v15, 2  ;;  %v11832_v39 = vmul.u32.u64.low %v3948_v41, %v3947_v24  ;;  %v11833_v17 = vmul.u32.u64.high %v3948_v41, %v3947_v24, %v11832_v39  ;;  %v4125_v22 = vand.u32 2139095040, %v11812_v30 }
 0x25c   :  { %vm3551_vm6 = vcmp.lt.s32.totalorder %v3550_v50, 2  ;;  %vm3552_vm7 = vcmp.eq.s32.totalorder %v3550_v50, 0  ;;  %v3734_v13 = vadd.s32 %v11748_v55, %v11743_v59  ;;  %vm9050_vm8 = vcmp.lt.s32.totalorder %v9049_v12, 0 }
 0x25d   :  { %v3749_v20 = vsel %vm9050_vm8, 0, %v9049_v12  ;;  %v3765_v1 = vsel %vm3680_vm15, %v3764_v28, %v3740_v48  ;;  %v3955_v36 = vmul.u32 %v3948_v41, %v3939_v62  ;;  %v4126_v3 = vshrl.u32 %v4125_v22, 23 }
 0x25e   :  { %v3750_v0 = vsub.s32 32, %v3749_v20  ;;  %v3751_v19 = vshll.u32 %v11802_v2, %v3749_v20  ;;  %v3754_v51 = vsub.s32 4294967266, %v3749_v20  ;;  %v3958_v53 = vadd.s32 1, %v11828_v46 }
 0x25f   :  { %v9493_v47 = vpop.eup %9492  ;;  %vm3555_vm9 = vcmp.eq.s32.totalorder %v3550_v50, 2  ;;  %vm3957_vm10 = vc.u32 %v11833_v17, %v11827_v37  ;;  %v4122_v59 = vand.u32 2147483647, %v11812_v30  ;;  %v9063_v55 = vadd.s32 4294967169, %v4126_v3 }
 0x260   :  { %v9495_v35 = vpop.eup %9494  ;;  %v3556_v8 = vxor.u32 2147483648, %v9493_v47  ;;  %v3752_v43 = vshrl.u32 %v3734_v13, %v3750_v0  ;;  %v3755_v48 = vadd.s32 127, %v3754_v51  ;;  %v3959_v16 = vsel %vm3957_vm10, %v3958_v53, %v11828_v46 }
 0x261   :  { %v3553_v6 = vxor.u32 2147483648, %v9495_v35  ;;  %v3767_v2 = vsel %vm11817_vm2, 0, %v3765_v1  ;;  %v3960_v45 = vadd.s32 %v3959_v16, %v3955_v36  ;;  %v4132_v57 = vadd.s32 1, %v9063_v55 }
 0x262   :  { %v3557_v11 = vsel %vm3555_vm9, %v3556_v8, %v9495_v35  ;;  %v3661_v41 = vsel %vm3659_vm5, %v3556_v8, %v9495_v35  ;;  %v3753_v49 = vor.u32 %v3752_v43, %v3751_v19  ;;  %v3756_v33 = vshll.u32 %v3755_v48, 23 }
 0x263   :  { %v3554_v14 = vsel %vm3552_vm7, %v9493_v47, %v3553_v6  ;;  %v3658_v61 = vsel %vm3656_vm1, %v9493_v47, %v3553_v6  ;;  %v3961_v9 = vadd.s32 536870912, %v3960_v45  ;;  %vm4133_vm12 = vcmp.gt.s32.totalorder %v4132_v57, 0 }
 0x264   :  { %v3558_v52 = vsel %vm3551_vm6, %v3554_v14, %v3557_v11  ;;  %v3662_v7 = vsel %vm3655_vm3, %v3658_v61, %v3661_v41  ;;  %v3757_v32 = vor.u32 4788187, %v3756_v33  ;;  %v3760_v28 = vcvt.s32.f32 %v3753_v49 }
 0x265   :  { %v3559_v62 = vsel %vm3548_vm4, nan, %v3558_v52  ;;  %v3663_v40 = vsel %vm3548_vm4, nan, %v3662_v7  ;;  %v11860_v54 = vshrl.u32 %v3961_v9, 30  ;;  %v4134_v12 = vsel %vm4133_vm12, %v4132_v57, 0 }
 0x266   :  { %v3560_v24 = vmul.f32 %v3559_v62, %v11792_v10  ;;  %v3758_v46 = vand.u32 2147483647, %v3757_v32  ;;  %v3771_v39 = vadd.s32 3, %v3767_v2  ;;  %v4136_v50 = vand.u32 31, %v4134_v12 }
 0x267   :  { %v3963_v22 = vshll.u32 %v11860_v54, 30  ;;  %v4129_v15 = vand.u32 8388607, %v4122_v59  ;;  %v3666_v20 = vmul.f32 3.0, %v11792_v10  ;;  %v11869_v34 = vmul.f32 %v11769_v5, %v9819_v18 }
 0x268   :  { %v3664_v13 = vsub.f32 %v3560_v24, %v3663_v40  ;;  %v3761_v1 = vmul.f32 %v3760_v28, %v3758_v46  ;;  %v4137_v36 = vsub.s32 32, %v4136_v50  ;;  %v3669_v3 = vmul.f32 5.0, %v11792_v10 }
 0x269   :  { %v11873_v0 = vmul.f32 0.095995836, %v9782_v56  ;;  %v11875_v19 = vsub.s32 %v3960_v45, %v3963_v22  ;;  %v11878_v47 = vand.u32 3, %v3771_v39  ;;  %v11880_v55 = vand.u32 3, %v3767_v2 }
 0x26a   :  { %v3665_v51 = vmul.f32 %v3664_v13, %v11792_v10  ;;  %v3762_v53 = vxor.u32 2147483648, %v3761_v1  ;;  %v4130_v8 = vor.u32 8388608, %v4129_v15  ;;  %v4139_v5 = vshll.u32 %v9636_v21, %v4136_v50 }
 0x26b   :  { %v3966_v35 = vsub.s32 0, %v11875_v19  ;;  %v4142_v43 = vshll.u32 %v9637_v23, %v4136_v50  ;;  %v4140_v6 = vshrl.u32 %v9637_v23, %v4137_v36  ;;  %v4143_v10 = vshrl.u32 %v9638_v25, %v4137_v36 }
 0x26c   :  { %v3667_v48 = vmul.f32 %v3666_v20, %v3665_v51  ;;  %v3763_v16 = vsel %vm3680_vm15, %v3762_v53, %v3761_v1  ;;  %v4145_v57 = vshll.u32 %v9638_v25, %v4136_v50  ;;  %v4146_v11 = vshrl.u32 %v9639_v27, %v4137_v36 }
 0x26d   :  { %v3766_v2 = vsel %vm11817_vm2, %v11532_v44, %v3763_v16  ;;  %v9056_v45 = vmin.u32 %v3966_v35, %v11875_v19  ;;  %v4135_v49 = vshrl.u32 %v4134_v12, 5  ;;  %v11896_v33 = vmul.f32 20.121807, %v9664_v4 }
 0x26e   :  { %v3668_v41 = vsub.f32 %v3667_v48, %v3560_v24  ;;  %9496 = vcosq.f32 %v3766_v2  ;;  %v3956_v14 = vadd.s32 %v11827_v37, %v11833_v17  ;;  %v11900_v9 = vshll.u32 %v4130_v8, 8 }
 0x26f   :  { %9498 = vsinq.f32 %v3766_v2  ;;  %v3968_v61 = vclz %v9056_v45  ;;  %v4138_v52 = vshrl.u32 %v9636_v21, %v4137_v36  ;;  %v4141_v7 = vor.u32 %v4140_v6, %v4139_v5 }
 0x270   :  { %v3670_v42 = vmul.f32 %v3669_v3, %v3668_v41  ;;  %v4144_v32 = vor.u32 %v4143_v10, %v4142_v43  ;;  %v4147_v62 = vor.u32 %v4146_v11, %v4145_v57  ;;  %v4148_v40 = vshll.u32 %v9639_v27, %v4136_v50 }
 0x271   :  { %v9057_v28 = vadd.s32 4294967294, %v3968_v61  ;;  %v4149_v12 = vshrl.u32 %v9640_v29, %v4137_v36  ;;  %v4151_v46 = vshll.u32 %v9640_v29, %v4136_v50  ;;  %v4152_v39 = vshrl.u32 %v9641_v38, %v4137_v36 }
 0x272   :  { %v3671_v24 = vsub.f32 %v3670_v42, %v3665_v51  ;;  %vm4154_vm11 = vcmp.lt.s32.totalorder %v4135_v49, 1  ;;  %vm3881_vm13 = vcmp.eq.s32.totalorder %v11880_v55, 2  ;;  %vm3902_vm14 = vcmp.lt.s32.totalorder %v11678_v31, 0 }
 0x273   :  { %vm9058_vm15 = vcmp.lt.s32.totalorder %v9057_v28, 0  ;;  %v4150_v37 = vor.u32 %v4149_v12, %v4148_v40  ;;  %vm4155_vm0 = vcmp.lt.s32.totalorder %v4135_v49, 2  ;;  %vm4156_vm1 = vcmp.lt.s32.totalorder %v4135_v49, 3 }
 0x274   :  { %v3672_v17 = vmul.f32 10.568547, %v3671_v24  ;;  %vm3878_vm2 = vcmp.eq.s32.totalorder %v11880_v55, 0  ;;  %v3971_v22 = vsel %vm9058_vm15, 0, %v9057_v28  ;;  %v4153_v15 = vor.u32 %v4152_v39, %v4151_v46 }
 0x275   :  { %vm4157_vm3 = vcmp.lt.s32.totalorder %v4135_v49, 4  ;;  %vm3877_vm4 = vcmp.lt.s32.totalorder %v11880_v55, 2  ;;  %v3972_v50 = vsub.s32 32, %v3971_v22  ;;  %v3973_v13 = vshll.u32 %v11875_v19, %v3971_v22 }
 0x276   :  { %v3976_v20 = vsub.s32 4294967266, %v3971_v22  ;;  %v4158_v1 = vsel %vm4154_vm11, %v4138_v52, %v4141_v7  ;;  %v3673_v36 = vmul.f32 %v3672_v17, %v11869_v34  ;;  %vm3770_vm5 = vweird.f32 %v11532_v44 }
 0x277   :  { %vm11917_vm6 = vcmp.le.f32.partialorder %v3900_v26, 0.7853982  ;;  %v4159_v51 = vsel %vm4157_vm3, %v4147_v62, 2102212464  ;;  %v4162_v53 = vsel %vm4154_vm11, %v4141_v7, %v4144_v32  ;;  %v4163_v35 = vsel %vm4157_vm3, %v4150_v37, 920167782 }
 0x278   :  { %v3974_v19 = vshrl.u32 %v3956_v14, %v3972_v50  ;;  %v3977_v8 = vadd.s32 127, %v3976_v20  ;;  %v4160_v5 = vsel %vm4156_vm1, %v4144_v32, %v4159_v51  ;;  %v4164_v43 = vsel %vm4156_vm1, %v4147_v62, %v4163_v35  ;;  %3675 = vst [vmem:[#allocation5 + $0x90] sm:$0xff] %v3673_v36 }
 0x279   :  { %v3986_v48 = vsub.s32 4, %v11860_v54  ;;  %v4165_v26 = vsel %vm4155_vm0, %v4162_v53, %v4164_v43  ;;  %v4166_v16 = vsel %vm4154_vm11, %v4144_v32, %v4147_v62  ;;  %v4167_v6 = vsel %vm4157_vm3, %v4153_v15, 1326507024 }
 0x27a   :  { %vm3777_vm7 = vcmp.eq.s32.totalorder %v11878_v47, 2  ;;  %v3975_v10 = vor.u32 %v3974_v19, %v3973_v13  ;;  %v3978_v2 = vshll.u32 %v3977_v8, 23  ;;  %v4168_v45 = vsel %vm4156_vm1, %v4150_v37, %v4167_v6 }
 0x27b   :  { %v4161_v57 = vsel %vm4155_vm0, %v4158_v1, %v4160_v5  ;;  %v4169_v11 = vsel %vm4155_vm0, %v4166_v16, %v4168_v45  ;;  %v11935_v41 = vmul.u32.u64.low %v11900_v9, %v4165_v26  ;;  %v11936_v14 = vmul.u32.u64.high %v11900_v9, %v4165_v26, %v11935_v41  ;;  %v9497_v61 = vpop.eup %9496 }
 0x27c   :  { %v3979_v42 = vor.u32 4788187, %v3978_v2  ;;  %v3982_v52 = vcvt.s32.f32 %v3975_v10  ;;  %v11940_v7 = vmul.u32.u64.low %v11900_v9, %v4169_v11  ;;  %v11941_v32 = vmul.u32.u64.high %v11900_v9, %v4169_v11, %v11940_v7  ;;  %v9499_v28 = vpop.eup %9498 }
 0x27d   :  { %vm3774_vm8 = vcmp.eq.s32.totalorder %v11878_v47, 0  ;;  %v3778_v62 = vxor.u32 2147483648, %v9497_v61  ;;  %v3987_v49 = vsel %vm3902_vm14, %v3986_v48, %v11860_v54  ;;  %v4347_v40 = vand.u32 2139095040, %v11896_v33 }
 0x27e   :  { %vm3773_vm9 = vcmp.lt.s32.totalorder %v11878_v47, 2  ;;  %v3775_v12 = vxor.u32 2147483648, %v9499_v28  ;;  %v3980_v24 = vand.u32 2147483647, %v3979_v42  ;;  %v4177_v46 = vmul.u32 %v11900_v9, %v4161_v57 }
 0x27f   :  { %v3779_v39 = vsel %vm3777_vm7, %v3778_v62, %v9499_v28  ;;  %v3883_v37 = vsel %vm3881_vm13, %v3778_v62, %v9499_v28  ;;  %v4180_v17 = vadd.s32 1, %v11936_v14  ;;  %v4348_v22 = vshrl.u32 %v4347_v40, 23 }
 0x280   :  { %v3776_v15 = vsel %vm3774_vm8, %v9497_v61, %v3775_v12  ;;  %v3880_v54 = vsel %vm3878_vm2, %v9497_v61, %v3775_v12  ;;  %v3983_v50 = vmul.f32 %v3982_v52, %v3980_v24  ;;  %v3989_v13 = vsel %vm11917_vm6, 0, %v3987_v49 }
 0x281   :  { %v3780_v20 = vsel %vm3773_vm9, %v3776_v15, %v3779_v39  ;;  %v3884_v9 = vsel %vm3877_vm4, %v3880_v54, %v3883_v37  ;;  %vm4179_vm10 = vc.u32 %v11941_v32, %v11935_v41  ;;  %v9071_v47 = vadd.s32 4294967169, %v4348_v22 }
 0x282   :  { %v3781_v1 = vsel %vm3770_vm5, nan, %v3780_v20  ;;  %v3885_v36 = vsel %vm3770_vm5, nan, %v3884_v9  ;;  %v3984_v51 = vxor.u32 2147483648, %v3983_v50  ;;  %v4181_v53 = vsel %vm4179_vm10, %v4180_v17, %v11936_v14 }
 0x283   :  { %v3782_v35 = vmul.f32 %v3781_v1, %v11873_v0  ;;  %v4182_v19 = vadd.s32 %v4181_v53, %v4177_v46  ;;  %v4344_v8 = vand.u32 2147483647, %v11896_v33  ;;  %v4354_v55 = vadd.s32 1, %v9071_v47 }
 0x284   :  { %v3888_v5 = vmul.f32 3.0, %v11873_v0  ;;  %v3985_v43 = vsel %vm3902_vm14, %v3984_v51, %v3983_v50  ;;  %v3993_v48 = vadd.s32 3, %v3989_v13  ;;  %v11976_v6 = vand.u32 3, %v3989_v13 }
 0x285   :  { %v3886_v26 = vsub.f32 %v3782_v35, %v3885_v36  ;;  %v3988_v44 = vsel %vm11917_vm6, %v11678_v31, %v3985_v43  ;;  %v4183_v16 = vadd.s32 536870912, %v4182_v19  ;;  %vm4355_vm12 = vcmp.gt.s32.totalorder %v4354_v55, 0 }
 0x286   :  { %9500 = vcosq.f32 %v3988_v44  ;;  %v4356_v10 = vsel %vm4355_vm12, %v4354_v55, 0  ;;  %v4351_v57 = vand.u32 8388607, %v4344_v8  ;;  %v11984_v11 = vmul.f32 0.07300323, %v9782_v56 }
 0x287   :  { %v3887_v2 = vmul.f32 %v3886_v26, %v11873_v0  ;;  %9502 = vsinq.f32 %v3988_v44  ;;  %v11979_v45 = vshrl.u32 %v4183_v16, 30  ;;  %v11986_v14 = vand.u32 3, %v3993_v48 }
 0x288   :  { %v4358_v3 = vand.u32 31, %v4356_v10  ;;  %v3891_v42 = vmul.f32 5.0, %v11873_v0  ;;  %v11991_v7 = vmul.f32 3.0, %v11984_v11  ;;  %vm4103_vm11 = vcmp.eq.s32.totalorder %v11976_v6, 2 }
 0x289   :  { %v3889_v61 = vmul.f32 %v3888_v5, %v3887_v2  ;;  %v4185_v52 = vshll.u32 %v11979_v45, 30  ;;  %v4352_v40 = vor.u32 8388608, %v4351_v57  ;;  %vm3996_vm13 = vcmp.eq.s32.totalorder %v11986_v14, 0 }
 0x28a   :  { %v4359_v28 = vsub.s32 32, %v4358_v3  ;;  %vm4100_vm14 = vcmp.eq.s32.totalorder %v11976_v6, 0  ;;  %v11998_v12 = vshrl.u32 %v4356_v10, 5  ;;  %v4361_v0 = vshll.u32 %v9636_v21, %v4358_v3 }
 0x28b   :  { %v3890_v62 = vsub.f32 %v3889_v61, %v3782_v35  ;;  %v11994_v49 = vsub.s32 %v4182_v19, %v4185_v52  ;;  %v4364_v24 = vshll.u32 %v9637_v23, %v4358_v3  ;;  %v12003_v46 = vmul.f32 23.304247, %v9664_v4 }
 0x28c   :  { %vm3995_vm15 = vcmp.lt.s32.totalorder %v11986_v14, 2  ;;  %vm4099_vm0 = vcmp.lt.s32.totalorder %v11976_v6, 2  ;;  %v4362_v17 = vshrl.u32 %v9637_v23, %v4359_v28  ;;  %v4365_v22 = vshrl.u32 %v9638_v25, %v4359_v28 }
 0x28d   :  { %v3892_v39 = vmul.f32 %v3891_v42, %v3890_v62  ;;  %v4188_v37 = vsub.s32 0, %v11994_v49  ;;  %vm3992_vm1 = vweird.f32 %v11678_v31  ;;  %v4367_v15 = vshll.u32 %v9638_v25, %v4358_v3 }
 0x28e   :  { %v4368_v54 = vshrl.u32 %v9639_v27, %v4359_v28  ;;  %v4370_v50 = vshll.u32 %v9639_v27, %v4358_v3  ;;  %v4371_v13 = vshrl.u32 %v9640_v29, %v4359_v28  ;;  %vm3999_vm2 = vcmp.eq.s32.totalorder %v11986_v14, 2 }
 0x28f   :  { %v3893_v20 = vsub.f32 %v3892_v39, %v3887_v2  ;;  %v4178_v9 = vadd.s32 %v11935_v41, %v11941_v32  ;;  %v9064_v47 = vmin.u32 %v4188_v37, %v11994_v49  ;;  %v4360_v1 = vshrl.u32 %v9636_v21, %v4359_v28 }
 0x290   :  { %vm4376_vm3 = vcmp.lt.s32.totalorder %v11998_v12, 1  ;;  %v12021_v36 = vshll.u32 %v4352_v40, 8  ;;  %v4569_v51 = vand.u32 2139095040, %v12003_v46  ;;  %v4363_v19 = vor.u32 %v4362_v17, %v4361_v0 }
 0x291   :  { %v3894_v53 = vmul.f32 15.162463, %v3893_v20  ;;  %v4190_v35 = vclz %v9064_v47  ;;  %v4366_v55 = vor.u32 %v4365_v22, %v4364_v24  ;;  %v4369_v5 = vor.u32 %v4368_v54, %v4367_v15 }
 0x292   :  { %v4372_v43 = vor.u32 %v4371_v13, %v4370_v50  ;;  %v4373_v48 = vshll.u32 %v9640_v29, %v4358_v3  ;;  %v4374_v41 = vshrl.u32 %v9641_v38, %v4359_v28  ;;  %vm4377_vm4 = vcmp.lt.s32.totalorder %v11998_v12, 2 }
 0x293   :  { %v9501_v32 = vpop.eup %9500  ;;  %v3895_v26 = vmul.f32 %v3894_v53, %v11869_v34  ;;  %v9065_v44 = vadd.s32 4294967294, %v4190_v35  ;;  %vm4379_vm5 = vcmp.lt.s32.totalorder %v11998_v12, 4  ;;  %vm4378_vm6 = vcmp.lt.s32.totalorder %v11998_v12, 3 }
 0x294   :  { %v9503_v16 = vpop.eup %9502  ;;  %v4000_v10 = vxor.u32 2147483648, %v9501_v32  ;;  %v4375_v2 = vor.u32 %v4374_v41, %v4373_v48  ;;  %v4381_v57 = vsel %vm4379_vm5, %v4369_v5, 2102212464  ;;  %v4380_v61 = vsel %vm4376_vm3, %v4360_v1, %v4363_v19 }
 0x295   :  { %3897 = vst [vmem:[#allocation5 + $0x98] sm:$0xff] %v3895_v26  ;;  %v3997_v3 = vxor.u32 2147483648, %v9503_v16  ;;  %vm9066_vm7 = vcmp.lt.s32.totalorder %v9065_v44, 0  ;;  %v4382_v42 = vsel %vm4378_vm6, %v4366_v55, %v4381_v57  ;;  %v4384_v40 = vsel %vm4376_vm3, %v4363_v19, %v4366_v55 }
 0x296   :  { %v4001_v52 = vsel %vm3999_vm2, %v4000_v10, %v9503_v16  ;;  %v4105_v28 = vsel %vm4103_vm11, %v4000_v10, %v9503_v16  ;;  %v4193_v62 = vsel %vm9066_vm7, 0, %v9065_v44  ;;  %v4385_v54 = vsel %vm4379_vm5, %v4372_v43, 920167782 }
 0x297   :  { %v3998_v0 = vsel %vm3996_vm13, %v9501_v32, %v3997_v3  ;;  %v4102_v24 = vsel %vm4100_vm14, %v9501_v32, %v3997_v3  ;;  %v4194_v39 = vsub.s32 32, %v4193_v62  ;;  %v4195_v37 = vshll.u32 %v11994_v49, %v4193_v62 }
 0x298   :  { %v4002_v17 = vsel %vm3995_vm15, %v3998_v0, %v4001_v52  ;;  %v4106_v22 = vsel %vm4099_vm0, %v4102_v24, %v4105_v28  ;;  %v4198_v15 = vsub.s32 4294967266, %v4193_v62  ;;  %v4386_v49 = vsel %vm4378_vm6, %v4369_v5, %v4385_v54 }
 0x299   :  { %v4003_v50 = vsel %vm3992_vm1, nan, %v4002_v17  ;;  %v4107_v13 = vsel %vm3992_vm1, nan, %v4106_v22  ;;  %v4196_v20 = vshrl.u32 %v4178_v9, %v4194_v39  ;;  %v4387_v6 = vsel %vm4377_vm4, %v4384_v40, %v4386_v49 }
 0x29a   :  { %v4004_v14 = vmul.f32 %v4003_v50, %v11984_v11  ;;  %v4199_v47 = vadd.s32 127, %v4198_v15  ;;  %v4388_v1 = vsel %vm4376_vm3, %v4366_v55, %v4369_v5  ;;  %v4389_v35 = vsel %vm4379_vm5, %v4375_v2, 1326507024 }
 0x29b   :  { %v4197_v53 = vor.u32 %v4196_v20, %v4195_v37  ;;  %v12067_v31 = vmul.u32.u64.low %v12021_v36, %v4387_v6  ;;  %v12068_v19 = vmul.u32.u64.high %v12021_v36, %v4387_v6, %v12067_v31  ;;  %v4208_v41 = vsub.s32 4, %v11979_v45 }
 0x29c   :  { %v4108_v9 = vsub.f32 %v4004_v14, %v4107_v13  ;;  %v4200_v48 = vshll.u32 %v4199_v47, 23  ;;  %v4390_v32 = vsel %vm4378_vm6, %v4372_v43, %v4389_v35  ;;  %v4383_v55 = vsel %vm4377_vm4, %v4380_v61, %v4382_v42 }
 0x29d   :  { %v4204_v26 = vcvt.s32.f32 %v4197_v53  ;;  %v4391_v5 = vsel %vm4377_vm4, %v4388_v1, %v4390_v32  ;;  %v4570_v44 = vshrl.u32 %v4569_v51, 23  ;;  %v4113_v3 = vmul.f32 5.0, %v11984_v11 }
 0x29e   :  { %v4109_v16 = vmul.f32 %v4108_v9, %v11984_v11  ;;  %v4201_v10 = vor.u32 4788187, %v4200_v48  ;;  %v12080_v2 = vmul.u32.u64.low %v12021_v36, %v4391_v5  ;;  %v12081_v57 = vmul.u32.u64.high %v12021_v36, %v4391_v5, %v12080_v2 }
 0x29f   :  { %vm4124_vm8 = vcmp.lt.s32.totalorder %v11812_v30, 0  ;;  %v4402_v43 = vadd.s32 1, %v12068_v19  ;;  %v9079_v52 = vadd.s32 4294967169, %v4570_v44  ;;  %v4399_v51 = vmul.u32 %v12021_v36, %v4383_v55 }
 0x2a0   :  { %v4111_v61 = vmul.f32 %v11991_v7, %v4109_v16  ;;  %v4202_v42 = vand.u32 2147483647, %v4201_v10  ;;  %v4209_v12 = vsel %vm4124_vm8, %v4208_v41, %v11979_v45  ;;  %vm12093_vm9 = vcmp.le.f32.partialorder %v4122_v59, 0.7853982 }
 0x2a1   :  { %v4576_v28 = vadd.s32 1, %v9079_v52  ;;  %vm4401_vm10 = vc.u32 %v12081_v57, %v12067_v31  ;;  %v4211_v7 = vsel %vm12093_vm9, 0, %v4209_v12  ;;  %v4566_v45 = vand.u32 2147483647, %v12003_v46 }
 0x2a2   :  { %v4112_v62 = vsub.f32 %v4111_v61, %v4004_v14  ;;  %v4205_v40 = vmul.f32 %v4204_v26, %v4202_v42  ;;  %v4403_v0 = vsel %vm4401_vm10, %v4402_v43, %v12068_v19  ;;  %v12104_v59 = vmul.f32 0.05908901, %v9782_v56 }
 0x2a3   :  { %vm4577_vm12 = vcmp.gt.s32.totalorder %v4576_v28, 0  ;;  %v4404_v39 = vadd.s32 %v4403_v0, %v4399_v51  ;;  %v4215_v54 = vadd.s32 3, %v4211_v7  ;;  %v12111_v20 = vand.u32 3, %v4211_v7 }
 0x2a4   :  { %v4114_v36 = vmul.f32 %v4113_v3, %v4112_v62  ;;  %v4206_v24 = vxor.u32 2147483648, %v4205_v40  ;;  %v4578_v37 = vsel %vm4577_vm12, %v4576_v28, 0  ;;  %v4573_v49 = vand.u32 8388607, %v4566_v45 }
 0x2a5   :  { %v4580_v17 = vand.u32 31, %v4578_v37  ;;  %v4405_v50 = vadd.s32 536870912, %v4404_v39  ;;  %v12122_v48 = vand.u32 3, %v4215_v54  ;;  %v4579_v32 = vshrl.u32 %v4578_v37, 5 }
 0x2a6   :  { %v4115_v22 = vsub.f32 %v4114_v36, %v4109_v16  ;;  %v4207_v15 = vsel %vm4124_vm8, %v4206_v24, %v4205_v40  ;;  %v4574_v10 = vor.u32 8388608, %v4573_v49  ;;  %vm4322_vm11 = vcmp.eq.s32.totalorder %v12111_v20, 0 }
 0x2a7   :  { %v4210_v13 = vsel %vm12093_vm9, %v11812_v30, %v4207_v15  ;;  %v4581_v14 = vsub.s32 32, %v4580_v17  ;;  %v12115_v6 = vshrl.u32 %v4405_v50, 30  ;;  %v4583_v1 = vshll.u32 %v9636_v21, %v4580_v17 }
 0x2a8   :  { %v4116_v47 = vmul.f32 19.691727, %v4115_v22  ;;  %9504 = vcosq.f32 %v4210_v13  ;;  %v4586_v35 = vshll.u32 %v9637_v23, %v4580_v17  ;;  %v4589_v26 = vshll.u32 %v9638_v25, %v4580_v17 }
 0x2a9   :  { %9506 = vsinq.f32 %v4210_v13  ;;  %v4584_v53 = vshrl.u32 %v9637_v23, %v4581_v14  ;;  %v4587_v19 = vshrl.u32 %v9638_v25, %v4581_v14  ;;  %v4407_v41 = vshll.u32 %v12115_v6, 30 }
 0x2aa   :  { %v4117_v9 = vmul.f32 %v4116_v47, %v11869_v34  ;;  %v4590_v55 = vshrl.u32 %v9639_v27, %v4581_v14  ;;  %v4592_v5 = vshll.u32 %v9639_v27, %v4580_v17  ;;  %v4593_v44 = vshrl.u32 %v9640_v29, %v4581_v14 }
 0x2ab   :  { %v12129_v16 = vsub.s32 %v4404_v39, %v4407_v41  ;;  %v4582_v2 = vshrl.u32 %v9636_v21, %v4581_v14  ;;  %v4595_v3 = vshll.u32 %v9640_v29, %v4580_v17  ;;  %v4585_v43 = vor.u32 %v4584_v53, %v4583_v1 }
 0x2ac   :  { %4119 = vst [vmem:[#allocation5 + $0xa0] sm:$0xff] %v4117_v9  ;;  %v4588_v52 = vor.u32 %v4587_v19, %v4586_v35  ;;  %v4594_v61 = vor.u32 %v4593_v44, %v4592_v5  ;;  %v4596_v42 = vshrl.u32 %v9641_v38, %v4581_v14  ;;  %vm4325_vm13 = vcmp.eq.s32.totalorder %v12111_v20, 2 }
 0x2ad   :  { %v4410_v12 = vsub.s32 0, %v12129_v16  ;;  %vm4598_vm14 = vcmp.lt.s32.totalorder %v4579_v32, 1  ;;  %v12138_v51 = vmul.f32 8.182562, %v9664_v4  ;;  %vm4217_vm15 = vcmp.lt.s32.totalorder %v12122_v48, 2 }
 0x2ae   :  { %vm4218_vm0 = vcmp.eq.s32.totalorder %v12122_v48, 0  ;;  %vm4321_vm1 = vcmp.lt.s32.totalorder %v12111_v20, 2  ;;  %v4591_v28 = vor.u32 %v4590_v55, %v4589_v26  ;;  %v4597_v62 = vor.u32 %v4596_v42, %v4595_v3 }
 0x2af   :  { %vm4601_vm2 = vcmp.lt.s32.totalorder %v4579_v32, 4  ;;  %vm4214_vm3 = vweird.f32 %v11812_v30  ;;  %v9072_v11 = vmin.u32 %v4410_v12, %v12129_v16  ;;  %vm4599_vm4 = vcmp.lt.s32.totalorder %v4579_v32, 2 }
 0x2b0   :  { %vm4600_vm5 = vcmp.lt.s32.totalorder %v4579_v32, 3  ;;  %v4614_v40 = vshll.u32 %v4574_v10, 8  ;;  %vm4346_vm6 = vcmp.lt.s32.totalorder %v11896_v33, 0  ;;  %v4602_v7 = vsel %vm4598_vm14, %v4582_v2, %v4585_v43 }
 0x2b1   :  { %v4603_v0 = vsel %vm4601_vm2, %v4591_v28, 2102212464  ;;  %v4606_v36 = vsel %vm4598_vm14, %v4585_v43, %v4588_v52  ;;  %v4607_v24 = vsel %vm4601_vm2, %v4594_v61, 920167782  ;;  %vm4221_vm7 = vcmp.eq.s32.totalorder %v12122_v48, 2 }
 0x2b2   :  { %v4400_v39 = vadd.s32 %v12067_v31, %v12081_v57  ;;  %v4412_v37 = vclz %v9072_v11  ;;  %v4793_v17 = vand.u32 2139095040, %v12138_v51  ;;  %v4604_v22 = vsel %vm4600_vm5, %v4588_v52, %v4603_v0 }
 0x2b3   :  { %v4608_v15 = vsel %vm4600_vm5, %v4591_v28, %v4607_v24  ;;  %v4610_v54 = vsel %vm4598_vm14, %v4588_v52, %v4591_v28  ;;  %v4611_v50 = vsel %vm4601_vm2, %v4597_v62, 1326507024  ;;  %v4605_v49 = vsel %vm4599_vm4, %v4602_v7, %v4604_v22 }
 0x2b4   :  { %v9073_v13 = vadd.s32 4294967294, %v4412_v37  ;;  %v4609_v14 = vsel %vm4599_vm4, %v4606_v36, %v4608_v15  ;;  %v4612_v47 = vsel %vm4600_vm5, %v4594_v61, %v4611_v50  ;;  %v4430_v31 = vsub.s32 4, %v12115_v6 }
 0x2b5   :  { %v9505_v1 = vpop.eup %9504  ;;  %v4613_v57 = vsel %vm4599_vm4, %v4610_v54, %v4612_v47  ;;  %v12163_v53 = vmul.u32.u64.low %v4614_v40, %v4609_v14  ;;  %v12164_v35 = vmul.u32.u64.high %v4614_v40, %v4609_v14, %v12163_v53  ;;  %v4621_v44 = vmul.u32 %v4614_v40, %v4605_v49 }
 0x2b6   :  { %v9507_v19 = vpop.eup %9506  ;;  %v4222_v9 = vxor.u32 2147483648, %v9505_v1  ;;  %vm9074_vm8 = vcmp.lt.s32.totalorder %v9073_v13, 0  ;;  %v12167_v41 = vmul.u32.u64.low %v4614_v40, %v4613_v57  ;;  %v12168_v26 = vmul.u32.u64.high %v4614_v40, %v4613_v57, %v12167_v41 }
 0x2b7   :  { %v4219_v55 = vxor.u32 2147483648, %v9507_v19  ;;  %v4415_v5 = vsel %vm9074_vm8, 0, %v9073_v13  ;;  %v4794_v10 = vshrl.u32 %v4793_v17, 23  ;;  %v4624_v12 = vadd.s32 1, %v12164_v35 }
 0x2b8   :  { %v4223_v2 = vsel %vm4221_vm7, %v4222_v9, %v9507_v19  ;;  %v4327_v32 = vsel %vm4325_vm13, %v4222_v9, %v9507_v19  ;;  %v4416_v3 = vsub.s32 32, %v4415_v5  ;;  %v4417_v43 = vshll.u32 %v12129_v16, %v4415_v5 }
 0x2b9   :  { %v4220_v52 = vsel %vm4218_vm0, %v9505_v1, %v4219_v55  ;;  %v4324_v61 = vsel %vm4322_vm11, %v9505_v1, %v4219_v55  ;;  %v4420_v42 = vsub.s32 4294967266, %v4415_v5  ;;  %v4431_v16 = vsel %vm4346_vm6, %v4430_v31, %v12115_v6 }
 0x2ba   :  { %v4224_v28 = vsel %vm4217_vm15, %v4220_v52, %v4223_v2  ;;  %v4328_v62 = vsel %vm4321_vm1, %v4324_v61, %v4327_v32  ;;  %v4418_v11 = vshrl.u32 %v4400_v39, %v4416_v3  ;;  %vm4623_vm9 = vc.u32 %v12168_v26, %v12163_v53 }
 0x2bb   :  { %v4225_v40 = vsel %vm4214_vm3, nan, %v4224_v28  ;;  %v4329_v7 = vsel %vm4214_vm3, nan, %v4328_v62  ;;  %v4421_v0 = vadd.s32 127, %v4420_v42  ;;  %v4625_v20 = vsel %vm4623_vm9, %v4624_v12, %v12164_v35 }
 0x2bc   :  { %v4226_v48 = vmul.f32 %v4225_v40, %v12104_v59  ;;  %v4419_v36 = vor.u32 %v4418_v11, %v4417_v43  ;;  %v9087_v24 = vadd.s32 4294967169, %v4794_v10  ;;  %v4332_v39 = vmul.f32 3.0, %v12104_v59 }
 0x2bd   :  { %v4422_v37 = vshll.u32 %v4421_v0, 23  ;;  %v4626_v6 = vadd.s32 %v4625_v20, %v4621_v44  ;;  %vm12198_vm10 = vcmp.le.f32.partialorder %v4344_v8, 0.7853982  ;;  %v4790_v22 = vand.u32 2147483647, %v12138_v51 }
 0x2be   :  { %v4330_v17 = vsub.f32 %v4226_v48, %v4329_v7  ;;  %v4800_v15 = vadd.s32 1, %v9087_v24  ;;  %v4426_v50 = vcvt.s32.f32 %v4419_v36  ;;  %v4433_v13 = vsel %vm12198_vm10, 0, %v4431_v16 }
 0x2bf   :  { %v4423_v54 = vor.u32 4788187, %v4422_v37  ;;  %v4627_v49 = vadd.s32 536870912, %v4626_v6  ;;  %v4335_v47 = vmul.f32 5.0, %v12104_v59  ;;  %v4437_v35 = vadd.s32 3, %v4433_v13 }
 0x2c0   :  { %v4331_v14 = vmul.f32 %v4330_v17, %v12104_v59  ;;  %vm4801_vm12 = vcmp.gt.s32.totalorder %v4800_v15, 0  ;;  %v4797_v19 = vand.u32 8388607, %v4790_v22  ;;  %v12213_v10 = vmul.f32 0.04969733, %v9782_v56 }
 0x2c1   :  { %v4424_v1 = vand.u32 2147483647, %v4423_v54  ;;  %v12207_v31 = vshrl.u32 %v4627_v49, 30  ;;  %v4802_v8 = vsel %vm4801_vm12, %v4800_v15, 0  ;;  %v12217_v3 = vand.u32 3, %v4437_v35 }
 0x2c2   :  { %v4333_v57 = vmul.f32 %v4332_v39, %v4331_v14  ;;  %v4804_v9 = vand.u32 31, %v4802_v8  ;;  %v12219_v43 = vand.u32 3, %v4433_v13  ;;  %v4798_v52 = vor.u32 8388608, %v4797_v19 }
 0x2c3   :  { %v4427_v41 = vmul.f32 %v4426_v50, %v4424_v1  ;;  %v4629_v55 = vshll.u32 %v12207_v31, 30  ;;  %v4622_v7 = vadd.s32 %v12163_v53, %v12168_v26  ;;  %v4803_v20 = vshrl.u32 %v4802_v8, 5 }
 0x2c4   :  { %v4334_v5 = vsub.f32 %v4333_v57, %v4226_v48  ;;  %v4805_v44 = vsub.s32 32, %v4804_v9  ;;  %v4807_v12 = vshll.u32 %v9636_v21, %v4804_v9  ;;  %v4810_v16 = vshll.u32 %v9637_v23, %v4804_v9 }
 0x2c5   :  { %v4428_v2 = vxor.u32 2147483648, %v4427_v41  ;;  %v12215_v59 = vsub.s32 %v4626_v6, %v4629_v55  ;;  %v12235_v48 = vmul.f32 11.704907, %v9664_v4  ;;  %v4813_v24 = vshll.u32 %v9638_v25, %v4804_v9 }
 0x2c6   :  { %v4336_v32 = vmul.f32 %v4335_v47, %v4334_v5  ;;  %v4808_v28 = vshrl.u32 %v9637_v23, %v4805_v44  ;;  %v4811_v40 = vshrl.u32 %v9638_v25, %v4805_v44  ;;  %vm4568_vm11 = vcmp.lt.s32.totalorder %v12003_v46, 0 }
 0x2c7   :  { %v4429_v61 = vsel %vm4346_vm6, %v4428_v2, %v4427_v41  ;;  %v4632_v42 = vsub.s32 0, %v12215_v59  ;;  %v4806_v37 = vshrl.u32 %v9636_v21, %v4805_v44  ;;  %v12240_v17 = vshll.u32 %v4798_v52, 8 }
 0x2c8   :  { %v4337_v62 = vsub.f32 %v4336_v32, %v4331_v14  ;;  %v4432_v11 = vsel %vm12198_vm10, %v11896_v33, %v4429_v61  ;;  %v4809_v6 = vor.u32 %v4808_v28, %v4807_v12  ;;  %v4812_v26 = vor.u32 %v4811_v40, %v4810_v16 }
 0x2c9   :  { %9508 = vcosq.f32 %v4432_v11  ;;  %v9080_v0 = vmin.u32 %v4632_v42, %v12215_v59  ;;  %v4814_v30 = vshrl.u32 %v9639_v27, %v4805_v44  ;;  %v4816_v15 = vshll.u32 %v9639_v27, %v4804_v9 }
 0x2ca   :  { %v4338_v36 = vmul.f32 24.18962, %v4337_v62  ;;  %9510 = vsinq.f32 %v4432_v11  ;;  %v4817_v50 = vshrl.u32 %v9640_v29, %v4805_v44  ;;  %v4819_v13 = vshll.u32 %v9640_v29, %v4804_v9 }
 0x2cb   :  { %v4634_v39 = vclz %v9080_v0  ;;  %v4820_v49 = vshrl.u32 %v9641_v38, %v4805_v44  ;;  %vm4547_vm13 = vcmp.eq.s32.totalorder %v12219_v43, 2  ;;  %v4652_v14 = vsub.s32 4, %v12207_v31 }
 0x2cc   :  { %v4339_v53 = vmul.f32 %v4338_v36, %v11869_v34  ;;  %v4815_v47 = vor.u32 %v4814_v30, %v4813_v24  ;;  %vm4822_vm14 = vcmp.lt.s32.totalorder %v4803_v20, 1  ;;  %vm4823_vm15 = vcmp.lt.s32.totalorder %v4803_v20, 2 }
 0x2cd   :  { %v9081_v54 = vadd.s32 4294967294, %v4634_v39  ;;  %vm4544_vm0 = vcmp.eq.s32.totalorder %v12219_v43, 0  ;;  %vm12253_vm1 = vcmp.le.f32.partialorder %v4566_v45, 0.7853982  ;;  %v4818_v8 = vor.u32 %v4817_v50, %v4816_v15 }
 0x2ce   :  { %4341 = vst [vmem:[#allocation5 + $0xa8] sm:$0xff] %v4339_v53  ;;  %v4821_v57 = vor.u32 %v4820_v49, %v4819_v13  ;;  %vm4825_vm3 = vcmp.lt.s32.totalorder %v4803_v20, 4  ;;  %vm4543_vm4 = vcmp.lt.s32.totalorder %v12219_v43, 2  ;;  %vm4824_vm5 = vcmp.lt.s32.totalorder %v4803_v20, 3 }
 0x2cf   :  { %vm9082_vm2 = vcmp.lt.s32.totalorder %v9081_v54, 0  ;;  %v4826_v19 = vsel %vm4822_vm14, %v4806_v37, %v4809_v6  ;;  %v4827_v9 = vsel %vm4825_vm3, %v4815_v47, 2102212464  ;;  %vm4436_vm6 = vweird.f32 %v11896_v33 }
 0x2d0   :  { %v4637_v35 = vsel %vm9082_vm2, 0, %v9081_v54  ;;  %v4830_v5 = vsel %vm4822_vm14, %v4809_v6, %v4812_v26  ;;  %v4828_v44 = vsel %vm4824_vm5, %v4812_v26, %v4827_v9  ;;  %v4831_v2 = vsel %vm4825_vm3, %v4818_v8, 920167782 }
 0x2d1   :  { %v4638_v41 = vsub.s32 32, %v4637_v35  ;;  %v4639_v55 = vshll.u32 %v12215_v59, %v4637_v35  ;;  %v4642_v45 = vsub.s32 4294967266, %v4637_v35  ;;  %v4834_v32 = vsel %vm4822_vm14, %v4812_v26, %v4815_v47 }
 0x2d2   :  { %v4835_v52 = vsel %vm4825_vm3, %v4821_v57, 1326507024  ;;  %v4832_v12 = vsel %vm4824_vm5, %v4815_v47, %v4831_v2  ;;  %vm4443_vm7 = vcmp.eq.s32.totalorder %v12217_v3, 2  ;;  %v4653_v62 = vsel %vm4568_vm11, %v4652_v14, %v12207_v31 }
 0x2d3   :  { %v4640_v61 = vshrl.u32 %v4622_v7, %v4638_v41  ;;  %v4643_v42 = vadd.s32 127, %v4642_v45  ;;  %v4836_v28 = vsel %vm4824_vm5, %v4818_v8, %v4835_v52  ;;  %v4833_v59 = vsel %vm4823_vm15, %v4830_v5, %v4832_v12 }
 0x2d4   :  { %v4837_v11 = vsel %vm4823_vm15, %v4834_v32, %v4836_v28  ;;  %v4829_v24 = vsel %vm4823_vm15, %v4826_v19, %v4828_v44  ;;  %v12275_v39 = vmul.u32.u64.low %v12240_v17, %v4833_v59  ;;  %v12276_v37 = vmul.u32.u64.high %v12240_v17, %v4833_v59, %v12275_v39 }
 0x2d5   :  { %v4641_v16 = vor.u32 %v4640_v61, %v4639_v55  ;;  %v4644_v40 = vshll.u32 %v4643_v42, 23  ;;  %v12270_v0 = vmul.u32.u64.low %v12240_v17, %v4837_v11  ;;  %v12271_v36 = vmul.u32.u64.high %v12240_v17, %v4837_v11, %v12270_v0 }
 0x2d6   :  { %v9509_v7 = vpop.eup %9508  ;;  %v5018_v31 = vand.u32 2139095040, %v12235_v48  ;;  %vm4440_vm8 = vcmp.eq.s32.totalorder %v12217_v3, 0  ;;  %vm4439_vm9 = vcmp.lt.s32.totalorder %v12217_v3, 2  ;;  %v4655_v20 = vsel %vm12253_vm1, 0, %v4653_v62 }
 0x2d7   :  { %v9511_v6 = vpop.eup %9510  ;;  %v4444_v53 = vxor.u32 2147483648, %v9509_v7  ;;  %v4645_v26 = vor.u32 4788187, %v4644_v40  ;;  %v4648_v30 = vcvt.s32.f32 %v4641_v16  ;;  %v4845_v14 = vmul.u32 %v12240_v17, %v4829_v24 }
 0x2d8   :  { %v4441_v15 = vxor.u32 2147483648, %v9511_v6  ;;  %v5019_v54 = vshrl.u32 %v5018_v31, 23  ;;  %vm4847_vm10 = vc.u32 %v12271_v36, %v12275_v39  ;;  %v4848_v57 = vadd.s32 1, %v12276_v37 }
 0x2d9   :  { %v4445_v50 = vsel %vm4443_vm7, %v4444_v53, %v9511_v6  ;;  %v4549_v13 = vsel %vm4547_vm13, %v4444_v53, %v9511_v6  ;;  %v4646_v49 = vand.u32 2147483647, %v4645_v26  ;;  %v5015_v45 = vand.u32 2147483647, %v12235_v48 }
 0x2da   :  { %v4442_v47 = vsel %vm4440_vm8, %v9509_v7, %v4441_v15  ;;  %v4546_v8 = vsel %vm4544_vm0, %v9509_v7, %v4441_v15  ;;  %v9095_v9 = vadd.s32 4294967169, %v5019_v54  ;;  %v4849_v55 = vsel %vm4847_vm10, %v4848_v57, %v12276_v37 }
 0x2db   :  { %v4446_v35 = vsel %vm4439_vm9, %v4442_v47, %v4445_v50  ;;  %v4550_v3 = vsel %vm4543_vm4, %v4546_v8, %v4549_v13  ;;  %v4649_v19 = vmul.f32 %v4648_v30, %v4646_v49  ;;  %v4850_v2 = vadd.s32 %v4849_v55, %v4845_v14 }
 0x2dc   :  { %v4447_v41 = vsel %vm4436_vm6, nan, %v4446_v35  ;;  %v4551_v17 = vsel %vm4436_vm6, nan, %v4550_v3  ;;  %v5025_v32 = vadd.s32 1, %v9095_v9  ;;  %v4554_v43 = vmul.f32 3.0, %v12213_v10 }
 0x2dd   :  { %v4448_v5 = vmul.f32 %v4447_v41, %v12213_v10  ;;  %v4650_v44 = vxor.u32 2147483648, %v4649_v19  ;;  %v4659_v52 = vadd.s32 3, %v4655_v20  ;;  %v4851_v12 = vadd.s32 536870912, %v4850_v2 }
 0x2de   :  { %vm5026_vm12 = vcmp.gt.s32.totalorder %v5025_v32, 0  ;;  %v157_v33 = vmul.f32 7.0, %v10332_v58  ;;  %v5022_v16 = vand.u32 8388607, %v5015_v45  ;;  %v12317_v0 = vand.u32 3, %v4655_v20 }
 0x2df   :  { %v4552_v61 = vsub.f32 %v4448_v5, %v4551_v17  ;;  %v4651_v42 = vsel %vm4568_vm11, %v4650_v44, %v4649_v19  ;;  %v5027_v62 = vsel %vm5026_vm12, %v5025_v32, 0  ;;  %v12311_v11 = vshrl.u32 %v4851_v12, 30 }
 0x2e0   :  { %v4654_v28 = vsel %vm12253_vm1, %v12003_v46, %v4651_v42  ;;  %v12315_v40 = vand.u32 3, %v4659_v52  ;;  %v5029_v7 = vand.u32 31, %v5027_v62  ;;  %v4557_v37 = vmul.f32 5.0, %v12213_v10 }
 0x2e1   :  { %v4553_v59 = vmul.f32 %v4552_v61, %v12213_v10  ;;  %9512 = vcosq.f32 %v4654_v28  ;;  %v4853_v1 = vshll.u32 %v12311_v11, 30  ;;  %v12322_v31 = vmul.f32 %v157_v33, %v11756_v63 }
 0x2e2   :  { %9514 = vsinq.f32 %v4654_v28  ;;  %v12325_v6 = vmul.f32 3.0, %v11066_v60  ;;  %v5030_v53 = vsub.s32 32, %v5029_v7  ;;  %v12328_v30 = vmul.f32 0.04291063, %v9782_v56 }
 0x2e3   :  { %v4555_v24 = vmul.f32 %v4554_v43, %v4553_v59  ;;  %v12330_v15 = vsub.s32 %v4850_v2, %v4853_v1  ;;  %v5023_v20 = vor.u32 8388608, %v5022_v16  ;;  %vm4665_vm11 = vcmp.eq.s32.totalorder %v12315_v40, 2 }
 0x2e4   :  { %vm4769_vm13 = vcmp.eq.s32.totalorder %v12317_v0, 2  ;;  %v5032_v10 = vshll.u32 %v9636_v21, %v5029_v7  ;;  %v5033_v54 = vshrl.u32 %v9637_v23, %v5030_v53  ;;  %v5035_v50 = vshll.u32 %v9637_v23, %v5029_v7 }
 0x2e5   :  { %v4556_v26 = vsub.f32 %v4555_v24, %v4448_v5  ;;  %vm4662_vm14 = vcmp.eq.s32.totalorder %v12315_v40, 0  ;;  %vm4766_vm15 = vcmp.eq.s32.totalorder %v12317_v0, 0  ;;  %v4856_v13 = vsub.s32 0, %v12330_v15 }
 0x2e6   :  { %v5036_v49 = vshrl.u32 %v9638_v25, %v5030_v53  ;;  %v5041_v14 = vshll.u32 %v9639_v27, %v5029_v7  ;;  %vm4661_vm0 = vcmp.lt.s32.totalorder %v12315_v40, 2  ;;  %vm4765_vm1 = vcmp.lt.s32.totalorder %v12317_v0, 2 }
 0x2e7   :  { %v4558_v60 = vmul.f32 %v4557_v37, %v4556_v26  ;;  %v12344_v47 = vshrl.u32 %v5027_v62, 5  ;;  %v5038_v8 = vshll.u32 %v9638_v25, %v5029_v7  ;;  %v5039_v57 = vshrl.u32 %v9639_v27, %v5030_v53 }
 0x2e8   :  { %v5042_v35 = vshrl.u32 %v9640_v29, %v5030_v53  ;;  %vm4658_vm2 = vweird.f32 %v12003_v46  ;;  %v4846_v19 = vadd.s32 %v12275_v39, %v12271_v36  ;;  %v9088_v9 = vmin.u32 %v4856_v13, %v12330_v15 }
 0x2e9   :  { %v4559_v3 = vsub.f32 %v4558_v60, %v4553_v59  ;;  %v12353_v41 = vshll.u32 %v5023_v20, 8  ;;  %v4876_v17 = vsub.s32 4, %v12311_v11  ;;  %v5031_v55 = vshrl.u32 %v9636_v21, %v5030_v53 }
 0x2ea   :  { %v5034_v5 = vor.u32 %v5033_v54, %v5032_v10  ;;  %v12358_v44 = vmul.f32 15.039664, %v9664_v4  ;;  %v4858_v32 = vclz %v9088_v9  ;;  %v5037_v43 = vor.u32 %v5036_v49, %v5035_v50 }
 0x2eb   :  { %v4560_v2 = vmul.f32 28.670528, %v4559_v3  ;;  %v5043_v52 = vor.u32 %v5042_v35, %v5041_v14  ;;  %v5040_v61 = vor.u32 %v5039_v57, %v5038_v8  ;;  %v5044_v42 = vshll.u32 %v9640_v29, %v5029_v7 }
 0x2ec   :  { %v5045_v36 = vshrl.u32 %v9641_v38, %v5030_v53  ;;  %vm5047_vm3 = vcmp.lt.s32.totalorder %v12344_v47, 1  ;;  %v9089_v12 = vadd.s32 4294967294, %v4858_v32  ;;  %vm5049_vm4 = vcmp.lt.s32.totalorder %v12344_v47, 3 }
 0x2ed   :  { %v4561_v39 = vmul.f32 %v4560_v2, %v11869_v34  ;;  %vm5050_vm5 = vcmp.lt.s32.totalorder %v12344_v47, 4  ;;  %vm5048_vm6 = vcmp.lt.s32.totalorder %v12344_v47, 2  ;;  %v5051_v62 = vsel %vm5047_vm3, %v5031_v55, %v5034_v5 }
 0x2ee   :  { %v9513_v33 = vpop.eup %9512  ;;  %v5046_v28 = vor.u32 %v5045_v36, %v5044_v42  ;;  %v5052_v59 = vsel %vm5050_vm5, %v5040_v61, 2102212464  ;;  %vm9090_vm7 = vcmp.lt.s32.totalorder %v9089_v12, 0  ;;  %v5055_v24 = vsel %vm5047_vm3, %v5034_v5, %v5037_v43 }
 0x2ef   :  { %v9515_v16 = vpop.eup %9514  ;;  %4563 = vst [vmem:[#allocation5 + $0xb0] sm:$0xff] %v4561_v39  ;;  %v4666_v7 = vxor.u32 2147483648, %v9513_v33  ;;  %v5056_v37 = vsel %vm5050_vm5, %v5043_v52, 920167782  ;;  %v4861_v53 = vsel %vm9090_vm7, 0, %v9089_v12  ;;  %v5053_v26 = vsel %vm5049_vm4, %v5037_v43, %v5052_v59 }
 0x2f0   :  { %v4663_v1 = vxor.u32 2147483648, %v9515_v16  ;;  %v5057_v20 = vsel %vm5049_vm4, %v5040_v61, %v5056_v37  ;;  %v4862_v50 = vsub.s32 32, %v4861_v53  ;;  %v4863_v60 = vshll.u32 %v12330_v15, %v4861_v53 }
 0x2f1   :  { %v4667_v10 = vsel %vm4665_vm11, %v4666_v7, %v9515_v16  ;;  %v4771_v54 = vsel %vm4769_vm13, %v4666_v7, %v9515_v16  ;;  %v4866_v14 = vsub.s32 4294967266, %v4861_v53  ;;  %v5058_v8 = vsel %vm5048_vm6, %v5055_v24, %v5057_v20 }
 0x2f2   :  { %v4664_v13 = vsel %vm4662_vm14, %v9513_v33, %v4663_v1  ;;  %v4768_v49 = vsel %vm4766_vm15, %v9513_v33, %v4663_v1  ;;  %v4864_v3 = vshrl.u32 %v4846_v19, %v4862_v50  ;;  %v5059_v15 = vsel %vm5047_vm3, %v5037_v43, %v5040_v61 }
 0x2f3   :  { %v4668_v57 = vsel %vm4661_vm0, %v4664_v13, %v4667_v10  ;;  %v4772_v35 = vsel %vm4765_vm1, %v4768_v49, %v4771_v54  ;;  %v4867_v5 = vadd.s32 127, %v4866_v14  ;;  %v5060_v2 = vsel %vm5050_vm5, %v5046_v28, 1326507024 }
 0x2f4   :  { %v4669_v9 = vsel %vm4658_vm2, nan, %v4668_v57  ;;  %v4773_v55 = vsel %vm4658_vm2, nan, %v4772_v35  ;;  %v4865_v32 = vor.u32 %v4864_v3, %v4863_v60  ;;  %v5054_v0 = vsel %vm5048_vm6, %v5051_v62, %v5053_v26 }
 0x2f5   :  { %v4670_v40 = vmul.f32 %v4669_v9, %v12328_v30  ;;  %v5061_v19 = vsel %vm5049_vm4, %v5043_v52, %v5060_v2  ;;  %v4868_v43 = vshll.u32 %v4867_v5, 23  ;;  %v4776_v39 = vmul.f32 3.0, %v12328_v30 }
 0x2f6   :  { %v5062_v61 = vsel %vm5048_vm6, %v5059_v15, %v5061_v19  ;;  %v12410_v46 = vmul.u32.u64.low %v12353_v41, %v5058_v8  ;;  %v12411_v42 = vmul.u32.u64.high %v12353_v41, %v5058_v8, %v12410_v46  ;;  %v4872_v62 = vcvt.s32.f32 %v4865_v32 }
 0x2f7   :  { %v4774_v36 = vsub.f32 %v4670_v40, %v4773_v55  ;;  %v12416_v12 = vmul.u32.u64.low %v12353_v41, %v5062_v61  ;;  %v12417_v33 = vmul.u32.u64.high %v12353_v41, %v5062_v61, %v12416_v12  ;;  %v4869_v28 = vor.u32 4788187, %v4868_v43 }
 0x2f8   :  { %v5243_v52 = vand.u32 2139095040, %v12358_v44  ;;  %v160_v47 = vsub.f32 %v12322_v31, %v12325_v6  ;;  %vm4792_vm8 = vcmp.lt.s32.totalorder %v12138_v51, 0  ;;  %v5070_v16 = vmul.u32 %v12353_v41, %v5054_v0 }
 0x2f9   :  { %v4775_v59 = vmul.f32 %v4774_v36, %v12328_v30  ;;  %v4870_v7 = vand.u32 2147483647, %v4869_v28  ;;  %v4877_v24 = vsel %vm4792_vm8, %v4876_v17, %v12311_v11  ;;  %v5073_v37 = vadd.s32 1, %v12411_v42 }
 0x2fa   :  { %v5244_v1 = vshrl.u32 %v5243_v52, 23  ;;  %v4779_v26 = vmul.f32 5.0, %v12328_v30  ;;  %vm12434_vm9 = vcmp.le.f32.partialorder %v4790_v22, 0.7853982  ;;  %vm5072_vm10 = vc.u32 %v12417_v33, %v12410_v46 }
 0x2fb   :  { %v4777_v53 = vmul.f32 %v4776_v39, %v4775_v59  ;;  %v4873_v6 = vmul.f32 %v4872_v62, %v4870_v7  ;;  %v5074_v41 = vsel %vm5072_vm10, %v5073_v37, %v12411_v42  ;;  %v5240_v11 = vand.u32 2147483647, %v12358_v44 }
 0x2fc   :  { %v9103_v17 = vadd.s32 4294967169, %v5244_v1  ;;  %v4879_v10 = vsel %vm12434_vm9, 0, %v4877_v24  ;;  %v5075_v30 = vadd.s32 %v5074_v41, %v5070_v16  ;;  %v12444_v22 = vmul.f32 0.25, %v160_v47 }
 0x2fd   :  { %v4778_v20 = vsub.f32 %v4777_v53, %v4670_v40  ;;  %v4874_v54 = vxor.u32 2147483648, %v4873_v6  ;;  %v12447_v49 = vmul.f32 18.301256, %v9664_v4  ;;  %v4883_v8 = vadd.s32 3, %v4879_v10 }
 0x2fe   :  { %v5250_v50 = vadd.s32 1, %v9103_v17  ;;  %v5076_v13 = vadd.s32 536870912, %v5075_v30  ;;  %v5247_v57 = vand.u32 8388607, %v5240_v11  ;;  %v12459_v55 = vmul.f32 0.8462844, %v12444_v22 }
 0x2ff   :  { %v4780_v60 = vmul.f32 %v4779_v26, %v4778_v20  ;;  %v4875_v14 = vsel %vm4792_vm8, %v4874_v54, %v4873_v6  ;;  %v5468_v32 = vand.u32 2139095040, %v12447_v49  ;;  %v12464_v0 = vmul.f32 0.12221112, %v9782_v56 }
 0x300   :  { %vm5251_vm12 = vcmp.gt.s32.totalorder %v5250_v50, 0  ;;  %v4878_v3 = vsel %vm12434_vm9, %v12138_v51, %v4875_v14  ;;  %v12456_v15 = vshrl.u32 %v5076_v13, 30  ;;  %v12466_v19 = vand.u32 3, %v4883_v8 }
 0x301   :  { %v4781_v35 = vsub.f32 %v4780_v60, %v4775_v59  ;;  %v5252_v9 = vsel %vm5251_vm12, %v5250_v50, 0  ;;  %9516 = vcosq.f32 %v4878_v3  ;;  %v12468_v43 = vand.u32 3, %v4879_v10 }
 0x302   :  { %v5254_v5 = vand.u32 31, %v5252_v9  ;;  %9518 = vsinq.f32 %v4878_v3  ;;  %v5078_v40 = vshll.u32 %v12456_v15, 30  ;;  %v5248_v39 = vor.u32 8388608, %v5247_v57 }
 0x303   :  { %v4782_v2 = vmul.f32 33.14126, %v4781_v35  ;;  %v5469_v7 = vshrl.u32 %v5468_v32, 23  ;;  %vm4990_vm11 = vcmp.eq.s32.totalorder %v12468_v43, 0  ;;  %vm4993_vm13 = vcmp.eq.s32.totalorder %v12468_v43, 2 }
 0x304   :  { %v5255_v61 = vsub.s32 32, %v5254_v5  ;;  %v12471_v36 = vsub.s32 %v5075_v30, %v5078_v40  ;;  %v5257_v12 = vshll.u32 %v9636_v21, %v5254_v5  ;;  %v5260_v62 = vshll.u32 %v9637_v23, %v5254_v5 }
 0x305   :  { %v4783_v42 = vmul.f32 %v4782_v2, %v11869_v34  ;;  %v5266_v47 = vshll.u32 %v9639_v27, %v5254_v5  ;;  %v5263_v16 = vshll.u32 %v9638_v25, %v5254_v5  ;;  %v5253_v24 = vshrl.u32 %v5252_v9, 5 }
 0x306   :  { %v5258_v28 = vshrl.u32 %v9637_v23, %v5255_v61  ;;  %v5261_v52 = vshrl.u32 %v9638_v25, %v5255_v61  ;;  %v5081_v59 = vsub.s32 0, %v12471_v36  ;;  %v5264_v34 = vshrl.u32 %v9639_v27, %v5255_v61 }
 0x307   :  { %4785 = vst [vmem:[#allocation5 + $0xb8] sm:$0xff] %v4783_v42  ;;  %v5267_v37 = vshrl.u32 %v9640_v29, %v5255_v61  ;;  %v5269_v1 = vshll.u32 %v9640_v29, %v5254_v5  ;;  %vm4885_vm14 = vcmp.lt.s32.totalorder %v12466_v19, 2  ;;  %vm4886_vm15 = vcmp.eq.s32.totalorder %v12466_v19, 0 }
 0x308   :  { %vm4889_vm0 = vcmp.eq.s32.totalorder %v12466_v19, 2  ;;  %vm4989_vm1 = vcmp.lt.s32.totalorder %v12468_v43, 2  ;;  %v5071_v53 = vadd.s32 %v12410_v46, %v12417_v33  ;;  %v9096_v26 = vmin.u32 %v5081_v59, %v12471_v36 }
 0x309   :  { %vm4882_vm2 = vweird.f32 %v12138_v51  ;;  %v5259_v31 = vor.u32 %v5258_v28, %v5257_v12  ;;  %v5262_v6 = vor.u32 %v5261_v52, %v5260_v62  ;;  %v5268_v41 = vor.u32 %v5267_v37, %v5266_v47 }
 0x30a   :  { %v5270_v17 = vshrl.u32 %v9641_v38, %v5255_v61  ;;  %v5083_v20 = vclz %v9096_v26  ;;  %v5265_v10 = vor.u32 %v5264_v34, %v5263_v16  ;;  %v12494_v30 = vshll.u32 %v5248_v39, 8 }
 0x30b   :  { %v9111_v54 = vadd.s32 4294967169, %v5469_v7  ;;  %v5256_v50 = vshrl.u32 %v9636_v21, %v5255_v61  ;;  %vm5272_vm3 = vcmp.lt.s32.totalorder %v5253_v24, 1  ;;  %vm5274_vm4 = vcmp.lt.s32.totalorder %v5253_v24, 3 }
 0x30c   :  { %v5271_v60 = vor.u32 %v5270_v17, %v5269_v1  ;;  %v9097_v46 = vadd.s32 4294967294, %v5083_v20  ;;  %v5101_v33 = vsub.s32 4, %v12456_v15  ;;  %vm5273_vm5 = vcmp.lt.s32.totalorder %v5253_v24, 2 }
 0x30d   :  { %vm5275_vm6 = vcmp.lt.s32.totalorder %v5253_v24, 4  ;;  %v5280_v14 = vsel %vm5272_vm3, %v5259_v31, %v5262_v6  ;;  %v5284_v9 = vsel %vm5272_vm3, %v5262_v6, %v5265_v10  ;;  %v5276_v61 = vsel %vm5272_vm3, %v5256_v50, %v5259_v31 }
 0x30e   :  { %v5277_v13 = vsel %vm5275_vm6, %v5265_v10, 2102212464  ;;  %v5281_v8 = vsel %vm5275_vm6, %v5268_v41, 920167782  ;;  %v5285_v57 = vsel %vm5275_vm6, %v5271_v60, 1326507024  ;;  %v9517_v35 = vpop.eup %9516  ;;  %v12536_v60 = vmul.f32 %v12459_v55, %v9819_v18 }
 0x30f   :  { %vm9098_vm7 = vcmp.lt.s32.totalorder %v9097_v46, 0  ;;  %v5282_v3 = vsel %vm5274_vm4, %v5265_v10, %v5281_v8  ;;  %v5286_v5 = vsel %vm5274_vm4, %v5268_v41, %v5285_v57  ;;  %v9519_v2 = vpop.eup %9518  ;;  %v4890_v40 = vxor.u32 2147483648, %v9517_v35 }
 0x310   :  { %v5086_v32 = vsel %vm9098_vm7, 0, %v9097_v46  ;;  %v5278_v42 = vsel %vm5274_vm4, %v5262_v6, %v5277_v13  ;;  %v4887_v39 = vxor.u32 2147483648, %v9519_v2  ;;  %v5283_v59 = vsel %vm5273_vm5, %v5280_v14, %v5282_v3 }
 0x311   :  { %v5087_v12 = vsub.s32 32, %v5086_v32  ;;  %v5088_v28 = vshll.u32 %v12471_v36, %v5086_v32  ;;  %v5091_v62 = vsub.s32 4294967266, %v5086_v32  ;;  %v4891_v52 = vsel %vm4889_vm0, %v4890_v40, %v9519_v2 }
 0x312   :  { %v4995_v47 = vsel %vm4993_vm13, %v4890_v40, %v9519_v2  ;;  %v5287_v16 = vsel %vm5273_vm5, %v5284_v9, %v5286_v5  ;;  %v4888_v34 = vsel %vm4886_vm15, %v9517_v35, %v4887_v39  ;;  %v4992_v7 = vsel %vm4990_vm11, %v9517_v35, %v4887_v39 }
 0x313   :  { %v5089_v37 = vshrl.u32 %v5071_v53, %v5087_v12  ;;  %v5092_v1 = vadd.s32 127, %v5091_v62  ;;  %v4892_v36 = vsel %vm4885_vm14, %v4888_v34, %v4891_v52  ;;  %v4996_v26 = vsel %vm4989_vm1, %v4992_v7, %v4995_v47 }
 0x314   :  { %v12520_v31 = vmul.u32.u64.low %v12494_v30, %v5287_v16  ;;  %v12521_v6 = vmul.u32.u64.high %v12494_v30, %v5287_v16, %v12520_v31  ;;  %v4893_v41 = vsel %vm4882_vm2, nan, %v4892_v36  ;;  %v4997_v17 = vsel %vm4882_vm2, nan, %v4996_v26 }
 0x315   :  { %v5090_v20 = vor.u32 %v5089_v37, %v5088_v28  ;;  %v5093_v10 = vshll.u32 %v5092_v1, 23  ;;  %v4894_v53 = vmul.f32 %v4893_v41, %v12464_v0  ;;  %v5279_v19 = vsel %vm5273_vm5, %v5276_v61, %v5278_v42 }
 0x316   :  { %v12530_v50 = vmul.u32.u64.low %v12494_v30, %v5283_v59  ;;  %v12531_v43 = vmul.u32.u64.high %v12494_v30, %v5283_v59, %v12530_v50  ;;  %v5475_v14 = vadd.s32 1, %v9111_v54  ;;  %v5000_v8 = vmul.f32 3.0, %v12464_v0 }
 0x317   :  { %v5094_v46 = vor.u32 4788187, %v5093_v10  ;;  %v5097_v13 = vcvt.s32.f32 %v5090_v20  ;;  %v4998_v51 = vsub.f32 %v4894_v53, %v4997_v17  ;;  %vm5017_vm8 = vcmp.lt.s32.totalorder %v12235_v48, 0 }
 0x318   :  { %v5465_v24 = vand.u32 2147483647, %v12447_v49  ;;  %v5295_v35 = vmul.u32 %v12494_v30, %v5279_v19  ;;  %vm5297_vm9 = vc.u32 %v12521_v6, %v12530_v50  ;;  %vm5476_vm10 = vcmp.gt.s32.totalorder %v5475_v14, 0 }
 0x319   :  { %v5095_v57 = vand.u32 2147483647, %v5094_v46  ;;  %v4999_v55 = vmul.f32 %v4998_v51, %v12464_v0  ;;  %v5102_v54 = vsel %vm5017_vm8, %v5101_v33, %v12456_v15  ;;  %v5298_v3 = vadd.s32 1, %v12531_v43 }
 0x31a   :  { %v5477_v9 = vsel %vm5476_vm10, %v5475_v14, 0  ;;  %v5003_v5 = vmul.f32 5.0, %v12464_v0  ;;  %v5006_v2 = vmul.f32 7.0, %v12464_v0  ;;  %vm12553_vm12 = vcmp.le.f32.partialorder %v5015_v45, 0.7853982 }
 0x31b   :  { %v5098_v40 = vmul.f32 %v5097_v13, %v5095_v57  ;;  %v5479_v32 = vand.u32 31, %v5477_v9  ;;  %v5001_v30 = vmul.f32 %v5000_v8, %v4999_v55  ;;  %v5299_v42 = vsel %vm5297_vm9, %v5298_v3, %v12531_v43 }
 0x31c   :  { %v5472_v15 = vand.u32 8388607, %v5465_v24  ;;  %v5104_v39 = vsel %vm12553_vm12, 0, %v5102_v54  ;;  %v5300_v12 = vadd.s32 %v5299_v42, %v5295_v35  ;;  %v12562_v62 = vshrl.u32 %v5477_v9, 5 }
 0x31d   :  { %v5099_v33 = vxor.u32 2147483648, %v5098_v40  ;;  %v5480_v0 = vsub.s32 32, %v5479_v32  ;;  %v5002_v28 = vsub.f32 %v5001_v30, %v4894_v53  ;;  %v5482_v52 = vshll.u32 %v9636_v21, %v5479_v32 }
 0x31e   :  { %v5485_v45 = vshll.u32 %v9637_v23, %v5479_v32  ;;  %v5301_v59 = vadd.s32 536870912, %v5300_v12  ;;  %v5488_v34 = vshll.u32 %v9638_v25, %v5479_v32  ;;  %v5491_v36 = vshll.u32 %v9639_v27, %v5479_v32 }
 0x31f   :  { %v5100_v47 = vsel %vm5017_vm8, %v5099_v33, %v5098_v40  ;;  %v5483_v16 = vshrl.u32 %v9637_v23, %v5480_v0  ;;  %v5004_v7 = vmul.f32 %v5003_v5, %v5002_v28  ;;  %v5486_v1 = vshrl.u32 %v9638_v25, %v5480_v0 }
 0x320   :  { %v5103_v37 = vsel %vm12553_vm12, %v12235_v48, %v5100_v47  ;;  %v12575_v26 = vshrl.u32 %v5301_v59, 30  ;;  %v5489_v31 = vshrl.u32 %v9639_v27, %v5480_v0  ;;  %v5492_v41 = vshrl.u32 %v9640_v29, %v5480_v0 }
 0x321   :  { %9520 = vcosq.f32 %v5103_v37  ;;  %v5005_v17 = vsub.f32 %v5004_v7, %v4999_v55  ;;  %v5108_v20 = vadd.s32 3, %v5104_v39  ;;  %v12579_v10 = vand.u32 3, %v5104_v39 }
 0x322   :  { %9522 = vsinq.f32 %v5103_v37  ;;  %v5303_v53 = vshll.u32 %v12575_v26, 30  ;;  %v5473_v19 = vor.u32 8388608, %v5472_v15  ;;  %v5481_v43 = vshrl.u32 %v9636_v21, %v5480_v0 }
 0x323   :  { %v5484_v46 = vor.u32 %v5483_v16, %v5482_v52  ;;  %v5007_v13 = vmul.f32 %v5006_v2, %v5005_v17  ;;  %v5493_v14 = vor.u32 %v5492_v41, %v5491_v36  ;;  %v5494_v51 = vshll.u32 %v9640_v29, %v5479_v32 }
 0x324   :  { %v5495_v8 = vshrl.u32 %v9641_v38, %v5480_v0  ;;  %v12585_v57 = vsub.s32 %v5300_v12, %v5303_v53  ;;  %v5487_v35 = vor.u32 %v5486_v1, %v5485_v45  ;;  %v5490_v55 = vor.u32 %v5489_v31, %v5488_v34 }
 0x325   :  { %vm5500_vm11 = vcmp.lt.s32.totalorder %v12562_v62, 4  ;;  %v5008_v54 = vsub.f32 %v5007_v13, %v5002_v28  ;;  %v12589_v3 = vmul.f32 0.08543425, %v9782_v56  ;;  %v5109_v9 = vand.u32 3, %v5108_v20 }
 0x326   :  { %vm5497_vm13 = vcmp.lt.s32.totalorder %v12562_v62, 1  ;;  %vm5215_vm14 = vcmp.eq.s32.totalorder %v12579_v10, 0  ;;  %v5306_v5 = vsub.s32 0, %v12585_v57  ;;  %vm5499_vm15 = vcmp.lt.s32.totalorder %v12562_v62, 3 }
 0x327   :  { %v5502_v2 = vsel %vm5500_vm11, %v5490_v55, 2102212464  ;;  %v12597_v40 = vshll.u32 %v5473_v19, 8  ;;  %v5009_v32 = vmul.f32 12.598308, %v5008_v54  ;;  %vm5214_vm0 = vcmp.lt.s32.totalorder %v12579_v10, 2 }
 0x328   :  { %v5496_v30 = vor.u32 %v5495_v8, %v5494_v51  ;;  %vm5498_vm1 = vcmp.lt.s32.totalorder %v12562_v62, 2  ;;  %v5506_v61 = vsel %vm5500_vm11, %v5493_v14, 920167782  ;;  %vm5107_vm2 = vweird.f32 %v12235_v48 }
 0x329   :  { %v9104_v42 = vmin.u32 %v5306_v5, %v12585_v57  ;;  %v5501_v15 = vsel %vm5497_vm13, %v5481_v43, %v5484_v46  ;;  %v5503_v33 = vsel %vm5499_vm15, %v5487_v35, %v5502_v2  ;;  %v5505_v39 = vsel %vm5497_vm13, %v5484_v46, %v5487_v35 }
 0x32a   :  { %v5010_v12 = vmul.f32 %v5009_v32, %v12536_v60  ;;  %vm5218_vm3 = vcmp.eq.s32.totalorder %v12579_v10, 2  ;;  %vm5242_vm4 = vcmp.lt.s32.totalorder %v12358_v44, 0  ;;  %v5507_v0 = vsel %vm5499_vm15, %v5490_v55, %v5506_v61 }
 0x32b   :  { %v12617_v28 = vmul.f32 21.525417, %v9664_v4  ;;  %vm5110_vm5 = vcmp.lt.s32.totalorder %v5109_v9, 2  ;;  %vm5111_vm6 = vcmp.eq.s32.totalorder %v5109_v9, 0  ;;  %vm5114_vm7 = vcmp.eq.s32.totalorder %v5109_v9, 2 }
 0x32c   :  { %v5308_v52 = vclz %v9104_v42  ;;  %5012 = vst [vmem:[#allocation5 + $0xc0] sm:$0xff] %v5010_v12  ;;  %v5504_v45 = vsel %vm5498_vm1, %v5501_v15, %v5503_v33  ;;  %v5508_v47 = vsel %vm5498_vm1, %v5505_v39, %v5507_v0  ;;  %v5509_v59 = vsel %vm5497_vm13, %v5487_v35, %v5490_v55 }
 0x32d   :  { %v5510_v16 = vsel %vm5500_vm11, %v5496_v30, 1326507024  ;;  %v12630_v37 = vmul.u32.u64.low %v12597_v40, %v5508_v47  ;;  %v12631_v1 = vmul.u32.u64.high %v12597_v40, %v5508_v47, %v12630_v37  ;;  %v5296_v31 = vadd.s32 %v12530_v50, %v12521_v6 }
 0x32e   :  { %v9105_v34 = vadd.s32 4294967294, %v5308_v52  ;;  %v5511_v7 = vsel %vm5499_vm15, %v5493_v14, %v5510_v16  ;;  %v9521_v36 = vpop.eup %9520  ;;  %v5326_v41 = vsub.s32 4, %v12575_v26  ;;  %v5693_v20 = vand.u32 2139095040, %v12617_v28 }
 0x32f   :  { %v5512_v17 = vsel %vm5498_vm1, %v5509_v59, %v5511_v7  ;;  %v9523_v53 = vpop.eup %9522  ;;  %v5115_v19 = vxor.u32 2147483648, %v9521_v36  ;;  %v5520_v51 = vmul.u32 %v12597_v40, %v5504_v45  ;;  %v5523_v2 = vadd.s32 1, %v12631_v1 }
 0x330   :  { %vm9106_vm8 = vcmp.lt.s32.totalorder %v9105_v34, 0  ;;  %v12641_v43 = vmul.u32.u64.low %v12597_v40, %v5512_v17  ;;  %v12642_v46 = vmul.u32.u64.high %v12597_v40, %v5512_v17, %v12641_v43  ;;  %v5112_v13 = vxor.u32 2147483648, %v9523_v53 }
 0x331   :  { %v5311_v14 = vsel %vm9106_vm8, 0, %v9105_v34  ;;  %v5694_v8 = vshrl.u32 %v5693_v20, 23  ;;  %v5116_v6 = vsel %vm5114_vm7, %v5115_v19, %v9523_v53  ;;  %v5220_v50 = vsel %vm5218_vm3, %v5115_v19, %v9523_v53 }
 0x332   :  { %v5312_v62 = vsub.s32 32, %v5311_v14  ;;  %v5313_v35 = vshll.u32 %v12585_v57, %v5311_v14  ;;  %v5113_v55 = vsel %vm5111_vm6, %v9521_v36, %v5112_v13  ;;  %v5217_v54 = vsel %vm5215_vm14, %v9521_v36, %v5112_v13 }
 0x333   :  { %v5316_v5 = vsub.s32 4294967266, %v5311_v14  ;;  %v5117_v32 = vsel %vm5110_vm5, %v5113_v55, %v5116_v6  ;;  %v5221_v40 = vsel %vm5214_vm0, %v5217_v54, %v5220_v50  ;;  %v5327_v61 = vsel %vm5242_vm4, %v5326_v41, %v12575_v26 }
 0x334   :  { %v5314_v30 = vshrl.u32 %v5296_v31, %v5312_v62  ;;  %v5118_v57 = vsel %vm5107_vm2, nan, %v5117_v32  ;;  %v5222_v42 = vsel %vm5107_vm2, nan, %v5221_v40  ;;  %vm5522_vm9 = vc.u32 %v12642_v46, %v12630_v37 }
 0x335   :  { %v5317_v15 = vadd.s32 127, %v5316_v5  ;;  %v5119_v9 = vmul.f32 %v5118_v57, %v12589_v3  ;;  %v5524_v10 = vsel %vm5522_vm9, %v5523_v2, %v12631_v1  ;;  %v9119_v39 = vadd.s32 4294967169, %v5694_v8 }
 0x336   :  { %v5315_v33 = vor.u32 %v5314_v30, %v5313_v35  ;;  %v5225_v12 = vmul.f32 3.0, %v12589_v3  ;;  %v5525_v26 = vadd.s32 %v5524_v10, %v5520_v51  ;;  %vm12670_vm10 = vcmp.le.f32.partialorder %v5240_v11, 0.7853982 }
 0x337   :  { %v5318_v0 = vshll.u32 %v5317_v15, 23  ;;  %v5223_v52 = vsub.f32 %v5119_v9, %v5222_v42  ;;  %v5690_v45 = vand.u32 2147483647, %v12617_v28  ;;  %v5700_v47 = vadd.s32 1, %v9119_v39 }
 0x338   :  { %v5322_v16 = vcvt.s32.f32 %v5315_v33  ;;  %v5329_v34 = vsel %vm12670_vm10, 0, %v5327_v61  ;;  %v5526_v7 = vadd.s32 536870912, %v5525_v26  ;;  %v5228_v17 = vmul.f32 5.0, %v12589_v3 }
 0x339   :  { %v5319_v59 = vor.u32 4788187, %v5318_v0  ;;  %v5224_v1 = vmul.f32 %v5223_v52, %v12589_v3  ;;  %vm5701_vm12 = vcmp.gt.s32.totalorder %v5700_v47, 0  ;;  %v5333_v20 = vadd.s32 3, %v5329_v34 }
 0x33a   :  { %v12678_v31 = vshrl.u32 %v5526_v7, 30  ;;  %v5702_v41 = vsel %vm5701_vm12, %v5700_v47, 0  ;;  %v5697_v13 = vand.u32 8388607, %v5690_v45  ;;  %v5231_v8 = vmul.f32 7.0, %v12589_v3 }
 0x33b   :  { %v5320_v36 = vand.u32 2147483647, %v5319_v59  ;;  %v5226_v11 = vmul.f32 %v5225_v12, %v5224_v1  ;;  %v5704_v53 = vand.u32 31, %v5702_v41  ;;  %v12688_v35 = vmul.f32 0.066490844, %v9782_v56 }
 0x33c   :  { %v5528_v43 = vshll.u32 %v12678_v31, 30  ;;  %v12690_v55 = vand.u32 3, %v5333_v20  ;;  %v12692_v54 = vand.u32 3, %v5329_v34  ;;  %v5521_v2 = vadd.s32 %v12630_v37, %v12642_v46 }
 0x33d   :  { %v5323_v19 = vmul.f32 %v5322_v16, %v5320_v36  ;;  %v5227_v14 = vsub.f32 %v5226_v11, %v5119_v9  ;;  %v5705_v51 = vsub.s32 32, %v5704_v53  ;;  %v5698_v3 = vor.u32 8388608, %v5697_v13 }
 0x33e   :  { %v12685_v50 = vsub.s32 %v5525_v26, %v5528_v43  ;;  %v5707_v61 = vshll.u32 %v9636_v21, %v5704_v53  ;;  %v12705_v15 = vshrl.u32 %v5702_v41, 5  ;;  %v5710_v9 = vshll.u32 %v9637_v23, %v5704_v53 }
 0x33f   :  { %v5324_v6 = vxor.u32 2147483648, %v5323_v19  ;;  %v5229_v62 = vmul.f32 %v5228_v17, %v5227_v14  ;;  %v5708_v57 = vshrl.u32 %v9637_v23, %v5705_v51  ;;  %v5711_v46 = vshrl.u32 %v9638_v25, %v5705_v51 }
 0x340   :  { %v5531_v32 = vsub.s32 0, %v12685_v50  ;;  %v5713_v33 = vshll.u32 %v9638_v25, %v5704_v53  ;;  %v5706_v39 = vshrl.u32 %v9636_v21, %v5705_v51  ;;  %v12711_v12 = vshll.u32 %v5698_v3, 8 }
 0x341   :  { %v5325_v5 = vsel %vm5242_vm4, %v5324_v6, %v5323_v19  ;;  %v5230_v40 = vsub.f32 %v5229_v62, %v5224_v1  ;;  %v12714_v0 = vmul.f32 24.727566, %v9664_v4  ;;  %v5709_v52 = vor.u32 %v5708_v57, %v5707_v61 }
 0x342   :  { %v5328_v30 = vsel %vm12670_vm10, %v12358_v44, %v5325_v5  ;;  %v9112_v42 = vmin.u32 %v5531_v32, %v12685_v50  ;;  %v5714_v48 = vshrl.u32 %v9639_v27, %v5705_v51  ;;  %v5716_v47 = vshll.u32 %v9639_v27, %v5704_v53 }
 0x343   :  { %9524 = vcosq.f32 %v5328_v30  ;;  %v5232_v37 = vmul.f32 %v5231_v8, %v5230_v40  ;;  %v5717_v16 = vshrl.u32 %v9640_v29, %v5705_v51  ;;  %v5719_v34 = vshll.u32 %v9640_v29, %v5704_v53 }
 0x344   :  { %9526 = vsinq.f32 %v5328_v30  ;;  %v5533_v10 = vclz %v9112_v42  ;;  %v5720_v7 = vshrl.u32 %v9641_v38, %v5705_v51  ;;  %vm5443_vm11 = vcmp.eq.s32.totalorder %v12692_v54, 2 }
 0x345   :  { %v5233_v26 = vsub.f32 %v5232_v37, %v5227_v14  ;;  %v5712_v36 = vor.u32 %v5711_v46, %v5710_v9  ;;  %v5715_v41 = vor.u32 %v5714_v48, %v5713_v33  ;;  %vm5722_vm13 = vcmp.lt.s32.totalorder %v12705_v15, 1 }
 0x346   :  { %v9113_v59 = vadd.s32 4294967294, %v5533_v10  ;;  %vm5336_vm14 = vcmp.eq.s32.totalorder %v12690_v55, 0  ;;  %vm5440_vm15 = vcmp.eq.s32.totalorder %v12692_v54, 0  ;;  %vm5467_vm0 = vcmp.lt.s32.totalorder %v12447_v49, 0 }
 0x347   :  { %v5234_v1 = vmul.f32 17.209208, %v5233_v26  ;;  %v5718_v11 = vor.u32 %v5717_v16, %v5716_v47  ;;  %v5721_v17 = vor.u32 %v5720_v7, %v5719_v34  ;;  %vm5723_vm2 = vcmp.lt.s32.totalorder %v12705_v15, 2 }
 0x348   :  { %vm9114_vm1 = vcmp.lt.s32.totalorder %v9113_v59, 0  ;;  %vm5335_vm3 = vcmp.lt.s32.totalorder %v12690_v55, 2  ;;  %vm5439_vm4 = vcmp.lt.s32.totalorder %v12692_v54, 2  ;;  %vm5724_vm5 = vcmp.lt.s32.totalorder %v12705_v15, 3 }
 0x349   :  { %v5235_v20 = vmul.f32 %v5234_v1, %v12536_v60  ;;  %v5536_v53 = vsel %vm9114_vm1, 0, %v9113_v59  ;;  %vm5725_vm6 = vcmp.lt.s32.totalorder %v12705_v15, 4  ;;  %vm5332_vm7 = vweird.f32 %v12358_v44 }
 0x34a   :  { %v5537_v19 = vsub.s32 32, %v5536_v53  ;;  %v5538_v43 = vshll.u32 %v12685_v50, %v5536_v53  ;;  %v5541_v13 = vsub.s32 4294967266, %v5536_v53  ;;  %v5727_v14 = vsel %vm5725_vm6, %v5715_v41, 2102212464 }
 0x34b   :  { %5237 = vst [vmem:[#allocation5 + $0xc8] sm:$0xff] %v5235_v20  ;;  %v5726_v51 = vsel %vm5722_vm13, %v5706_v39, %v5709_v52  ;;  %v5728_v8 = vsel %vm5724_vm5, %v5712_v36, %v5727_v14  ;;  %v5730_v6 = vsel %vm5722_vm13, %v5709_v52, %v5712_v36  ;;  %v5731_v62 = vsel %vm5725_vm6, %v5718_v11, 920167782 }
 0x34c   :  { %vm12746_vm8 = vcmp.le.f32.partialorder %v5465_v24, 0.7853982  ;;  %v5539_v5 = vshrl.u32 %v5521_v2, %v5537_v19  ;;  %v5542_v32 = vadd.s32 127, %v5541_v13  ;;  %v5732_v3 = vsel %vm5724_vm5, %v5715_v41, %v5731_v62 }
 0x34d   :  { %v5734_v40 = vsel %vm5722_vm13, %v5712_v36, %v5715_v41  ;;  %vm5339_vm9 = vcmp.eq.s32.totalorder %v12690_v55, 2  ;;  %v5551_v30 = vsub.s32 4, %v12678_v31  ;;  %v5733_v61 = vsel %vm5723_vm2, %v5730_v6, %v5732_v3 }
 0x34e   :  { %v5735_v24 = vsel %vm5725_vm6, %v5721_v17, 1326507024  ;;  %v5540_v57 = vor.u32 %v5539_v5, %v5538_v43  ;;  %v5543_v42 = vshll.u32 %v5542_v32, 23  ;;  %v5918_v9 = vand.u32 2139095040, %v12714_v0 }
 0x34f   :  { %v5736_v2 = vsel %vm5724_vm5, %v5718_v11, %v5735_v24  ;;  %v5729_v46 = vsel %vm5723_vm2, %v5726_v51, %v5728_v8  ;;  %v12768_v10 = vmul.u32.u64.low %v12711_v12, %v5733_v61  ;;  %v12769_v39 = vmul.u32.u64.high %v12711_v12, %v5733_v61, %v12768_v10 }
 0x350   :  { %v9525_v37 = vpop.eup %9524  ;;  %v5737_v33 = vsel %vm5723_vm2, %v5734_v40, %v5736_v2  ;;  %v5544_v48 = vor.u32 4788187, %v5543_v42  ;;  %v5547_v47 = vcvt.s32.f32 %v5540_v57  ;;  %v5919_v59 = vshrl.u32 %v5918_v9, 23 }
 0x351   :  { %v9527_v26 = vpop.eup %9526  ;;  %v5340_v52 = vxor.u32 2147483648, %v9525_v37  ;;  %v5552_v34 = vsel %vm5467_vm0, %v5551_v30, %v12678_v31  ;;  %v12776_v7 = vmul.u32.u64.low %v12711_v12, %v5737_v33  ;;  %v12777_v1 = vmul.u32.u64.high %v12711_v12, %v5737_v33, %v12776_v7 }
 0x352   :  { %v5337_v16 = vxor.u32 2147483648, %v9527_v26  ;;  %v5545_v41 = vand.u32 2147483647, %v5544_v48  ;;  %v9127_v11 = vadd.s32 4294967169, %v5919_v59  ;;  %v5745_v31 = vmul.u32 %v12711_v12, %v5729_v46 }
 0x353   :  { %v5341_v15 = vsel %vm5339_vm9, %v5340_v52, %v9527_v26  ;;  %v5445_v36 = vsel %vm5443_vm11, %v5340_v52, %v9527_v26  ;;  %v5748_v53 = vadd.s32 1, %v12769_v39  ;;  %v5554_v6 = vsel %vm12746_vm8, 0, %v5552_v34 }
 0x354   :  { %v5338_v17 = vsel %vm5336_vm14, %v9525_v37, %v5337_v16  ;;  %v5442_v20 = vsel %vm5440_vm15, %v9525_v37, %v5337_v16  ;;  %v5548_v13 = vmul.f32 %v5547_v47, %v5545_v41  ;;  %v5925_v14 = vadd.s32 1, %v9127_v11 }
 0x355   :  { %v5342_v19 = vsel %vm5335_vm3, %v5338_v17, %v5341_v15  ;;  %v5446_v43 = vsel %vm5439_vm4, %v5442_v20, %v5445_v36  ;;  %vm5747_vm10 = vc.u32 %v12777_v1, %v12768_v10  ;;  %v5450_v62 = vmul.f32 3.0, %v12688_v35 }
 0x356   :  { %v5343_v51 = vsel %vm5332_vm7, nan, %v5342_v19  ;;  %v5447_v8 = vsel %vm5332_vm7, nan, %v5446_v43  ;;  %v5549_v12 = vxor.u32 2147483648, %v5548_v13  ;;  %v5749_v54 = vsel %vm5747_vm10, %v5748_v53, %v12769_v39 }
 0x357   :  { %v5344_v55 = vmul.f32 %v5343_v51, %v12688_v35  ;;  %vm5926_vm12 = vcmp.gt.s32.totalorder %v5925_v14, 0  ;;  %v5750_v5 = vadd.s32 %v5749_v54, %v5745_v31  ;;  %v5915_v32 = vand.u32 2147483647, %v12714_v0 }
 0x358   :  { %v5927_v3 = vsel %vm5926_vm12, %v5925_v14, 0  ;;  %v5550_v40 = vsel %vm5467_vm0, %v5549_v12, %v5548_v13  ;;  %v5558_v30 = vadd.s32 3, %v5554_v6  ;;  %v5453_v24 = vmul.f32 5.0, %v12688_v35 }
 0x359   :  { %v5448_v44 = vsub.f32 %v5344_v55, %v5447_v8  ;;  %v5929_v61 = vand.u32 31, %v5927_v3  ;;  %v5553_v57 = vsel %vm12746_vm8, %v12447_v49, %v5550_v40  ;;  %v5751_v42 = vadd.s32 536870912, %v5750_v5 }
 0x35a   :  { %v5456_v9 = vmul.f32 7.0, %v12688_v35  ;;  %9528 = vcosq.f32 %v5553_v57  ;;  %v12814_v46 = vmul.f32 0.054641057, %v9782_v56  ;;  %v12819_v39 = vmul.f32 9.355812, %v9664_v4 }
 0x35b   :  { %v5449_v2 = vmul.f32 %v5448_v44, %v12688_v35  ;;  %v5930_v37 = vsub.s32 32, %v5929_v61  ;;  %9530 = vsinq.f32 %v5553_v57  ;;  %v12816_v33 = vshrl.u32 %v5751_v42, 30 }
 0x35c   :  { %v12821_v52 = vand.u32 3, %v5558_v30  ;;  %v12823_v50 = vand.u32 3, %v5554_v6  ;;  %v5922_v48 = vand.u32 8388607, %v5915_v32  ;;  %v5932_v47 = vshll.u32 %v9636_v21, %v5929_v61 }
 0x35d   :  { %v5451_v26 = vmul.f32 %v5450_v62, %v5449_v2  ;;  %v5753_v35 = vshll.u32 %v12816_v33, 30  ;;  %v5933_v59 = vshrl.u32 %v9637_v23, %v5930_v37  ;;  %v5935_v16 = vshll.u32 %v9637_v23, %v5929_v61 }
 0x35e   :  { %v5936_v7 = vshrl.u32 %v9638_v25, %v5930_v37  ;;  %v5941_v15 = vshll.u32 %v9639_v27, %v5929_v61  ;;  %v5942_v36 = vshrl.u32 %v9640_v29, %v5930_v37  ;;  %v12836_v11 = vshrl.u32 %v5927_v3, 5 }
 0x35f   :  { %v5452_v34 = vsub.f32 %v5451_v26, %v5344_v55  ;;  %v12834_v41 = vsub.s32 %v5750_v5, %v5753_v35  ;;  %v5938_v17 = vshll.u32 %v9638_v25, %v5929_v61  ;;  %v5939_v20 = vshrl.u32 %v9639_v27, %v5930_v37 }
 0x360   :  { %vm5561_vm11 = vcmp.eq.s32.totalorder %v12821_v52, 0  ;;  %vm5665_vm13 = vcmp.eq.s32.totalorder %v12823_v50, 0  ;;  %vm5668_vm14 = vcmp.eq.s32.totalorder %v12823_v50, 2  ;;  %v5923_v53 = vor.u32 8388608, %v5922_v48 }
 0x361   :  { %v5454_v31 = vmul.f32 %v5453_v24, %v5452_v34  ;;  %vm5560_vm15 = vcmp.lt.s32.totalorder %v12821_v52, 2  ;;  %vm5664_vm0 = vcmp.lt.s32.totalorder %v12823_v50, 2  ;;  %v5756_v19 = vsub.s32 0, %v12834_v41 }
 0x362   :  { %v5931_v43 = vshrl.u32 %v9636_v21, %v5930_v37  ;;  %v5944_v13 = vshll.u32 %v9640_v29, %v5929_v61  ;;  %v5945_v14 = vshrl.u32 %v9641_v38, %v5930_v37  ;;  %vm5557_vm1 = vweird.f32 %v12447_v49 }
 0x363   :  { %v5455_v51 = vsub.f32 %v5454_v31, %v5449_v2  ;;  %v5934_v8 = vor.u32 %v5933_v59, %v5932_v47  ;;  %v5937_v6 = vor.u32 %v5936_v7, %v5935_v16  ;;  %v5943_v55 = vor.u32 %v5942_v36, %v5941_v15 }
 0x364   :  { %vm5564_vm2 = vcmp.eq.s32.totalorder %v12821_v52, 2  ;;  %v9120_v12 = vmin.u32 %v5756_v19, %v12834_v41  ;;  %v5940_v54 = vor.u32 %v5939_v20, %v5938_v17  ;;  %vm5947_vm3 = vcmp.lt.s32.totalorder %v12836_v11, 1 }
 0x365   :  { %v5457_v62 = vmul.f32 %v5456_v9, %v5455_v51  ;;  %vm5949_vm4 = vcmp.lt.s32.totalorder %v12836_v11, 3  ;;  %vm5950_vm5 = vcmp.lt.s32.totalorder %v12836_v11, 4  ;;  %v12855_v5 = vshll.u32 %v5923_v53, 8 }
 0x366   :  { %v5758_v3 = vclz %v9120_v12  ;;  %v5946_v44 = vor.u32 %v5945_v14, %v5944_v13  ;;  %vm5948_vm6 = vcmp.lt.s32.totalorder %v12836_v11, 2  ;;  %v5951_v40 = vsel %vm5947_vm3, %v5931_v43, %v5934_v8 }
 0x367   :  { %v5458_v30 = vsub.f32 %v5457_v62, %v5452_v34  ;;  %v5952_v61 = vsel %vm5950_vm5, %v5940_v54, 2102212464  ;;  %v5955_v24 = vsel %vm5947_vm3, %v5934_v8, %v5937_v6  ;;  %v5956_v57 = vsel %vm5950_vm5, %v5943_v55, 920167782  ;;  %v9529_v42 = vpop.eup %9528 }
 0x368   :  { %v5746_v2 = vadd.s32 %v12768_v10, %v12777_v1  ;;  %v9121_v9 = vadd.s32 4294967294, %v5758_v3  ;;  %v5953_v37 = vsel %vm5949_vm4, %v5937_v6, %v5952_v61  ;;  %v5957_v26 = vsel %vm5949_vm4, %v5940_v54, %v5956_v57  ;;  %v9531_v48 = vpop.eup %9530 }
 0x369   :  { %v5459_v35 = vmul.f32 21.763275, %v5458_v30  ;;  %v5565_v47 = vxor.u32 2147483648, %v9529_v42  ;;  %v5954_v59 = vsel %vm5948_vm6, %v5951_v40, %v5953_v37  ;;  %v5959_v16 = vsel %vm5947_vm3, %v5937_v6, %v5940_v54 }
 0x36a   :  { %v5562_v34 = vxor.u32 2147483648, %v9531_v48  ;;  %vm9122_vm7 = vcmp.lt.s32.totalorder %v9121_v9, 0  ;;  %v5958_v10 = vsel %vm5948_vm6, %v5955_v24, %v5957_v26  ;;  %v5960_v1 = vsel %vm5950_vm5, %v5946_v44, 1326507024 }
 0x36b   :  { %v5460_v7 = vmul.f32 %v5459_v35, %v12536_v60  ;;  %v5566_v15 = vsel %vm5564_vm2, %v5565_v47, %v9531_v48  ;;  %v5670_v36 = vsel %vm5668_vm14, %v5565_v47, %v9531_v48  ;;  %v5761_v17 = vsel %vm9122_vm7, 0, %v9121_v9 }
 0x36c   :  { %v5563_v20 = vsel %vm5561_vm11, %v9529_v42, %v5562_v34  ;;  %v5667_v31 = vsel %vm5665_vm13, %v9529_v42, %v5562_v34  ;;  %v5762_v53 = vsub.s32 32, %v5761_v17  ;;  %v5763_v19 = vshll.u32 %v12834_v41, %v5761_v17 }
 0x36d   :  { %5462 = vst [vmem:[#allocation5 + $0xd0] sm:$0xff] %v5460_v7  ;;  %v5567_v43 = vsel %vm5560_vm15, %v5563_v20, %v5566_v15  ;;  %v5671_v13 = vsel %vm5664_vm0, %v5667_v31, %v5670_v36  ;;  %v5766_v14 = vsub.s32 4294967266, %v5761_v17  ;;  %v5961_v51 = vsel %vm5949_vm4, %v5943_v55, %v5960_v1 }
 0x36e   :  { %v5568_v8 = vsel %vm5557_vm1, nan, %v5567_v43  ;;  %v5672_v6 = vsel %vm5557_vm1, nan, %v5671_v13  ;;  %v5764_v12 = vshrl.u32 %v5746_v2, %v5762_v53  ;;  %v5962_v41 = vsel %vm5948_vm6, %v5959_v16, %v5961_v51 }
 0x36f   :  { %v5569_v52 = vmul.f32 %v5568_v8, %v12814_v46  ;;  %v5767_v54 = vadd.s32 127, %v5766_v14  ;;  %v12904_v50 = vmul.u32.u64.low %v12855_v5, %v5962_v41  ;;  %v12905_v62 = vmul.u32.u64.high %v12855_v5, %v5962_v41, %v12904_v50 }
 0x370   :  { %v5765_v3 = vor.u32 %v5764_v12, %v5763_v19  ;;  %v5776_v55 = vsub.s32 4, %v12816_v33  ;;  %v12909_v44 = vmul.u32.u64.low %v12855_v5, %v5958_v10  ;;  %v12910_v40 = vmul.u32.u64.high %v12855_v5, %v5958_v10, %v12909_v44 }
 0x371   :  { %v5673_v49 = vsub.f32 %v5569_v52, %v5672_v6  ;;  %v5675_v30 = vmul.f32 3.0, %v12814_v46  ;;  %v5768_v11 = vshll.u32 %v5767_v54, 23  ;;  %vm5692_vm8 = vcmp.lt.s32.totalorder %v12617_v28, 0 }
 0x372   :  { %v5970_v61 = vmul.u32 %v12855_v5, %v5954_v59  ;;  %v6145_v24 = vand.u32 2139095040, %v12819_v39  ;;  %v5772_v2 = vcvt.s32.f32 %v5765_v3  ;;  %vm5972_vm9 = vc.u32 %v12905_v62, %v12909_v44 }
 0x373   :  { %v5674_v57 = vmul.f32 %v5673_v49, %v12814_v46  ;;  %v5769_v42 = vor.u32 4788187, %v5768_v11  ;;  %v5777_v9 = vsel %vm5692_vm8, %v5776_v55, %v12816_v33  ;;  %v5973_v37 = vadd.s32 1, %v12910_v40 }
 0x374   :  { %v6146_v26 = vshrl.u32 %v6145_v24, 23  ;;  %v5678_v35 = vmul.f32 5.0, %v12814_v46  ;;  %vm12927_vm10 = vcmp.le.f32.partialorder %v5690_v45, 0.7853982  ;;  %v6142_v16 = vand.u32 2147483647, %v12819_v39 }
 0x375   :  { %v5676_v48 = vmul.f32 %v5675_v30, %v5674_v57  ;;  %v5770_v5 = vand.u32 2147483647, %v5769_v42  ;;  %v5974_v59 = vsel %vm5972_vm9, %v5973_v37, %v12910_v40  ;;  %v5779_v1 = vsel %vm12927_vm10, 0, %v5777_v9 }
 0x376   :  { %v9135_v34 = vadd.s32 4294967169, %v6146_v26  ;;  %v5975_v7 = vadd.s32 %v5974_v59, %v5970_v61  ;;  %v5681_v17 = vmul.f32 7.0, %v12814_v46  ;;  %v5783_v31 = vadd.s32 3, %v5779_v1 }
 0x377   :  { %v5677_v10 = vsub.f32 %v5676_v48, %v5569_v52  ;;  %v5773_v33 = vmul.f32 %v5772_v2, %v5770_v5  ;;  %v6149_v53 = vand.u32 8388607, %v6142_v16  ;;  %v12947_v12 = vmul.f32 0.046456706, %v9782_v56 }
 0x378   :  { %v6152_v15 = vadd.s32 1, %v9135_v34  ;;  %v5976_v45 = vadd.s32 536870912, %v5975_v7  ;;  %v12949_v41 = vand.u32 3, %v5779_v1  ;;  %v12951_v50 = vand.u32 3, %v5783_v31 }
 0x379   :  { %v5679_v36 = vmul.f32 %v5678_v35, %v5677_v10  ;;  %v5774_v20 = vxor.u32 2147483648, %v5773_v33  ;;  %v6150_v55 = vor.u32 8388608, %v6149_v53  ;;  %v12959_v11 = vmul.f32 12.96653, %v9664_v4 }
 0x37a   :  { %vm6153_vm12 = vcmp.gt.s32.totalorder %v6152_v15, 0  ;;  %v12940_v13 = vshrl.u32 %v5976_v45, 30  ;;  %vm5893_vm11 = vcmp.eq.s32.totalorder %v12949_v41, 2  ;;  %vm5786_vm13 = vcmp.eq.s32.totalorder %v12951_v50, 0 }
 0x37b   :  { %v5680_v19 = vsub.f32 %v5679_v36, %v5674_v57  ;;  %v5775_v43 = vsel %vm5692_vm8, %v5774_v20, %v5773_v33  ;;  %v6154_v14 = vsel %vm6153_vm12, %v6152_v15, 0  ;;  %vm5789_vm14 = vcmp.eq.s32.totalorder %v12951_v50, 2 }
 0x37c   :  { %v5778_v51 = vsel %vm12927_vm10, %v12617_v28, %v5775_v43  ;;  %v6156_v8 = vand.u32 31, %v6154_v14  ;;  %v5978_v6 = vshll.u32 %v12940_v13, 30  ;;  %v6155_v2 = vshrl.u32 %v6154_v14, 5 }
 0x37d   :  { %v5682_v46 = vmul.f32 %v5681_v17, %v5680_v19  ;;  %9532 = vcosq.f32 %v5778_v51  ;;  %vm5890_vm15 = vcmp.eq.s32.totalorder %v12949_v41, 0  ;;  %v5971_v48 = vadd.s32 %v12909_v44, %v12905_v62 }
 0x37e   :  { %9534 = vsinq.f32 %v5778_v51  ;;  %v6157_v52 = vsub.s32 32, %v6156_v8  ;;  %v12953_v3 = vsub.s32 %v5975_v7, %v5978_v6  ;;  %v6159_v40 = vshll.u32 %v9636_v21, %v6156_v8 }
 0x37f   :  { %v5683_v54 = vsub.f32 %v5682_v46, %v5677_v10  ;;  %v6162_v49 = vshll.u32 %v9637_v23, %v6156_v8  ;;  %v6165_v30 = vshll.u32 %v9638_v25, %v6156_v8  ;;  %v6168_v37 = vshll.u32 %v9639_v27, %v6156_v8 }
 0x380   :  { %v5981_v24 = vsub.s32 0, %v12953_v3  ;;  %v6160_v57 = vshrl.u32 %v9637_v23, %v6157_v52  ;;  %v6163_v42 = vshrl.u32 %v9638_v25, %v6157_v52  ;;  %v6166_v9 = vshrl.u32 %v9639_v27, %v6157_v52 }
 0x381   :  { %v5684_v61 = vmul.f32 26.2813, %v5683_v54  ;;  %vm5785_vm0 = vcmp.lt.s32.totalorder %v12951_v50, 2  ;;  %vm5889_vm1 = vcmp.lt.s32.totalorder %v12949_v41, 2  ;;  %v6158_v5 = vshrl.u32 %v9636_v21, %v6157_v52 }
 0x382   :  { %v9128_v35 = vmin.u32 %v5981_v24, %v12953_v3  ;;  %v6169_v47 = vshrl.u32 %v9640_v29, %v6157_v52  ;;  %v12978_v59 = vshll.u32 %v6150_v55, 8  ;;  %v6373_v34 = vand.u32 2139095040, %v12959_v11 }
 0x383   :  { %v5685_v26 = vmul.f32 %v5684_v61, %v12536_v60  ;;  %vm5782_vm2 = vweird.f32 %v12617_v28  ;;  %v6161_v33 = vor.u32 %v6160_v57, %v6159_v40  ;;  %v6164_v62 = vor.u32 %v6163_v42, %v6162_v49 }
 0x384   :  { %v5983_v10 = vclz %v9128_v35  ;;  %v6167_v44 = vor.u32 %v6166_v9, %v6165_v30  ;;  %v6170_v1 = vor.u32 %v6169_v47, %v6168_v37  ;;  %v6171_v7 = vshll.u32 %v9640_v29, %v6156_v8 }
 0x385   :  { %5687 = vst [vmem:[#allocation5 + $0xd8] sm:$0xff] %v5685_v26  ;;  %v6172_v15 = vshrl.u32 %v9641_v38, %v6157_v52  ;;  %vm6174_vm3 = vcmp.lt.s32.totalorder %v6155_v2, 1  ;;  %v6001_v17 = vsub.s32 4, %v12940_v13  ;;  %vm6176_vm4 = vcmp.lt.s32.totalorder %v6155_v2, 3 }
 0x386   :  { %v9129_v36 = vadd.s32 4294967294, %v5983_v10  ;;  %vm6177_vm5 = vcmp.lt.s32.totalorder %v6155_v2, 4  ;;  %vm6175_vm6 = vcmp.lt.s32.totalorder %v6155_v2, 2  ;;  %v6178_v45 = vsel %vm6174_vm3, %v6158_v5, %v6161_v33 }
 0x387   :  { %v6173_v20 = vor.u32 %v6172_v15, %v6171_v7  ;;  %v6179_v31 = vsel %vm6177_vm5, %v6167_v44, 2102212464  ;;  %v6182_v19 = vsel %vm6174_vm3, %v6161_v33, %v6164_v62  ;;  %v6183_v43 = vsel %vm6177_vm5, %v6170_v1, 920167782 }
 0x388   :  { %vm9130_vm7 = vcmp.lt.s32.totalorder %v9129_v36, 0  ;;  %v6180_v53 = vsel %vm6176_vm4, %v6164_v62, %v6179_v31  ;;  %v6184_v8 = vsel %vm6176_vm4, %v6167_v44, %v6183_v43  ;;  %v6186_v46 = vsel %vm6174_vm3, %v6164_v62, %v6167_v44 }
 0x389   :  { %v5986_v51 = vsel %vm9130_vm7, 0, %v9129_v36  ;;  %v6187_v6 = vsel %vm6177_vm5, %v6173_v20, 1326507024  ;;  %v6181_v61 = vsel %vm6175_vm6, %v6178_v45, %v6180_v53  ;;  %v6185_v24 = vsel %vm6175_vm6, %v6182_v19, %v6184_v8 }
 0x38a   :  { %v9533_v14 = vpop.eup %9532  ;;  %v5987_v55 = vsub.s32 32, %v5986_v51  ;;  %v5988_v40 = vshll.u32 %v12953_v3, %v5986_v51  ;;  %v5991_v49 = vsub.s32 4294967266, %v5986_v51  ;;  %v6188_v57 = vsel %vm6176_vm4, %v6170_v1, %v6187_v6 }
 0x38b   :  { %v9535_v52 = vpop.eup %9534  ;;  %v5790_v54 = vxor.u32 2147483648, %v9533_v14  ;;  %v6189_v5 = vsel %vm6175_vm6, %v6186_v46, %v6188_v57  ;;  %v6374_v47 = vshrl.u32 %v6373_v34, 23  ;;  %v5900_v41 = vmul.f32 3.0, %v12947_v12 }
 0x38c   :  { %v5787_v30 = vxor.u32 2147483648, %v9535_v52  ;;  %v5989_v37 = vshrl.u32 %v5971_v48, %v5987_v55  ;;  %v5992_v26 = vadd.s32 127, %v5991_v49  ;;  %vm5917_vm8 = vcmp.lt.s32.totalorder %v12714_v0, 0 }
 0x38d   :  { %v5791_v42 = vsel %vm5789_vm14, %v5790_v54, %v9535_v52  ;;  %v5895_v9 = vsel %vm5893_vm11, %v5790_v54, %v9535_v52  ;;  %v13012_v7 = vmul.u32.u64.low %v12978_v59, %v6189_v5  ;;  %v13013_v15 = vmul.u32.u64.high %v12978_v59, %v6189_v5, %v13012_v7 }
 0x38e   :  { %v5788_v35 = vsel %vm5786_vm13, %v9533_v14, %v5787_v30  ;;  %v5892_v3 = vsel %vm5890_vm15, %v9533_v14, %v5787_v30  ;;  %v5990_v62 = vor.u32 %v5989_v37, %v5988_v40  ;;  %v5993_v44 = vshll.u32 %v5992_v26, 23 }
 0x38f   :  { %v5792_v10 = vsel %vm5785_vm0, %v5788_v35, %v5791_v42  ;;  %v5896_v33 = vsel %vm5889_vm1, %v5892_v3, %v5895_v9  ;;  %v9143_v36 = vadd.s32 4294967169, %v6374_v47  ;;  %v162_v19 = vmul.f32 9.0, %v10332_v58 }
 0x390   :  { %v5793_v48 = vsel %vm5782_vm2, nan, %v5792_v10  ;;  %v5897_v1 = vsel %vm5782_vm2, nan, %v5896_v33  ;;  %v5994_v34 = vor.u32 4788187, %v5993_v44  ;;  %v5997_v50 = vcvt.s32.f32 %v5990_v62 }
 0x391   :  { %v5794_v2 = vmul.f32 %v5793_v48, %v12947_v12  ;;  %v13018_v20 = vmul.u32.u64.low %v12978_v59, %v6185_v24  ;;  %v13019_v45 = vmul.u32.u64.high %v12978_v59, %v6185_v24, %v13018_v20  ;;  %v6380_v53 = vadd.s32 1, %v9143_v36 }
 0x392   :  { %v5995_v28 = vand.u32 2147483647, %v5994_v34  ;;  %v6002_v43 = vsel %vm5917_vm8, %v6001_v17, %v12940_v13  ;;  %v6197_v14 = vmul.u32 %v12978_v59, %v6181_v61  ;;  %v5903_v46 = vmul.f32 5.0, %v12947_v12 }
 0x393   :  { %v5898_v31 = vsub.f32 %v5794_v2, %v5897_v1  ;;  %vm6199_vm9 = vc.u32 %v13013_v15, %v13018_v20  ;;  %vm6381_vm10 = vcmp.gt.s32.totalorder %v6380_v53, 0  ;;  %vm5916_vm12 = vcmp.le.f32.partialorder %v5915_v32, 0.7853982 }
 0x394   :  { %v5998_v8 = vmul.f32 %v5997_v50, %v5995_v28  ;;  %v6200_v6 = vadd.s32 1, %v13019_v45  ;;  %v6382_v52 = vsel %vm6381_vm10, %v6380_v53, 0  ;;  %v6004_v13 = vsel %vm5916_vm12, 0, %v6002_v43 }
 0x395   :  { %v5899_v51 = vmul.f32 %v5898_v31, %v12947_v12  ;;  %v6384_v17 = vand.u32 31, %v6382_v52  ;;  %v13036_v59 = vmul.f32 %v162_v19, %v12444_v22  ;;  %v13039_v40 = vmul.f32 4.0, %v11756_v63 }
 0x396   :  { %v5999_v55 = vxor.u32 2147483648, %v5998_v8  ;;  %v5906_v49 = vmul.f32 7.0, %v12947_v12  ;;  %v6201_v30 = vsel %vm6199_vm9, %v6200_v6, %v13019_v45  ;;  %v6008_v9 = vadd.s32 3, %v6004_v13 }
 0x397   :  { %v5901_v54 = vmul.f32 %v5900_v41, %v5899_v51  ;;  %v6202_v24 = vadd.s32 %v6201_v30, %v6197_v14  ;;  %v6385_v57 = vsub.s32 32, %v6384_v17  ;;  %v6370_v37 = vand.u32 2147483647, %v12959_v11 }
 0x398   :  { %v6000_v32 = vsel %vm5917_vm8, %v5999_v55, %v5998_v8  ;;  %v13047_v26 = vshrl.u32 %v6382_v52, 5  ;;  %v6387_v12 = vshll.u32 %v9636_v21, %v6384_v17  ;;  %v6390_v5 = vshll.u32 %v9637_v23, %v6384_v17 }
 0x399   :  { %v5902_v61 = vsub.f32 %v5901_v54, %v5794_v2  ;;  %v6003_v42 = vsel %vm5916_vm12, %v12714_v0, %v6000_v32  ;;  %v6203_v63 = vadd.s32 536870912, %v6202_v24  ;;  %v6388_v3 = vshrl.u32 %v9637_v23, %v6385_v57 }
 0x39a   :  { %9536 = vcosq.f32 %v6003_v42  ;;  %v6391_v47 = vshrl.u32 %v9638_v25, %v6385_v57  ;;  %v6396_v62 = vshll.u32 %v9639_v27, %v6384_v17  ;;  %v6397_v44 = vshrl.u32 %v9640_v29, %v6385_v57 }
 0x39b   :  { %v5904_v35 = vmul.f32 %v5903_v46, %v5902_v61  ;;  %9538 = vsinq.f32 %v6003_v42  ;;  %v13053_v33 = vshrl.u32 %v6203_v63, 30  ;;  %v13057_v48 = vand.u32 3, %v6004_v13 }
 0x39c   :  { %v6377_v1 = vand.u32 8388607, %v6370_v37  ;;  %v6393_v7 = vshll.u32 %v9638_v25, %v6384_v17  ;;  %v6394_v2 = vshrl.u32 %v9639_v27, %v6385_v57  ;;  %v13064_v50 = vmul.f32 0.040440697, %v9782_v56 }
 0x39d   :  { %v5905_v10 = vsub.f32 %v5904_v35, %v5899_v51  ;;  %v6009_v36 = vand.u32 3, %v6008_v9  ;;  %v6205_v41 = vshll.u32 %v13053_v33, 30  ;;  %v6389_v45 = vor.u32 %v6388_v3, %v6387_v12 }
 0x39e   :  { %v6398_v31 = vor.u32 %v6397_v44, %v6396_v62  ;;  %v6399_v28 = vshll.u32 %v9640_v29, %v6384_v17  ;;  %v6400_v53 = vshrl.u32 %v9641_v38, %v6385_v57  ;;  %v6392_v14 = vor.u32 %v6391_v47, %v6390_v5 }
 0x39f   :  { %v5907_v34 = vmul.f32 %v5906_v49, %v5905_v10  ;;  %v13069_v43 = vsub.s32 %v6202_v24, %v6205_v41  ;;  %vm6405_vm11 = vcmp.lt.s32.totalorder %v13047_v26, 4  ;;  %vm6114_vm13 = vcmp.lt.s32.totalorder %v13057_v48, 2 }
 0x3a0   :  { %vm6115_vm14 = vcmp.eq.s32.totalorder %v13057_v48, 0  ;;  %v6378_v51 = vor.u32 8388608, %v6377_v1  ;;  %v6395_v8 = vor.u32 %v6394_v2, %v6393_v7  ;;  %vm6402_vm15 = vcmp.lt.s32.totalorder %v13047_v26, 1 }
 0x3a1   :  { %v5908_v19 = vsub.f32 %v5907_v34, %v5902_v61  ;;  %vm6007_vm0 = vweird.f32 %v12714_v0  ;;  %vm6118_vm1 = vcmp.eq.s32.totalorder %v13057_v48, 2  ;;  %v6208_v6 = vsub.s32 0, %v13069_v43 }
 0x3a2   :  { %vm6404_vm2 = vcmp.lt.s32.totalorder %v13047_v26, 3  ;;  %vm6010_vm3 = vcmp.lt.s32.totalorder %v6009_v36, 2  ;;  %v6386_v52 = vshrl.u32 %v9636_v21, %v6385_v57  ;;  %v6401_v54 = vor.u32 %v6400_v53, %v6399_v28 }
 0x3a3   :  { %v5909_v46 = vmul.f32 30.777992, %v5908_v19  ;;  %v6411_v55 = vsel %vm6405_vm11, %v6398_v31, 920167782  ;;  %v9136_v17 = vmin.u32 %v6208_v6, %v13069_v43  ;;  %vm6403_vm4 = vcmp.lt.s32.totalorder %v13047_v26, 2 }
 0x3a4   :  { %v6410_v49 = vsel %vm6402_vm15, %v6389_v45, %v6392_v14  ;;  %vm6011_vm5 = vcmp.eq.s32.totalorder %v6009_v36, 0  ;;  %vm6014_vm6 = vcmp.eq.s32.totalorder %v6009_v36, 2  ;;  %v6412_v30 = vsel %vm6404_vm2, %v6395_v8, %v6411_v55 }
 0x3a5   :  { %v5910_v13 = vmul.f32 %v5909_v46, %v12536_v60  ;;  %v13089_v61 = vshll.u32 %v6378_v51, 8  ;;  %v6198_v32 = vadd.s32 %v13018_v20, %v13013_v15  ;;  %v6210_v24 = vclz %v9136_v17 }
 0x3a6   :  { %v6407_v57 = vsel %vm6405_vm11, %v6395_v8, 2102212464  ;;  %v13096_v42 = vmul.f32 16.35471, %v9664_v4  ;;  %v6228_v35 = vsub.s32 4, %v13053_v33  ;;  %v6413_v63 = vsel %vm6403_vm4, %v6410_v49, %v6412_v30 }
 0x3a7   :  { %5912 = vst [vmem:[#allocation5 + $0xe0] sm:$0xff] %v5910_v13  ;;  %v9537_v9 = vpop.eup %9536  ;;  %v6414_v12 = vsel %vm6402_vm15, %v6392_v14, %v6395_v8  ;;  %v6415_v3 = vsel %vm6405_vm11, %v6401_v54, 1326507024  ;;  %v9137_v5 = vadd.s32 4294967294, %v6210_v24  ;;  %v6406_v47 = vsel %vm6402_vm15, %v6386_v52, %v6389_v45 }
 0x3a8   :  { %v9539_v15 = vpop.eup %9538  ;;  %v6015_v20 = vxor.u32 2147483648, %v9537_v9  ;;  %v6416_v10 = vsel %vm6404_vm2, %v6398_v31, %v6415_v3  ;;  %v6408_v44 = vsel %vm6404_vm2, %v6392_v14, %v6407_v57  ;;  %v6601_v53 = vand.u32 2139095040, %v13096_v42 }
 0x3a9   :  { %v6012_v62 = vxor.u32 2147483648, %v9539_v15  ;;  %v13112_v1 = vmul.u32.u64.low %v13089_v61, %v6413_v63  ;;  %v13113_v7 = vmul.u32.u64.high %v13089_v61, %v6413_v63, %v13112_v1  ;;  %vm9138_vm7 = vcmp.lt.s32.totalorder %v9137_v5, 0 }
 0x3aa   :  { %v6016_v2 = vsel %vm6014_vm6, %v6015_v20, %v9539_v15  ;;  %v6120_v34 = vsel %vm6118_vm1, %v6015_v20, %v9539_v15  ;;  %v6417_v41 = vsel %vm6403_vm4, %v6414_v12, %v6416_v10  ;;  %v6213_v28 = vsel %vm9138_vm7, 0, %v9137_v5 }
 0x3ab   :  { %v6013_v45 = vsel %vm6011_vm5, %v9537_v9, %v6012_v62  ;;  %v6117_v31 = vsel %vm6115_vm14, %v9537_v9, %v6012_v62  ;;  %v6214_v51 = vsub.s32 32, %v6213_v28  ;;  %v6215_v8 = vshll.u32 %v13069_v43, %v6213_v28 }
 0x3ac   :  { %v6017_v19 = vsel %vm6010_vm3, %v6013_v45, %v6016_v2  ;;  %v6121_v14 = vsel %vm6114_vm13, %v6117_v31, %v6120_v34  ;;  %v6218_v52 = vsub.s32 4294967266, %v6213_v28  ;;  %v6409_v54 = vsel %vm6403_vm4, %v6406_v47, %v6408_v44 }
 0x3ad   :  { %v6018_v46 = vsel %vm6007_vm0, nan, %v6017_v19  ;;  %v6122_v6 = vsel %vm6007_vm0, nan, %v6121_v14  ;;  %v6216_v36 = vshrl.u32 %v6198_v32, %v6214_v51  ;;  %v6125_v17 = vmul.f32 3.0, %v13064_v50 }
 0x3ae   :  { %v6019_v55 = vmul.f32 %v6018_v46, %v13064_v50  ;;  %v13137_v13 = vmul.u32.u64.low %v13089_v61, %v6417_v41  ;;  %v13138_v48 = vmul.u32.u64.high %v13089_v61, %v6417_v41, %v13137_v13  ;;  %v6219_v43 = vadd.s32 127, %v6218_v52 }
 0x3af   :  { %v6428_v49 = vadd.s32 1, %v13113_v7  ;;  %v6602_v30 = vshrl.u32 %v6601_v53, 23  ;;  %vm6144_vm8 = vcmp.lt.s32.totalorder %v12819_v39, 0  ;;  %v6217_v0 = vor.u32 %v6216_v36, %v6215_v8 }
 0x3b0   :  { %v6123_v24 = vsub.f32 %v6019_v55, %v6122_v6  ;;  %v6425_v26 = vmul.u32 %v13089_v61, %v6409_v54  ;;  %v165_v57 = vsub.f32 %v13036_v59, %v13039_v40  ;;  %v6220_v32 = vshll.u32 %v6219_v43, 23 }
 0x3b1   :  { %v6229_v9 = vsel %vm6144_vm8, %v6228_v35, %v13053_v33  ;;  %v9151_v63 = vadd.s32 4294967169, %v6602_v30  ;;  %vm13152_vm9 = vcmp.le.f32.partialorder %v6142_v16, 0.7853982  ;;  %vm6427_vm10 = vc.u32 %v13138_v48, %v13112_v1 }
 0x3b2   :  { %v6124_v12 = vmul.f32 %v6123_v24, %v13064_v50  ;;  %v6598_v61 = vand.u32 2147483647, %v13096_v42  ;;  %v6221_v59 = vor.u32 4788187, %v6220_v32  ;;  %v6224_v40 = vcvt.s32.f32 %v6217_v0 }
 0x3b3   :  { %v6429_v15 = vsel %vm6427_vm10, %v6428_v49, %v13113_v7  ;;  %v6608_v20 = vadd.s32 1, %v9151_v63  ;;  %v6128_v35 = vmul.f32 5.0, %v13064_v50  ;;  %v6231_v5 = vsel %vm13152_vm9, 0, %v6229_v9 }
 0x3b4   :  { %v6126_v33 = vmul.f32 %v6125_v17, %v6124_v12  ;;  %v6430_v16 = vadd.s32 %v6429_v15, %v6425_v26  ;;  %v6222_v47 = vand.u32 2147483647, %v6221_v59  ;;  %v13164_v2 = vmul.f32 19.653152, %v9664_v4 }
 0x3b5   :  { %vm6609_vm12 = vcmp.gt.s32.totalorder %v6608_v20, 0  ;;  %v6235_v41 = vadd.s32 3, %v6231_v5  ;;  %v6605_v7 = vand.u32 8388607, %v6598_v61  ;;  %v13168_v31 = vmul.f32 0.2, %v165_v57 }
 0x3b6   :  { %v6127_v10 = vsub.f32 %v6126_v33, %v6019_v55  ;;  %v6431_v62 = vadd.s32 536870912, %v6430_v16  ;;  %v6610_v44 = vsel %vm6609_vm12, %v6608_v20, 0  ;;  %v6225_v34 = vmul.f32 %v6224_v40, %v6222_v47 }
 0x3b7   :  { %v6612_v45 = vand.u32 31, %v6610_v44  ;;  %v6131_v53 = vmul.f32 7.0, %v13064_v50  ;;  %v13174_v46 = vmul.f32 0.9356026, %v13168_v31  ;;  %v13176_v6 = vand.u32 3, %v6231_v5 }
 0x3b8   :  { %v6129_v28 = vmul.f32 %v6128_v35, %v6127_v10  ;;  %v13171_v19 = vshrl.u32 %v6431_v62, 30  ;;  %v6226_v14 = vxor.u32 2147483648, %v6225_v34  ;;  %v13181_v55 = vand.u32 3, %v6235_v41 }
 0x3b9   :  { %v6613_v51 = vsub.s32 32, %v6612_v45  ;;  %v6606_v36 = vor.u32 8388608, %v6605_v7  ;;  %v6829_v50 = vand.u32 2139095040, %v13164_v2  ;;  %v6615_v49 = vshll.u32 %v9636_v21, %v6612_v45 }
 0x3ba   :  { %v6130_v8 = vsub.f32 %v6129_v28, %v6124_v12  ;;  %v6433_v52 = vshll.u32 %v13171_v19, 30  ;;  %v6227_v54 = vsel %vm6144_vm8, %v6226_v14, %v6225_v34  ;;  %v6618_v24 = vshll.u32 %v9637_v23, %v6612_v45 }
 0x3bb   :  { %v6230_v17 = vsel %vm13152_vm9, %v12819_v39, %v6227_v54  ;;  %v6616_v30 = vshrl.u32 %v9637_v23, %v6613_v51  ;;  %v6619_v0 = vshrl.u32 %v9638_v25, %v6613_v51  ;;  %v6611_v32 = vshrl.u32 %v6610_v44, 5 }
 0x3bc   :  { %v6132_v13 = vmul.f32 %v6131_v53, %v6130_v8  ;;  %v13187_v43 = vsub.s32 %v6430_v16, %v6433_v52  ;;  %9540 = vcosq.f32 %v6230_v17  ;;  %v6621_v9 = vshll.u32 %v9638_v25, %v6612_v45 }
 0x3bd   :  { %9542 = vsinq.f32 %v6230_v17  ;;  %v6622_v63 = vshrl.u32 %v9639_v27, %v6613_v51  ;;  %v6624_v12 = vshll.u32 %v9639_v27, %v6612_v45  ;;  %v6625_v3 = vshrl.u32 %v9640_v29, %v6613_v51 }
 0x3be   :  { %v6133_v26 = vsub.f32 %v6132_v13, %v6127_v10  ;;  %v6436_v57 = vsub.s32 0, %v13187_v43  ;;  %v13199_v40 = vmul.f32 0.10688543, %v9782_v56  ;;  %v6426_v15 = vadd.s32 %v13112_v1, %v13138_v48 }
 0x3bf   :  { %v6617_v33 = vor.u32 %v6616_v30, %v6615_v49  ;;  %v6620_v35 = vor.u32 %v6619_v0, %v6618_v24  ;;  %v6627_v5 = vshll.u32 %v9640_v29, %v6612_v45  ;;  %v13205_v16 = vshll.u32 %v6606_v36, 8 }
 0x3c0   :  { %v6134_v59 = vmul.f32 35.261242, %v6133_v26  ;;  %v9144_v20 = vmin.u32 %v6436_v57, %v13187_v43  ;;  %vm6241_vm11 = vcmp.eq.s32.totalorder %v13181_v55, 2  ;;  %vm6345_vm13 = vcmp.eq.s32.totalorder %v13176_v6, 2 }
 0x3c1   :  { %vm6372_vm14 = vcmp.lt.s32.totalorder %v12959_v11, 0  ;;  %v6614_v62 = vshrl.u32 %v9636_v21, %v6613_v51  ;;  %v6830_v1 = vshrl.u32 %v6829_v50, 23  ;;  %vm6238_vm15 = vcmp.eq.s32.totalorder %v13181_v55, 0 }
 0x3c2   :  { %v6135_v47 = vmul.f32 %v6134_v59, %v12536_v60  ;;  %v6438_v10 = vclz %v9144_v20  ;;  %vm6342_vm0 = vcmp.eq.s32.totalorder %v13176_v6, 0  ;;  %v6623_v48 = vor.u32 %v6622_v63, %v6621_v9 }
 0x3c3   :  { %v6626_v44 = vor.u32 %v6625_v3, %v6624_v12  ;;  %v6628_v34 = vshrl.u32 %v9641_v38, %v6613_v51  ;;  %vm6630_vm1 = vcmp.lt.s32.totalorder %v6611_v32, 1  ;;  %vm6237_vm2 = vcmp.lt.s32.totalorder %v13181_v55, 2 }
 0x3c4   :  { %6137 = vst [vmem:[#allocation5 + $0xe8] sm:$0xff] %v6135_v47  ;;  %vm6341_vm3 = vcmp.lt.s32.totalorder %v13176_v6, 2  ;;  %v9145_v60 = vadd.s32 4294967294, %v6438_v10  ;;  %v6456_v41 = vsub.s32 4, %v13171_v19  ;;  %vm6632_vm4 = vcmp.lt.s32.totalorder %v6611_v32, 3 }
 0x3c5   :  { %vm6633_vm5 = vcmp.lt.s32.totalorder %v6611_v32, 4  ;;  %vm6234_vm6 = vweird.f32 %v12819_v39  ;;  %v6629_v7 = vor.u32 %v6628_v34, %v6627_v5  ;;  %vm6631_vm7 = vcmp.lt.s32.totalorder %v6611_v32, 2 }
 0x3c6   :  { %v6635_v45 = vsel %vm6633_vm5, %v6623_v48, 2102212464  ;;  %v6638_v28 = vsel %vm6630_vm1, %v6617_v33, %v6620_v35  ;;  %vm9146_vm8 = vcmp.lt.s32.totalorder %v9145_v60, 0  ;;  %v6634_v53 = vsel %vm6630_vm1, %v6614_v62, %v6617_v33 }
 0x3c7   :  { %v6636_v14 = vsel %vm6632_vm4, %v6620_v35, %v6635_v45  ;;  %v6639_v51 = vsel %vm6633_vm5, %v6626_v44, 920167782  ;;  %v6441_v8 = vsel %vm9146_vm8, 0, %v9145_v60  ;;  %v6642_v54 = vsel %vm6630_vm1, %v6620_v35, %v6623_v48 }
 0x3c8   :  { %v6640_v52 = vsel %vm6632_vm4, %v6623_v48, %v6639_v51  ;;  %v6643_v36 = vsel %vm6633_vm5, %v6629_v7, 1326507024  ;;  %vm13226_vm9 = vcmp.le.f32.partialorder %v6370_v37, 0.7853982  ;;  %v6442_v13 = vsub.s32 32, %v6441_v8 }
 0x3c9   :  { %v6443_v17 = vshll.u32 %v13187_v43, %v6441_v8  ;;  %v6446_v49 = vsub.s32 4294967266, %v6441_v8  ;;  %v6641_v30 = vsel %vm6631_vm7, %v6638_v28, %v6640_v52  ;;  %v6637_v24 = vsel %vm6631_vm7, %v6634_v53, %v6636_v14  ;;  %v9541_v9 = vpop.eup %9540 }
 0x3ca   :  { %v6644_v0 = vsel %vm6632_vm4, %v6626_v44, %v6643_v36  ;;  %v13235_v26 = vmul.u32.u64.low %v13205_v16, %v6641_v30  ;;  %v13236_v57 = vmul.u32.u64.high %v13205_v16, %v6641_v30, %v13235_v26  ;;  %v6444_v37 = vshrl.u32 %v6426_v15, %v6442_v13  ;;  %v9543_v59 = vpop.eup %9542 }
 0x3cb   :  { %v6447_v63 = vadd.s32 127, %v6446_v49  ;;  %v6645_v12 = vsel %vm6631_vm7, %v6642_v54, %v6644_v0  ;;  %v9159_v3 = vadd.s32 4294967169, %v6830_v1  ;;  %v6242_v43 = vxor.u32 2147483648, %v9541_v9 }
 0x3cc   :  { %v6457_v20 = vsel %vm6372_vm14, %v6456_v41, %v13171_v19  ;;  %v13244_v33 = vmul.u32.u64.low %v13205_v16, %v6645_v12  ;;  %v13245_v35 = vmul.u32.u64.high %v13205_v16, %v6645_v12, %v13244_v33  ;;  %v6239_v5 = vxor.u32 2147483648, %v9543_v59 }
 0x3cd   :  { %v6445_v47 = vor.u32 %v6444_v37, %v6443_v17  ;;  %v6448_v10 = vshll.u32 %v6447_v63, 23  ;;  %v6653_v62 = vmul.u32 %v13205_v16, %v6637_v24  ;;  %v6243_v32 = vsel %vm6241_vm11, %v6242_v43, %v9543_v59 }
 0x3ce   :  { %v6347_v15 = vsel %vm6345_vm13, %v6242_v43, %v9543_v59  ;;  %v6656_v1 = vadd.s32 1, %v13236_v57  ;;  %v6836_v48 = vadd.s32 1, %v9159_v3  ;;  %v6240_v19 = vsel %vm6238_vm15, %v9541_v9, %v6239_v5 }
 0x3cf   :  { %v6344_v44 = vsel %vm6342_vm0, %v9541_v9, %v6239_v5  ;;  %v6449_v34 = vor.u32 4788187, %v6448_v10  ;;  %v6452_v60 = vcvt.s32.f32 %v6445_v47  ;;  %v6244_v16 = vsel %vm6237_vm2, %v6240_v19, %v6243_v32 }
 0x3d0   :  { %v6348_v41 = vsel %vm6341_vm3, %v6344_v44, %v6347_v15  ;;  %vm6655_vm10 = vc.u32 %v13245_v35, %v13235_v26  ;;  %v6826_v7 = vand.u32 2147483647, %v13164_v2  ;;  %v6245_v45 = vsel %vm6234_vm6, nan, %v6244_v16 }
 0x3d1   :  { %v6349_v28 = vsel %vm6234_vm6, nan, %v6348_v41  ;;  %v6450_v53 = vand.u32 2147483647, %v6449_v34  ;;  %v6657_v14 = vsel %vm6655_vm10, %v6656_v1, %v13236_v57  ;;  %v6246_v55 = vmul.f32 %v6245_v45, %v13199_v40 }
 0x3d2   :  { %v6459_v6 = vsel %vm13226_vm9, 0, %v6457_v20  ;;  %v6658_v51 = vadd.s32 %v6657_v14, %v6653_v62  ;;  %vm6837_vm12 = vcmp.gt.s32.totalorder %v6836_v48, 0  ;;  %v6352_v36 = vmul.f32 3.0, %v13199_v40 }
 0x3d3   :  { %v6453_v8 = vmul.f32 %v6452_v60, %v6450_v53  ;;  %v6838_v52 = vsel %vm6837_vm12, %v6836_v48, 0  ;;  %v6350_v54 = vsub.f32 %v6246_v55, %v6349_v28  ;;  %v6463_v39 = vadd.s32 3, %v6459_v6 }
 0x3d4   :  { %v6659_v13 = vadd.s32 536870912, %v6658_v51  ;;  %v6840_v17 = vand.u32 31, %v6838_v52  ;;  %v6833_v30 = vand.u32 8388607, %v6826_v7  ;;  %v13277_v24 = vmul.f32 %v13174_v46, %v9819_v18 }
 0x3d5   :  { %v6454_v49 = vxor.u32 2147483648, %v6453_v8  ;;  %v6351_v0 = vmul.f32 %v6350_v54, %v13199_v40  ;;  %v6355_v57 = vmul.f32 5.0, %v13199_v40  ;;  %v6358_v37 = vmul.f32 7.0, %v13199_v40 }
 0x3d6   :  { %v13281_v9 = vshrl.u32 %v6659_v13, 30  ;;  %v6361_v63 = vmul.f32 9.0, %v13199_v40  ;;  %v6841_v3 = vsub.s32 32, %v6840_v17  ;;  %v13288_v43 = vmul.f32 0.07712164, %v9782_v56 }
 0x3d7   :  { %v6455_v12 = vsel %vm6372_vm14, %v6454_v49, %v6453_v8  ;;  %v6353_v59 = vmul.f32 %v6352_v36, %v6351_v0  ;;  %v13294_v33 = vand.u32 3, %v6463_v39  ;;  %v13296_v5 = vand.u32 3, %v6459_v6 }
 0x3d8   :  { %v6458_v46 = vsel %vm13226_vm9, %v12959_v11, %v6455_v12  ;;  %v6661_v20 = vshll.u32 %v13281_v9, 30  ;;  %v6834_v40 = vor.u32 8388608, %v6833_v30  ;;  %v6843_v62 = vshll.u32 %v9636_v21, %v6840_v17 }
 0x3d9   :  { %9544 = vcosq.f32 %v6458_v46  ;;  %v6354_v47 = vsub.f32 %v6353_v59, %v6246_v55  ;;  %v6844_v32 = vshrl.u32 %v9637_v23, %v6841_v3  ;;  %v6846_v15 = vshll.u32 %v9637_v23, %v6840_v17 }
 0x3da   :  { %9546 = vsinq.f32 %v6458_v46  ;;  %v13298_v10 = vsub.s32 %v6658_v51, %v6661_v20  ;;  %v6847_v50 = vshrl.u32 %v9638_v25, %v6841_v3  ;;  %v6852_v1 = vshll.u32 %v9639_v27, %v6840_v17 }
 0x3db   :  { %v6356_v48 = vmul.f32 %v6355_v57, %v6354_v47  ;;  %v6849_v44 = vshll.u32 %v9638_v25, %v6840_v17  ;;  %v6850_v34 = vshrl.u32 %v9639_v27, %v6841_v3  ;;  %v13308_v60 = vshrl.u32 %v6838_v52, 5 }
 0x3dc   :  { %v6664_v19 = vsub.s32 0, %v13298_v10  ;;  %v6853_v16 = vshrl.u32 %v9640_v29, %v6841_v3  ;;  %v6855_v41 = vshll.u32 %v9640_v29, %v6840_v17  ;;  %v6856_v45 = vshrl.u32 %v9641_v38, %v6841_v3 }
 0x3dd   :  { %v6357_v28 = vsub.f32 %v6356_v48, %v6351_v0  ;;  %vm6469_vm11 = vcmp.eq.s32.totalorder %v13294_v33, 2  ;;  %vm6573_vm13 = vcmp.eq.s32.totalorder %v13296_v5, 2  ;;  %v13316_v14 = vshll.u32 %v6834_v40, 8 }
 0x3de   :  { %v9152_v53 = vmin.u32 %v6664_v19, %v13298_v10  ;;  %vm6466_vm14 = vcmp.eq.s32.totalorder %v13294_v33, 0  ;;  %vm6570_vm15 = vcmp.eq.s32.totalorder %v13296_v5, 0  ;;  %v6842_v55 = vshrl.u32 %v9636_v21, %v6841_v3 }
 0x3df   :  { %v6845_v6 = vor.u32 %v6844_v32, %v6843_v62  ;;  %v6848_v51 = vor.u32 %v6847_v50, %v6846_v15  ;;  %v6854_v8 = vor.u32 %v6853_v16, %v6852_v1  ;;  %v6359_v52 = vmul.f32 %v6358_v37, %v6357_v28 }
 0x3e0   :  { %vm6465_vm0 = vcmp.lt.s32.totalorder %v13294_v33, 2  ;;  %vm6569_vm1 = vcmp.lt.s32.totalorder %v13296_v5, 2  ;;  %v6654_v54 = vadd.s32 %v13235_v26, %v13245_v35  ;;  %v6666_v36 = vclz %v9152_v53 }
 0x3e1   :  { %v6851_v13 = vor.u32 %v6850_v34, %v6849_v44  ;;  %vm6462_vm2 = vweird.f32 %v12959_v11  ;;  %v6857_v17 = vor.u32 %v6856_v45, %v6855_v41  ;;  %vm6858_vm3 = vcmp.lt.s32.totalorder %v13308_v60, 1 }
 0x3e2   :  { %vm6860_vm4 = vcmp.lt.s32.totalorder %v13308_v60, 3  ;;  %v13329_v49 = vmul.f32 22.90455, %v9664_v4  ;;  %v6360_v39 = vsub.f32 %v6359_v52, %v6354_v47  ;;  %vm6600_vm5 = vcmp.lt.s32.totalorder %v13096_v42, 0 }
 0x3e3   :  { %v9153_v30 = vadd.s32 4294967294, %v6666_v36  ;;  %vm6859_vm6 = vcmp.lt.s32.totalorder %v13308_v60, 2  ;;  %vm6861_vm7 = vcmp.lt.s32.totalorder %v13308_v60, 4  ;;  %v6684_v26 = vsub.s32 4, %v13281_v9 }
 0x3e4   :  { %v6862_v35 = vsel %vm6858_vm3, %v6842_v55, %v6845_v6  ;;  %v6866_v0 = vsel %vm6858_vm3, %v6845_v6, %v6848_v51  ;;  %v6867_v57 = vsel %vm6861_vm7, %v6854_v8, 920167782  ;;  %v6362_v37 = vmul.f32 %v6361_v63, %v6360_v39 }
 0x3e5   :  { %vm9154_vm8 = vcmp.lt.s32.totalorder %v9153_v30, 0  ;;  %v6863_v12 = vsel %vm6861_vm7, %v6851_v13, 2102212464  ;;  %v6868_v3 = vsel %vm6860_vm4, %v6851_v13, %v6867_v57  ;;  %v6870_v20 = vsel %vm6858_vm3, %v6848_v51, %v6851_v13 }
 0x3e6   :  { %v6669_v59 = vsel %vm9154_vm8, 0, %v9153_v30  ;;  %v6869_v46 = vsel %vm6859_vm6, %v6866_v0, %v6868_v3  ;;  %v6871_v40 = vsel %vm6861_vm7, %v6857_v17, 1326507024  ;;  %v9545_v47 = vpop.eup %9544  ;;  %v6363_v62 = vsub.f32 %v6362_v37, %v6357_v28 }
 0x3e7   :  { %v6670_v32 = vsub.s32 32, %v6669_v59  ;;  %v6671_v15 = vshll.u32 %v13298_v10, %v6669_v59  ;;  %v6674_v50 = vsub.s32 4294967266, %v6669_v59  ;;  %v9547_v63 = vpop.eup %9546  ;;  %v6470_v1 = vxor.u32 2147483648, %v9545_v47 }
 0x3e8   :  { %v6872_v48 = vsel %vm6860_vm4, %v6854_v8, %v6871_v40  ;;  %v13349_v19 = vmul.u32.u64.low %v13316_v14, %v6869_v46  ;;  %v13350_v44 = vmul.u32.u64.high %v13316_v14, %v6869_v46, %v13349_v19  ;;  %v6364_v34 = vmul.f32 14.636623, %v6363_v62 }
 0x3e9   :  { %v6467_v16 = vxor.u32 2147483648, %v9547_v63  ;;  %v6672_v41 = vshrl.u32 %v6654_v54, %v6670_v32  ;;  %v6675_v45 = vadd.s32 127, %v6674_v50  ;;  %v6471_v28 = vsel %vm6469_vm11, %v6470_v1, %v9547_v63 }
 0x3ea   :  { %v6575_v10 = vsel %vm6573_vm13, %v6470_v1, %v9547_v63  ;;  %v6864_v53 = vsel %vm6860_vm4, %v6848_v51, %v6863_v12  ;;  %v6873_v55 = vsel %vm6859_vm6, %v6870_v20, %v6872_v48  ;;  %v6365_v6 = vmul.f32 %v6364_v34, %v13277_v24 }
 0x3eb   :  { %v6468_v8 = vsel %vm6466_vm14, %v9545_v47, %v6467_v16  ;;  %v6572_v52 = vsel %vm6570_vm15, %v9545_v47, %v6467_v16  ;;  %v6673_v54 = vor.u32 %v6672_v41, %v6671_v15  ;;  %v6676_v17 = vshll.u32 %v6675_v45, 23 }
 0x3ec   :  { %v6472_v36 = vsel %vm6465_vm0, %v6468_v8, %v6471_v28  ;;  %v6576_v13 = vsel %vm6569_vm1, %v6572_v52, %v6575_v10  ;;  %v6685_v51 = vsel %vm6600_vm5, %v6684_v26, %v13281_v9  ;;  %6367 = vst [vmem:[#allocation5 + $0xf0] sm:$0xff] %v6365_v6  ;;  %v6865_v33 = vsel %vm6859_vm6, %v6862_v35, %v6864_v53 }
 0x3ed   :  { %v6473_v39 = vsel %vm6462_vm2, nan, %v6472_v36  ;;  %v6577_v30 = vsel %vm6462_vm2, nan, %v6576_v13  ;;  %v6680_v0 = vcvt.s32.f32 %v6673_v54  ;;  %v6677_v5 = vor.u32 4788187, %v6676_v17 }
 0x3ee   :  { %v6474_v57 = vmul.f32 %v6473_v39, %v13288_v43  ;;  %v13381_v37 = vmul.u32.u64.low %v13316_v14, %v6873_v55  ;;  %v13382_v12 = vmul.u32.u64.high %v13316_v14, %v6873_v55, %v13381_v37  ;;  %v6580_v9 = vmul.f32 3.0, %v13288_v43 }
 0x3ef   :  { %vm13387_vm9 = vcmp.le.f32.partialorder %v6598_v61, 0.7853982  ;;  %v6884_v11 = vadd.s32 1, %v13350_v44  ;;  %v7057_v60 = vand.u32 2139095040, %v13329_v49  ;;  %v6678_v3 = vand.u32 2147483647, %v6677_v5 }
 0x3f0   :  { %v6578_v35 = vsub.f32 %v6474_v57, %v6577_v30  ;;  %v6687_v59 = vsel %vm13387_vm9, 0, %v6685_v51  ;;  %v6881_v46 = vmul.u32 %v13316_v14, %v6865_v33  ;;  %vm6883_vm10 = vc.u32 %v13382_v12, %v13349_v19 }
 0x3f1   :  { %v7058_v20 = vshrl.u32 %v7057_v60, 23  ;;  %v6681_v47 = vmul.f32 %v6680_v0, %v6678_v3  ;;  %v6691_v61 = vadd.s32 3, %v6687_v59  ;;  %v6885_v62 = vsel %vm6883_vm10, %v6884_v11, %v13350_v44 }
 0x3f2   :  { %v6579_v40 = vmul.f32 %v6578_v35, %v13288_v43  ;;  %v6583_v50 = vmul.f32 5.0, %v13288_v43  ;;  %v6886_v1 = vadd.s32 %v6885_v62, %v6881_v46  ;;  %v7054_v48 = vand.u32 2147483647, %v13329_v49 }
 0x3f3   :  { %v9167_v32 = vadd.s32 4294967169, %v7058_v20  ;;  %v6682_v63 = vxor.u32 2147483648, %v6681_v47  ;;  %v6586_v16 = vmul.f32 7.0, %v13288_v43  ;;  %v13408_v28 = vand.u32 3, %v6691_v61 }
 0x3f4   :  { %v6581_v15 = vmul.f32 %v6580_v9, %v6579_v40  ;;  %v6887_v45 = vadd.s32 536870912, %v6886_v1  ;;  %v13410_v10 = vand.u32 3, %v6687_v59  ;;  %v7061_v8 = vand.u32 8388607, %v7054_v48 }
 0x3f5   :  { %v7064_v34 = vadd.s32 1, %v9167_v32  ;;  %v6683_v41 = vsel %vm6600_vm5, %v6682_v63, %v6681_v47  ;;  %v13417_v54 = vmul.f32 26.12775, %v9664_v4  ;;  %v13420_v13 = vmul.f32 0.061144467, %v9782_v56 }
 0x3f6   :  { %v6582_v14 = vsub.f32 %v6581_v15, %v6474_v57  ;;  %v6686_v44 = vsel %vm13387_vm9, %v13096_v42, %v6683_v41  ;;  %v13412_v55 = vshrl.u32 %v6887_v45, 30  ;;  %v6589_v30 = vmul.f32 9.0, %v13288_v43 }
 0x3f7   :  { %vm7065_vm12 = vcmp.gt.s32.totalorder %v7064_v34, 0  ;;  %9548 = vcosq.f32 %v6686_v44  ;;  %v13425_v0 = vmul.f32 3.0, %v13420_v13  ;;  %vm6697_vm11 = vcmp.eq.s32.totalorder %v13408_v28, 2 }
 0x3f8   :  { %v6584_v53 = vmul.f32 %v6583_v50, %v6582_v14  ;;  %v7066_v6 = vsel %vm7065_vm12, %v7064_v34, 0  ;;  %9550 = vsinq.f32 %v6686_v44  ;;  %v6889_v17 = vshll.u32 %v13412_v55, 30 }
 0x3f9   :  { %v7068_v52 = vand.u32 31, %v7066_v6  ;;  %vm6801_vm13 = vcmp.eq.s32.totalorder %v13410_v10, 2  ;;  %v7062_v57 = vor.u32 8388608, %v7061_v8  ;;  %v7285_v9 = vand.u32 2139095040, %v13417_v54 }
 0x3fa   :  { %v6585_v36 = vsub.f32 %v6584_v53, %v6579_v40  ;;  %v13427_v33 = vsub.s32 %v6886_v1, %v6889_v17  ;;  %vm6694_vm14 = vcmp.eq.s32.totalorder %v13408_v28, 0  ;;  %vm6798_vm15 = vcmp.eq.s32.totalorder %v13410_v10, 0 }
 0x3fb   :  { %v7069_v51 = vsub.s32 32, %v7068_v52  ;;  %v7071_v5 = vshll.u32 %v9636_v21, %v7068_v52  ;;  %v7074_v37 = vshll.u32 %v9637_v23, %v7068_v52  ;;  %vm6693_vm0 = vcmp.lt.s32.totalorder %v13408_v28, 2 }
 0x3fc   :  { %v6587_v39 = vmul.f32 %v6586_v16, %v6585_v36  ;;  %v6892_v43 = vsub.s32 0, %v13427_v33  ;;  %vm6797_vm1 = vcmp.lt.s32.totalorder %v13410_v10, 2  ;;  %v7077_v35 = vshll.u32 %v9638_v25, %v7068_v52 }
 0x3fd   :  { %v7072_v11 = vshrl.u32 %v9637_v23, %v7069_v51  ;;  %v7075_v60 = vshrl.u32 %v9638_v25, %v7069_v51  ;;  %v7078_v3 = vshrl.u32 %v9639_v27, %v7069_v51  ;;  %v7080_v59 = vshll.u32 %v9639_v27, %v7068_v52 }
 0x3fe   :  { %v6588_v26 = vsub.f32 %v6587_v39, %v6582_v14  ;;  %v7081_v46 = vshrl.u32 %v9640_v29, %v7069_v51  ;;  %vm6690_vm2 = vweird.f32 %v13096_v42  ;;  %v6882_v40 = vadd.s32 %v13349_v19, %v13382_v12 }
 0x3ff   :  { %v9160_v47 = vmin.u32 %v6892_v43, %v13427_v33  ;;  %v7067_v61 = vshrl.u32 %v7066_v6, 5  ;;  %v6912_v62 = vsub.s32 4, %v13412_v55  ;;  %v7070_v32 = vshrl.u32 %v9636_v21, %v7069_v51 }
 0x400   :  { %v6590_v20 = vmul.f32 %v6589_v30, %v6588_v26  ;;  %v13451_v15 = vshll.u32 %v7062_v57, 8  ;;  %v7286_v50 = vshrl.u32 %v7285_v9, 23  ;;  %v7073_v34 = vor.u32 %v7072_v11, %v7071_v5 }
 0x401   :  { %v6894_v1 = vclz %v9160_v47  ;;  %v7076_v14 = vor.u32 %v7075_v60, %v7074_v37  ;;  %v7079_v16 = vor.u32 %v7078_v3, %v7077_v35  ;;  %v7082_v41 = vor.u32 %v7081_v46, %v7080_v59 }
 0x402   :  { %v6591_v63 = vsub.f32 %v6590_v20, %v6585_v36  ;;  %v7083_v45 = vshll.u32 %v9640_v29, %v7068_v52  ;;  %v7084_v19 = vshrl.u32 %v9641_v38, %v7069_v51  ;;  %vm7086_vm3 = vcmp.lt.s32.totalorder %v7067_v61, 1 }
 0x403   :  { %v9161_v44 = vadd.s32 4294967294, %v6894_v1  ;;  %vm7087_vm4 = vcmp.lt.s32.totalorder %v7067_v61, 2  ;;  %vm7088_vm5 = vcmp.lt.s32.totalorder %v7067_v61, 3  ;;  %vm7089_vm6 = vcmp.lt.s32.totalorder %v7067_v61, 4 }
 0x404   :  { %v6592_v12 = vmul.f32 19.24834, %v6591_v63  ;;  %v9549_v53 = vpop.eup %9548  ;;  %v7085_v6 = vor.u32 %v7084_v19, %v7083_v45  ;;  %v7090_v8 = vsel %vm7086_vm3, %v7070_v32, %v7073_v34  ;;  %v7091_v30 = vsel %vm7089_vm6, %v7079_v16, 2102212464 }
 0x405   :  { %v9551_v36 = vpop.eup %9550  ;;  %v6698_v39 = vxor.u32 2147483648, %v9549_v53  ;;  %vm9162_vm7 = vcmp.lt.s32.totalorder %v9161_v44, 0  ;;  %vm6828_vm8 = vcmp.lt.s32.totalorder %v13164_v2, 0  ;;  %v7094_v57 = vsel %vm7086_vm3, %v7073_v34, %v7076_v14 }
 0x406   :  { %v6593_v17 = vmul.f32 %v6592_v12, %v13277_v24  ;;  %v6695_v52 = vxor.u32 2147483648, %v9551_v36  ;;  %v6897_v51 = vsel %vm9162_vm7, 0, %v9161_v44  ;;  %v7095_v5 = vsel %vm7089_vm6, %v7082_v41, 920167782 }
 0x407   :  { %v6699_v37 = vsel %vm6697_vm11, %v6698_v39, %v9551_v36  ;;  %v6803_v9 = vsel %vm6801_vm13, %v6698_v39, %v9551_v36  ;;  %v6898_v26 = vsub.s32 32, %v6897_v51  ;;  %v6899_v43 = vshll.u32 %v13427_v33, %v6897_v51 }
 0x408   :  { %6595 = vst [vmem:[#allocation5 + $0xf8] sm:$0xff] %v6593_v17  ;;  %v6696_v11 = vsel %vm6694_vm14, %v9549_v53, %v6695_v52  ;;  %v6800_v60 = vsel %vm6798_vm15, %v9549_v53, %v6695_v52  ;;  %v6902_v35 = vsub.s32 4294967266, %v6897_v51  ;;  %v7092_v3 = vsel %vm7088_vm5, %v7076_v14, %v7091_v30 }
 0x409   :  { %v6700_v59 = vsel %vm6693_vm0, %v6696_v11, %v6699_v37  ;;  %v6804_v46 = vsel %vm6797_vm1, %v6800_v60, %v6803_v9  ;;  %v6900_v20 = vshrl.u32 %v6882_v40, %v6898_v26  ;;  %v7096_v47 = vsel %vm7088_vm5, %v7079_v16, %v7095_v5 }
 0x40a   :  { %v6701_v33 = vsel %vm6690_vm2, nan, %v6700_v59  ;;  %v6805_v32 = vsel %vm6690_vm2, nan, %v6804_v46  ;;  %v6903_v63 = vadd.s32 127, %v6902_v35  ;;  %v7097_v1 = vsel %vm7087_vm4, %v7094_v57, %v7096_v47 }
 0x40b   :  { %v6702_v34 = vmul.f32 %v6701_v33, %v13420_v13  ;;  %v6901_v45 = vor.u32 %v6900_v20, %v6899_v43  ;;  %v7098_v28 = vsel %vm7086_vm3, %v7076_v14, %v7079_v16  ;;  %v7099_v10 = vsel %vm7089_vm6, %v7085_v6, 1326507024 }
 0x40c   :  { %v6904_v19 = vshll.u32 %v6903_v63, 23  ;;  %v7100_v40 = vsel %vm7088_vm5, %v7082_v41, %v7099_v10  ;;  %v13486_v12 = vmul.u32.u64.low %v13451_v15, %v7097_v1  ;;  %v13487_v44 = vmul.u32.u64.high %v13451_v15, %v7097_v1, %v13486_v12 }
 0x40d   :  { %v6806_v42 = vsub.f32 %v6702_v34, %v6805_v32  ;;  %v6908_v53 = vcvt.s32.f32 %v6901_v45  ;;  %v7093_v36 = vsel %vm7087_vm4, %v7090_v8, %v7092_v3  ;;  %v7101_v17 = vsel %vm7087_vm4, %v7098_v28, %v7100_v40 }
 0x40e   :  { %v6905_v39 = vor.u32 4788187, %v6904_v19  ;;  %v13493_v30 = vmul.u32.u64.low %v13451_v15, %v7101_v17  ;;  %v13494_v14 = vmul.u32.u64.high %v13451_v15, %v7101_v17, %v13493_v30  ;;  %v9175_v16 = vadd.s32 4294967169, %v7286_v50 }
 0x40f   :  { %v6807_v6 = vmul.f32 %v6806_v42, %v13420_v13  ;;  %v6913_v41 = vsel %vm6828_vm8, %v6912_v62, %v13412_v55  ;;  %v7109_v51 = vmul.u32 %v13451_v15, %v7093_v36  ;;  %v7112_v61 = vadd.s32 1, %v13487_v44 }
 0x410   :  { %v6906_v52 = vand.u32 2147483647, %v6905_v39  ;;  %v7292_v8 = vadd.s32 1, %v9175_v16  ;;  %v6811_v5 = vmul.f32 5.0, %v13420_v13  ;;  %vm13508_vm9 = vcmp.le.f32.partialorder %v6826_v7, 0.7853982 }
 0x411   :  { %v6809_v57 = vmul.f32 %v13425_v0, %v6807_v6  ;;  %v6915_v55 = vsel %vm13508_vm9, 0, %v6913_v41  ;;  %vm7111_vm10 = vc.u32 %v13494_v14, %v13486_v12  ;;  %v6814_v7 = vmul.f32 7.0, %v13420_v13 }
 0x412   :  { %v6909_v37 = vmul.f32 %v6908_v53, %v6906_v52  ;;  %vm7293_vm12 = vcmp.gt.s32.totalorder %v7292_v8, 0  ;;  %v7113_v15 = vsel %vm7111_vm10, %v7112_v61, %v13487_v44  ;;  %v6919_v60 = vadd.s32 3, %v6915_v55 }
 0x413   :  { %v6810_v62 = vsub.f32 %v6809_v57, %v6702_v34  ;;  %v7294_v0 = vsel %vm7293_vm12, %v7292_v8, 0  ;;  %v7114_v26 = vadd.s32 %v7113_v15, %v7109_v51  ;;  %v7282_v35 = vand.u32 2147483647, %v13417_v54 }
 0x414   :  { %v6910_v9 = vxor.u32 2147483648, %v6909_v37  ;;  %v7296_v43 = vand.u32 31, %v7294_v0  ;;  %v6817_v20 = vmul.f32 9.0, %v13420_v13  ;;  %v13526_v32 = vmul.f32 0.05088242, %v9782_v56 }
 0x415   :  { %v6812_v11 = vmul.f32 %v6811_v5, %v6810_v62  ;;  %v7115_v59 = vadd.s32 536870912, %v7114_v26  ;;  %v13528_v63 = vand.u32 3, %v6915_v55  ;;  %v13532_v45 = vand.u32 3, %v6919_v60 }
 0x416   :  { %v6911_v3 = vsel %vm6828_vm8, %v6910_v9, %v6909_v37  ;;  %v7297_v33 = vsub.s32 32, %v7296_v43  ;;  %v7289_v13 = vand.u32 8388607, %v7282_v35  ;;  %v13537_v10 = vshrl.u32 %v7294_v0, 5 }
 0x417   :  { %v6813_v46 = vsub.f32 %v6812_v11, %v6807_v6  ;;  %v6914_v47 = vsel %vm13508_vm9, %v13164_v2, %v6911_v3  ;;  %v13530_v1 = vshrl.u32 %v7115_v59, 30  ;;  %v7299_v19 = vshll.u32 %v9636_v21, %v7296_v43 }
 0x418   :  { %9552 = vcosq.f32 %v6914_v47  ;;  %v7302_v40 = vshll.u32 %v9637_v23, %v7296_v43  ;;  %v7300_v42 = vshrl.u32 %v9637_v23, %v7297_v33  ;;  %v7305_v53 = vshll.u32 %v9638_v25, %v7296_v43 }
 0x419   :  { %v6815_v34 = vmul.f32 %v6814_v7, %v6813_v46  ;;  %9554 = vsinq.f32 %v6914_v47  ;;  %v7117_v28 = vshll.u32 %v13530_v1, 30  ;;  %v7306_v36 = vshrl.u32 %v9639_v27, %v7297_v33 }
 0x41a   :  { %v7303_v39 = vshrl.u32 %v9638_v25, %v7297_v33  ;;  %v7308_v30 = vshll.u32 %v9639_v27, %v7296_v43  ;;  %v7309_v16 = vshrl.u32 %v9640_v29, %v7297_v33  ;;  %v7311_v41 = vshll.u32 %v9640_v29, %v7296_v43 }
 0x41b   :  { %v6816_v44 = vsub.f32 %v6815_v34, %v6810_v62  ;;  %v13544_v17 = vsub.s32 %v7114_v26, %v7117_v28  ;;  %v7312_v52 = vshrl.u32 %v9641_v38, %v7297_v33  ;;  %v13552_v51 = vmul.f32 10.5128355, %v9664_v4 }
 0x41c   :  { %vm7026_vm11 = vcmp.eq.s32.totalorder %v13528_v63, 0  ;;  %vm7029_vm13 = vcmp.eq.s32.totalorder %v13528_v63, 2  ;;  %v7290_v8 = vor.u32 8388608, %v7289_v13  ;;  %vm6921_vm14 = vcmp.lt.s32.totalorder %v13532_v45, 2 }
 0x41d   :  { %v6818_v6 = vmul.f32 %v6817_v20, %v6816_v44  ;;  %v7120_v61 = vsub.s32 0, %v13544_v17  ;;  %vm7025_vm15 = vcmp.lt.s32.totalorder %v13528_v63, 2  ;;  %v7298_v5 = vshrl.u32 %v9636_v21, %v7297_v33 }
 0x41e   :  { %v7301_v50 = vor.u32 %v7300_v42, %v7299_v19  ;;  %v7307_v37 = vor.u32 %v7306_v36, %v7305_v53  ;;  %vm6918_vm0 = vweird.f32 %v13164_v2  ;;  %v7304_v62 = vor.u32 %v7303_v39, %v7302_v40 }
 0x41f   :  { %v6819_v57 = vsub.f32 %v6818_v6, %v6813_v46  ;;  %v9168_v55 = vmin.u32 %v7120_v61, %v13544_v17  ;;  %v7310_v15 = vor.u32 %v7309_v16, %v7308_v30  ;;  %vm7317_vm1 = vcmp.lt.s32.totalorder %v13537_v10, 4 }
 0x420   :  { %v7313_v9 = vor.u32 %v7312_v52, %v7311_v41  ;;  %vm7314_vm2 = vcmp.lt.s32.totalorder %v13537_v10, 1  ;;  %v7319_v26 = vsel %vm7317_vm1, %v7307_v37, 2102212464  ;;  %vm6922_vm3 = vcmp.eq.s32.totalorder %v13532_v45, 0 }
 0x421   :  { %v6820_v0 = vmul.f32 23.822159, %v6819_v57  ;;  %vm6925_vm4 = vcmp.eq.s32.totalorder %v13532_v45, 2  ;;  %v7122_v43 = vclz %v9168_v55  ;;  %vm7316_vm5 = vcmp.lt.s32.totalorder %v13537_v10, 3 }
 0x422   :  { %v7110_v7 = vadd.s32 %v13486_v12, %v13494_v14  ;;  %v7318_v60 = vsel %vm7314_vm2, %v7298_v5, %v7301_v50  ;;  %v7320_v3 = vsel %vm7316_vm5, %v7304_v62, %v7319_v26  ;;  %vm7315_vm6 = vcmp.lt.s32.totalorder %v13537_v10, 2 }
 0x423   :  { %v6821_v11 = vmul.f32 %v6820_v0, %v13277_v24  ;;  %v9169_v59 = vadd.s32 4294967294, %v7122_v43  ;;  %v7323_v46 = vsel %vm7317_vm1, %v7310_v15, 920167782  ;;  %v7326_v20 = vsel %vm7314_vm2, %v7304_v62, %v7307_v37 }
 0x424   :  { %v7140_v33 = vsub.s32 4, %v13530_v1  ;;  %v7322_v12 = vsel %vm7314_vm2, %v7301_v50, %v7304_v62  ;;  %v7327_v14 = vsel %vm7317_vm1, %v7313_v9, 1326507024  ;;  %v7330_v34 = vshll.u32 %v7290_v8, 8 }
 0x425   :  { %v9553_v47 = vpop.eup %9552  ;;  %6823 = vst [vmem:[#allocation5 + $0x100] sm:$0xff] %v6821_v11  ;;  %vm9170_vm7 = vcmp.lt.s32.totalorder %v9169_v59, 0  ;;  %v7321_v19 = vsel %vm7315_vm6, %v7318_v60, %v7320_v3  ;;  %v7328_v40 = vsel %vm7316_vm5, %v7310_v15, %v7327_v14  ;;  %v7324_v53 = vsel %vm7316_vm5, %v7307_v37, %v7323_v46 }
 0x426   :  { %v9555_v13 = vpop.eup %9554  ;;  %v6926_v28 = vxor.u32 2147483648, %v9553_v47  ;;  %v7125_v42 = vsel %vm9170_vm7, 0, %v9169_v59  ;;  %v7329_v36 = vsel %vm7315_vm6, %v7326_v20, %v7328_v40  ;;  %v7515_v8 = vand.u32 2139095040, %v13552_v51 }
 0x427   :  { %v6923_v44 = vxor.u32 2147483648, %v9555_v13  ;;  %v7126_v16 = vsub.s32 32, %v7125_v42  ;;  %v7127_v6 = vshll.u32 %v13544_v17, %v7125_v42  ;;  %v7130_v61 = vsub.s32 4294967266, %v7125_v42 }
 0x428   :  { %v6927_v39 = vsel %vm6925_vm4, %v6926_v28, %v9555_v13  ;;  %v7031_v30 = vsel %vm7029_vm13, %v6926_v28, %v9555_v13  ;;  %v7325_v37 = vsel %vm7315_vm6, %v7322_v12, %v7324_v53  ;;  %v7516_v15 = vshrl.u32 %v7515_v8, 23 }
 0x429   :  { %v6924_v41 = vsel %vm6922_vm3, %v9553_v47, %v6923_v44  ;;  %v7028_v52 = vsel %vm7026_vm11, %v9553_v47, %v6923_v44  ;;  %v7128_v50 = vshrl.u32 %v7110_v7, %v7126_v16  ;;  %v7131_v62 = vadd.s32 127, %v7130_v61 }
 0x42a   :  { %v6928_v57 = vsel %vm6921_vm14, %v6924_v41, %v6927_v39  ;;  %v7032_v5 = vsel %vm7025_vm15, %v7028_v52, %v7031_v30  ;;  %v13615_v45 = vmul.u32.u64.low %v7330_v34, %v7329_v36  ;;  %v13616_v26 = vmul.u32.u64.high %v7330_v34, %v7329_v36, %v13615_v45 }
 0x42b   :  { %v6929_v17 = vsel %vm6918_vm0, nan, %v6928_v57  ;;  %v7033_v55 = vsel %vm6918_vm0, nan, %v7032_v5  ;;  %v7129_v9 = vor.u32 %v7128_v50, %v7127_v6  ;;  %v7132_v63 = vshll.u32 %v7131_v62, 23 }
 0x42c   :  { %v6930_v0 = vmul.f32 %v6929_v17, %v13526_v32  ;;  %v13618_v43 = vmul.u32.u64.low %v7330_v34, %v7325_v37  ;;  %v13619_v11 = vmul.u32.u64.high %v7330_v34, %v7325_v37, %v13618_v43  ;;  %v9183_v10 = vadd.s32 4294967169, %v7516_v15 }
 0x42d   :  { %v7036_v60 = vmul.f32 3.0, %v13526_v32  ;;  %vm7056_vm8 = vcmp.lt.s32.totalorder %v13329_v49, 0  ;;  %v7133_v2 = vor.u32 4788187, %v7132_v63  ;;  %v7136_v3 = vcvt.s32.f32 %v7129_v9 }
 0x42e   :  { %v7034_v7 = vsub.f32 %v6930_v0, %v7033_v55  ;;  %v7522_v59 = vadd.s32 1, %v9183_v10  ;;  %v7141_v20 = vsel %vm7056_vm8, %v7140_v33, %v13530_v1  ;;  %v7337_v47 = vmul.u32 %v7330_v34, %v7321_v19 }
 0x42f   :  { %vm7339_vm9 = vc.u32 %v13616_v26, %v13618_v43  ;;  %v7039_v12 = vmul.f32 5.0, %v13526_v32  ;;  %v7134_v14 = vand.u32 2147483647, %v7133_v2  ;;  %v7340_v13 = vadd.s32 1, %v13619_v11 }
 0x430   :  { %v7035_v46 = vmul.f32 %v7034_v7, %v13526_v32  ;;  %vm7523_vm10 = vcmp.gt.s32.totalorder %v7522_v59, 0  ;;  %vm13634_vm12 = vcmp.le.f32.partialorder %v7054_v48, 0.7853982  ;;  %v7512_v44 = vand.u32 2147483647, %v13552_v51 }
 0x431   :  { %v7524_v1 = vsel %vm7523_vm10, %v7522_v59, 0  ;;  %v7137_v33 = vmul.f32 %v7136_v3, %v7134_v14  ;;  %v7143_v34 = vsel %vm13634_vm12, 0, %v7141_v20  ;;  %v7341_v19 = vsel %vm7339_vm9, %v7340_v13, %v13619_v11 }
 0x432   :  { %v7037_v28 = vmul.f32 %v7036_v60, %v7035_v46  ;;  %v7526_v42 = vand.u32 31, %v7524_v1  ;;  %v7342_v36 = vadd.s32 %v7341_v19, %v7337_v47  ;;  %v7042_v39 = vmul.f32 7.0, %v13526_v32 }
 0x433   :  { %v7045_v30 = vmul.f32 9.0, %v13526_v32  ;;  %v7138_v48 = vxor.u32 2147483648, %v7137_v33  ;;  %v7147_v41 = vadd.s32 3, %v7143_v34  ;;  %v13644_v52 = vand.u32 3, %v7143_v34 }
 0x434   :  { %v7038_v53 = vsub.f32 %v7037_v28, %v6930_v0  ;;  %v7527_v16 = vsub.s32 32, %v7526_v42  ;;  %v7343_v61 = vadd.s32 536870912, %v7342_v36  ;;  %v7519_v57 = vand.u32 8388607, %v7512_v44 }
 0x435   :  { %v7139_v8 = vsel %vm7056_vm8, %v7138_v48, %v7137_v33  ;;  %v7529_v5 = vshll.u32 %v9636_v21, %v7526_v42  ;;  %v7532_v50 = vshll.u32 %v9637_v23, %v7526_v42  ;;  %v7538_v55 = vshll.u32 %v9639_v27, %v7526_v42 }
 0x436   :  { %v7040_v6 = vmul.f32 %v7039_v12, %v7038_v53  ;;  %v7142_v32 = vsel %vm13634_vm12, %v13329_v49, %v7139_v8  ;;  %v13655_v17 = vshrl.u32 %v7343_v61, 30  ;;  %v7530_v62 = vshrl.u32 %v9637_v23, %v7527_v16 }
 0x437   :  { %9556 = vcosq.f32 %v7142_v32  ;;  %v7533_v15 = vshrl.u32 %v9638_v25, %v7527_v16  ;;  %v7539_v0 = vshrl.u32 %v9640_v29, %v7527_v16  ;;  %v7525_v63 = vshrl.u32 %v7524_v1, 5 }
 0x438   :  { %v7041_v37 = vsub.f32 %v7040_v6, %v7035_v46  ;;  %9558 = vsinq.f32 %v7142_v32  ;;  %v7345_v45 = vshll.u32 %v13655_v17, 30  ;;  %v7535_v11 = vshll.u32 %v9638_v25, %v7526_v42 }
 0x439   :  { %v7536_v10 = vshrl.u32 %v9639_v27, %v7527_v16  ;;  %v7541_v7 = vshll.u32 %v9640_v29, %v7526_v42  ;;  %v7542_v60 = vshrl.u32 %v9641_v38, %v7527_v16  ;;  %v13666_v3 = vand.u32 3, %v7147_v41 }
 0x43a   :  { %v7043_v9 = vmul.f32 %v7042_v39, %v7041_v37  ;;  %v13668_v59 = vsub.s32 %v7342_v36, %v7345_v45  ;;  %v7520_v46 = vor.u32 8388608, %v7519_v57  ;;  %v13671_v20 = vmul.f32 0.043659445, %v9782_v56 }
 0x43b   :  { %v7531_v47 = vor.u32 %v7530_v62, %v7529_v5  ;;  %v7534_v12 = vor.u32 %v7533_v15, %v7532_v50  ;;  %v7540_v14 = vor.u32 %v7539_v0, %v7538_v55  ;;  %v7528_v40 = vshrl.u32 %v9636_v21, %v7527_v16 }
 0x43c   :  { %v7044_v2 = vsub.f32 %v7043_v9, %v7038_v53  ;;  %v7348_v28 = vsub.s32 0, %v13668_v59  ;;  %vm7544_vm11 = vcmp.lt.s32.totalorder %v7525_v63, 1  ;;  %vm7254_vm13 = vcmp.eq.s32.totalorder %v13644_v52, 0 }
 0x43d   :  { %vm7257_vm14 = vcmp.eq.s32.totalorder %v13644_v52, 2  ;;  %v7537_v1 = vor.u32 %v7536_v10, %v7535_v11  ;;  %v7543_v33 = vor.u32 %v7542_v60, %v7541_v7  ;;  %vm7547_vm15 = vcmp.lt.s32.totalorder %v7525_v63, 4 }
 0x43e   :  { %v7046_v13 = vmul.f32 %v7045_v30, %v7044_v2  ;;  %vm7149_vm0 = vcmp.lt.s32.totalorder %v13666_v3, 2  ;;  %vm7253_vm1 = vcmp.lt.s32.totalorder %v13644_v52, 2  ;;  %v9176_v19 = vmin.u32 %v7348_v28, %v13668_v59 }
 0x43f   :  { %vm7546_vm2 = vcmp.lt.s32.totalorder %v7525_v63, 3  ;;  %v7560_v42 = vshll.u32 %v7520_v46, 8  ;;  %vm7146_vm3 = vweird.f32 %v13329_v49  ;;  %vm7545_vm4 = vcmp.lt.s32.totalorder %v7525_v63, 2 }
 0x440   :  { %v7047_v34 = vsub.f32 %v7046_v13, %v7041_v37  ;;  %v7549_v53 = vsel %vm7547_vm15, %v7537_v1, 2102212464  ;;  %v7552_v36 = vsel %vm7544_vm11, %v7531_v47, %v7534_v12  ;;  %v7553_v39 = vsel %vm7547_vm15, %v7540_v14, 920167782 }
 0x441   :  { %vm7150_vm5 = vcmp.eq.s32.totalorder %v13666_v3, 0  ;;  %v7350_v48 = vclz %v9176_v19  ;;  %v7548_v16 = vsel %vm7544_vm11, %v7528_v40, %v7531_v47  ;;  %v7550_v6 = vsel %vm7546_vm2, %v7534_v12, %v7549_v53 }
 0x442   :  { %v7048_v30 = vmul.f32 28.35863, %v7047_v34  ;;  %v7554_v41 = vsel %vm7546_vm2, %v7537_v1, %v7553_v39  ;;  %v7556_v61 = vsel %vm7544_vm11, %v7534_v12, %v7537_v1  ;;  %v7557_v8 = vsel %vm7547_vm15, %v7543_v33, 1326507024 }
 0x443   :  { %vm7153_vm6 = vcmp.eq.s32.totalorder %v13666_v3, 2  ;;  %v9177_v5 = vadd.s32 4294967294, %v7350_v48  ;;  %v7555_v50 = vsel %vm7545_vm4, %v7552_v36, %v7554_v41  ;;  %v7338_v37 = vadd.s32 %v13618_v43, %v13616_v26 }
 0x444   :  { %v7049_v57 = vmul.f32 %v7048_v30, %v13277_v24  ;;  %v7558_v32 = vsel %vm7546_vm2, %v7540_v14, %v7557_v8  ;;  %v13696_v55 = vmul.u32.u64.low %v7560_v42, %v7555_v50  ;;  %v13697_v62 = vmul.u32.u64.high %v7560_v42, %v7555_v50, %v13696_v55  ;;  %v9557_v15 = vpop.eup %9556 }
 0x445   :  { %vm9178_vm7 = vcmp.lt.s32.totalorder %v9177_v5, 0  ;;  %v7551_v0 = vsel %vm7545_vm4, %v7548_v16, %v7550_v6  ;;  %v7559_v9 = vsel %vm7545_vm4, %v7556_v61, %v7558_v32  ;;  %v13703_v45 = vmul.f32 14.207393, %v9664_v4  ;;  %v9559_v11 = vpop.eup %9558 }
 0x446   :  { %7051 = vst [vmem:[#allocation5 + $0x108] sm:$0xff] %v7049_v57  ;;  %v7154_v10 = vxor.u32 2147483648, %v9557_v15  ;;  %v7353_v7 = vsel %vm9178_vm7, 0, %v9177_v5  ;;  %v13705_v26 = vmul.u32.u64.low %v7560_v42, %v7559_v9  ;;  %v13706_v43 = vmul.u32.u64.high %v7560_v42, %v7559_v9, %v13705_v26 }
 0x447   :  { %v7151_v60 = vxor.u32 2147483648, %v9559_v11  ;;  %v7354_v2 = vsub.s32 32, %v7353_v7  ;;  %v7355_v46 = vshll.u32 %v13668_v59, %v7353_v7  ;;  %v7358_v47 = vsub.s32 4294967266, %v7353_v7 }
 0x448   :  { %v7155_v12 = vsel %vm7153_vm6, %v7154_v10, %v9559_v11  ;;  %v7259_v63 = vsel %vm7257_vm14, %v7154_v10, %v9559_v11  ;;  %v7567_v14 = vmul.u32 %v7560_v42, %v7551_v0  ;;  %v7570_v13 = vadd.s32 1, %v13697_v62 }
 0x449   :  { %v7152_v28 = vsel %vm7150_vm5, %v9557_v15, %v7151_v60  ;;  %v7256_v40 = vsel %vm7254_vm13, %v9557_v15, %v7151_v60  ;;  %v7356_v1 = vshrl.u32 %v7338_v37, %v7354_v2  ;;  %v7359_v33 = vadd.s32 127, %v7358_v47 }
 0x44a   :  { %v7156_v59 = vsel %vm7149_vm0, %v7152_v28, %v7155_v12  ;;  %v7260_v34 = vsel %vm7253_vm1, %v7256_v40, %v7259_v63  ;;  %v7368_v19 = vsub.s32 4, %v13655_v17  ;;  %vm7569_vm8 = vc.u32 %v13706_v43, %v13696_v55 }
 0x44b   :  { %v7157_v42 = vsel %vm7146_vm3, nan, %v7156_v59  ;;  %v7261_v53 = vsel %vm7146_vm3, nan, %v7260_v34  ;;  %v7357_v36 = vor.u32 %v7356_v1, %v7355_v46  ;;  %v7360_v39 = vshll.u32 %v7359_v33, 23 }
 0x44c   :  { %v7158_v30 = vmul.f32 %v7157_v42, %v13671_v20  ;;  %v7264_v3 = vmul.f32 3.0, %v13671_v20  ;;  %v7571_v52 = vsel %vm7569_vm8, %v7570_v13, %v13697_v62  ;;  %v7746_v48 = vand.u32 2139095040, %v13703_v45 }
 0x44d   :  { %vm7284_vm9 = vcmp.lt.s32.totalorder %v13417_v54, 0  ;;  %v7361_v16 = vor.u32 4788187, %v7360_v39  ;;  %v7364_v6 = vcvt.s32.f32 %v7357_v36  ;;  %v7572_v41 = vadd.s32 %v7571_v52, %v7567_v14 }
 0x44e   :  { %v7262_v61 = vsub.f32 %v7158_v30, %v7261_v53  ;;  %v7369_v49 = vsel %vm7284_vm9, %v7368_v19, %v13655_v17  ;;  %v7743_v8 = vand.u32 2147483647, %v13703_v45  ;;  %v7747_v57 = vshrl.u32 %v7746_v48, 23 }
 0x44f   :  { %v7362_v5 = vand.u32 2147483647, %v7361_v16  ;;  %v7573_v50 = vadd.s32 536870912, %v7572_v41  ;;  %vm13741_vm10 = vcmp.le.f32.partialorder %v7282_v35, 0.7853982  ;;  %v7267_v11 = vmul.f32 5.0, %v13671_v20 }
 0x450   :  { %v7263_v37 = vmul.f32 %v7262_v61, %v13671_v20  ;;  %v9191_v62 = vadd.s32 4294967169, %v7747_v57  ;;  %v7371_v0 = vsel %vm13741_vm10, 0, %v7369_v49  ;;  %v7750_v10 = vand.u32 8388607, %v7743_v8 }
 0x451   :  { %v7365_v15 = vmul.f32 %v7364_v6, %v7362_v5  ;;  %v7574_v9 = vshrl.u32 %v7573_v50, 30  ;;  %v13751_v26 = vmul.f32 11.0, %v10332_v58  ;;  %v7270_v35 = vmul.f32 7.0, %v13671_v20 }
 0x452   :  { %v7265_v17 = vmul.f32 %v7264_v3, %v7263_v37  ;;  %v7753_v7 = vadd.s32 1, %v9191_v62  ;;  %v7273_v47 = vmul.f32 9.0, %v13671_v20  ;;  %v7375_v12 = vadd.s32 3, %v7371_v0 }
 0x453   :  { %v7366_v60 = vxor.u32 2147483648, %v7365_v15  ;;  %v7575_v2 = vshll.u32 %v7574_v9, 30  ;;  %v13757_v14 = vand.u32 3, %v7371_v0  ;;  %v7751_v1 = vor.u32 8388608, %v7750_v10 }
 0x454   :  { %v7266_v46 = vsub.f32 %v7265_v17, %v7158_v30  ;;  %vm7754_vm12 = vcmp.gt.s32.totalorder %v7753_v7, 0  ;;  %v13765_v33 = vmul.f32 17.647974, %v9664_v4  ;;  %v7598_v59 = vsub.s32 4, %v7574_v9 }
 0x455   :  { %v7367_v63 = vsel %vm7284_vm9, %v7366_v60, %v7365_v15  ;;  %v13759_v13 = vsub.s32 %v7572_v41, %v7575_v2  ;;  %v7755_v28 = vsel %vm7754_vm12, %v7753_v7, 0  ;;  %v13770_v42 = vand.u32 3, %v7375_v12 }
 0x456   :  { %v7268_v40 = vmul.f32 %v7267_v11, %v7266_v46  ;;  %v7370_v58 = vsel %vm13741_vm10, %v13417_v54, %v7367_v63  ;;  %v13768_v34 = vshrl.u32 %v7755_v28, 5  ;;  %v7757_v53 = vand.u32 31, %v7755_v28 }
 0x457   :  { %9560 = vcosq.f32 %v7370_v58  ;;  %v7578_v20 = vsub.s32 0, %v13759_v13  ;;  %v13773_v36 = vmul.f32 0.038273484, %v9782_v56  ;;  %vm7514_vm11 = vcmp.lt.s32.totalorder %v13552_v51, 0 }
 0x458   :  { %v7269_v19 = vsub.f32 %v7268_v40, %v7263_v37  ;;  %9562 = vsinq.f32 %v7370_v58  ;;  %v7568_v39 = vadd.s32 %v13696_v55, %v13706_v43  ;;  %v7758_v52 = vsub.s32 32, %v7757_v53 }
 0x459   :  { %v9184_v30 = vmin.u32 %v7578_v20, %v13759_v13  ;;  %v7760_v48 = vshll.u32 %v9636_v21, %v7757_v53  ;;  %v13780_v16 = vshll.u32 %v7751_v1, 8  ;;  %v13784_v41 = vsel %vm7514_vm11, %v7598_v59, %v7574_v9 }
 0x45a   :  { %v7271_v3 = vmul.f32 %v7270_v35, %v7269_v19  ;;  %vm7775_vm13 = vcmp.lt.s32.totalorder %v13768_v34, 1  ;;  %v7977_v61 = vand.u32 2139095040, %v13765_v33  ;;  %vm7381_vm14 = vcmp.eq.s32.totalorder %v13770_v42, 2 }
 0x45b   :  { %v7580_v6 = vclz %v9184_v30  ;;  %vm7485_vm15 = vcmp.eq.s32.totalorder %v13757_v14, 2  ;;  %v7759_v55 = vshrl.u32 %v9636_v21, %v7758_v52  ;;  %v7761_v43 = vshrl.u32 %v9637_v23, %v7758_v52 }
 0x45c   :  { %v7272_v49 = vsub.f32 %v7271_v3, %v7266_v46  ;;  %v7763_v57 = vshll.u32 %v9637_v23, %v7757_v53  ;;  %vm7378_vm0 = vcmp.eq.s32.totalorder %v13770_v42, 0  ;;  %vm7482_vm1 = vcmp.eq.s32.totalorder %v13757_v14, 0 }
 0x45d   :  { %v9185_v5 = vadd.s32 4294967294, %v7580_v6  ;;  %v7764_v50 = vshrl.u32 %v9638_v25, %v7758_v52  ;;  %v7766_v37 = vshll.u32 %v9638_v25, %v7757_v53  ;;  %v7767_v32 = vshrl.u32 %v9639_v27, %v7758_v52 }
 0x45e   :  { %v7274_v62 = vmul.f32 %v7273_v47, %v7272_v49  ;;  %vm7377_vm2 = vcmp.lt.s32.totalorder %v13770_v42, 2  ;;  %vm7481_vm3 = vcmp.lt.s32.totalorder %v13757_v14, 2  ;;  %v7762_v15 = vor.u32 %v7761_v43, %v7760_v48 }
 0x45f   :  { %v7769_v0 = vshll.u32 %v9639_v27, %v7757_v53  ;;  %v7770_v9 = vshrl.u32 %v9640_v29, %v7758_v52  ;;  %vm7374_vm4 = vweird.f32 %v13417_v54  ;;  %vm9186_vm5 = vcmp.lt.s32.totalorder %v9185_v5, 0 }
 0x460   :  { %v7765_v17 = vor.u32 %v7764_v50, %v7763_v57  ;;  %v7768_v11 = vor.u32 %v7767_v32, %v7766_v37  ;;  %v7772_v10 = vshll.u32 %v9640_v29, %v7757_v53  ;;  %v7275_v7 = vsub.f32 %v7274_v62, %v7269_v19 }
 0x461   :  { %v7583_v35 = vsel %vm9186_vm5, 0, %v9185_v5  ;;  %v7771_v60 = vor.u32 %v7770_v9, %v7769_v0  ;;  %v7773_v2 = vshrl.u32 %v9641_v38, %v7758_v52  ;;  %vm7776_vm6 = vcmp.lt.s32.totalorder %v13768_v34, 2 }
 0x462   :  { %v7584_v46 = vsub.s32 32, %v7583_v35  ;;  %v7585_v47 = vshll.u32 %v13759_v13, %v7583_v35  ;;  %v7588_v12 = vsub.s32 4294967266, %v7583_v35  ;;  %v7276_v63 = vmul.f32 32.87073, %v7275_v7 }
 0x463   :  { %v7774_v28 = vor.u32 %v7773_v2, %v7772_v10  ;;  %vm7777_vm7 = vcmp.lt.s32.totalorder %v13768_v34, 3  ;;  %vm7778_vm8 = vcmp.lt.s32.totalorder %v13768_v34, 4  ;;  %v7779_v1 = vsel %vm7775_vm13, %v7759_v55, %v7762_v15 }
 0x464   :  { %v7586_v40 = vshrl.u32 %v7568_v39, %v7584_v46  ;;  %v7589_v58 = vadd.s32 127, %v7588_v12  ;;  %v7780_v20 = vsel %vm7778_vm8, %v7768_v11, 2102212464  ;;  %v9561_v59 = vpop.eup %9560  ;;  %v7277_v13 = vmul.f32 %v7276_v63, %v13277_v24 }
 0x465   :  { %v7781_v19 = vsel %vm7777_vm7, %v7765_v17, %v7780_v20  ;;  %v7783_v53 = vsel %vm7775_vm13, %v7762_v15, %v7765_v17  ;;  %v7784_v30 = vsel %vm7778_vm8, %v7771_v60, 920167782  ;;  %v9563_v39 = vpop.eup %9562  ;;  %v7382_v3 = vxor.u32 2147483648, %v9561_v59 }
 0x466   :  { %v7587_v52 = vor.u32 %v7586_v40, %v7585_v47  ;;  %v7590_v48 = vshll.u32 %v7589_v58, 23  ;;  %v7782_v6 = vsel %vm7776_vm6, %v7779_v1, %v7781_v19  ;;  %7279 = vst [vmem:[#allocation5 + $0x110] sm:$0xff] %v7277_v13  ;;  %v7379_v49 = vxor.u32 2147483648, %v9563_v39 }
 0x467   :  { %v7785_v55 = vsel %vm7777_vm7, %v7768_v11, %v7784_v30  ;;  %v7787_v43 = vsel %vm7775_vm13, %v7765_v17, %v7768_v11  ;;  %v7788_v57 = vsel %vm7778_vm8, %v7774_v28, 1326507024  ;;  %v7383_v5 = vsel %vm7381_vm14, %v7382_v3, %v9563_v39 }
 0x468   :  { %v7487_v50 = vsel %vm7485_vm15, %v7382_v3, %v9563_v39  ;;  %v7591_v37 = vor.u32 4788187, %v7590_v48  ;;  %v7594_v32 = vcvt.s32.f32 %v7587_v52  ;;  %v7380_v62 = vsel %vm7378_vm0, %v9561_v59, %v7379_v49 }
 0x469   :  { %v7484_v15 = vsel %vm7482_vm1, %v9561_v59, %v7379_v49  ;;  %v7786_v0 = vsel %vm7776_vm6, %v7783_v53, %v7785_v55  ;;  %v7789_v9 = vsel %vm7777_vm7, %v7771_v60, %v7788_v57  ;;  %v7384_v17 = vsel %vm7377_vm2, %v7380_v62, %v7383_v5 }
 0x46a   :  { %v7488_v11 = vsel %vm7481_vm3, %v7484_v15, %v7487_v50  ;;  %v7592_v10 = vand.u32 2147483647, %v7591_v37  ;;  %v7790_v7 = vsel %vm7776_vm6, %v7787_v43, %v7789_v9  ;;  %v7385_v35 = vsel %vm7374_vm4, nan, %v7384_v17 }
 0x46b   :  { %v7489_v2 = vsel %vm7374_vm4, nan, %v7488_v11  ;;  %v13851_v46 = vmul.u32.u64.low %v13780_v16, %v7790_v7  ;;  %v13852_v47 = vmul.u32.u64.high %v13780_v16, %v7790_v7, %v13851_v46  ;;  %v7386_v42 = vmul.f32 %v7385_v35, %v13773_v36 }
 0x46c   :  { %v7595_v60 = vmul.f32 %v7594_v32, %v7592_v10  ;;  %v13856_v14 = vmul.u32.u64.low %v13780_v16, %v7786_v0  ;;  %v13857_v12 = vmul.u32.u64.high %v13780_v16, %v7786_v0, %v13856_v14  ;;  %vm13861_vm9 = vcmp.le.f32.partialorder %v7512_v44, 0.7853982 }
 0x46d   :  { %v7978_v54 = vshrl.u32 %v7977_v61, 23  ;;  %v7490_v63 = vsub.f32 %v7386_v42, %v7489_v2  ;;  %v7492_v28 = vmul.f32 3.0, %v13773_v36  ;;  %v7601_v58 = vsel %vm13861_vm9, 0, %v13784_v41 }
 0x46e   :  { %v7596_v40 = vxor.u32 2147483648, %v7595_v60  ;;  %v13872_v1 = vmul.f32 5.0, %v12444_v22  ;;  %v7798_v20 = vmul.u32 %v13780_v16, %v7782_v6  ;;  %vm7800_vm10 = vc.u32 %v13852_v47, %v13856_v14 }
 0x46f   :  { %v9199_v44 = vadd.s32 4294967169, %v7978_v54  ;;  %v13878_v59 = vmul.f32 %v13751_v26, %v13168_v31  ;;  %v7491_v61 = vmul.f32 %v7490_v63, %v13773_v36  ;;  %v7801_v19 = vadd.s32 1, %v13857_v12 }
 0x470   :  { %v7597_v13 = vsel %vm7514_vm11, %v7596_v40, %v7595_v60  ;;  %v7495_v41 = vmul.f32 5.0, %v13773_v36  ;;  %v7605_v16 = vadd.s32 3, %v7601_v58  ;;  %v7974_v26 = vand.u32 2147483647, %v13765_v33 }
 0x471   :  { %v7600_v22 = vsel %vm13861_vm9, %v13552_v51, %v7597_v13  ;;  %v7984_v53 = vadd.s32 1, %v9199_v44  ;;  %v7493_v30 = vmul.f32 %v7492_v28, %v7491_v61  ;;  %v7802_v31 = vsel %vm7800_vm10, %v7801_v19, %v13857_v12 }
 0x472   :  { %9564 = vcosq.f32 %v7600_v22  ;;  %v7803_v39 = vadd.s32 %v7802_v31, %v7798_v20  ;;  %v170_v3 = vsub.f32 %v13878_v59, %v13872_v1  ;;  %v13892_v48 = vand.u32 3, %v7601_v58 }
 0x473   :  { %9566 = vsinq.f32 %v7600_v22  ;;  %vm7985_vm12 = vcmp.gt.s32.totalorder %v7984_v53, 0  ;;  %v7494_v52 = vsub.f32 %v7493_v30, %v7386_v42  ;;  %v13895_v49 = vmul.f32 0.095121816, %v9782_v56 }
 0x474   :  { %v7986_v6 = vsel %vm7985_vm12, %v7984_v53, 0  ;;  %v13897_v55 = vand.u32 3, %v7605_v16  ;;  %v7804_v43 = vadd.s32 536870912, %v7803_v39  ;;  %v7498_v50 = vmul.f32 7.0, %v13773_v36 }
 0x475   :  { %v7988_v57 = vand.u32 31, %v7986_v6  ;;  %v7496_v5 = vmul.f32 %v7495_v41, %v7494_v52  ;;  %v7501_v37 = vmul.f32 9.0, %v13773_v36  ;;  %v7981_v32 = vand.u32 8388607, %v7974_v26 }
 0x476   :  { %v13904_v62 = vmul.f32 3.0, %v13895_v49  ;;  %v13907_v15 = vmul.f32 5.0, %v13895_v49  ;;  %v13909_v0 = vshrl.u32 %v7804_v43, 30  ;;  %vm7712_vm11 = vcmp.eq.s32.totalorder %v13892_v48, 0 }
 0x477   :  { %v7989_v9 = vsub.s32 32, %v7988_v57  ;;  %v7497_v17 = vsub.f32 %v7496_v5, %v7491_v61  ;;  %vm7715_vm13 = vcmp.eq.s32.totalorder %v13892_v48, 2  ;;  %v13914_v11 = vmul.f32 20.983463, %v9664_v4 }
 0x478   :  { %vm7607_vm14 = vcmp.lt.s32.totalorder %v13897_v55, 2  ;;  %vm7608_vm15 = vcmp.eq.s32.totalorder %v13897_v55, 0  ;;  %vm7611_vm0 = vcmp.eq.s32.totalorder %v13897_v55, 2  ;;  %vm7711_vm1 = vcmp.lt.s32.totalorder %v13892_v48, 2 }
 0x479   :  { %v13921_v36 = vadd.s32 %v13856_v14, %v13852_v47  ;;  %v7806_v10 = vshll.u32 %v13909_v0, 30  ;;  %v7499_v7 = vmul.f32 %v7498_v50, %v7497_v17  ;;  %vm7604_vm2 = vweird.f32 %v13552_v51 }
 0x47a   :  { %v7982_v35 = vor.u32 8388608, %v7981_v32  ;;  %v7991_v2 = vshll.u32 %v9636_v21, %v7988_v57  ;;  %v7994_v46 = vshll.u32 %v9637_v23, %v7988_v57  ;;  %v7992_v60 = vshrl.u32 %v9637_v23, %v7989_v9 }
 0x47b   :  { %v13927_v42 = vsub.s32 %v7803_v39, %v7806_v10  ;;  %v7995_v12 = vshrl.u32 %v9638_v25, %v7989_v9  ;;  %v7997_v34 = vshll.u32 %v9638_v25, %v7988_v57  ;;  %v7500_v47 = vsub.f32 %v7499_v7, %v7494_v52 }
 0x47c   :  { %v7998_v14 = vshrl.u32 %v9639_v27, %v7989_v9  ;;  %v8000_v54 = vshll.u32 %v9639_v27, %v7988_v57  ;;  %v8001_v63 = vshrl.u32 %v9640_v29, %v7989_v9  ;;  %v7987_v40 = vshrl.u32 %v7986_v6, 5 }
 0x47d   :  { %v7809_v28 = vsub.s32 0, %v13927_v42  ;;  %v8003_v58 = vshll.u32 %v9640_v29, %v7988_v57  ;;  %v8004_v20 = vshrl.u32 %v9641_v38, %v7989_v9  ;;  %v7502_v44 = vmul.f32 %v7501_v37, %v7500_v47 }
 0x47e   :  { %v7829_v61 = vsub.s32 4, %v13909_v0  ;;  %v13939_v13 = vshll.u32 %v7982_v35, 8  ;;  %v8208_v19 = vand.u32 2139095040, %v13914_v11  ;;  %v7990_v16 = vshrl.u32 %v9636_v21, %v7989_v9 }
 0x47f   :  { %v9565_v41 = vpop.eup %9564  ;;  %v9192_v22 = vmin.u32 %v7809_v28, %v13927_v42  ;;  %v7993_v53 = vor.u32 %v7992_v60, %v7991_v2  ;;  %v7996_v30 = vor.u32 %v7995_v12, %v7994_v46  ;;  %v7503_v39 = vsub.f32 %v7502_v44, %v7497_v17 }
 0x480   :  { %v9567_v31 = vpop.eup %9566  ;;  %v7612_v52 = vxor.u32 2147483648, %v9565_v41  ;;  %v7999_v6 = vor.u32 %v7998_v14, %v7997_v34  ;;  %v8002_v43 = vor.u32 %v8001_v63, %v8000_v54  ;;  %v8005_v50 = vor.u32 %v8004_v20, %v8003_v58 }
 0x481   :  { %v7609_v57 = vxor.u32 2147483648, %v9567_v31  ;;  %v7811_v5 = vclz %v9192_v22  ;;  %vm8006_vm3 = vcmp.lt.s32.totalorder %v7987_v40, 1  ;;  %v7504_v37 = vmul.f32 37.366684, %v7503_v39 }
 0x482   :  { %v7613_v32 = vsel %vm7611_vm0, %v7612_v52, %v9567_v31  ;;  %v7717_v10 = vsel %vm7715_vm13, %v7612_v52, %v9567_v31  ;;  %vm8007_vm4 = vcmp.lt.s32.totalorder %v7987_v40, 2  ;;  %vm8008_vm5 = vcmp.lt.s32.totalorder %v7987_v40, 3 }
 0x483   :  { %v7610_v9 = vsel %vm7608_vm15, %v9565_v41, %v7609_v57  ;;  %v7714_v17 = vsel %vm7712_vm11, %v9565_v41, %v7609_v57  ;;  %v9193_v7 = vadd.s32 4294967294, %v7811_v5  ;;  %v7505_v35 = vmul.f32 %v7504_v37, %v13277_v24 }
 0x484   :  { %v7614_v2 = vsel %vm7607_vm14, %v7610_v9, %v7613_v32  ;;  %v7718_v46 = vsel %vm7711_vm1, %v7714_v17, %v7717_v10  ;;  %vm8009_vm6 = vcmp.lt.s32.totalorder %v7987_v40, 4  ;;  %v8010_v55 = vsel %vm8006_vm3, %v7990_v16, %v7993_v53 }
 0x485   :  { %v7615_v60 = vsel %vm7604_vm2, nan, %v7614_v2  ;;  %v7719_v12 = vsel %vm7604_vm2, nan, %v7718_v46  ;;  %vm9194_vm7 = vcmp.lt.s32.totalorder %v9193_v7, 0  ;;  %v8011_v34 = vsel %vm8009_vm6, %v7999_v6, 2102212464  ;;  %7507 = vst [vmem:[#allocation5 + $0x118] sm:$0xff] %v7505_v35 }
 0x486   :  { %v7616_v47 = vmul.f32 %v7615_v60, %v13895_v49  ;;  %v7814_v24 = vsel %vm9194_vm7, 0, %v9193_v7  ;;  %v8012_v14 = vsel %vm8008_vm5, %v7996_v30, %v8011_v34  ;;  %v8014_v28 = vsel %vm8006_vm3, %v7993_v53, %v7996_v30 }
 0x487   :  { %v7815_v48 = vsub.s32 32, %v7814_v24  ;;  %v7816_v54 = vshll.u32 %v13927_v42, %v7814_v24  ;;  %v7819_v63 = vsub.s32 4294967266, %v7814_v24  ;;  %v8015_v51 = vsel %vm8009_vm6, %v8002_v43, 920167782 }
 0x488   :  { %v7720_v58 = vsub.f32 %v7616_v47, %v7719_v12  ;;  %v8018_v20 = vsel %vm8006_vm3, %v7996_v30, %v7999_v6  ;;  %v8019_v44 = vsel %vm8009_vm6, %v8005_v50, 1326507024  ;;  %v8016_v16 = vsel %vm8008_vm5, %v7999_v6, %v8015_v51 }
 0x489   :  { %v7817_v41 = vshrl.u32 %v13921_v36, %v7815_v48  ;;  %v7820_v22 = vadd.s32 127, %v7819_v63  ;;  %v8020_v31 = vsel %vm8008_vm5, %v8002_v43, %v8019_v44  ;;  %v8013_v42 = vsel %vm8007_vm4, %v8010_v55, %v8012_v14 }
 0x48a   :  { %v7721_v39 = vmul.f32 %v7720_v58, %v13895_v49  ;;  %v8017_v53 = vsel %vm8007_vm4, %v8014_v28, %v8016_v16  ;;  %v8021_v52 = vsel %vm8007_vm4, %v8018_v20, %v8020_v31  ;;  %v8209_v43 = vshrl.u32 %v8208_v19, 23 }
 0x48b   :  { %v7818_v57 = vor.u32 %v7817_v41, %v7816_v54  ;;  %v7821_v5 = vshll.u32 %v7820_v22, 23  ;;  %v13978_v30 = vmul.u32.u64.low %v13939_v13, %v8021_v52  ;;  %v13979_v50 = vmul.u32.u64.high %v13939_v13, %v8021_v52, %v13978_v30 }
 0x48c   :  { %v7723_v36 = vmul.f32 %v13904_v62, %v7721_v39  ;;  %v13983_v6 = vmul.u32.u64.low %v13939_v13, %v8017_v53  ;;  %v13984_v37 = vmul.u32.u64.high %v13939_v13, %v8017_v53, %v13983_v6  ;;  %v171_v32 = vmul.f32 0.16666667, %v170_v3 }
 0x48d   :  { %vm7745_vm8 = vcmp.lt.s32.totalorder %v13703_v45, 0  ;;  %v7822_v40 = vor.u32 4788187, %v7821_v5  ;;  %v7825_v10 = vcvt.s32.f32 %v7818_v57  ;;  %v9207_v17 = vadd.s32 4294967169, %v8209_v43 }
 0x48e   :  { %v7724_v9 = vsub.f32 %v7723_v36, %v7616_v47  ;;  %v7830_v62 = vsel %vm7745_vm8, %v7829_v61, %v13909_v0  ;;  %v7728_v7 = vmul.f32 7.0, %v13895_v49  ;;  %v8029_v19 = vmul.u32 %v13939_v13, %v8013_v42 }
 0x48f   :  { %v7823_v35 = vand.u32 2147483647, %v7822_v40  ;;  %vm8031_vm9 = vc.u32 %v13979_v50, %v13983_v6  ;;  %vm14003_vm10 = vcmp.le.f32.partialorder %v7743_v8, 0.7853982  ;;  %v8032_v3 = vadd.s32 1, %v13984_v37 }
 0x490   :  { %v7726_v1 = vmul.f32 %v13907_v15, %v7724_v9  ;;  %v8215_v0 = vadd.s32 1, %v9207_v17  ;;  %v7508_v61 = vmul.f32 1.0171072, %v171_v32  ;;  %v7832_v46 = vsel %vm14003_vm10, 0, %v7830_v62 }
 0x491   :  { %v7826_v2 = vmul.f32 %v7825_v10, %v7823_v35  ;;  %v7731_v60 = vmul.f32 9.0, %v13895_v49  ;;  %v8033_v12 = vsel %vm8031_vm9, %v8032_v3, %v13984_v37  ;;  %v8205_v8 = vand.u32 2147483647, %v13914_v11 }
 0x492   :  { %v7727_v13 = vsub.f32 %v7726_v1, %v7721_v39  ;;  %vm8216_vm12 = vcmp.gt.s32.totalorder %v8215_v0, 0  ;;  %v8034_v34 = vadd.s32 %v8033_v12, %v8029_v19  ;;  %v14014_v55 = vmul.f32 0.070385896, %v9782_v56 }
 0x493   :  { %v7827_v15 = vxor.u32 2147483648, %v7826_v2  ;;  %v8217_v47 = vsel %vm8216_vm12, %v8215_v0, 0  ;;  %v7836_v14 = vadd.s32 3, %v7832_v46  ;;  %v14017_v54 = vmul.f32 %v7508_v61, %v9819_v18 }
 0x494   :  { %v7729_v24 = vmul.f32 %v7728_v7, %v7727_v13  ;;  %v8219_v48 = vand.u32 31, %v8217_v47  ;;  %v7734_v63 = vmul.f32 11.0, %v13895_v49  ;;  %v8035_v58 = vadd.s32 536870912, %v8034_v34 }
 0x495   :  { %v7828_v28 = vsel %vm7745_vm8, %v7827_v15, %v7826_v2  ;;  %v14026_v44 = vmul.f32 3.0, %v14014_v55  ;;  %v14029_v22 = vmul.f32 5.0, %v14014_v55  ;;  %v8212_v49 = vand.u32 8388607, %v8205_v8 }
 0x496   :  { %v7730_v51 = vsub.f32 %v7729_v24, %v7724_v9  ;;  %v7831_v20 = vsel %vm14003_vm10, %v13703_v45, %v7828_v28  ;;  %v8220_v41 = vsub.s32 32, %v8219_v48  ;;  %v14031_v18 = vshrl.u32 %v8035_v58, 30 }
 0x497   :  { %9568 = vcosq.f32 %v7831_v20  ;;  %v14035_v31 = vand.u32 3, %v7836_v14  ;;  %v14037_v39 = vand.u32 3, %v7832_v46  ;;  %v8222_v53 = vshll.u32 %v9636_v21, %v8219_v48 }
 0x498   :  { %v7732_v16 = vmul.f32 %v7731_v60, %v7730_v51  ;;  %9570 = vsinq.f32 %v7831_v20  ;;  %v8037_v42 = vshll.u32 %v14031_v18, 30  ;;  %v8225_v52 = vshll.u32 %v9637_v23, %v8219_v48 }
 0x499   :  { %v14043_v57 = vmul.f32 24.262768, %v9664_v4  ;;  %v8223_v30 = vshrl.u32 %v9637_v23, %v8220_v41  ;;  %v8226_v36 = vshrl.u32 %v9638_v25, %v8220_v41  ;;  %v8228_v37 = vshll.u32 %v9638_v25, %v8219_v48 }
 0x49a   :  { %v7733_v5 = vsub.f32 %v7732_v16, %v7727_v13  ;;  %v14048_v43 = vsub.s32 %v8034_v34, %v8037_v42  ;;  %v8229_v32 = vshrl.u32 %v9639_v27, %v8220_v41  ;;  %v8231_v40 = vshll.u32 %v9639_v27, %v8219_v48 }
 0x49b   :  { %v8232_v10 = vshrl.u32 %v9640_v29, %v8220_v41  ;;  %vm7946_vm11 = vcmp.eq.s32.totalorder %v14037_v39, 2  ;;  %v14054_v62 = vshrl.u32 %v8217_v47, 5  ;;  %v8234_v17 = vshll.u32 %v9640_v29, %v8219_v48 }
 0x49c   :  { %v7735_v9 = vmul.f32 %v7734_v63, %v7733_v5  ;;  %vm7839_vm13 = vcmp.eq.s32.totalorder %v14035_v31, 0  ;;  %vm7842_vm14 = vcmp.eq.s32.totalorder %v14035_v31, 2  ;;  %vm7943_vm15 = vcmp.eq.s32.totalorder %v14037_v39, 0 }
 0x49d   :  { %v8040_v7 = vsub.s32 0, %v14048_v43  ;;  %v8213_v35 = vor.u32 8388608, %v8212_v49  ;;  %v8235_v19 = vshrl.u32 %v9641_v38, %v8220_v41  ;;  %vm7838_vm0 = vcmp.lt.s32.totalorder %v14035_v31, 2 }
 0x49e   :  { %v7736_v1 = vsub.f32 %v7735_v9, %v7730_v51  ;;  %vm7942_vm1 = vcmp.lt.s32.totalorder %v14037_v39, 2  ;;  %v8221_v59 = vshrl.u32 %v9636_v21, %v8220_v41  ;;  %v8224_v3 = vor.u32 %v8223_v30, %v8222_v53 }
 0x49f   :  { %v8439_v0 = vand.u32 2139095040, %v14043_v57  ;;  %vm7835_vm2 = vweird.f32 %v13703_v45  ;;  %v9200_v61 = vmin.u32 %v8040_v7, %v14048_v43  ;;  %v8227_v2 = vor.u32 %v8226_v36, %v8225_v52 }
 0x4a0   :  { %v8230_v46 = vor.u32 %v8229_v32, %v8228_v37  ;;  %v8233_v13 = vor.u32 %v8232_v10, %v8231_v40  ;;  %v7737_v60 = vmul.f32 16.685759, %v7736_v1  ;;  %v8236_v12 = vor.u32 %v8235_v19, %v8234_v17 }
 0x4a1   :  { %vm8237_vm3 = vcmp.lt.s32.totalorder %v14054_v62, 1  ;;  %vm8240_vm4 = vcmp.lt.s32.totalorder %v14054_v62, 4  ;;  %v8030_v15 = vadd.s32 %v13983_v6, %v13979_v50  ;;  %v8042_v34 = vclz %v9200_v61 }
 0x4a2   :  { %v14072_v47 = vshll.u32 %v8213_v35, 8  ;;  %v8436_v24 = vand.u32 2147483647, %v14043_v57  ;;  %v7738_v14 = vmul.f32 %v7737_v60, %v14017_v54  ;;  %v8060_v48 = vsub.s32 4, %v14031_v18 }
 0x4a3   :  { %vm8239_vm5 = vcmp.lt.s32.totalorder %v14054_v62, 3  ;;  %v8242_v63 = vsel %vm8240_vm4, %v8230_v46, 2102212464  ;;  %v9201_v28 = vadd.s32 4294967294, %v8042_v34  ;;  %vm8238_vm6 = vcmp.lt.s32.totalorder %v14054_v62, 2 }
 0x4a4   :  { %v8246_v50 = vsel %vm8240_vm4, %v8233_v13, 920167782  ;;  %v8249_v6 = vsel %vm8237_vm3, %v8227_v2, %v8230_v46  ;;  %v9569_v58 = vpop.eup %9568  ;;  %7740 = vst [vmem:[#allocation5 + $0x120] sm:$0xff] %v7738_v14  ;;  %v8241_v51 = vsel %vm8237_vm3, %v8221_v59, %v8224_v3  ;;  %v8245_v20 = vsel %vm8237_vm3, %v8224_v3, %v8227_v2 }
 0x4a5   :  { %v8250_v41 = vsel %vm8240_vm4, %v8236_v12, 1326507024  ;;  %v8440_v49 = vshrl.u32 %v8439_v0, 23  ;;  %v9571_v16 = vpop.eup %9570  ;;  %v7843_v42 = vxor.u32 2147483648, %v9569_v58  ;;  %vm9202_vm7 = vcmp.lt.s32.totalorder %v9201_v28, 0 }
 0x4a6   :  { %v8243_v53 = vsel %vm8239_vm5, %v8227_v2, %v8242_v63  ;;  %v8251_v52 = vsel %vm8239_vm5, %v8233_v13, %v8250_v41  ;;  %v7840_v5 = vxor.u32 2147483648, %v9571_v16  ;;  %v8045_v30 = vsel %vm9202_vm7, 0, %v9201_v28 }
 0x4a7   :  { %v8247_v36 = vsel %vm8239_vm5, %v8230_v46, %v8246_v50  ;;  %v8252_v37 = vsel %vm8238_vm6, %v8249_v6, %v8251_v52  ;;  %v7844_v32 = vsel %vm7842_vm14, %v7843_v42, %v9571_v16  ;;  %v7948_v40 = vsel %vm7946_vm11, %v7843_v42, %v9571_v16 }
 0x4a8   :  { %v8046_v10 = vsub.s32 32, %v8045_v30  ;;  %v8047_v9 = vshll.u32 %v14048_v43, %v8045_v30  ;;  %v7841_v17 = vsel %vm7839_vm13, %v9569_v58, %v7840_v5  ;;  %v7945_v7 = vsel %vm7943_vm15, %v9569_v58, %v7840_v5 }
 0x4a9   :  { %v8050_v35 = vsub.s32 4294967266, %v8045_v30  ;;  %v9215_v19 = vadd.s32 4294967169, %v8440_v49  ;;  %v7845_v1 = vsel %vm7838_vm0, %v7841_v17, %v7844_v32  ;;  %v7949_v59 = vsel %vm7942_vm1, %v7945_v7, %v7948_v40 }
 0x4aa   :  { %v8048_v3 = vshrl.u32 %v8030_v15, %v8046_v10  ;;  %v8248_v0 = vsel %vm8238_vm6, %v8245_v20, %v8247_v36  ;;  %v7846_v43 = vsel %vm7835_vm2, nan, %v7845_v1  ;;  %v7950_v61 = vsel %vm7835_vm2, nan, %v7949_v59 }
 0x4ab   :  { %v8051_v2 = vadd.s32 127, %v8050_v35  ;;  %v8446_v46 = vadd.s32 1, %v9215_v19  ;;  %v7847_v13 = vmul.f32 %v7846_v43, %v14014_v55  ;;  %v8244_v15 = vsel %vm8238_vm6, %v8241_v51, %v8243_v53 }
 0x4ac   :  { %v8049_v60 = vor.u32 %v8048_v3, %v8047_v9  ;;  %v14120_v31 = vmul.u32.u64.low %v14072_v47, %v8252_v37  ;;  %v14121_v12 = vmul.u32.u64.high %v14072_v47, %v8252_v37, %v14120_v31  ;;  %v7959_v63 = vmul.f32 7.0, %v14014_v55 }
 0x4ad   :  { %v8052_v39 = vshll.u32 %v8051_v2, 23  ;;  %v14126_v34 = vmul.u32.u64.low %v14072_v47, %v8248_v0  ;;  %v14127_v14 = vmul.u32.u64.high %v14072_v47, %v8248_v0, %v14126_v34  ;;  %v7951_v45 = vsub.f32 %v7847_v13, %v7950_v61 }
 0x4ae   :  { %vm7976_vm8 = vcmp.lt.s32.totalorder %v13765_v33, 0  ;;  %vm8447_vm9 = vcmp.gt.s32.totalorder %v8446_v46, 0  ;;  %v8056_v50 = vcvt.s32.f32 %v8049_v60  ;;  %v8260_v51 = vmul.u32 %v14072_v47, %v8244_v15 }
 0x4af   :  { %v8053_v28 = vor.u32 4788187, %v8052_v39  ;;  %v8061_v6 = vsel %vm7976_vm8, %v8060_v48, %v14031_v18  ;;  %v8448_v58 = vsel %vm8447_vm9, %v8446_v46, 0  ;;  %v7952_v62 = vmul.f32 %v7951_v45, %v14014_v55 }
 0x4b0   :  { %vm8262_vm10 = vc.u32 %v14121_v12, %v14126_v34  ;;  %v8443_v20 = vand.u32 8388607, %v8436_v24  ;;  %v8263_v49 = vadd.s32 1, %v14127_v14  ;;  %v14142_v16 = vshrl.u32 %v8448_v58, 5 }
 0x4b1   :  { %v8054_v41 = vand.u32 2147483647, %v8053_v28  ;;  %v8450_v42 = vand.u32 31, %v8448_v58  ;;  %v7954_v53 = vmul.f32 %v14026_v44, %v7952_v62  ;;  %v7962_v18 = vmul.f32 9.0, %v14014_v55 }
 0x4b2   :  { %v14147_v48 = vmul.f32 11.0, %v14014_v55  ;;  %vm14151_vm12 = vcmp.le.f32.partialorder %v7974_v26, 0.7853982  ;;  %v8264_v30 = vsel %vm8262_vm10, %v8263_v49, %v14127_v14  ;;  %v8444_v32 = vor.u32 8388608, %v8443_v20 }
 0x4b3   :  { %v8057_v52 = vmul.f32 %v8056_v50, %v8054_v41  ;;  %v8063_v5 = vsel %vm14151_vm12, 0, %v8061_v6  ;;  %v8451_v36 = vsub.s32 32, %v8450_v42  ;;  %v7955_v37 = vsub.f32 %v7954_v53, %v7847_v13 }
 0x4b4   :  { %v8265_v44 = vadd.s32 %v8264_v30, %v8260_v51  ;;  %v8453_v40 = vshll.u32 %v9636_v21, %v8450_v42  ;;  %v8456_v26 = vshll.u32 %v9637_v23, %v8450_v42  ;;  %vm8468_vm11 = vcmp.lt.s32.totalorder %v14142_v16, 1 }
 0x4b5   :  { %v8058_v55 = vxor.u32 2147483648, %v8057_v52  ;;  %v8454_v10 = vshrl.u32 %v9637_v23, %v8451_v36  ;;  %v7957_v9 = vmul.f32 %v14029_v22, %v7955_v37  ;;  %v8457_v7 = vshrl.u32 %v9638_v25, %v8451_v36 }
 0x4b6   :  { %v8266_v17 = vadd.s32 536870912, %v8265_v44  ;;  %v8462_v35 = vshll.u32 %v9639_v27, %v8450_v42  ;;  %v8459_v1 = vshll.u32 %v9638_v25, %v8450_v42  ;;  %v8460_v59 = vshrl.u32 %v9639_v27, %v8451_v36 }
 0x4b7   :  { %v8059_v19 = vsel %vm7976_vm8, %v8058_v55, %v8057_v52  ;;  %v8463_v3 = vshrl.u32 %v9640_v29, %v8451_v36  ;;  %v7958_v0 = vsub.f32 %v7957_v9, %v7952_v62  ;;  %v8455_v61 = vor.u32 %v8454_v10, %v8453_v40 }
 0x4b8   :  { %v8062_v43 = vsel %vm14151_vm12, %v13765_v33, %v8059_v19  ;;  %v14173_v22 = vshrl.u32 %v8266_v17, 30  ;;  %v8465_v46 = vshll.u32 %v9640_v29, %v8450_v42  ;;  %v8466_v13 = vshrl.u32 %v9641_v38, %v8451_v36 }
 0x4b9   :  { %9572 = vcosq.f32 %v8062_v43  ;;  %v8464_v2 = vor.u32 %v8463_v3, %v8462_v35  ;;  %v7960_v60 = vmul.f32 %v7959_v63, %v7958_v0  ;;  %v8458_v39 = vor.u32 %v8457_v7, %v8456_v26 }
 0x4ba   :  { %9574 = vsinq.f32 %v8062_v43  ;;  %v8268_v31 = vshll.u32 %v14173_v22, 30  ;;  %v8452_v15 = vshrl.u32 %v9636_v21, %v8451_v36  ;;  %v8461_v14 = vor.u32 %v8460_v59, %v8459_v1 }
 0x4bb   :  { %v8467_v45 = vor.u32 %v8466_v13, %v8465_v46  ;;  %vm8471_vm13 = vcmp.lt.s32.totalorder %v14142_v16, 4  ;;  %v7961_v28 = vsub.f32 %v7960_v60, %v7955_v37  ;;  %v14181_v50 = vmul.f32 0.056663726, %v9782_v56 }
 0x4bc   :  { %v14183_v6 = vsub.s32 %v8265_v44, %v8268_v31  ;;  %vm8470_vm14 = vcmp.lt.s32.totalorder %v14142_v16, 3  ;;  %v8067_v58 = vadd.s32 3, %v8063_v5  ;;  %v8172_v63 = vand.u32 3, %v8063_v5 }
 0x4bd   :  { %v8473_v62 = vsel %vm8471_vm13, %v8461_v14, 2102212464  ;;  %v8477_v51 = vsel %vm8471_vm13, %v8464_v2, 920167782  ;;  %v7963_v20 = vmul.f32 %v7962_v18, %v7961_v28  ;;  %vm8469_vm15 = vcmp.lt.s32.totalorder %v14142_v16, 2 }
 0x4be   :  { %v8271_v41 = vsub.s32 0, %v14183_v6  ;;  %v8476_v49 = vsel %vm8468_vm11, %v8455_v61, %v8458_v39  ;;  %v8472_v42 = vsel %vm8468_vm11, %v8452_v15, %v8455_v61  ;;  %v8478_v53 = vsel %vm8470_vm14, %v8461_v14, %v8477_v51 }
 0x4bf   :  { %v8481_v47 = vsel %vm8471_vm13, %v8467_v45, 1326507024  ;;  %v8484_v52 = vshll.u32 %v8444_v32, 8  ;;  %v7964_v30 = vsub.f32 %v7963_v20, %v7958_v0  ;;  %v8474_v18 = vsel %vm8470_vm14, %v8458_v39, %v8473_v62 }
 0x4c0   :  { %v9208_v5 = vmin.u32 %v8271_v41, %v14183_v6  ;;  %v8480_v36 = vsel %vm8468_vm11, %v8458_v39, %v8461_v14  ;;  %vm8066_vm0 = vweird.f32 %v13765_v33  ;;  %v8068_v37 = vand.u32 3, %v8067_v58 }
 0x4c1   :  { %v8479_v44 = vsel %vm8469_vm15, %v8476_v49, %v8478_v53  ;;  %v8482_v40 = vsel %vm8470_vm14, %v8464_v2, %v8481_v47  ;;  %v7966_v32 = vmul.f32 %v14147_v48, %v7964_v30  ;;  %vm8173_vm1 = vcmp.lt.s32.totalorder %v8172_v63, 2 }
 0x4c2   :  { %vm8174_vm2 = vcmp.eq.s32.totalorder %v8172_v63, 0  ;;  %v8273_v55 = vclz %v9208_v5  ;;  %v8475_v10 = vsel %vm8469_vm15, %v8472_v42, %v8474_v18  ;;  %v8483_v26 = vsel %vm8469_vm15, %v8480_v36, %v8482_v40 }
 0x4c3   :  { %v14209_v9 = vmul.u32.u64.low %v8484_v52, %v8479_v44  ;;  %v14210_v17 = vmul.u32.u64.high %v8484_v52, %v8479_v44, %v14209_v9  ;;  %v7967_v7 = vsub.f32 %v7966_v32, %v7961_v28  ;;  %vm8069_vm3 = vcmp.lt.s32.totalorder %v8068_v37, 2 }
 0x4c4   :  { %v9209_v35 = vadd.s32 4294967294, %v8273_v55  ;;  %v14213_v19 = vmul.u32.u64.low %v8484_v52, %v8483_v26  ;;  %v14214_v1 = vmul.u32.u64.high %v8484_v52, %v8483_v26, %v14213_v19  ;;  %vm8070_vm4 = vcmp.eq.s32.totalorder %v8068_v37, 0 }
 0x4c5   :  { %vm8073_vm5 = vcmp.eq.s32.totalorder %v8068_v37, 2  ;;  %vm8177_vm6 = vcmp.eq.s32.totalorder %v8172_v63, 2  ;;  %v7968_v59 = vmul.f32 21.28387, %v7967_v7  ;;  %v8261_v3 = vadd.s32 %v14126_v34, %v14121_v12 }
 0x4c6   :  { %v9573_v48 = vpop.eup %9572  ;;  %vm9210_vm7 = vcmp.lt.s32.totalorder %v9209_v35, 0  ;;  %v8291_v16 = vsub.s32 4, %v14173_v22  ;;  %v8491_v2 = vmul.u32 %v8484_v52, %v8475_v10  ;;  %v8494_v46 = vadd.s32 1, %v14210_v17 }
 0x4c7   :  { %v9575_v0 = vpop.eup %9574  ;;  %v8074_v43 = vxor.u32 2147483648, %v9573_v48  ;;  %v8276_v61 = vsel %vm9210_vm7, 0, %v9209_v35  ;;  %v7969_v13 = vmul.f32 %v7968_v59, %v14017_v54  ;;  %v14225_v34 = vmul.f32 27.507868, %v9664_v4 }
 0x4c8   :  { %v8071_v60 = vxor.u32 2147483648, %v9575_v0  ;;  %v8277_v31 = vsub.s32 32, %v8276_v61  ;;  %v8278_v39 = vshll.u32 %v14183_v6, %v8276_v61  ;;  %v8281_v12 = vsub.s32 4294967266, %v8276_v61 }
 0x4c9   :  { %v8075_v15 = vsel %vm8073_vm5, %v8074_v43, %v9575_v0  ;;  %v8179_v14 = vsel %vm8177_vm6, %v8074_v43, %v9575_v0  ;;  %7971 = vst [vmem:[#allocation5 + $0x128] sm:$0xff] %v7969_v13  ;;  %vm8493_vm8 = vc.u32 %v14214_v1, %v14209_v9  ;;  %v8184_v52 = vmul.f32 3.0, %v14181_v50 }
 0x4ca   :  { %v8072_v45 = vsel %vm8070_vm4, %v9573_v48, %v8071_v60  ;;  %v8176_v28 = vsel %vm8174_vm2, %v9573_v48, %v8071_v60  ;;  %v8279_v58 = vshrl.u32 %v8261_v3, %v8277_v31  ;;  %v8282_v51 = vadd.s32 127, %v8281_v12 }
 0x4cb   :  { %v8076_v62 = vsel %vm8069_vm3, %v8072_v45, %v8075_v15  ;;  %v8180_v6 = vsel %vm8173_vm1, %v8176_v28, %v8179_v14  ;;  %v8495_v20 = vsel %vm8493_vm8, %v8494_v46, %v14210_v17  ;;  %v8670_v63 = vand.u32 2139095040, %v14225_v34 }
 0x4cc   :  { %v8077_v4 = vsel %vm8066_vm0, nan, %v8076_v62  ;;  %v8181_v41 = vsel %vm8066_vm0, nan, %v8180_v6  ;;  %v8280_v49 = vor.u32 %v8279_v58, %v8278_v39  ;;  %v8496_v42 = vadd.s32 %v8495_v20, %v8491_v2 }
 0x4cd   :  { %v8078_v53 = vmul.f32 %v8077_v4, %v14181_v50  ;;  %v8283_v47 = vshll.u32 %v8282_v51, 23  ;;  %vm8207_vm9 = vcmp.lt.s32.totalorder %v13914_v11, 0  ;;  %v8667_v44 = vand.u32 2147483647, %v14225_v34 }
 0x4ce   :  { %v8497_v30 = vadd.s32 536870912, %v8496_v42  ;;  %v8287_v36 = vcvt.s32.f32 %v8280_v49  ;;  %v8292_v33 = vsel %vm8207_vm9, %v8291_v16, %v14173_v22  ;;  %v8671_v40 = vshrl.u32 %v8670_v63, 23 }
 0x4cf   :  { %v8182_v5 = vsub.f32 %v8078_v53, %v8181_v41  ;;  %v8284_v18 = vor.u32 4788187, %v8283_v47  ;;  %vm14251_vm10 = vcmp.le.f32.partialorder %v8205_v8, 0.7853982  ;;  %v8187_v22 = vmul.f32 5.0, %v14181_v50 }
 0x4d0   :  { %v14245_v37 = vshrl.u32 %v8497_v30, 30  ;;  %v9223_v17 = vadd.s32 4294967169, %v8671_v40  ;;  %v8294_v19 = vsel %vm14251_vm10, 0, %v8292_v33  ;;  %v8674_v59 = vand.u32 8388607, %v8667_v44 }
 0x4d1   :  { %v8183_v32 = vmul.f32 %v8182_v5, %v14181_v50  ;;  %v8285_v55 = vand.u32 2147483647, %v8284_v18  ;;  %v8298_v0 = vadd.s32 3, %v8294_v19  ;;  %v8190_v2 = vmul.f32 7.0, %v14181_v50 }
 0x4d2   :  { %v8499_v26 = vshll.u32 %v14245_v37, 30  ;;  %v8677_v3 = vadd.s32 1, %v9223_v17  ;;  %v8675_v31 = vor.u32 8388608, %v8674_v59  ;;  %v8193_v14 = vmul.f32 9.0, %v14181_v50 }
 0x4d3   :  { %v8185_v7 = vmul.f32 %v8184_v52, %v8183_v32  ;;  %v8288_v35 = vmul.f32 %v8287_v36, %v8285_v55  ;;  %v14272_v12 = vand.u32 3, %v8298_v0  ;;  %v14274_v45 = vand.u32 3, %v8294_v19 }
 0x4d4   :  { %v14259_v48 = vsub.s32 %v8496_v42, %v8499_v26  ;;  %vm8678_vm12 = vcmp.gt.s32.totalorder %v8677_v3, 0  ;;  %v8196_v62 = vmul.f32 11.0, %v14181_v50  ;;  %v14278_v6 = vmul.f32 0.047656577, %v9782_v56 }
 0x4d5   :  { %v8186_v8 = vsub.f32 %v8185_v7, %v8078_v53  ;;  %v8289_v16 = vxor.u32 2147483648, %v8288_v35  ;;  %v8679_v39 = vsel %vm8678_vm12, %v8677_v3, 0  ;;  %v8492_v20 = vadd.s32 %v14209_v9, %v14214_v1 }
 0x4d6   :  { %v8502_v43 = vsub.s32 0, %v14259_v48  ;;  %v8681_v51 = vand.u32 31, %v8679_v39  ;;  %v8522_v41 = vsub.s32 4, %v14245_v37  ;;  %v14283_v49 = vshll.u32 %v8675_v31, 8 }
 0x4d7   :  { %v8188_v61 = vmul.f32 %v8187_v22, %v8186_v8  ;;  %v8290_v46 = vsel %vm8207_vm9, %v8289_v16, %v8288_v35  ;;  %v14285_v53 = vshrl.u32 %v8679_v39, 5  ;;  %vm8304_vm11 = vcmp.eq.s32.totalorder %v14272_v12, 2 }
 0x4d8   :  { %v8293_v13 = vsel %vm14251_vm10, %v13914_v11, %v8290_v46  ;;  %v9216_v60 = vmin.u32 %v8502_v43, %v14259_v48  ;;  %v8682_v47 = vsub.s32 32, %v8681_v51  ;;  %v8684_v52 = vshll.u32 %v9636_v21, %v8681_v51 }
 0x4d9   :  { %v8189_v15 = vsub.f32 %v8188_v61, %v8183_v32  ;;  %9576 = vcosq.f32 %v8293_v13  ;;  %vm8408_vm13 = vcmp.eq.s32.totalorder %v14274_v45, 2  ;;  %v8687_v50 = vshll.u32 %v9637_v23, %v8681_v51 }
 0x4da   :  { %9578 = vsinq.f32 %v8293_v13  ;;  %v8504_v28 = vclz %v9216_v60  ;;  %v8690_v9 = vshll.u32 %v9638_v25, %v8681_v51  ;;  %v8693_v1 = vshll.u32 %v9639_v27, %v8681_v51 }
 0x4db   :  { %v8191_v58 = vmul.f32 %v8190_v2, %v8189_v15  ;;  %vm8301_vm15 = vcmp.eq.s32.totalorder %v14272_v12, 0  ;;  %vm8405_vm0 = vcmp.eq.s32.totalorder %v14274_v45, 0  ;;  %v8685_v5 = vshrl.u32 %v9637_v23, %v8682_v47 }
 0x4dc   :  { %v9217_v4 = vadd.s32 4294967294, %v8504_v28  ;;  %v8696_v18 = vshll.u32 %v9640_v29, %v8681_v51  ;;  %vm8300_vm1 = vcmp.lt.s32.totalorder %v14272_v12, 2  ;;  %vm8404_vm2 = vcmp.lt.s32.totalorder %v14274_v45, 2 }
 0x4dd   :  { %v8192_v42 = vsub.f32 %v8191_v58, %v8186_v8  ;;  %v8688_v32 = vshrl.u32 %v9638_v25, %v8682_v47  ;;  %vm8297_vm3 = vweird.f32 %v13914_v11  ;;  %v8686_v10 = vor.u32 %v8685_v5, %v8684_v52 }
 0x4de   :  { %vm9218_vm14 = vcmp.lt.s32.totalorder %v9217_v4, 0  ;;  %v8691_v26 = vshrl.u32 %v9639_v27, %v8682_v47  ;;  %v8694_v23 = vshrl.u32 %v9640_v29, %v8682_v47  ;;  %v8697_v35 = vshrl.u32 %v9641_v38, %v8682_v47 }
 0x4df   :  { %v8194_v30 = vmul.f32 %v8193_v14, %v8192_v42  ;;  %v8507_v63 = vsel %vm9218_vm14, 0, %v9217_v4  ;;  %v8689_v22 = vor.u32 %v8688_v32, %v8687_v50  ;;  %vm8438_vm4 = vcmp.lt.s32.totalorder %v14043_v57, 0 }
 0x4e0   :  { %v8508_v36 = vsub.s32 32, %v8507_v63  ;;  %v8509_v33 = vshll.u32 %v14259_v48, %v8507_v63  ;;  %v8512_v40 = vsub.s32 4294967266, %v8507_v63  ;;  %v8683_v48 = vshrl.u32 %v9636_v21, %v8682_v47 }
 0x4e1   :  { %v8195_v55 = vsub.f32 %v8194_v30, %v8189_v15  ;;  %v8695_v59 = vor.u32 %v8694_v23, %v8693_v1  ;;  %vm8699_vm5 = vcmp.lt.s32.totalorder %v14285_v53, 1  ;;  %vm14310_vm6 = vcmp.le.f32.partialorder %v8436_v24, 0.7853982 }
 0x4e2   :  { %v8510_v17 = vshrl.u32 %v8492_v20, %v8508_v36  ;;  %v8513_v7 = vadd.s32 127, %v8512_v40  ;;  %v8692_v3 = vor.u32 %v8691_v26, %v8690_v9  ;;  %v8698_v8 = vor.u32 %v8697_v35, %v8696_v18 }
 0x4e3   :  { %v8197_v19 = vmul.f32 %v8196_v62, %v8195_v55  ;;  %vm8700_vm7 = vcmp.lt.s32.totalorder %v14285_v53, 2  ;;  %vm8701_vm8 = vcmp.lt.s32.totalorder %v14285_v53, 3  ;;  %vm8702_vm9 = vcmp.lt.s32.totalorder %v14285_v53, 4 }
 0x4e4   :  { %v8511_v27 = vor.u32 %v8510_v17, %v8509_v33  ;;  %v8514_v29 = vshll.u32 %v8513_v7, 23  ;;  %v8704_v24 = vsel %vm8702_vm9, %v8692_v3, 2102212464  ;;  %v8707_v43 = vsel %vm8699_vm5, %v8686_v10, %v8689_v22 }
 0x4e5   :  { %v8198_v16 = vsub.f32 %v8197_v19, %v8192_v42  ;;  %v8703_v13 = vsel %vm8699_vm5, %v8683_v48, %v8686_v10  ;;  %v8708_v60 = vsel %vm8702_vm9, %v8695_v59, 920167782  ;;  %v8705_v15 = vsel %vm8701_vm8, %v8689_v22, %v8704_v24 }
 0x4e6   :  { %v9577_v21 = vpop.eup %9576  ;;  %v8515_v38 = vor.u32 4788187, %v8514_v29  ;;  %v8518_v0 = vcvt.s32.f32 %v8511_v27  ;;  %v8709_v14 = vsel %vm8701_vm8, %v8692_v3, %v8708_v60  ;;  %v8711_v47 = vsel %vm8699_vm5, %v8689_v22, %v8692_v3 }
 0x4e7   :  { %v9579_v61 = vpop.eup %9578  ;;  %v8199_v2 = vmul.f32 25.87223, %v8198_v16  ;;  %v8305_v46 = vxor.u32 2147483648, %v9577_v21  ;;  %v8710_v51 = vsel %vm8700_vm7, %v8707_v43, %v8709_v14  ;;  %v8706_v9 = vsel %vm8700_vm7, %v8703_v13, %v8705_v15 }
 0x4e8   :  { %v8302_v31 = vxor.u32 2147483648, %v9579_v61  ;;  %v8516_v39 = vand.u32 2147483647, %v8515_v38  ;;  %v8712_v1 = vsel %vm8702_vm9, %v8698_v8, 1326507024  ;;  %v8415_v10 = vmul.f32 3.0, %v14278_v6 }
 0x4e9   :  { %v8200_v28 = vmul.f32 %v8199_v2, %v14017_v54  ;;  %v8306_v58 = vsel %vm8304_vm11, %v8305_v46, %v9579_v61  ;;  %v8410_v62 = vsel %vm8408_vm13, %v8305_v46, %v9579_v61  ;;  %v8713_v12 = vsel %vm8701_vm8, %v8695_v59, %v8712_v1 }
 0x4ea   :  { %v8303_v20 = vsel %vm8301_vm15, %v9577_v21, %v8302_v31  ;;  %v8407_v4 = vsel %vm8405_vm0, %v9577_v21, %v8302_v31  ;;  %v8519_v42 = vmul.f32 %v8518_v0, %v8516_v39  ;;  %v8714_v45 = vsel %vm8700_vm7, %v8711_v47, %v8713_v12 }
 0x4eb   :  { %8202 = vst [vmem:[#allocation5 + $0x130] sm:$0xff] %v8200_v28  ;;  %v8307_v52 = vsel %vm8300_vm1, %v8303_v20, %v8306_v58  ;;  %v8411_v50 = vsel %vm8404_vm2, %v8407_v4, %v8410_v62  ;;  %v14360_v36 = vmul.u32.u64.low %v14283_v49, %v8710_v51  ;;  %v14361_v33 = vmul.u32.u64.high %v14283_v49, %v8710_v51, %v14360_v36 }
 0x4ec   :  { %v8308_v30 = vsel %vm8297_vm3, nan, %v8307_v52  ;;  %v8412_v63 = vsel %vm8297_vm3, nan, %v8411_v50  ;;  %v8520_v5 = vxor.u32 2147483648, %v8519_v42  ;;  %v8523_v53 = vsel %vm8438_vm4, %v8522_v41, %v14245_v37 }
 0x4ed   :  { %v8309_v18 = vmul.f32 %v8308_v30, %v14278_v6  ;;  %v14367_v11 = vmul.u32.u64.low %v14283_v49, %v8714_v45  ;;  %v14368_v32 = vmul.u32.u64.high %v14283_v49, %v8714_v45, %v14367_v11  ;;  %v8722_v23 = vmul.u32 %v14283_v49, %v8706_v9 }
 0x4ee   :  { %v8521_v40 = vsel %vm8438_vm4, %v8520_v5, %v8519_v42  ;;  %v8725_v7 = vadd.s32 1, %v14361_v33  ;;  %v8525_v22 = vsel %vm14310_vm6, 0, %v8523_v53  ;;  %v8418_v37 = vmul.f32 5.0, %v14278_v6 }
 0x4ef   :  { %v8413_v55 = vsub.f32 %v8309_v18, %v8412_v63  ;;  %v8524_v26 = vsel %vm14310_vm6, %v14043_v57, %v8521_v40  ;;  %vm8724_vm10 = vc.u32 %v14368_v32, %v14360_v36  ;;  %v8529_v59 = vadd.s32 3, %v8525_v22 }
 0x4f0   :  { %9580 = vcosq.f32 %v8524_v26  ;;  %v8726_v41 = vsel %vm8724_vm10, %v8725_v7, %v14361_v33  ;;  %v8421_v29 = vmul.f32 7.0, %v14278_v6  ;;  %v8634_v16 = vand.u32 3, %v8525_v22 }
 0x4f1   :  { %v8414_v17 = vmul.f32 %v8413_v55, %v14278_v6  ;;  %9582 = vsinq.f32 %v8524_v26  ;;  %v8727_v19 = vadd.s32 %v8726_v41, %v8722_v23  ;;  %v8530_v25 = vand.u32 3, %v8529_v59 }
 0x4f2   :  { %v8424_v0 = vmul.f32 9.0, %v14278_v6  ;;  %v8427_v24 = vmul.f32 11.0, %v14278_v6  ;;  %v8435_v46 = vmul.f32 0.041215412, %v9782_v56  ;;  %vm8639_vm11 = vcmp.eq.s32.totalorder %v8634_v16, 2 }
 0x4f3   :  { %v8416_v35 = vmul.f32 %v8415_v10, %v8414_v17  ;;  %v8728_v49 = vadd.s32 536870912, %v8727_v19  ;;  %vm8535_vm12 = vcmp.eq.s32.totalorder %v8530_v25, 2  ;;  %vm8532_vm13 = vcmp.eq.s32.totalorder %v8530_v25, 0 }
 0x4f4   :  { %vm8636_vm14 = vcmp.eq.s32.totalorder %v8634_v16, 0  ;;  %vm8531_vm15 = vcmp.lt.s32.totalorder %v8530_v25, 2  ;;  %vm8635_vm0 = vcmp.lt.s32.totalorder %v8634_v16, 2  ;;  %vm8528_vm1 = vweird.f32 %v14043_v57 }
 0x4f5   :  { %v8417_v48 = vsub.f32 %v8416_v35, %v8309_v18  ;;  %v14389_v3 = vshrl.u32 %v8728_v49, 30  ;;  %v8646_v5 = vmul.f32 3.0, %v8435_v46  ;;  %v8723_v57 = vadd.s32 %v14360_v36, %v14368_v32 }
 0x4f6   :  { %v8649_v53 = vmul.f32 5.0, %v8435_v46  ;;  %v8655_v59 = vmul.f32 9.0, %v8435_v46  ;;  %vm8669_vm3 = vcmp.lt.s32.totalorder %v14225_v34, 0  ;;  %vm8668_vm4 = vcmp.le.f32.partialorder %v8667_v44, 0.7853982 }
 0x4f7   :  { %v8419_v27 = vmul.f32 %v8418_v37, %v8417_v48  ;;  %v8730_v21 = vshll.u32 %v14389_v3, 30  ;;  %v8652_v37 = vmul.f32 7.0, %v8435_v46  ;;  %v8658_v16 = vmul.f32 11.0, %v8435_v46 }
 0x4f9   :  { %v8420_v8 = vsub.f32 %v8419_v27, %v8414_v17  ;;  %v8731_v43 = vsub.s32 %v8727_v19, %v8730_v21  ;;  %v8753_v27 = vsub.s32 4, %v14389_v3 }
 0x4fb   :  { %v8422_v38 = vmul.f32 %v8421_v29, %v8420_v8  ;;  %v8733_v31 = vsub.s32 0, %v8731_v43 }
 0x4fd   :  { %v9581_v61 = vpop.eup %9580  ;;  %v8423_v2 = vsub.f32 %v8422_v38, %v8417_v48  ;;  %v9224_v28 = vmin.u32 %v8733_v31, %v8731_v43  ;;  %v8754_v38 = vsel %vm8669_vm3, %v8753_v27, %v14389_v3 }
 0x4fe   :  { %v9583_v13 = vpop.eup %9582  ;;  %v8536_v60 = vxor.u32 2147483648, %v9581_v61 }
 0x4ff   :  { %v8425_v39 = vmul.f32 %v8424_v0, %v8423_v2  ;;  %v8533_v15 = vxor.u32 2147483648, %v9583_v13  ;;  %v8735_v42 = vclz %v9224_v28 }
 0x500   :  { %v8537_v14 = vsel %vm8535_vm12, %v8536_v60, %v9583_v13  ;;  %v8641_v6 = vsel %vm8639_vm11, %v8536_v60, %v9583_v13  ;;  %vm8759_vm12 = vweird.f32 %v14225_v34 }
 0x501   :  { %v8426_v58 = vsub.f32 %v8425_v39, %v8420_v8  ;;  %v8534_v62 = vsel %vm8532_vm13, %v9581_v61, %v8533_v15  ;;  %v8638_v51 = vsel %vm8636_vm14, %v9581_v61, %v8533_v15  ;;  %v9225_v1 = vadd.s32 4294967294, %v8735_v42 }
 0x502   :  { %v8538_v20 = vsel %vm8531_vm15, %v8534_v62, %v8537_v14  ;;  %v8642_v4 = vsel %vm8635_vm0, %v8638_v51, %v8641_v6  ;;  %v8756_v61 = vsel %vm8668_vm4, 0, %v8754_v38  ;;  %v8666_v6 = vmul.f32 0.036353234, %v9782_v56 }
 0x503   :  { %v8428_v47 = vmul.f32 %v8427_v24, %v8426_v58  ;;  %v8539_v52 = vsel %vm8528_vm1, nan, %v8538_v20  ;;  %v8643_v50 = vsel %vm8528_vm1, nan, %v8642_v4  ;;  %vm9226_vm2 = vcmp.lt.s32.totalorder %v9225_v1, 0 }
 0x504   :  { %v8540_v9 = vmul.f32 %v8539_v52, %v8435_v46  ;;  %v8738_v18 = vsel %vm9226_vm2, 0, %v9225_v1  ;;  %v8760_v13 = vadd.s32 3, %v8756_v61  ;;  %v8865_v44 = vand.u32 3, %v8756_v61 }
 0x505   :  { %v8429_v30 = vsub.f32 %v8428_v47, %v8423_v2  ;;  %v8739_v33 = vsub.s32 32, %v8738_v18  ;;  %v8740_v40 = vshll.u32 %v8731_v43, %v8738_v18  ;;  %v8743_v11 = vsub.s32 4294967266, %v8738_v18 }
 0x506   :  { %v8644_v63 = vsub.f32 %v8540_v9, %v8643_v50  ;;  %v8761_v39 = vand.u32 3, %v8760_v13  ;;  %vm8870_vm6 = vcmp.eq.s32.totalorder %v8865_v44, 2  ;;  %vm8867_vm8 = vcmp.eq.s32.totalorder %v8865_v44, 0 }
 0x507   :  { %v8430_v12 = vmul.f32 30.424994, %v8429_v30  ;;  %v8741_v26 = vshrl.u32 %v8723_v57, %v8739_v33  ;;  %v8744_v23 = vadd.s32 127, %v8743_v11  ;;  %vm8866_vm10 = vcmp.lt.s32.totalorder %v8865_v44, 2 }
 0x508   :  { %v8645_v45 = vmul.f32 %v8644_v63, %v8435_v46  ;;  %vm8766_vm5 = vcmp.eq.s32.totalorder %v8761_v39, 2  ;;  %vm8763_vm7 = vcmp.eq.s32.totalorder %v8761_v39, 0  ;;  %vm8762_vm9 = vcmp.lt.s32.totalorder %v8761_v39, 2 }
 0x509   :  { %v8431_v55 = vmul.f32 %v8430_v12, %v14017_v54  ;;  %v8742_v7 = vor.u32 %v8741_v26, %v8740_v40  ;;  %v8745_v22 = vshll.u32 %v8744_v23, 23  ;;  %v8880_v63 = vmul.f32 5.0, %v8666_v6 }
 0x50a   :  { %v8647_v10 = vmul.f32 %v8646_v5, %v8645_v45  ;;  %v8883_v12 = vmul.f32 7.0, %v8666_v6  ;;  %v8889_v40 = vmul.f32 11.0, %v8666_v6 }
 0x50b   :  { %8433 = vst [vmem:[#allocation5 + $0x138] sm:$0xff] %v8431_v55  ;;  %v8746_v36 = vor.u32 4788187, %v8745_v22  ;;  %v8749_v32 = vcvt.s32.f32 %v8742_v7 }
 0x50c   :  { %v8648_v17 = vsub.f32 %v8647_v10, %v8540_v9  ;;  %v8877_v9 = vmul.f32 3.0, %v8666_v6 }
 0x50d   :  { %v8747_v19 = vand.u32 2147483647, %v8746_v36 }
 0x50e   :  { %v8650_v35 = vmul.f32 %v8649_v53, %v8648_v17 }
 0x50f   :  { %v8750_v49 = vmul.f32 %v8749_v32, %v8747_v19 }
 0x510   :  { %v8651_v41 = vsub.f32 %v8650_v35, %v8645_v45 }
 0x511   :  { %v8751_v8 = vxor.u32 2147483648, %v8750_v49 }
 0x512   :  { %v8653_v48 = vmul.f32 %v8652_v37, %v8651_v41 }
 0x513   :  { %v8752_v21 = vsel %vm8669_vm3, %v8751_v8, %v8750_v49 }
 0x514   :  { %v8654_v29 = vsub.f32 %v8653_v48, %v8648_v17  ;;  %v8755_v0 = vsel %vm8668_vm4, %v14225_v34, %v8752_v21  ;;  %v8886_v34 = vmul.f32 9.0, %v8666_v6 }
 0x515   :  { %9584 = vcosq.f32 %v8755_v0 }
 0x516   :  { %v8656_v25 = vmul.f32 %v8655_v59, %v8654_v29  ;;  %9586 = vsinq.f32 %v8755_v0 }
 0x518   :  { %v8657_v24 = vsub.f32 %v8656_v25, %v8651_v41 }
 0x51a   :  { %v8659_v43 = vmul.f32 %v8658_v16, %v8657_v24 }
 0x51c   :  { %v8660_v2 = vsub.f32 %v8659_v43, %v8654_v29 }
 0x51e   :  { %v8661_v60 = vmul.f32 34.951656, %v8660_v2 }
 0x520   :  { %v8662_v31 = vmul.f32 %v8661_v60, %v14017_v54 }
 0x522   :  { %8664 = vst [vmem:[#allocation5 + $0x140] sm:$0xff] %v8662_v31  ;;  %v9585_v15 = vpop.eup %9584 }
 0x523   :  { %v9587_v46 = vpop.eup %9586  ;;  %v8767_v3 = vxor.u32 2147483648, %v9585_v15 }
 0x524   :  { %v8764_v14 = vxor.u32 2147483648, %v9587_v46 }
 0x525   :  { %v8768_v28 = vsel %vm8766_vm5, %v8767_v3, %v9587_v46  ;;  %v8872_v58 = vsel %vm8870_vm6, %v8767_v3, %v9587_v46 }
 0x526   :  { %v8765_v62 = vsel %vm8763_vm7, %v9585_v15, %v8764_v14  ;;  %v8869_v51 = vsel %vm8867_vm8, %v9585_v15, %v8764_v14 }
 0x527   :  { %v8769_v20 = vsel %vm8762_vm9, %v8765_v62, %v8768_v28  ;;  %v8873_v4 = vsel %vm8866_vm10, %v8869_v51, %v8872_v58 }
 0x528   :  { %v8770_v42 = vsel %vm8759_vm12, nan, %v8769_v20  ;;  %v8874_v47 = vsel %vm8759_vm12, nan, %v8873_v4 }
 0x529   :  { %v8771_v52 = vmul.f32 %v8770_v42, %v8666_v6 }
 0x52b   :  { %v8875_v50 = vsub.f32 %v8771_v52, %v8874_v47 }
 0x52d   :  { %v8876_v1 = vmul.f32 %v8875_v50, %v8666_v6 }
 0x52f   :  { %v8878_v30 = vmul.f32 %v8877_v9, %v8876_v1 }
 0x531   :  { %v8879_v5 = vsub.f32 %v8878_v30, %v8771_v52 }
 0x533   :  { %v8881_v57 = vmul.f32 %v8880_v63, %v8879_v5 }
 0x535   :  { %v8882_v56 = vsub.f32 %v8881_v57, %v8876_v1 }
 0x537   :  { %v8884_v18 = vmul.f32 %v8883_v12, %v8882_v56 }
 0x539   :  { %v8885_v45 = vsub.f32 %v8884_v18, %v8879_v5 }
 0x53b   :  { %v8887_v33 = vmul.f32 %v8886_v34, %v8885_v45 }
 0x53d   :  { %v8888_v11 = vsub.f32 %v8887_v33, %v8882_v56 }
 0x53f   :  { %v8890_v55 = vmul.f32 %v8889_v40, %v8888_v11 }
 0x541   :  { %v8891_v10 = vsub.f32 %v8890_v55, %v8885_v45 }
 0x543   :  { %v8892_v53 = vmul.f32 39.460094, %v8891_v10 }
 0x545   :  { %v8893_v26 = vmul.f32 %v8892_v53, %v14017_v54 }
 0x547   :  { %8895 = vst [vmem:[#allocation5 + $0x148] sm:$0xff] %v8893_v26 }
 0x548   :  { %9620 = shalt.err (!%p9617_p9)
}
 0x549   :  { %8907 = dma.vmem_to_hbm [thread:$0]  %s8902_s13, 5376, %s14416_s1, [#allocation4], %s9634_s9, %s9634_s9, %s9635_s10  }
 0x54a   :  { %9631 = dma.done.wait [#allocation4], 5376  }
 0x54b   :  { %9632 = vsyncadd [#allocation4], 4294961920 }
 0x54c   :  { %8911 = vsyncpa [#allocation3], 1 }
 0x54d   :  { %8912 = vsyncpa [#allocation4], 1 }

</bundles_post_ra>
